<compile_context>
chip_gen: v7x
topology: tpu7x:2x2x1
jax: 0.10.0
libtpu: 0.0.40
codegen_flags: <defaults>
</compile_context>

<pallas_src>
import functools

import numpy as np
import jax
import jax.numpy as jnp
from jax.experimental import pallas as pl
from jax.experimental.pallas import tpu as pltpu

EPS = 1e-5      # PyTorch BatchNorm default eps
LANES = 128     # lane width: all activations are padded to 128 channels
PHASES = 4      # 2x2 output phases of a stride-2 transposed conv


# ----------------------------------------------------------------------------
# Shared epilogue math: bias + single-pass BatchNorm folded over the 4 phase
# blocks + activation.  Used verbatim by the Pallas kernel and the reference.
# ----------------------------------------------------------------------------
def _epilogue(y, b, g, bt, *, use_bn, act, n_phase=PHASES):
    C = b.shape[-1]
    y = y + jnp.concatenate([b] * n_phase, axis=-1)
    if use_bn:
        count = y.shape[0] * n_phase          # = N * Ho * Wo samples per channel
        s1 = jnp.sum(y, axis=0, keepdims=True)
        s2 = jnp.sum(y * y, axis=0, keepdims=True)
        s1 = sum(s1[:, k * C:(k + 1) * C] for k in range(n_phase))
        s2 = sum(s2[:, k * C:(k + 1) * C] for k in range(n_phase))
        mean = s1 / count
        var = s2 / count - mean * mean        # single-pass E[y^2] - E[y]^2
        scale = g * jax.lax.rsqrt(var + EPS)  # pad-lane gamma is 0 -> scale 0
        shift = bt - mean * scale
        y = (y * jnp.concatenate([scale] * n_phase, axis=-1)
             + jnp.concatenate([shift] * n_phase, axis=-1))
    if act == "relu":
        y = jnp.maximum(y, 0.0)
    elif act == "tanh":
        y = jnp.tanh(y)
    return y


# ----------------------------------------------------------------------------
# Fused ConvT-as-matmul + BN + activation Pallas kernel (one launch per layer)
# ----------------------------------------------------------------------------
def _make_kernel(use_bn, act):
    def kernel(p_ref, w_ref, b_ref, g_ref, bt_ref, o_ref):
        # bf16 x bf16 -> f32 on the MXU; the whole epilogue stays f32.
        y = jnp.dot(p_ref[...], w_ref[...], preferred_element_type=jnp.float32)
        y = _epilogue(y, b_ref[...], g_ref[...], bt_ref[...],
                      use_bn=use_bn, act=act)
        o_ref[...] = y.astype(o_ref.dtype)
    return kernel


def convt_layer_pallas(pat, wf, b, g, bt, *, use_bn, act, out_dtype):
    """pat: (M, 9*128) bf16, wf: (9*128, 4*128) bf16, b/g/bt: (1, 128) f32."""
    M, K = pat.shape
    Nc = wf.shape[1]
    return pl.pallas_call(
        _make_kernel(use_bn, act),
        out_shape=jax.ShapeDtypeStruct((M, Nc), out_dtype),
        grid_spec=pltpu.PrefetchScalarGridSpec(
            num_scalar_prefetch=0,
            grid=(1,),
            in_specs=[
                pl.BlockSpec((M, K), lambda i: (0, 0)),
                pl.BlockSpec((K, Nc), lambda i: (0, 0)),
                pl.BlockSpec((1, LANES), lambda i: (0, 0)),
                pl.BlockSpec((1, LANES), lambda i: (0, 0)),
                pl.BlockSpec((1, LANES), lambda i: (0, 0)),
            ],
            out_specs=pl.BlockSpec((M, Nc), lambda i: (0, 0)),
        ),
        compiler_params=pltpu.CompilerParams(
            dimension_semantics=("arbitrary",),
            vmem_limit_bytes=32 * 1024 * 1024,   # fits every generation (v7x: 64 MiB phys)
        ),
    )(pat, wf, b, g, bt)


def convt_layer_ref(pat, wf, b, g, bt, *, use_bn, act, out_dtype):
    """Pure-JAX reference with identical math (same bf16 operands)."""
    y = jnp.dot(pat, wf, preferred_element_type=jnp.float32)
    y = _epilogue(y, b, g, bt, use_bn=use_bn, act=act)
    return y.astype(out_dtype)


# ----------------------------------------------------------------------------
# Thin XLA glue between layers (polyphase taps + depth-to-space), all bf16
# ----------------------------------------------------------------------------
def _polyphase_patches(act):
    """(N, H, W, 128) -> (N*H*W, 9*128) union-of-phases tap matrix."""
    N, H, W, Cp = act.shape
    xp = jnp.pad(act, ((0, 0), (1, 1), (1, 1), (0, 0)))
    taps = [xp[:, a:a + H, b:b + W, :] for a in range(3) for b in range(3)]
    pat = jnp.concatenate(taps, axis=-1)
    return pat.reshape(N * H * W, 9 * Cp)


def _depth_to_space(y, N, H, W, Cp=LANES):
    """(N*H*W, 4*Cp) phase-blocked -> (N, 2H, 2W, Cp) NHWC."""
    y = y.reshape(N, H, W, 2, 2, Cp)
    y = jnp.transpose(y, (0, 1, 3, 2, 4, 5))
    return y.reshape(N, 2 * H, 2 * W, Cp)


# ----------------------------------------------------------------------------
# One-time parameter preparation (host-side; hoisted out of the hot path)
# ----------------------------------------------------------------------------
def _fold_convt_weight_polyphase(w):
    """(Cin, Cout, 4, 4) ConvT weight -> (9*128, 4*128) bf16 folded matrix.

    Row block (dy, dx) in {-1,0,1}^2 is the input tap offset; column block
    (py, px) in {0,1}^2 is the output phase of (oy, ox) = (2i+py, 2j+px).
    Entry = w[ci, co, ky, kx] with ky = 1 + py - 2*dy, kx = 1 + px - 2*dx when
    in [0, 3], else 0 (each phase only uses 4 of the 9 offsets).
    """
    w = np.asarray(w, np.float32)
    Cin, Cout = w.shape[0], w.shape[1]
    out = np.zeros((9 * LANES, PHASES * LANES), np.float32)
    for a, dy in enumerate((-1, 0, 1)):
        for b, dx in enumerate((-1, 0, 1)):
            for py in range(2):
                ky = 1 + py - 2 * dy
                if not 0 <= ky <= 3:
                    continue
                for px in range(2):
                    kx = 1 + px - 2 * dx
                    if not 0 <= kx <= 3:
                        continue
                    r0 = (a * 3 + b) * LANES
                    c0 = (py * 2 + px) * LANES
                    out[r0:r0 + Cin, c0:c0 + Cout] = w[:, :, ky, kx]
    return jnp.asarray(out, jnp.bfloat16)


def _pad_row(v, fill=0.0):
    v = np.asarray(v, np.float32)
    out = np.full((1, LANES), fill, np.float32)
    out[0, :v.shape[0]] = v
    return jnp.asarray(out)


def prepare_params(p, *, nc=3, ngf=16, nz=32):
    """One-time folding/padding/casting of raw (PyTorch-layout) parameters."""
    del nc, nz
    C1 = ngf * 8
    assert C1 == LANES, "this kernel assumes ngf*8 == 128 lanes"
    F1 = C1 * 4 * 4
    # Permute fc1 feature columns (C,H,W) -> (H,W,C) so the FC output is
    # already NHWC-ordered (BatchNorm1d is per-feature, so permuting is exact).
    perm = np.transpose(np.arange(F1).reshape(C1, 4, 4), (1, 2, 0)).reshape(-1)
    return {
        "fc1_w": jnp.asarray(np.asarray(p["fc1_w"], np.float32)[:, perm],
                             jnp.bfloat16),
        "fc1_b": jnp.asarray(np.asarray(p["fc1_b"], np.float32)[perm]),
        "bn1_g": jnp.asarray(np.asarray(p["bn1_g"], np.float32)[perm]),
        "bn1_b": jnp.asarray(np.asarray(p["bn1_b"], np.float32)[perm]),
        "ct1_w": _fold_convt_weight_polyphase(p["ct1_w"]),
        "ct1_b": _pad_row(p["ct1_b"]),
        "bn2_g": _pad_row(p["bn2_g"]),   # pad gamma lanes = 0 -> pad stays 0
        "bn2_b": _pad_row(p["bn2_b"]),
        "ct2_w": _fold_convt_weight_polyphase(p["ct2_w"]),
        "ct2_b": _pad_row(p["ct2_b"]),
        "bn3_g": _pad_row(p["bn3_g"]),
        "bn3_b": _pad_row(p["bn3_b"]),
        "ct3_w": _fold_convt_weight_polyphase(p["ct3_w"]),
        "ct3_b": _pad_row(p["ct3_b"]),
        "ones": jnp.ones((1, LANES), jnp.float32),
        "zeros": jnp.zeros((1, LANES), jnp.float32),
    }


def init_generator_params(key, nc=3, ngf=16, nz=32):
    ks = jax.random.split(key, 8)

    def u(k, shape, fan_in):
        lim = 1.0 / np.sqrt(float(fan_in))
        return jax.random.uniform(k, shape, jnp.float32, -lim, lim)

    F1 = ngf * 8 * 4 * 4
    return {
        "fc1_w": u(ks[0], (nz, F1), nz),
        "fc1_b": u(ks[1], (F1,), nz),
        "bn1_g": jnp.ones((F1,), jnp.float32),
        "bn1_b": jnp.zeros((F1,), jnp.float32),
        "ct1_w": u(ks[2], (ngf * 8, ngf * 4, 4, 4), ngf * 4 * 16),
        "ct1_b": u(ks[3], (ngf * 4,), ngf * 4 * 16),
        "bn2_g": jnp.ones((ngf * 4,), jnp.float32),
        "bn2_b": jnp.zeros((ngf * 4,), jnp.float32),
        "ct2_w": u(ks[4], (ngf * 4, ngf * 2, 4, 4), ngf * 2 * 16),
        "ct2_b": u(ks[5], (ngf * 2,), ngf * 2 * 16),
        "bn3_g": jnp.ones((ngf * 2,), jnp.float32),
        "bn3_b": jnp.zeros((ngf * 2,), jnp.float32),
        "ct3_w": u(ks[6], (ngf * 2, nc, 4, 4), nc * 16),
        "ct3_b": u(ks[7], (nc,), nc * 16),
    }


# ----------------------------------------------------------------------------
# Forward pass (takes PREPARED params)
# ----------------------------------------------------------------------------
def generator_forward(params, x, *, nc=3, ngf=16, nz=32, mm=convt_layer_pallas):
    N = x.shape[0]
    C1 = ngf * 8

    # --- fc1 + BatchNorm1d + ReLU --------------------------------------------
    # (2, 32) @ (32, 2048) is ~131 KFLOP: left to plain XLA per perf review —
    # a dedicated pallas_call's launch overhead dwarfs the work.
    z = x.reshape(N, nz).astype(jnp.bfloat16)
    y = jnp.dot(z, params["fc1_w"], preferred_element_type=jnp.float32)
    y = y + params["fc1_b"][None, :]
    mean = jnp.mean(y, axis=0, keepdims=True)
    var = jnp.mean(y * y, axis=0, keepdims=True) - mean * mean
    y = ((y - mean) * jax.lax.rsqrt(var + EPS) * params["bn1_g"][None, :]
         + params["bn1_b"][None, :])
    h = jnp.maximum(y, 0.0).astype(jnp.bfloat16).reshape(N, 4, 4, C1)   # NHWC

    # --- ConvT(128 -> 64) + BN + ReLU : 4x4 -> 8x8 -----------------------------
    yb = mm(_polyphase_patches(h), params["ct1_w"], params["ct1_b"],
            params["bn2_g"], params["bn2_b"],
            use_bn=True, act="relu", out_dtype=jnp.bfloat16)
    h = _depth_to_space(yb, N, 4, 4)

    # --- ConvT(64 -> 32) + BN + ReLU : 8x8 -> 16x16 ----------------------------
    yb = mm(_polyphase_patches(h), params["ct2_w"], params["ct2_b"],
            params["bn3_g"], params["bn3_b"],
            use_bn=True, act="relu", out_dtype=jnp.bfloat16)
    h = _depth_to_space(yb, N, 8, 8)

    # --- ConvT(32 -> 3) + Tanh : 16x16 -> 32x32 --------------------------------
    yb = mm(_polyphase_patches(h), params["ct3_w"], params["ct3_b"],
            params["ones"], params["zeros"],
            use_bn=False, act="tanh", out_dtype=jnp.float32)
    h = _depth_to_space(yb, N, 16, 16)                 # (N, 32, 32, 128) f32
    return jnp.transpose(h[..., :nc], (0, 3, 1, 2))   # single NCHW transpose


if __name__ == "__main__":
    # Small, module-consistent shapes: batch=2, nz=32, ngf=16, nc=3.
    NC, NGF, NZ, BATCH = 3, 16, 32, 2
    raw = init_generator_params(jax.random.PRNGKey(1), nc=NC, ngf=NGF, nz=NZ)
    params = prepare_params(raw, nc=NC, ngf=NGF, nz=NZ)   # one-time, outside jit
    x = jax.random.normal(jax.random.PRNGKey(0), (BATCH, NZ, 1, 1), jnp.float32)

    fwd_pallas = jax.jit(functools.partial(
        generator_forward, nc=NC, ngf=NGF, nz=NZ))
    fwd_ref = jax.jit(functools.partial(
        generator_forward, nc=NC, ngf=NGF, nz=NZ, mm=convt_layer_ref))

    out = jax.block_until_ready(fwd_pallas(params, x))
    assert out.shape == (BATCH, NC, 32, 32), out.shape
    assert bool(jnp.all(jnp.isfinite(out)))

    # Cross-check the Pallas hot path against a pure-JAX reference that uses
    # the exact same folded bf16 operands / f32 epilogue.
    ref = jax.block_until_ready(fwd_ref(params, x))
    assert jnp.allclose(out, ref, rtol=5e-3, atol=5e-3), float(
        jnp.max(jnp.abs(out - ref)))

    print("KERNEL_OK")
</pallas_src>

<mosaic_0001>
module attributes {stable_mosaic.version = 11 : i64} {
  func.func @kernel(%arg0: i32, %arg1: memref<32x1152xbf16, #tpu.memory_space<vmem>>, %arg2: memref<1152x512xbf16, #tpu.memory_space<vmem>>, %arg3: memref<1x128xf32, #tpu.memory_space<vmem>>, %arg4: memref<1x128xf32, #tpu.memory_space<vmem>>, %arg5: memref<1x128xf32, #tpu.memory_space<vmem>>, %arg6: memref<32x512xbf16, #tpu.memory_space<vmem>>) attributes {dimension_semantics = [#tpu.dimension_semantics<arbitrary>], iteration_bounds = array<i64: 1>, scalar_prefetch = 0 : i64, scratch_operands = 0 : i64, tpu.core_type = #tpu.core_type<tc>, window_params = [{pipeline_mode = #tpu.pipeline_mode<synchronous>, transform_indices = @transform_0, window_bounds = array<i64: 32, 1152>}, {pipeline_mode = #tpu.pipeline_mode<synchronous>, transform_indices = @transform_1, window_bounds = array<i64: 1152, 512>}, {pipeline_mode = #tpu.pipeline_mode<synchronous>, transform_indices = @transform_2, window_bounds = array<i64: 1, 128>}, {pipeline_mode = #tpu.pipeline_mode<synchronous>, transform_indices = @transform_3, window_bounds = array<i64: 1, 128>}, {pipeline_mode = #tpu.pipeline_mode<synchronous>, transform_indices = @transform_4, window_bounds = array<i64: 1, 128>}, {pipeline_mode = #tpu.pipeline_mode<synchronous>, transform_indices = @transform_5, window_bounds = array<i64: 32, 512>}]} {
    %c0 = arith.constant 0 : index
    %c0_0 = arith.constant 0 : index
    %0 = vector.load %arg1[%c0, %c0_0] : memref<32x1152xbf16, #tpu.memory_space<vmem>>, vector<32x1152xbf16>
    %c0_1 = arith.constant 0 : index
    %c0_2 = arith.constant 0 : index
    %1 = vector.load %arg2[%c0_1, %c0_2] : memref<1152x512xbf16, #tpu.memory_space<vmem>>, vector<1152x512xbf16>
    %cst = arith.constant dense<0.000000e+00> : vector<32x512xf32>
    %2 = tpu.matmul %0, %1, %cst {dimension_numbers = #tpu.dot_dimension_numbers<[1], [0], [0], [1], [0, 0, 1, 1], [], []>} : vector<32x1152xbf16>, vector<1152x512xbf16>, vector<32x512xf32> -> vector<32x512xf32>
    %c0_3 = arith.constant 0 : index
    %c0_4 = arith.constant 0 : index
    %3 = vector.load %arg3[%c0_3, %c0_4] : memref<1x128xf32, #tpu.memory_space<vmem>>, vector<1x128xf32>
    %c0_5 = arith.constant 0 : index
    %c0_6 = arith.constant 0 : index
    %4 = vector.load %arg4[%c0_5, %c0_6] : memref<1x128xf32, #tpu.memory_space<vmem>>, vector<1x128xf32>
    %c0_7 = arith.constant 0 : index
    %c0_8 = arith.constant 0 : index
    %5 = vector.load %arg5[%c0_7, %c0_8] : memref<1x128xf32, #tpu.memory_space<vmem>>, vector<1x128xf32>
    %6 = tpu.concatenate %3, %3, %3, %3 in 1 : vector<1x128xf32>, vector<1x128xf32>, vector<1x128xf32>, vector<1x128xf32> -> vector<1x512xf32>
    %7 = vector.broadcast %6 : vector<1x512xf32> to vector<32x512xf32>
    %8 = arith.addf %2, %7 : vector<32x512xf32>
    %cst_9 = arith.constant dense<0.000000e+00> : vector<512xf32>
    %9 = vector.multi_reduction <add>, %8, %cst_9 [0] : vector<32x512xf32> to vector<512xf32>
    %10 = vector.shape_cast %9 : vector<512xf32> to vector<1x512xf32>
    %11 = arith.mulf %8, %8 : vector<32x512xf32>
    %cst_10 = arith.constant dense<0.000000e+00> : vector<512xf32>
    %12 = vector.multi_reduction <add>, %11, %cst_10 [0] : vector<32x512xf32> to vector<512xf32>
    %13 = vector.shape_cast %12 : vector<512xf32> to vector<1x512xf32>
    %14 = vector.extract_strided_slice %10 {offsets = [0, 0], sizes = [1, 128], strides = [1, 1]} : vector<1x512xf32> to vector<1x128xf32>
    %cst_11 = arith.constant 0.000000e+00 : f32
    %15 = vector.broadcast %cst_11 : f32 to vector<1x128xf32>
    %16 = arith.addf %15, %14 : vector<1x128xf32>
    %17 = vector.extract_strided_slice %10 {offsets = [0, 128], sizes = [1, 128], strides = [1, 1]} : vector<1x512xf32> to vector<1x128xf32>
    %18 = arith.addf %16, %17 : vector<1x128xf32>
    %19 = vector.extract_strided_slice %10 {offsets = [0, 256], sizes = [1, 128], strides = [1, 1]} : vector<1x512xf32> to vector<1x128xf32>
    %20 = arith.addf %18, %19 : vector<1x128xf32>
    %21 = vector.extract_strided_slice %10 {offsets = [0, 384], sizes = [1, 128], strides = [1, 1]} : vector<1x512xf32> to vector<1x128xf32>
    %22 = arith.addf %20, %21 : vector<1x128xf32>
    %23 = vector.extract_strided_slice %13 {offsets = [0, 0], sizes = [1, 128], strides = [1, 1]} : vector<1x512xf32> to vector<1x128xf32>
    %cst_12 = arith.constant 0.000000e+00 : f32
    %24 = vector.broadcast %cst_12 : f32 to vector<1x128xf32>
    %25 = arith.addf %24, %23 : vector<1x128xf32>
    %26 = vector.extract_strided_slice %13 {offsets = [0, 128], sizes = [1, 128], strides = [1, 1]} : vector<1x512xf32> to vector<1x128xf32>
    %27 = arith.addf %25, %26 : vector<1x128xf32>
    %28 = vector.extract_strided_slice %13 {offsets = [0, 256], sizes = [1, 128], strides = [1, 1]} : vector<1x512xf32> to vector<1x128xf32>
    %29 = arith.addf %27, %28 : vector<1x128xf32>
    %30 = vector.extract_strided_slice %13 {offsets = [0, 384], sizes = [1, 128], strides = [1, 1]} : vector<1x512xf32> to vector<1x128xf32>
    %31 = arith.addf %29, %30 : vector<1x128xf32>
    %cst_13 = arith.constant 1.280000e+02 : f32
    %32 = vector.broadcast %cst_13 : f32 to vector<1x128xf32>
    %33 = arith.divf %22, %32 : vector<1x128xf32>
    %cst_14 = arith.constant 1.280000e+02 : f32
    %34 = vector.broadcast %cst_14 : f32 to vector<1x128xf32>
    %35 = arith.divf %31, %34 : vector<1x128xf32>
    %36 = arith.mulf %33, %33 : vector<1x128xf32>
    %37 = arith.subf %35, %36 : vector<1x128xf32>
    %cst_15 = arith.constant 9.99999974E-6 : f32
    %38 = vector.broadcast %cst_15 : f32 to vector<1x128xf32>
    %39 = arith.addf %37, %38 : vector<1x128xf32>
    %40 = math.rsqrt %39 : vector<1x128xf32>
    %41 = arith.mulf %4, %40 : vector<1x128xf32>
    %42 = arith.mulf %33, %41 : vector<1x128xf32>
    %43 = arith.subf %5, %42 : vector<1x128xf32>
    %44 = tpu.concatenate %41, %41, %41, %41 in 1 : vector<1x128xf32>, vector<1x128xf32>, vector<1x128xf32>, vector<1x128xf32> -> vector<1x512xf32>
    %45 = vector.broadcast %44 : vector<1x512xf32> to vector<32x512xf32>
    %46 = arith.mulf %8, %45 : vector<32x512xf32>
    %47 = tpu.concatenate %43, %43, %43, %43 in 1 : vector<1x128xf32>, vector<1x128xf32>, vector<1x128xf32>, vector<1x128xf32> -> vector<1x512xf32>
    %48 = vector.broadcast %47 : vector<1x512xf32> to vector<32x512xf32>
    %49 = arith.addf %46, %48 : vector<32x512xf32>
    %cst_16 = arith.constant 0.000000e+00 : f32
    %50 = vector.broadcast %cst_16 : f32 to vector<32x512xf32>
    %51 = arith.maximumf %49, %50 : vector<32x512xf32>
    %52 = arith.truncf %51 : vector<32x512xf32> to vector<32x512xbf16>
    %c0_17 = arith.constant 0 : index
    %c0_18 = arith.constant 0 : index
    %53 = vector.load %arg6[%c0_17, %c0_18] : memref<32x512xbf16, #tpu.memory_space<vmem>>, vector<32x512xbf16>
    tpu.vector_store %arg6[%c0_17, %c0_18], %52 {strides = array<i32>} : memref<32x512xbf16, #tpu.memory_space<vmem>>, vector<32x512xbf16>,
    return
  }
  func.func @transform_0(%arg0: i32) -> (i32, i32) {
    %c0_i32 = arith.constant 0 : i32
    %c0_i32_0 = arith.constant 0 : i32
    %c0_i32_1 = arith.constant 0 : i32
    return %c0_i32, %c0_i32_0 : i32, i32
  }
  func.func @transform_1(%arg0: i32) -> (i32, i32) {
    %c0_i32 = arith.constant 0 : i32
    %c0_i32_0 = arith.constant 0 : i32
    %c0_i32_1 = arith.constant 0 : i32
    return %c0_i32, %c0_i32_0 : i32, i32
  }
  func.func @transform_2(%arg0: i32) -> (i32, i32) {
    %c0_i32 = arith.constant 0 : i32
    %c0_i32_0 = arith.constant 0 : i32
    %c0_i32_1 = arith.constant 0 : i32
    return %c0_i32, %c0_i32_0 : i32, i32
  }
  func.func @transform_3(%arg0: i32) -> (i32, i32) {
    %c0_i32 = arith.constant 0 : i32
    %c0_i32_0 = arith.constant 0 : i32
    %c0_i32_1 = arith.constant 0 : i32
    return %c0_i32, %c0_i32_0 : i32, i32
  }
  func.func @transform_4(%arg0: i32) -> (i32, i32) {
    %c0_i32 = arith.constant 0 : i32
    %c0_i32_0 = arith.constant 0 : i32
    %c0_i32_1 = arith.constant 0 : i32
    return %c0_i32, %c0_i32_0 : i32, i32
  }
  func.func @transform_5(%arg0: i32) -> (i32, i32) {
    %c0_i32 = arith.constant 0 : i32
    %c0_i32_0 = arith.constant 0 : i32
    %c0_i32_1 = arith.constant 0 : i32
    return %c0_i32, %c0_i32_0 : i32, i32
  }
}

module attributes {stable_mosaic.version = 11 : i64} {
  func.func @kernel(%arg0: i32, %arg1: memref<128x1152xbf16, #tpu.memory_space<vmem>>, %arg2: memref<1152x512xbf16, #tpu.memory_space<vmem>>, %arg3: memref<1x128xf32, #tpu.memory_space<vmem>>, %arg4: memref<1x128xf32, #tpu.memory_space<vmem>>, %arg5: memref<1x128xf32, #tpu.memory_space<vmem>>, %arg6: memref<128x512xbf16, #tpu.memory_space<vmem>>) attributes {dimension_semantics = [#tpu.dimension_semantics<arbitrary>], iteration_bounds = array<i64: 1>, scalar_prefetch = 0 : i64, scratch_operands = 0 : i64, tpu.core_type = #tpu.core_type<tc>, window_params = [{pipeline_mode = #tpu.pipeline_mode<synchronous>, transform_indices = @transform_0, window_bounds = array<i64: 128, 1152>}, {pipeline_mode = #tpu.pipeline_mode<synchronous>, transform_indices = @transform_1, window_bounds = array<i64: 1152, 512>}, {pipeline_mode = #tpu.pipeline_mode<synchronous>, transform_indices = @transform_2, window_bounds = array<i64: 1, 128>}, {pipeline_mode = #tpu.pipeline_mode<synchronous>, transform_indices = @transform_3, window_bounds = array<i64: 1, 128>}, {pipeline_mode = #tpu.pipeline_mode<synchronous>, transform_indices = @transform_4, window_bounds = array<i64: 1, 128>}, {pipeline_mode = #tpu.pipeline_mode<synchronous>, transform_indices = @transform_5, window_bounds = array<i64: 128, 512>}]} {
    %c0 = arith.constant 0 : index
    %c0_0 = arith.constant 0 : index
    %0 = vector.load %arg1[%c0, %c0_0] : memref<128x1152xbf16, #tpu.memory_space<vmem>>, vector<128x1152xbf16>
    %c0_1 = arith.constant 0 : index
    %c0_2 = arith.constant 0 : index
    %1 = vector.load %arg2[%c0_1, %c0_2] : memref<1152x512xbf16, #tpu.memory_space<vmem>>, vector<1152x512xbf16>
    %cst = arith.constant dense<0.000000e+00> : vector<128x512xf32>
    %2 = tpu.matmul %0, %1, %cst {dimension_numbers = #tpu.dot_dimension_numbers<[1], [0], [0], [1], [0, 0, 1, 1], [], []>} : vector<128x1152xbf16>, vector<1152x512xbf16>, vector<128x512xf32> -> vector<128x512xf32>
    %c0_3 = arith.constant 0 : index
    %c0_4 = arith.constant 0 : index
    %3 = vector.load %arg3[%c0_3, %c0_4] : memref<1x128xf32, #tpu.memory_space<vmem>>, vector<1x128xf32>
    %c0_5 = arith.constant 0 : index
    %c0_6 = arith.constant 0 : index
    %4 = vector.load %arg4[%c0_5, %c0_6] : memref<1x128xf32, #tpu.memory_space<vmem>>, vector<1x128xf32>
    %c0_7 = arith.constant 0 : index
    %c0_8 = arith.constant 0 : index
    %5 = vector.load %arg5[%c0_7, %c0_8] : memref<1x128xf32, #tpu.memory_space<vmem>>, vector<1x128xf32>
    %6 = tpu.concatenate %3, %3, %3, %3 in 1 : vector<1x128xf32>, vector<1x128xf32>, vector<1x128xf32>, vector<1x128xf32> -> vector<1x512xf32>
    %7 = vector.broadcast %6 : vector<1x512xf32> to vector<128x512xf32>
    %8 = arith.addf %2, %7 : vector<128x512xf32>
    %cst_9 = arith.constant dense<0.000000e+00> : vector<512xf32>
    %9 = vector.multi_reduction <add>, %8, %cst_9 [0] : vector<128x512xf32> to vector<512xf32>
    %10 = vector.shape_cast %9 : vector<512xf32> to vector<1x512xf32>
    %11 = arith.mulf %8, %8 : vector<128x512xf32>
    %cst_10 = arith.constant dense<0.000000e+00> : vector<512xf32>
    %12 = vector.multi_reduction <add>, %11, %cst_10 [0] : vector<128x512xf32> to vector<512xf32>
    %13 = vector.shape_cast %12 : vector<512xf32> to vector<1x512xf32>
    %14 = vector.extract_strided_slice %10 {offsets = [0, 0], sizes = [1, 128], strides = [1, 1]} : vector<1x512xf32> to vector<1x128xf32>
    %cst_11 = arith.constant 0.000000e+00 : f32
    %15 = vector.broadcast %cst_11 : f32 to vector<1x128xf32>
    %16 = arith.addf %15, %14 : vector<1x128xf32>
    %17 = vector.extract_strided_slice %10 {offsets = [0, 128], sizes = [1, 128], strides = [1, 1]} : vector<1x512xf32> to vector<1x128xf32>
    %18 = arith.addf %16, %17 : vector<1x128xf32>
    %19 = vector.extract_strided_slice %10 {offsets = [0, 256], sizes = [1, 128], strides = [1, 1]} : vector<1x512xf32> to vector<1x128xf32>
    %20 = arith.addf %18, %19 : vector<1x128xf32>
    %21 = vector.extract_strided_slice %10 {offsets = [0, 384], sizes = [1, 128], strides = [1, 1]} : vector<1x512xf32> to vector<1x128xf32>
    %22 = arith.addf %20, %21 : vector<1x128xf32>
    %23 = vector.extract_strided_slice %13 {offsets = [0, 0], sizes = [1, 128], strides = [1, 1]} : vector<1x512xf32> to vector<1x128xf32>
    %cst_12 = arith.constant 0.000000e+00 : f32
    %24 = vector.broadcast %cst_12 : f32 to vector<1x128xf32>
    %25 = arith.addf %24, %23 : vector<1x128xf32>
    %26 = vector.extract_strided_slice %13 {offsets = [0, 128], sizes = [1, 128], strides = [1, 1]} : vector<1x512xf32> to vector<1x128xf32>
    %27 = arith.addf %25, %26 : vector<1x128xf32>
    %28 = vector.extract_strided_slice %13 {offsets = [0, 256], sizes = [1, 128], strides = [1, 1]} : vector<1x512xf32> to vector<1x128xf32>
    %29 = arith.addf %27, %28 : vector<1x128xf32>
    %30 = vector.extract_strided_slice %13 {offsets = [0, 384], sizes = [1, 128], strides = [1, 1]} : vector<1x512xf32> to vector<1x128xf32>
    %31 = arith.addf %29, %30 : vector<1x128xf32>
    %cst_13 = arith.constant 5.120000e+02 : f32
    %32 = vector.broadcast %cst_13 : f32 to vector<1x128xf32>
    %33 = arith.divf %22, %32 : vector<1x128xf32>
    %cst_14 = arith.constant 5.120000e+02 : f32
    %34 = vector.broadcast %cst_14 : f32 to vector<1x128xf32>
    %35 = arith.divf %31, %34 : vector<1x128xf32>
    %36 = arith.mulf %33, %33 : vector<1x128xf32>
    %37 = arith.subf %35, %36 : vector<1x128xf32>
    %cst_15 = arith.constant 9.99999974E-6 : f32
    %38 = vector.broadcast %cst_15 : f32 to vector<1x128xf32>
    %39 = arith.addf %37, %38 : vector<1x128xf32>
    %40 = math.rsqrt %39 : vector<1x128xf32>
    %41 = arith.mulf %4, %40 : vector<1x128xf32>
    %42 = arith.mulf %33, %41 : vector<1x128xf32>
    %43 = arith.subf %5, %42 : vector<1x128xf32>
    %44 = tpu.concatenate %41, %41, %41, %41 in 1 : vector<1x128xf32>, vector<1x128xf32>, vector<1x128xf32>, vector<1x128xf32> -> vector<1x512xf32>
    %45 = vector.broadcast %44 : vector<1x512xf32> to vector<128x512xf32>
    %46 = arith.mulf %8, %45 : vector<128x512xf32>
    %47 = tpu.concatenate %43, %43, %43, %43 in 1 : vector<1x128xf32>, vector<1x128xf32>, vector<1x128xf32>, vector<1x128xf32> -> vector<1x512xf32>
    %48 = vector.broadcast %47 : vector<1x512xf32> to vector<128x512xf32>
    %49 = arith.addf %46, %48 : vector<128x512xf32>
    %cst_16 = arith.constant 0.000000e+00 : f32
    %50 = vector.broadcast %cst_16 : f32 to vector<128x512xf32>
    %51 = arith.maximumf %49, %50 : vector<128x512xf32>
    %52 = arith.truncf %51 : vector<128x512xf32> to vector<128x512xbf16>
    %c0_17 = arith.constant 0 : index
    %c0_18 = arith.constant 0 : index
    %53 = vector.load %arg6[%c0_17, %c0_18] : memref<128x512xbf16, #tpu.memory_space<vmem>>, vector<128x512xbf16>
    tpu.vector_store %arg6[%c0_17, %c0_18], %52 {strides = array<i32>} : memref<128x512xbf16, #tpu.memory_space<vmem>>, vector<128x512xbf16>,
    return
  }
  func.func @transform_0(%arg0: i32) -> (i32, i32) {
    %c0_i32 = arith.constant 0 : i32
    %c0_i32_0 = arith.constant 0 : i32
    %c0_i32_1 = arith.constant 0 : i32
    return %c0_i32, %c0_i32_0 : i32, i32
  }
  func.func @transform_1(%arg0: i32) -> (i32, i32) {
    %c0_i32 = arith.constant 0 : i32
    %c0_i32_0 = arith.constant 0 : i32
    %c0_i32_1 = arith.constant 0 : i32
    return %c0_i32, %c0_i32_0 : i32, i32
  }
  func.func @transform_2(%arg0: i32) -> (i32, i32) {
    %c0_i32 = arith.constant 0 : i32
    %c0_i32_0 = arith.constant 0 : i32
    %c0_i32_1 = arith.constant 0 : i32
    return %c0_i32, %c0_i32_0 : i32, i32
  }
  func.func @transform_3(%arg0: i32) -> (i32, i32) {
    %c0_i32 = arith.constant 0 : i32
    %c0_i32_0 = arith.constant 0 : i32
    %c0_i32_1 = arith.constant 0 : i32
    return %c0_i32, %c0_i32_0 : i32, i32
  }
  func.func @transform_4(%arg0: i32) -> (i32, i32) {
    %c0_i32 = arith.constant 0 : i32
    %c0_i32_0 = arith.constant 0 : i32
    %c0_i32_1 = arith.constant 0 : i32
    return %c0_i32, %c0_i32_0 : i32, i32
  }
  func.func @transform_5(%arg0: i32) -> (i32, i32) {
    %c0_i32 = arith.constant 0 : i32
    %c0_i32_0 = arith.constant 0 : i32
    %c0_i32_1 = arith.constant 0 : i32
    return %c0_i32, %c0_i32_0 : i32, i32
  }
}

module attributes {stable_mosaic.version = 11 : i64} {
  func.func @kernel(%arg0: i32, %arg1: memref<512x1152xbf16, #tpu.memory_space<vmem>>, %arg2: memref<1152x512xbf16, #tpu.memory_space<vmem>>, %arg3: memref<1x128xf32, #tpu.memory_space<vmem>>, %arg4: memref<1x128xf32, #tpu.memory_space<vmem>>, %arg5: memref<1x128xf32, #tpu.memory_space<vmem>>, %arg6: memref<512x512xf32, #tpu.memory_space<vmem>>) attributes {dimension_semantics = [#tpu.dimension_semantics<arbitrary>], iteration_bounds = array<i64: 1>, scalar_prefetch = 0 : i64, scratch_operands = 0 : i64, tpu.core_type = #tpu.core_type<tc>, window_params = [{pipeline_mode = #tpu.pipeline_mode<synchronous>, transform_indices = @transform_0, window_bounds = array<i64: 512, 1152>}, {pipeline_mode = #tpu.pipeline_mode<synchronous>, transform_indices = @transform_1, window_bounds = array<i64: 1152, 512>}, {pipeline_mode = #tpu.pipeline_mode<synchronous>, transform_indices = @transform_2, window_bounds = array<i64: 1, 128>}, {pipeline_mode = #tpu.pipeline_mode<synchronous>, transform_indices = @transform_3, window_bounds = array<i64: 1, 128>}, {pipeline_mode = #tpu.pipeline_mode<synchronous>, transform_indices = @transform_4, window_bounds = array<i64: 1, 128>}, {pipeline_mode = #tpu.pipeline_mode<synchronous>, transform_indices = @transform_5, window_bounds = array<i64: 512, 512>}]} {
    %c0 = arith.constant 0 : index
    %c0_0 = arith.constant 0 : index
    %0 = vector.load %arg1[%c0, %c0_0] : memref<512x1152xbf16, #tpu.memory_space<vmem>>, vector<512x1152xbf16>
    %c0_1 = arith.constant 0 : index
    %c0_2 = arith.constant 0 : index
    %1 = vector.load %arg2[%c0_1, %c0_2] : memref<1152x512xbf16, #tpu.memory_space<vmem>>, vector<1152x512xbf16>
    %cst = arith.constant dense<0.000000e+00> : vector<512x512xf32>
    %2 = tpu.matmul %0, %1, %cst {dimension_numbers = #tpu.dot_dimension_numbers<[1], [0], [0], [1], [0, 0, 1, 1], [], []>} : vector<512x1152xbf16>, vector<1152x512xbf16>, vector<512x512xf32> -> vector<512x512xf32>
    %c0_3 = arith.constant 0 : index
    %c0_4 = arith.constant 0 : index
    %3 = vector.load %arg3[%c0_3, %c0_4] : memref<1x128xf32, #tpu.memory_space<vmem>>, vector<1x128xf32>
    %4 = tpu.concatenate %3, %3, %3, %3 in 1 : vector<1x128xf32>, vector<1x128xf32>, vector<1x128xf32>, vector<1x128xf32> -> vector<1x512xf32>
    %5 = vector.broadcast %4 : vector<1x512xf32> to vector<512x512xf32>
    %6 = arith.addf %2, %5 : vector<512x512xf32>
    %7 = math.tanh %6 : vector<512x512xf32>
    %c0_5 = arith.constant 0 : index
    %c0_6 = arith.constant 0 : index
    %8 = vector.load %arg6[%c0_5, %c0_6] : memref<512x512xf32, #tpu.memory_space<vmem>>, vector<512x512xf32>
    tpu.vector_store %arg6[%c0_5, %c0_6], %7 {strides = array<i32>} : memref<512x512xf32, #tpu.memory_space<vmem>>, vector<512x512xf32>,
    return
  }
  func.func @transform_0(%arg0: i32) -> (i32, i32) {
    %c0_i32 = arith.constant 0 : i32
    %c0_i32_0 = arith.constant 0 : i32
    %c0_i32_1 = arith.constant 0 : i32
    return %c0_i32, %c0_i32_0 : i32, i32
  }
  func.func @transform_1(%arg0: i32) -> (i32, i32) {
    %c0_i32 = arith.constant 0 : i32
    %c0_i32_0 = arith.constant 0 : i32
    %c0_i32_1 = arith.constant 0 : i32
    return %c0_i32, %c0_i32_0 : i32, i32
  }
  func.func @transform_2(%arg0: i32) -> (i32, i32) {
    %c0_i32 = arith.constant 0 : i32
    %c0_i32_0 = arith.constant 0 : i32
    %c0_i32_1 = arith.constant 0 : i32
    return %c0_i32, %c0_i32_0 : i32, i32
  }
  func.func @transform_3(%arg0: i32) -> (i32, i32) {
    %c0_i32 = arith.constant 0 : i32
    %c0_i32_0 = arith.constant 0 : i32
    %c0_i32_1 = arith.constant 0 : i32
    return %c0_i32, %c0_i32_0 : i32, i32
  }
  func.func @transform_4(%arg0: i32) -> (i32, i32) {
    %c0_i32 = arith.constant 0 : i32
    %c0_i32_0 = arith.constant 0 : i32
    %c0_i32_1 = arith.constant 0 : i32
    return %c0_i32, %c0_i32_0 : i32, i32
  }
  func.func @transform_5(%arg0: i32) -> (i32, i32) {
    %c0_i32 = arith.constant 0 : i32
    %c0_i32_0 = arith.constant 0 : i32
    %c0_i32_1 = arith.constant 0 : i32
    return %c0_i32, %c0_i32_0 : i32, i32
  }
}

</mosaic_0001>

<bundles_post_ra>
// kernel: generator_forward.3
= control target key start
LH: loop header
LB: loop body
LE: loop exit
PB: predicated region body
PF: predicated region fallthrough
CT: control target
= control target key end

     0   :  { %10 = vsyncpa [#allocation3], 0  ;;  %s3902_s0 = inlined_call_operand.vmem [shape: bf16[32,1152], index: 0, kind: input, shape index: {}]   ;;  %s3903_s1 = inlined_call_operand.hbm [shape: bf16[1152,512], index: 1, kind: input, shape index: {}]   ;;  %s3904_s2 = inlined_call_operand.hbm [shape: f32[1,128], index: 2, kind: input, shape index: {}]   ;;  %s3905_s3 = inlined_call_operand.hbm [shape: f32[1,128], index: 3, kind: input, shape index: {}]   ;;  %s3906_s4 = inlined_call_operand.hbm [shape: f32[1,128], index: 4, kind: input, shape index: {}]   ;;  %s3907_s5 = inlined_call_operand.vmem [shape: bf16[32,512], index: 5, kind: output, shape index: {}]  }
   0x1   :  { %11 = vsyncpa [#allocation5], 0 }
   0x2   :  { %12 = vsyncpa [#allocation8], 0  ;;  %s3636_s18 = smov [#allocation4]   ;;  %s3637_s20 = smov [#allocation2]  }
   0x3   :  { %s33_s19 = sshll.u32 %s3636_s18, 4  ;;  %s20_s21 = sshll.u32 %s3637_s20, 4  ;;  %s34_s19 = int_to_ptr.vmem [resolvable:$true] %s33_s19  ;;  %s3673_s21 = int_to_ptr.vmem [resolvable:$true] %s20_s21 }
   0x4   :  { %s3542_s24 = scalar_lea.hbm %s3904_s2, 16 }
   0x5   :  { %p3543_p0 = scmp.ne.s32.totalorder %s3904_s2, %s3542_s24  ;;  %p3546_p1 = scmp.lt.u32.totalorder %s3542_s24, %s3904_s2 }
   0x7   :  { %p3548_p2 = pnand %p3546_p1, %p3543_p0 }
   0x9   :  { %3551 = shalt.err (!%p3548_p2)
}
   0xa   :  { %s3552_s29 = scalar_lea.vmem %s34_s19, 16  ;;  %s3556_s30 = scalar_lea.vmem %s34_s19, 32 }
   0xb   :  { %p3553_p3 = scmp.ne.s32.totalorder %s34_s19, %s3552_s29  ;;  %p3557_p4 = scmp.lt.s32.totalorder %s34_s19, %s34_s19 }
   0xc   :  { %p3558_p5 = scmp.lt.s32.totalorder %s3556_s30, %s3552_s29 }
   0xe   :  { %p3559_p6 = por %p3558_p5, %p3557_p4 }
  0x10   :  { %p3560_p7 = pnand %p3559_p6, %p3553_p3 }
  0x12   :  { %3563 = shalt.err (!%p3560_p7)
}
  0x13   :  { %36 = dma.hbm_to_vmem [thread:$0]  %s3904_s2, 16, %s34_s19, [#allocation5]  }
  0x14   :  { %s3564_s10 = scalar_lea.hbm %s3903_s1, 36864 }
  0x15   :  { %p3565_p8 = scmp.ne.s32.totalorder %s3903_s1, %s3564_s10  ;;  %p3568_p9 = scmp.lt.u32.totalorder %s3564_s10, %s3903_s1 }
  0x17   :  { %p3570_p10 = pnand %p3568_p9, %p3565_p8 }
  0x19   :  { %3573 = shalt.err (!%p3570_p10)
}
  0x1a   :  { %s3574_s15 = scalar_lea.vmem %s3673_s21, 36864  ;;  %p3579_p12 = scmp.lt.s32.totalorder %s3673_s21, %s3673_s21 }
  0x1b   :  { %p3575_p11 = scmp.ne.s32.totalorder %s3673_s21, %s3574_s15  ;;  %p3580_p13 = scmp.lt.s32.totalorder %s3574_s15, %s3574_s15 }
  0x1d   :  { %p3581_p0 = por %p3580_p13, %p3579_p12 }
  0x1f   :  { %p3582_p1 = pnand %p3581_p0, %p3575_p11 }
  0x21   :  { %3585 = shalt.err (!%p3582_p1)
}
  0x22   :  { %s3638_s2 = smov 256   ;;  %s3639_s16 = smov 16  }
  0x23   :  { %26 = dma.hbm_to_vmem [thread:$0]  %s3903_s1, 36864, %s3673_s21, [#allocation3], %s3638_s2, %s3638_s2, %s3639_s16  }
  0x24   :  { %s3640_s19 = smov [#allocation6]   ;;  %s3641_s22 = smov [#allocation7]  }
  0x25   :  { %s43_s20 = sshll.u32 %s3640_s19, 4  ;;  %s53_s23 = sshll.u32 %s3641_s22, 4  ;;  %s44_s20 = int_to_ptr.vmem [resolvable:$true] %s43_s20  ;;  %s54_s23 = int_to_ptr.vmem [resolvable:$true] %s53_s23 }
  0x26   :  { %s3586_s26 = scalar_lea.hbm %s3905_s3, 16 }
  0x27   :  { %p3587_p2 = scmp.ne.s32.totalorder %s3905_s3, %s3586_s26  ;;  %p3590_p3 = scmp.lt.u32.totalorder %s3586_s26, %s3905_s3 }
  0x29   :  { %p3592_p4 = pnand %p3590_p3, %p3587_p2 }
  0x2b   :  { %3595 = shalt.err (!%p3592_p4)
}
  0x2c   :  { %s3596_s1 = scalar_lea.vmem %s44_s20, 16  ;;  %s3600_s21 = scalar_lea.vmem %s44_s20, 32 }
  0x2d   :  { %p3597_p5 = scmp.ne.s32.totalorder %s44_s20, %s3596_s1  ;;  %p3601_p6 = scmp.lt.s32.totalorder %s44_s20, %s44_s20 }
  0x2e   :  { %p3602_p7 = scmp.lt.s32.totalorder %s3600_s21, %s3596_s1 }
  0x30   :  { %p3603_p8 = por %p3602_p7, %p3601_p6 }
  0x32   :  { %p3604_p9 = pnand %p3603_p8, %p3597_p5 }
  0x34   :  { %3607 = shalt.err (!%p3604_p9)
}
  0x35   :  { %46 = dma.hbm_to_vmem [thread:$0]  %s3905_s3, 16, %s44_s20, [#allocation5]  }
  0x36   :  { %s3608_s10 = scalar_lea.hbm %s3906_s4, 16 }
  0x37   :  { %p3609_p10 = scmp.ne.s32.totalorder %s3906_s4, %s3608_s10  ;;  %p3612_p11 = scmp.lt.u32.totalorder %s3608_s10, %s3906_s4 }
  0x39   :  { %p3614_p12 = pnand %p3612_p11, %p3609_p10 }
  0x3b   :  { %3617 = shalt.err (!%p3614_p12)
}
  0x3c   :  { %s3618_s15 = scalar_lea.vmem %s54_s23, 16  ;;  %s3622_s2 = scalar_lea.vmem %s54_s23, 32 }
  0x3d   :  { %p3619_p13 = scmp.ne.s32.totalorder %s54_s23, %s3618_s15  ;;  %p3623_p0 = scmp.lt.s32.totalorder %s54_s23, %s54_s23 }
  0x3e   :  { %p3624_p1 = scmp.lt.s32.totalorder %s3622_s2, %s3618_s15 }
  0x40   :  { %p3625_p2 = por %p3624_p1, %p3623_p0 }
  0x42   :  { %p3626_p3 = pnand %p3625_p2, %p3619_p13 }
  0x44   :  { %3629 = shalt.err (!%p3626_p3)
}
  0x45   :  { %56 = dma.hbm_to_vmem [thread:$0]  %s3906_s4, 16, %s54_s23, [#allocation8]  }
  0x46   :  { %3630 = dma.done.wait [#allocation3], 36864  }
  0x47   :  { %3631 = vsyncadd [#allocation3], 4294930432 }
  0x48   :  { %3632 = dma.done.wait [#allocation5], 32  }
  0x49   :  { %3633 = vsyncadd [#allocation5], 4294967264 }
  0x4a   :  { %3634 = dma.done.wait [#allocation8], 16  }
  0x4b   :  { %3635 = vsyncadd [#allocation8], 4294967280  ;;  %v3082_v0 = vld [vmem:[#allocation2 + $0x4] ss:$16 sps:$4 sm:$0xff]   ;;  %v3084_v1 = vld [vmem:[#allocation2 + $0xc] ss:$16 sps:$4 sm:$0xff]  }
  0x4c   :  { %1917 = vmatprep.subr.bf16.mxu0 %v3082_v0  ;;  %v3086_v2 = vld [vmem:[#allocation2] ss:$16 sps:$4 sm:$0xff]   ;;  %v3087_v3 = vld [vmem:[#allocation2 + $0x8] ss:$16 sps:$4 sm:$0xff]   ;;  %2182 = vmatprep.subr.bf16.mxu1 %v3084_v1  ;;  %v3088_v4 = vld [vmem:[#allocation2 + $0x24] ss:$16 sps:$4 sm:$0xff]  }
  0x4d   :  { %1918 = vmatpush1.bf16.msra.mxu0 %v3086_v2  ;;  %2183 = vmatpush1.bf16.msra.mxu1 %v3087_v3  ;;  %v3090_v5 = vld [vmem:[#allocation2 + $0x2c] ss:$16 sps:$4 sm:$0xff]   ;;  %v3092_v6 = vld [vmem:[#allocation2 + $0x20] ss:$16 sps:$4 sm:$0xff]   ;;  %v3093_v7 = vld [vmem:[#allocation2 + $0x28] ss:$16 sps:$4 sm:$0xff]  }
  0x4e   :  { %1919 = vmatprep.subr.bf16.mxu0 %v3088_v4  ;;  %2184 = vmatprep.subr.bf16.mxu1 %v3090_v5  ;;  %v3094_v8 = vld [vmem:[#allocation2 + $0x44] ss:$16 sps:$4 sm:$0xff]   ;;  %v3096_v9 = vld [vmem:[#allocation2 + $0x4c] ss:$16 sps:$4 sm:$0xff]   ;;  %v3098_v10 = vld [vmem:[#allocation2 + $0x40] ss:$16 sps:$4 sm:$0xff]  }
  0x4f   :  { %v3099_v11 = vld [vmem:[#allocation2 + $0x48] ss:$16 sps:$4 sm:$0xff]   ;;  %v3100_v12 = vld [vmem:[#allocation2 + $0x64] ss:$16 sps:$4 sm:$0xff]   ;;  %v3102_v13 = vld [vmem:[#allocation2 + $0x6c] ss:$16 sps:$4 sm:$0xff]  }
  0x50   :  { %v3104_v14 = vld [vmem:[#allocation2 + $0x60] ss:$16 sps:$4 sm:$0xff]   ;;  %v3105_v15 = vld [vmem:[#allocation2 + $0x68] ss:$16 sps:$4 sm:$0xff]   ;;  %v3106_v16 = vld [vmem:[#allocation2 + $0x84] ss:$16 sps:$4 sm:$0xff]  }
  0x51   :  { %1920 = vmatpush1.bf16.msra.mxu0 %v3092_v6  ;;  %2185 = vmatpush1.bf16.msra.mxu1 %v3093_v7  ;;  %v3108_v17 = vld [vmem:[#allocation2 + $0x8c] ss:$16 sps:$4 sm:$0xff]   ;;  %v3110_v18 = vld [vmem:[#allocation2 + $0x80] ss:$16 sps:$4 sm:$0xff]   ;;  %v3111_v19 = vld [vmem:[#allocation2 + $0x88] ss:$16 sps:$4 sm:$0xff]  }
  0x52   :  { %1921 = vmatprep.subr.bf16.mxu0 %v3094_v8  ;;  %2186 = vmatprep.subr.bf16.mxu1 %v3096_v9  ;;  %v3112_v20 = vld [vmem:[#allocation2 + $0xa4] ss:$16 sps:$4 sm:$0xff]   ;;  %v3114_v21 = vld [vmem:[#allocation2 + $0xac] ss:$16 sps:$4 sm:$0xff]   ;;  %v3116_v22 = vld [vmem:[#allocation2 + $0xa0] ss:$16 sps:$4 sm:$0xff]  }
  0x53   :  { %v3117_v23 = vld [vmem:[#allocation2 + $0xa8] ss:$16 sps:$4 sm:$0xff]   ;;  %v3118_v24 = vld [vmem:[#allocation2 + $0xc4] ss:$16 sps:$4 sm:$0xff]   ;;  %v3120_v25 = vld [vmem:[#allocation2 + $0xcc] ss:$16 sps:$4 sm:$0xff]  }
  0x54   :  { %v3122_v26 = vld [vmem:[#allocation2 + $0xc0] ss:$16 sps:$4 sm:$0xff]   ;;  %v3123_v27 = vld [vmem:[#allocation2 + $0xc8] ss:$16 sps:$4 sm:$0xff]   ;;  %v3124_v28 = vld [vmem:[#allocation2 + $0xe4] ss:$16 sps:$4 sm:$0xff]  }
  0x55   :  { %1922 = vmatpush1.bf16.msra.mxu0 %v3098_v10  ;;  %2187 = vmatpush1.bf16.msra.mxu1 %v3099_v11  ;;  %v3126_v29 = vld [vmem:[#allocation2 + $0xec] ss:$16 sps:$4 sm:$0xff]   ;;  %v3128_v30 = vld [vmem:[#allocation2 + $0xe0] ss:$16 sps:$4 sm:$0xff]   ;;  %v3129_v31 = vld [vmem:[#allocation2 + $0xe8] ss:$16 sps:$4 sm:$0xff]  }
  0x56   :  { %1923 = vmatprep.subr.bf16.mxu0 %v3100_v12  ;;  %2188 = vmatprep.subr.bf16.mxu1 %v3102_v13  ;;  %v3130_v32 = vld [vmem:[#allocation2 + $0x104] ss:$16 sps:$4 sm:$0xff]   ;;  %v3132_v33 = vld [vmem:[#allocation2 + $0x10c] ss:$16 sps:$4 sm:$0xff]   ;;  %v3134_v34 = vld [vmem:[#allocation2 + $0x100] ss:$16 sps:$4 sm:$0xff]  }
  0x57   :  { %v3135_v35 = vld [vmem:[#allocation2 + $0x108] ss:$16 sps:$4 sm:$0xff]   ;;  %v3136_v36 = vld [vmem:[#allocation2 + $0x124] ss:$16 sps:$4 sm:$0xff]   ;;  %v3138_v37 = vld [vmem:[#allocation2 + $0x12c] ss:$16 sps:$4 sm:$0xff]  }
  0x58   :  { %v3140_v38 = vld [vmem:[#allocation2 + $0x120] ss:$16 sps:$4 sm:$0xff]   ;;  %v3141_v39 = vld [vmem:[#allocation2 + $0x128] ss:$16 sps:$4 sm:$0xff]   ;;  %v3142_v40 = vld [vmem:[#allocation2 + $0x144] ss:$16 sps:$4 sm:$0xff]  }
  0x59   :  { %1924 = vmatpush1.bf16.msra.mxu0 %v3104_v14  ;;  %2189 = vmatpush1.bf16.msra.mxu1 %v3105_v15  ;;  %v3144_v41 = vld [vmem:[#allocation2 + $0x14c] ss:$16 sps:$4 sm:$0xff]   ;;  %v3146_v42 = vld [vmem:[#allocation2 + $0x140] ss:$16 sps:$4 sm:$0xff]   ;;  %v3147_v43 = vld [vmem:[#allocation2 + $0x148] ss:$16 sps:$4 sm:$0xff]  }
  0x5a   :  { %1925 = vmatprep.subr.bf16.mxu0 %v3106_v16  ;;  %2190 = vmatprep.subr.bf16.mxu1 %v3108_v17  ;;  %v3148_v44 = vld [vmem:[#allocation2 + $0x164] ss:$16 sps:$4 sm:$0xff]   ;;  %v3150_v45 = vld [vmem:[#allocation2 + $0x16c] ss:$16 sps:$4 sm:$0xff]   ;;  %v3152_v46 = vld [vmem:[#allocation2 + $0x160] ss:$16 sps:$4 sm:$0xff]  }
  0x5b   :  { %v3153_v47 = vld [vmem:[#allocation2 + $0x168] ss:$16 sps:$4 sm:$0xff]   ;;  %v3154_v49 = vld [vmem:[#allocation2 + $0x184] ss:$16 sps:$4 sm:$0xff]   ;;  %v3156_v50 = vld [vmem:[#allocation2 + $0x18c] ss:$16 sps:$4 sm:$0xff]  }
  0x5c   :  { %v3180_v48 = vld [vmem:[%s3902_s0 + $0x4] ss:$36 sps:$4 sm:$0xff]   ;;  %v3158_v51 = vld [vmem:[#allocation2 + $0x180] ss:$16 sps:$4 sm:$0xff]   ;;  %v3162_v54 = vld [vmem:[#allocation2 + $0x1ac] ss:$16 sps:$4 sm:$0xff]  }
  0x5d   :  { %1926 = vmatpush1.bf16.msra.mxu0 %v3110_v18  ;;  %2191 = vmatpush1.bf16.msra.mxu1 %v3111_v19  ;;  %v3159_v52 = vld [vmem:[#allocation2 + $0x188] ss:$16 sps:$4 sm:$0xff]   ;;  %v3160_v53 = vld [vmem:[#allocation2 + $0x1a4] ss:$16 sps:$4 sm:$0xff]   ;;  %v3164_v55 = vld [vmem:[#allocation2 + $0x1a0] ss:$16 sps:$4 sm:$0xff]  }
  0x5e   :  { %1927 = vmatprep.subr.bf16.mxu0 %v3112_v20  ;;  %2192 = vmatprep.subr.bf16.mxu1 %v3114_v21  ;;  %v3165_v56 = vld [vmem:[#allocation2 + $0x1a8] ss:$16 sps:$4 sm:$0xff]   ;;  %v3166_v57 = vld [vmem:[#allocation2 + $0x1c4] ss:$16 sps:$4 sm:$0xff]   ;;  %v3168_v58 = vld [vmem:[#allocation2 + $0x1cc] ss:$16 sps:$4 sm:$0xff]  }
  0x5f   :  { %1949 = vmatprep.mubr.bf16.mxu0 %v3180_v48  ;;  %2214 = vmatprep.mubr.bf16.mxu1 %v3180_v48  ;;  %v3170_v59 = vld [vmem:[#allocation2 + $0x1c0] ss:$16 sps:$4 sm:$0xff]   ;;  %v3171_v60 = vld [vmem:[#allocation2 + $0x1c8] ss:$16 sps:$4 sm:$0xff]   ;;  %v3172_v61 = vld [vmem:[#allocation2 + $0x1e4] ss:$16 sps:$4 sm:$0xff]  }
  0x60   :  { %v3174_v62 = vld [vmem:[#allocation2 + $0x1ec] ss:$16 sps:$4 sm:$0xff]   ;;  %v3176_v63 = vld [vmem:[#allocation2 + $0x1e0] ss:$16 sps:$4 sm:$0xff]   ;;  %v3177_v0 = vld [vmem:[#allocation2 + $0x1e8] ss:$16 sps:$4 sm:$0xff]  }
  0x61   :  { %1928 = vmatpush1.bf16.msra.mxu0 %v3116_v22  ;;  %2193 = vmatpush1.bf16.msra.mxu1 %v3117_v23  ;;  %v3183_v1 = vld [vmem:[#allocation2 + $0x204] ss:$16 sps:$4 sm:$0xff]   ;;  %v3186_v2 = vld [vmem:[#allocation2 + $0x20c] ss:$16 sps:$4 sm:$0xff]   ;;  %v3181_v4 = vld [vmem:[#allocation2 + $0x200] ss:$16 sps:$4 sm:$0xff]  }
  0x62   :  { %1929 = vmatprep.subr.bf16.mxu0 %v3118_v24  ;;  %2194 = vmatprep.subr.bf16.mxu1 %v3120_v25  ;;  %v3178_v3 = vld [vmem:[%s3902_s0] ss:$36 sps:$4 sm:$0xff]   ;;  %v3184_v5 = vld [vmem:[#allocation2 + $0x208] ss:$16 sps:$4 sm:$0xff]   ;;  %v3192_v7 = vld [vmem:[#allocation2 + $0x22c] ss:$16 sps:$4 sm:$0xff]  }
  0x63   :  { %v3189_v6 = vld [vmem:[#allocation2 + $0x224] ss:$16 sps:$4 sm:$0xff]   ;;  %v3187_v8 = vld [vmem:[#allocation2 + $0x220] ss:$16 sps:$4 sm:$0xff]   ;;  %v3190_v9 = vld [vmem:[#allocation2 + $0x228] ss:$16 sps:$4 sm:$0xff]  }
  0x64   :  { %v3195_v10 = vld [vmem:[#allocation2 + $0x244] ss:$16 sps:$4 sm:$0xff]   ;;  %v3198_v11 = vld [vmem:[#allocation2 + $0x24c] ss:$16 sps:$4 sm:$0xff]   ;;  %v3193_v12 = vld [vmem:[#allocation2 + $0x240] ss:$16 sps:$4 sm:$0xff]  }
  0x65   :  { %1930 = vmatpush1.bf16.msra.mxu0 %v3122_v26  ;;  %2195 = vmatpush1.bf16.msra.mxu1 %v3123_v27  ;;  %v3196_v13 = vld [vmem:[#allocation2 + $0x248] ss:$16 sps:$4 sm:$0xff]   ;;  %v3201_v14 = vld [vmem:[#allocation2 + $0x264] ss:$16 sps:$4 sm:$0xff]   ;;  %v3204_v15 = vld [vmem:[#allocation2 + $0x26c] ss:$16 sps:$4 sm:$0xff]  }
  0x66   :  { %1931 = vmatprep.subr.bf16.mxu0 %v3124_v28  ;;  %2196 = vmatprep.subr.bf16.mxu1 %v3126_v29  ;;  %v3199_v16 = vld [vmem:[#allocation2 + $0x260] ss:$16 sps:$4 sm:$0xff]   ;;  %v3202_v17 = vld [vmem:[#allocation2 + $0x268] ss:$16 sps:$4 sm:$0xff]   ;;  %v3207_v18 = vld [vmem:[#allocation2 + $0x284] ss:$16 sps:$4 sm:$0xff]  }
  0x67   :  { %v3210_v19 = vld [vmem:[#allocation2 + $0x28c] ss:$16 sps:$4 sm:$0xff]   ;;  %v3205_v20 = vld [vmem:[#allocation2 + $0x280] ss:$16 sps:$4 sm:$0xff]   ;;  %v3208_v21 = vld [vmem:[#allocation2 + $0x288] ss:$16 sps:$4 sm:$0xff]  }
  0x68   :  { %v3213_v22 = vld [vmem:[#allocation2 + $0x2a4] ss:$16 sps:$4 sm:$0xff]   ;;  %v3216_v23 = vld [vmem:[#allocation2 + $0x2ac] ss:$16 sps:$4 sm:$0xff]   ;;  %v3211_v25 = vld [vmem:[#allocation2 + $0x2a0] ss:$16 sps:$4 sm:$0xff]  }
  0x69   :  { %1932 = vmatpush1.bf16.msra.mxu0 %v3128_v30  ;;  %2197 = vmatpush1.bf16.msra.mxu1 %v3129_v31  ;;  %v3265_v24 = vld [vmem:[%s3902_s0 + $0x4c] ss:$36 sps:$4 sm:$0xff]   ;;  %v3214_v26 = vld [vmem:[#allocation2 + $0x2a8] ss:$16 sps:$4 sm:$0xff]   ;;  %v3219_v27 = vld [vmem:[#allocation2 + $0x2c4] ss:$16 sps:$4 sm:$0xff]  }
  0x6a   :  { %1933 = vmatprep.subr.bf16.mxu0 %v3130_v32  ;;  %2198 = vmatprep.subr.bf16.mxu1 %v3132_v33  ;;  %v3222_v28 = vld [vmem:[#allocation2 + $0x2cc] ss:$16 sps:$4 sm:$0xff]   ;;  %v3217_v30 = vld [vmem:[#allocation2 + $0x2c0] ss:$16 sps:$4 sm:$0xff]   ;;  %v3220_v31 = vld [vmem:[#allocation2 + $0x2c8] ss:$16 sps:$4 sm:$0xff]  }
  0x6b   :  { %v3273_v29 = vld [vmem:[%s3902_s0 + $0x48] ss:$36 sps:$4 sm:$0xff]   ;;  %v3225_v32 = vld [vmem:[#allocation2 + $0x2e4] ss:$16 sps:$4 sm:$0xff]  }
  0x6c   :  { %v3228_v33 = vld [vmem:[#allocation2 + $0x2ec] ss:$16 sps:$4 sm:$0xff]   ;;  %v3244_v48 = vld [vmem:[#allocation2 + $0x348] ss:$16 sps:$4 sm:$0xff]  }
  0x6d   :  { %1934 = vmatpush1.bf16.msra.mxu0 %v3134_v34  ;;  %2199 = vmatpush1.bf16.msra.mxu1 %v3135_v35  ;;  %v3282_v34 = vld [vmem:[%s3902_s0 + $0xc] ss:$36 sps:$4 sm:$0xff]  }
  0x6e   :  { %1935 = vmatprep.subr.bf16.mxu0 %v3136_v36  ;;  %2200 = vmatprep.subr.bf16.mxu1 %v3138_v37  ;;  %v3223_v35 = vld [vmem:[#allocation2 + $0x2e0] ss:$16 sps:$4 sm:$0xff]   ;;  %v3226_v36 = vld [vmem:[#allocation2 + $0x2e8] ss:$16 sps:$4 sm:$0xff]   ;;  %v3231_v37 = vld [vmem:[#allocation2 + $0x304] ss:$16 sps:$4 sm:$0xff]  }
  0x71   :  { %1936 = vmatpush1.bf16.msra.mxu0 %v3140_v38  ;;  %2201 = vmatpush1.bf16.msra.mxu1 %v3141_v39  ;;  %v3234_v38 = vld [vmem:[#allocation2 + $0x30c] ss:$16 sps:$4 sm:$0xff]   ;;  %v3229_v39 = vld [vmem:[#allocation2 + $0x300] ss:$16 sps:$4 sm:$0xff]  }
  0x72   :  { %1937 = vmatprep.subr.bf16.mxu0 %v3142_v40  ;;  %2202 = vmatprep.subr.bf16.mxu1 %v3144_v41  ;;  %v3232_v40 = vld [vmem:[#allocation2 + $0x308] ss:$16 sps:$4 sm:$0xff]   ;;  %v3237_v41 = vld [vmem:[#allocation2 + $0x324] ss:$16 sps:$4 sm:$0xff]  }
  0x75   :  { %1938 = vmatpush1.bf16.msra.mxu0 %v3146_v42  ;;  %2203 = vmatpush1.bf16.msra.mxu1 %v3147_v43  ;;  %v3240_v42 = vld [vmem:[#allocation2 + $0x32c] ss:$16 sps:$4 sm:$0xff]   ;;  %v3235_v43 = vld [vmem:[#allocation2 + $0x320] ss:$16 sps:$4 sm:$0xff]  }
  0x76   :  { %1939 = vmatprep.subr.bf16.mxu0 %v3148_v44  ;;  %2204 = vmatprep.subr.bf16.mxu1 %v3150_v45  ;;  %v3238_v44 = vld [vmem:[#allocation2 + $0x328] ss:$16 sps:$4 sm:$0xff]   ;;  %v3243_v45 = vld [vmem:[#allocation2 + $0x344] ss:$16 sps:$4 sm:$0xff]  }
  0x79   :  { %1940 = vmatpush1.bf16.msra.mxu0 %v3152_v46  ;;  %2205 = vmatpush1.bf16.msra.mxu1 %v3153_v47  ;;  %v3246_v46 = vld [vmem:[#allocation2 + $0x34c] ss:$16 sps:$4 sm:$0xff]   ;;  %v3241_v47 = vld [vmem:[#allocation2 + $0x340] ss:$16 sps:$4 sm:$0xff]  }
  0x7a   :  { %1941 = vmatprep.subr.bf16.mxu0 %v3154_v49  ;;  %2206 = vmatprep.subr.bf16.mxu1 %v3156_v50  ;;  %v3249_v49 = vld [vmem:[#allocation2 + $0x364] ss:$16 sps:$4 sm:$0xff]   ;;  %v3252_v50 = vld [vmem:[#allocation2 + $0x36c] ss:$16 sps:$4 sm:$0xff]  }
  0x7d   :  { %1942 = vmatpush1.bf16.msra.mxu0 %v3158_v51  ;;  %2207 = vmatpush1.bf16.msra.mxu1 %v3159_v52  ;;  %v3247_v51 = vld [vmem:[#allocation2 + $0x360] ss:$16 sps:$4 sm:$0xff]   ;;  %v3250_v52 = vld [vmem:[#allocation2 + $0x368] ss:$16 sps:$4 sm:$0xff]  }
  0x7e   :  { %1943 = vmatprep.subr.bf16.mxu0 %v3160_v53  ;;  %2208 = vmatprep.subr.bf16.mxu1 %v3162_v54  ;;  %v3255_v53 = vld [vmem:[#allocation2 + $0x384] ss:$16 sps:$4 sm:$0xff]   ;;  %v3258_v54 = vld [vmem:[#allocation2 + $0x38c] ss:$16 sps:$4 sm:$0xff]  }
  0x81   :  { %1944 = vmatpush1.bf16.msra.mxu0 %v3164_v55  ;;  %2209 = vmatpush1.bf16.msra.mxu1 %v3165_v56  ;;  %v3253_v55 = vld [vmem:[#allocation2 + $0x380] ss:$16 sps:$4 sm:$0xff]   ;;  %v3256_v56 = vld [vmem:[#allocation2 + $0x388] ss:$16 sps:$4 sm:$0xff]  }
  0x82   :  { %1945 = vmatprep.subr.bf16.mxu0 %v3166_v57  ;;  %2210 = vmatprep.subr.bf16.mxu1 %v3168_v58  ;;  %v3261_v57 = vld [vmem:[#allocation2 + $0x3a4] ss:$16 sps:$4 sm:$0xff]   ;;  %v3264_v58 = vld [vmem:[#allocation2 + $0x3ac] ss:$16 sps:$4 sm:$0xff]  }
  0x85   :  { %1946 = vmatpush1.bf16.msra.mxu0 %v3170_v59  ;;  %2211 = vmatpush1.bf16.msra.mxu1 %v3171_v60  ;;  %v3259_v59 = vld [vmem:[#allocation2 + $0x3a0] ss:$16 sps:$4 sm:$0xff]   ;;  %v3262_v60 = vld [vmem:[#allocation2 + $0x3a8] ss:$16 sps:$4 sm:$0xff]  }
  0x86   :  { %1947 = vmatprep.subr.bf16.mxu0 %v3172_v61  ;;  %2212 = vmatprep.subr.bf16.mxu1 %v3174_v62  ;;  %v3269_v61 = vld [vmem:[#allocation2 + $0x3c4] ss:$16 sps:$4 sm:$0xff]   ;;  %v3272_v62 = vld [vmem:[#allocation2 + $0x3cc] ss:$16 sps:$4 sm:$0xff]  }
  0x89   :  { %1948 = vmatpush1.bf16.msra.mxu0 %v3176_v63  ;;  %2213 = vmatpush1.bf16.msra.mxu1 %v3177_v0  ;;  %v3267_v63 = vld [vmem:[#allocation2 + $0x3c0] ss:$16 sps:$4 sm:$0xff]   ;;  %v3270_v0 = vld [vmem:[#allocation2 + $0x3c8] ss:$16 sps:$4 sm:$0xff]  }
  0x8a   :  { %1970 = vmatprep.subr.bf16.mxu0 %v3183_v1  ;;  %2235 = vmatprep.subr.bf16.mxu1 %v3186_v2  ;;  %v3276_v1 = vld [vmem:[#allocation2 + $0x3e4] ss:$16 sps:$4 sm:$0xff]   ;;  %v3279_v2 = vld [vmem:[#allocation2 + $0x3ec] ss:$16 sps:$4 sm:$0xff]  }
  0x8c   :  { %1950 = vmatmul.mubr.bf16.vlgmr.msra.gmra.mrb[0].mxu0 %v3178_v3  ;;  %2215 = vmatmul.mubr.bf16.vlgmr.msra.gmra.mrb[0].mxu1 %v3178_v3  ;;  %v3274_v3 = vld [vmem:[#allocation2 + $0x3e0] ss:$16 sps:$4 sm:$0xff]  }
  0x8d   :  { %1971 = vmatpush1.bf16.msra.mxu0 %v3181_v4  ;;  %2236 = vmatpush1.bf16.msra.mxu1 %v3184_v5  ;;  %v3277_v4 = vld [vmem:[#allocation2 + $0x3e8] ss:$16 sps:$4 sm:$0xff]   ;;  %v3285_v5 = vld [vmem:[#allocation2 + $0x404] ss:$16 sps:$4 sm:$0xff]  }
  0x8e   :  { %1972 = vmatprep.subr.bf16.mxu0 %v3189_v6  ;;  %2237 = vmatprep.subr.bf16.mxu1 %v3192_v7  ;;  %v3288_v6 = vld [vmem:[#allocation2 + $0x40c] ss:$16 sps:$4 sm:$0xff]  }
  0x8f   :  { %1959 = vmatprep.mubr.bf16.mxu0 %v3265_v24  ;;  %2224 = vmatprep.mubr.bf16.mxu1 %v3265_v24  ;;  %v3280_v7 = vld [vmem:[%s3902_s0 + $0x8] ss:$36 sps:$4 sm:$0xff]  }
  0x90   :  { %v3304_v24 = vld [vmem:[#allocation2 + $0x468] ss:$16 sps:$4 sm:$0xff]  }
  0x91   :  { %1973 = vmatpush1.bf16.msra.mxu0 %v3187_v8  ;;  %2238 = vmatpush1.bf16.msra.mxu1 %v3190_v9  ;;  %v3283_v8 = vld [vmem:[#allocation2 + $0x400] ss:$16 sps:$4 sm:$0xff]   ;;  %v3286_v9 = vld [vmem:[#allocation2 + $0x408] ss:$16 sps:$4 sm:$0xff]  }
  0x92   :  { %1974 = vmatprep.subr.bf16.mxu0 %v3195_v10  ;;  %2239 = vmatprep.subr.bf16.mxu1 %v3198_v11  ;;  %v3291_v10 = vld [vmem:[#allocation2 + $0x424] ss:$16 sps:$4 sm:$0xff]   ;;  %v3294_v11 = vld [vmem:[#allocation2 + $0x42c] ss:$16 sps:$4 sm:$0xff]  }
  0x94   :  { %1960 = vmatmul.mubr.bf16.gmra.mrb[4].mxu0 %v3273_v29  ;;  %2225 = vmatmul.mubr.bf16.gmra.mrb[4].mxu1 %v3273_v29  ;;  %v3315_v29 = vld [vmem:[#allocation2 + $0x4a4] ss:$16 sps:$4 sm:$0xff]  }
  0x95   :  { %1975 = vmatpush1.bf16.msra.mxu0 %v3193_v12  ;;  %2240 = vmatpush1.bf16.msra.mxu1 %v3196_v13  ;;  %v3367_v12 = vld [vmem:[%s3902_s0 + $0x54] ss:$36 sps:$4 sm:$0xff]   ;;  %v3289_v13 = vld [vmem:[#allocation2 + $0x420] ss:$16 sps:$4 sm:$0xff]  }
  0x96   :  { %1976 = vmatprep.subr.bf16.mxu0 %v3201_v14  ;;  %2241 = vmatprep.subr.bf16.mxu1 %v3204_v15  ;;  %v3292_v14 = vld [vmem:[#allocation2 + $0x428] ss:$16 sps:$4 sm:$0xff]   ;;  %v3297_v15 = vld [vmem:[#allocation2 + $0x444] ss:$16 sps:$4 sm:$0xff]  }
  0x97   :  { %2002 = vmatprep.mubr.bf16.mxu0 %v3282_v34  ;;  %2267 = vmatprep.mubr.bf16.mxu1 %v3282_v34  ;;  %v3324_v34 = vld [vmem:[#allocation2 + $0x4cc] ss:$16 sps:$4 sm:$0xff]  }
  0x99   :  { %1977 = vmatpush1.bf16.msra.mxu0 %v3199_v16  ;;  %2242 = vmatpush1.bf16.msra.mxu1 %v3202_v17  ;;  %v3300_v16 = vld [vmem:[#allocation2 + $0x44c] ss:$16 sps:$4 sm:$0xff]   ;;  %v3295_v17 = vld [vmem:[#allocation2 + $0x440] ss:$16 sps:$4 sm:$0xff]  }
  0x9a   :  { %1978 = vmatprep.subr.bf16.mxu0 %v3207_v18  ;;  %2243 = vmatprep.subr.bf16.mxu1 %v3210_v19  ;;  %v3298_v18 = vld [vmem:[#allocation2 + $0x448] ss:$16 sps:$4 sm:$0xff]   ;;  %v3375_v19 = vld [vmem:[%s3902_s0 + $0x50] ss:$36 sps:$4 sm:$0xff]  }
  0x9d   :  { %1979 = vmatpush1.bf16.msra.mxu0 %v3205_v20  ;;  %2244 = vmatpush1.bf16.msra.mxu1 %v3208_v21  ;;  %v3303_v20 = vld [vmem:[#allocation2 + $0x464] ss:$16 sps:$4 sm:$0xff]   ;;  %v3306_v21 = vld [vmem:[#allocation2 + $0x46c] ss:$16 sps:$4 sm:$0xff]  }
  0x9e   :  { %1980 = vmatprep.subr.bf16.mxu0 %v3213_v22  ;;  %2245 = vmatprep.subr.bf16.mxu1 %v3216_v23  ;;  %v3384_v22 = vld [vmem:[%s3902_s0 + $0x14] ss:$36 sps:$4 sm:$0xff]   ;;  %v3301_v23 = vld [vmem:[#allocation2 + $0x460] ss:$16 sps:$4 sm:$0xff]  }
  0xa1   :  { %1981 = vmatpush1.bf16.msra.mxu0 %v3211_v25  ;;  %2246 = vmatpush1.bf16.msra.mxu1 %v3214_v26  ;;  %v3309_v25 = vld [vmem:[#allocation2 + $0x484] ss:$16 sps:$4 sm:$0xff]   ;;  %v3312_v26 = vld [vmem:[#allocation2 + $0x48c] ss:$16 sps:$4 sm:$0xff]  }
  0xa2   :  { %1982 = vmatprep.subr.bf16.mxu0 %v3219_v27  ;;  %2247 = vmatprep.subr.bf16.mxu1 %v3222_v28  ;;  %v3307_v27 = vld [vmem:[#allocation2 + $0x480] ss:$16 sps:$4 sm:$0xff]   ;;  %v3310_v28 = vld [vmem:[#allocation2 + $0x488] ss:$16 sps:$4 sm:$0xff]  }
  0xa5   :  { %1983 = vmatpush1.bf16.msra.mxu0 %v3217_v30  ;;  %2248 = vmatpush1.bf16.msra.mxu1 %v3220_v31  ;;  %v3318_v30 = vld [vmem:[#allocation2 + $0x4ac] ss:$16 sps:$4 sm:$0xff]   ;;  %v3313_v31 = vld [vmem:[#allocation2 + $0x4a0] ss:$16 sps:$4 sm:$0xff]  }
  0xa6   :  { %1984 = vmatprep.subr.bf16.mxu0 %v3225_v32  ;;  %2249 = vmatprep.subr.bf16.mxu1 %v3228_v33  ;;  %v3316_v32 = vld [vmem:[#allocation2 + $0x4a8] ss:$16 sps:$4 sm:$0xff]   ;;  %v3321_v33 = vld [vmem:[#allocation2 + $0x4c4] ss:$16 sps:$4 sm:$0xff]  }
  0xa9   :  { %1985 = vmatpush1.bf16.msra.mxu0 %v3223_v35  ;;  %2250 = vmatpush1.bf16.msra.mxu1 %v3226_v36  ;;  %v3319_v35 = vld [vmem:[#allocation2 + $0x4c0] ss:$16 sps:$4 sm:$0xff]   ;;  %v3322_v36 = vld [vmem:[#allocation2 + $0x4c8] ss:$16 sps:$4 sm:$0xff]  }
  0xaa   :  { %1986 = vmatprep.subr.bf16.mxu0 %v3231_v37  ;;  %2251 = vmatprep.subr.bf16.mxu1 %v3234_v38  ;;  %v3327_v37 = vld [vmem:[#allocation2 + $0x4e4] ss:$16 sps:$4 sm:$0xff]   ;;  %v3330_v38 = vld [vmem:[#allocation2 + $0x4ec] ss:$16 sps:$4 sm:$0xff]  }
  0xad   :  { %1987 = vmatpush1.bf16.msra.mxu0 %v3229_v39  ;;  %2252 = vmatpush1.bf16.msra.mxu1 %v3232_v40  ;;  %v3325_v39 = vld [vmem:[#allocation2 + $0x4e0] ss:$16 sps:$4 sm:$0xff]   ;;  %v3328_v40 = vld [vmem:[#allocation2 + $0x4e8] ss:$16 sps:$4 sm:$0xff]  }
  0xae   :  { %1988 = vmatprep.subr.bf16.mxu0 %v3237_v41  ;;  %2253 = vmatprep.subr.bf16.mxu1 %v3240_v42  ;;  %v3333_v41 = vld [vmem:[#allocation2 + $0x504] ss:$16 sps:$4 sm:$0xff]   ;;  %v3336_v42 = vld [vmem:[#allocation2 + $0x50c] ss:$16 sps:$4 sm:$0xff]  }
  0xb1   :  { %1989 = vmatpush1.bf16.msra.mxu0 %v3235_v43  ;;  %2254 = vmatpush1.bf16.msra.mxu1 %v3238_v44  ;;  %v3331_v43 = vld [vmem:[#allocation2 + $0x500] ss:$16 sps:$4 sm:$0xff]   ;;  %v3334_v44 = vld [vmem:[#allocation2 + $0x508] ss:$16 sps:$4 sm:$0xff]  }
  0xb2   :  { %1990 = vmatprep.subr.bf16.mxu0 %v3243_v45  ;;  %2255 = vmatprep.subr.bf16.mxu1 %v3246_v46  ;;  %v3339_v45 = vld [vmem:[#allocation2 + $0x524] ss:$16 sps:$4 sm:$0xff]   ;;  %v3342_v46 = vld [vmem:[#allocation2 + $0x52c] ss:$16 sps:$4 sm:$0xff]  }
  0xb5   :  { %1991 = vmatpush1.bf16.msra.mxu0 %v3241_v47  ;;  %2256 = vmatpush1.bf16.msra.mxu1 %v3244_v48  ;;  %v3337_v47 = vld [vmem:[#allocation2 + $0x520] ss:$16 sps:$4 sm:$0xff]   ;;  %v3340_v48 = vld [vmem:[#allocation2 + $0x528] ss:$16 sps:$4 sm:$0xff]  }
  0xb6   :  { %1992 = vmatprep.subr.bf16.mxu0 %v3249_v49  ;;  %2257 = vmatprep.subr.bf16.mxu1 %v3252_v50  ;;  %v3345_v49 = vld [vmem:[#allocation2 + $0x544] ss:$16 sps:$4 sm:$0xff]   ;;  %v3348_v50 = vld [vmem:[#allocation2 + $0x54c] ss:$16 sps:$4 sm:$0xff]  }
  0xb9   :  { %1993 = vmatpush1.bf16.msra.mxu0 %v3247_v51  ;;  %2258 = vmatpush1.bf16.msra.mxu1 %v3250_v52  ;;  %v3343_v51 = vld [vmem:[#allocation2 + $0x540] ss:$16 sps:$4 sm:$0xff]   ;;  %v3346_v52 = vld [vmem:[#allocation2 + $0x548] ss:$16 sps:$4 sm:$0xff]  }
  0xba   :  { %1994 = vmatprep.subr.bf16.mxu0 %v3255_v53  ;;  %2259 = vmatprep.subr.bf16.mxu1 %v3258_v54  ;;  %v3351_v53 = vld [vmem:[#allocation2 + $0x564] ss:$16 sps:$4 sm:$0xff]   ;;  %v3354_v54 = vld [vmem:[#allocation2 + $0x56c] ss:$16 sps:$4 sm:$0xff]  }
  0xbd   :  { %1995 = vmatpush1.bf16.msra.mxu0 %v3253_v55  ;;  %2260 = vmatpush1.bf16.msra.mxu1 %v3256_v56  ;;  %v3349_v55 = vld [vmem:[#allocation2 + $0x560] ss:$16 sps:$4 sm:$0xff]   ;;  %v3352_v56 = vld [vmem:[#allocation2 + $0x568] ss:$16 sps:$4 sm:$0xff]  }
  0xbe   :  { %1996 = vmatprep.subr.bf16.mxu0 %v3261_v57  ;;  %2261 = vmatprep.subr.bf16.mxu1 %v3264_v58  ;;  %v3357_v57 = vld [vmem:[#allocation2 + $0x584] ss:$16 sps:$4 sm:$0xff]   ;;  %v3360_v58 = vld [vmem:[#allocation2 + $0x58c] ss:$16 sps:$4 sm:$0xff]  }
  0xc1   :  { %1997 = vmatpush1.bf16.msra.mxu0 %v3259_v59  ;;  %2262 = vmatpush1.bf16.msra.mxu1 %v3262_v60  ;;  %v3355_v59 = vld [vmem:[#allocation2 + $0x580] ss:$16 sps:$4 sm:$0xff]   ;;  %v3358_v60 = vld [vmem:[#allocation2 + $0x588] ss:$16 sps:$4 sm:$0xff]  }
  0xc2   :  { %1998 = vmatprep.subr.bf16.mxu0 %v3269_v61  ;;  %2263 = vmatprep.subr.bf16.mxu1 %v3272_v62  ;;  %v3363_v61 = vld [vmem:[#allocation2 + $0x5a4] ss:$16 sps:$4 sm:$0xff]   ;;  %v3366_v62 = vld [vmem:[#allocation2 + $0x5ac] ss:$16 sps:$4 sm:$0xff]  }
  0xc5   :  { %1999 = vmatpush1.bf16.msra.mxu0 %v3267_v63  ;;  %2264 = vmatpush1.bf16.msra.mxu1 %v3270_v0  ;;  %v3361_v63 = vld [vmem:[#allocation2 + $0x5a0] ss:$16 sps:$4 sm:$0xff]   ;;  %v3364_v0 = vld [vmem:[#allocation2 + $0x5a8] ss:$16 sps:$4 sm:$0xff]  }
  0xc6   :  { %2000 = vmatprep.subr.bf16.mxu0 %v3276_v1  ;;  %2265 = vmatprep.subr.bf16.mxu1 %v3279_v2  ;;  %v3371_v1 = vld [vmem:[#allocation2 + $0x5c4] ss:$16 sps:$4 sm:$0xff]   ;;  %v3374_v2 = vld [vmem:[#allocation2 + $0x5cc] ss:$16 sps:$4 sm:$0xff]  }
  0xc9   :  { %2001 = vmatpush1.bf16.msra.mxu0 %v3274_v3  ;;  %2266 = vmatpush1.bf16.msra.mxu1 %v3277_v4  ;;  %v3369_v3 = vld [vmem:[#allocation2 + $0x5c0] ss:$16 sps:$4 sm:$0xff]   ;;  %v3372_v4 = vld [vmem:[#allocation2 + $0x5c8] ss:$16 sps:$4 sm:$0xff]  }
  0xca   :  { %2023 = vmatprep.subr.bf16.mxu0 %v3285_v5  ;;  %2288 = vmatprep.subr.bf16.mxu1 %v3288_v6  ;;  %v3378_v5 = vld [vmem:[#allocation2 + $0x5e4] ss:$16 sps:$4 sm:$0xff]   ;;  %v3381_v6 = vld [vmem:[#allocation2 + $0x5ec] ss:$16 sps:$4 sm:$0xff]  }
  0xcc   :  { %2003 = vmatmul.mubr.bf16.vlgmr.msra.gmra.mrb[0].mxu0 %v3280_v7  ;;  %2268 = vmatmul.mubr.bf16.vlgmr.msra.gmra.mrb[0].mxu1 %v3280_v7  ;;  %v3376_v7 = vld [vmem:[#allocation2 + $0x5e0] ss:$16 sps:$4 sm:$0xff]  }
  0xcd   :  { %2024 = vmatpush1.bf16.msra.mxu0 %v3283_v8  ;;  %2289 = vmatpush1.bf16.msra.mxu1 %v3286_v9  ;;  %v3379_v8 = vld [vmem:[#allocation2 + $0x5e8] ss:$16 sps:$4 sm:$0xff]   ;;  %v3387_v9 = vld [vmem:[#allocation2 + $0x604] ss:$16 sps:$4 sm:$0xff]  }
  0xce   :  { %2025 = vmatprep.subr.bf16.mxu0 %v3291_v10  ;;  %2290 = vmatprep.subr.bf16.mxu1 %v3294_v11  ;;  %v3390_v10 = vld [vmem:[#allocation2 + $0x60c] ss:$16 sps:$4 sm:$0xff]   ;;  %v3382_v11 = vld [vmem:[%s3902_s0 + $0x10] ss:$36 sps:$4 sm:$0xff]  }
  0xcf   :  { %2012 = vmatprep.mubr.bf16.mxu0 %v3367_v12  ;;  %2277 = vmatprep.mubr.bf16.mxu1 %v3367_v12  ;;  %v3385_v12 = vld [vmem:[#allocation2 + $0x600] ss:$16 sps:$4 sm:$0xff]  }
  0xd1   :  { %2026 = vmatpush1.bf16.msra.mxu0 %v3289_v13  ;;  %2291 = vmatpush1.bf16.msra.mxu1 %v3292_v14  ;;  %v3388_v13 = vld [vmem:[#allocation2 + $0x608] ss:$16 sps:$4 sm:$0xff]   ;;  %v3393_v14 = vld [vmem:[#allocation2 + $0x624] ss:$16 sps:$4 sm:$0xff]  }
  0xd2   :  { %2027 = vmatprep.subr.bf16.mxu0 %v3297_v15  ;;  %2292 = vmatprep.subr.bf16.mxu1 %v3300_v16  ;;  %v3396_v15 = vld [vmem:[#allocation2 + $0x62c] ss:$16 sps:$4 sm:$0xff]  }
  0xd3   :  { %v3469_v16 = vld [vmem:[%s3902_s0 + $0x5c] ss:$36 sps:$4 sm:$0xff]  }
  0xd4   :  { %2013 = vmatmul.mubr.bf16.gmra.mrb[4].mxu0 %v3375_v19  ;;  %2278 = vmatmul.mubr.bf16.gmra.mrb[4].mxu1 %v3375_v19  ;;  %v3399_v19 = vld [vmem:[#allocation2 + $0x644] ss:$16 sps:$4 sm:$0xff]  }
  0xd5   :  { %2028 = vmatpush1.bf16.msra.mxu0 %v3295_v17  ;;  %2293 = vmatpush1.bf16.msra.mxu1 %v3298_v18  ;;  %v3391_v17 = vld [vmem:[#allocation2 + $0x620] ss:$16 sps:$4 sm:$0xff]   ;;  %v3394_v18 = vld [vmem:[#allocation2 + $0x628] ss:$16 sps:$4 sm:$0xff]  }
  0xd6   :  { %2029 = vmatprep.subr.bf16.mxu0 %v3303_v20  ;;  %2294 = vmatprep.subr.bf16.mxu1 %v3306_v21  ;;  %v3402_v20 = vld [vmem:[#allocation2 + $0x64c] ss:$16 sps:$4 sm:$0xff]   ;;  %v3397_v21 = vld [vmem:[#allocation2 + $0x640] ss:$16 sps:$4 sm:$0xff]  }
  0xd7   :  { %2055 = vmatprep.mubr.bf16.mxu0 %v3384_v22  ;;  %2320 = vmatprep.mubr.bf16.mxu1 %v3384_v22  ;;  %v3400_v22 = vld [vmem:[#allocation2 + $0x648] ss:$16 sps:$4 sm:$0xff]  }
  0xd9   :  { %2030 = vmatpush1.bf16.msra.mxu0 %v3301_v23  ;;  %2295 = vmatpush1.bf16.msra.mxu1 %v3304_v24  ;;  %v3477_v23 = vld [vmem:[%s3902_s0 + $0x58] ss:$36 sps:$4 sm:$0xff]   ;;  %v3405_v24 = vld [vmem:[#allocation2 + $0x664] ss:$16 sps:$4 sm:$0xff]  }
  0xda   :  { %2031 = vmatprep.subr.bf16.mxu0 %v3309_v25  ;;  %2296 = vmatprep.subr.bf16.mxu1 %v3312_v26  ;;  %v3408_v25 = vld [vmem:[#allocation2 + $0x66c] ss:$16 sps:$4 sm:$0xff]  }
  0xdb   :  { %v3486_v26 = vld [vmem:[%s3902_s0 + $0x1c] ss:$36 sps:$4 sm:$0xff]  }
  0xdd   :  { %2032 = vmatpush1.bf16.msra.mxu0 %v3307_v27  ;;  %2297 = vmatpush1.bf16.msra.mxu1 %v3310_v28  ;;  %v3403_v27 = vld [vmem:[#allocation2 + $0x660] ss:$16 sps:$4 sm:$0xff]   ;;  %v3406_v28 = vld [vmem:[#allocation2 + $0x668] ss:$16 sps:$4 sm:$0xff]  }
  0xde   :  { %2033 = vmatprep.subr.bf16.mxu0 %v3315_v29  ;;  %2298 = vmatprep.subr.bf16.mxu1 %v3318_v30  ;;  %v3411_v29 = vld [vmem:[#allocation2 + $0x684] ss:$16 sps:$4 sm:$0xff]   ;;  %v3414_v30 = vld [vmem:[#allocation2 + $0x68c] ss:$16 sps:$4 sm:$0xff]  }
  0xe1   :  { %2034 = vmatpush1.bf16.msra.mxu0 %v3313_v31  ;;  %2299 = vmatpush1.bf16.msra.mxu1 %v3316_v32  ;;  %v3409_v31 = vld [vmem:[#allocation2 + $0x680] ss:$16 sps:$4 sm:$0xff]   ;;  %v3412_v32 = vld [vmem:[#allocation2 + $0x688] ss:$16 sps:$4 sm:$0xff]  }
  0xe2   :  { %2035 = vmatprep.subr.bf16.mxu0 %v3321_v33  ;;  %2300 = vmatprep.subr.bf16.mxu1 %v3324_v34  ;;  %v3417_v33 = vld [vmem:[#allocation2 + $0x6a4] ss:$16 sps:$4 sm:$0xff]   ;;  %v3420_v34 = vld [vmem:[#allocation2 + $0x6ac] ss:$16 sps:$4 sm:$0xff]  }
  0xe5   :  { %2036 = vmatpush1.bf16.msra.mxu0 %v3319_v35  ;;  %2301 = vmatpush1.bf16.msra.mxu1 %v3322_v36  ;;  %v3415_v35 = vld [vmem:[#allocation2 + $0x6a0] ss:$16 sps:$4 sm:$0xff]   ;;  %v3418_v36 = vld [vmem:[#allocation2 + $0x6a8] ss:$16 sps:$4 sm:$0xff]  }
  0xe6   :  { %2037 = vmatprep.subr.bf16.mxu0 %v3327_v37  ;;  %2302 = vmatprep.subr.bf16.mxu1 %v3330_v38  ;;  %v3423_v37 = vld [vmem:[#allocation2 + $0x6c4] ss:$16 sps:$4 sm:$0xff]   ;;  %v3426_v38 = vld [vmem:[#allocation2 + $0x6cc] ss:$16 sps:$4 sm:$0xff]  }
  0xe9   :  { %2038 = vmatpush1.bf16.msra.mxu0 %v3325_v39  ;;  %2303 = vmatpush1.bf16.msra.mxu1 %v3328_v40  ;;  %v3421_v39 = vld [vmem:[#allocation2 + $0x6c0] ss:$16 sps:$4 sm:$0xff]   ;;  %v3424_v40 = vld [vmem:[#allocation2 + $0x6c8] ss:$16 sps:$4 sm:$0xff]  }
  0xea   :  { %2039 = vmatprep.subr.bf16.mxu0 %v3333_v41  ;;  %2304 = vmatprep.subr.bf16.mxu1 %v3336_v42  ;;  %v3429_v41 = vld [vmem:[#allocation2 + $0x6e4] ss:$16 sps:$4 sm:$0xff]   ;;  %v3432_v42 = vld [vmem:[#allocation2 + $0x6ec] ss:$16 sps:$4 sm:$0xff]  }
  0xed   :  { %2040 = vmatpush1.bf16.msra.mxu0 %v3331_v43  ;;  %2305 = vmatpush1.bf16.msra.mxu1 %v3334_v44  ;;  %v3427_v43 = vld [vmem:[#allocation2 + $0x6e0] ss:$16 sps:$4 sm:$0xff]   ;;  %v3430_v44 = vld [vmem:[#allocation2 + $0x6e8] ss:$16 sps:$4 sm:$0xff]  }
  0xee   :  { %2041 = vmatprep.subr.bf16.mxu0 %v3339_v45  ;;  %2306 = vmatprep.subr.bf16.mxu1 %v3342_v46  ;;  %v3435_v45 = vld [vmem:[#allocation2 + $0x704] ss:$16 sps:$4 sm:$0xff]   ;;  %v3438_v46 = vld [vmem:[#allocation2 + $0x70c] ss:$16 sps:$4 sm:$0xff]  }
  0xf1   :  { %2042 = vmatpush1.bf16.msra.mxu0 %v3337_v47  ;;  %2307 = vmatpush1.bf16.msra.mxu1 %v3340_v48  ;;  %v3433_v47 = vld [vmem:[#allocation2 + $0x700] ss:$16 sps:$4 sm:$0xff]   ;;  %v3436_v48 = vld [vmem:[#allocation2 + $0x708] ss:$16 sps:$4 sm:$0xff]  }
  0xf2   :  { %2043 = vmatprep.subr.bf16.mxu0 %v3345_v49  ;;  %2308 = vmatprep.subr.bf16.mxu1 %v3348_v50  ;;  %v3441_v49 = vld [vmem:[#allocation2 + $0x724] ss:$16 sps:$4 sm:$0xff]   ;;  %v3444_v50 = vld [vmem:[#allocation2 + $0x72c] ss:$16 sps:$4 sm:$0xff]  }
  0xf5   :  { %2044 = vmatpush1.bf16.msra.mxu0 %v3343_v51  ;;  %2309 = vmatpush1.bf16.msra.mxu1 %v3346_v52  ;;  %v3439_v51 = vld [vmem:[#allocation2 + $0x720] ss:$16 sps:$4 sm:$0xff]   ;;  %v3442_v52 = vld [vmem:[#allocation2 + $0x728] ss:$16 sps:$4 sm:$0xff]  }
  0xf6   :  { %2045 = vmatprep.subr.bf16.mxu0 %v3351_v53  ;;  %2310 = vmatprep.subr.bf16.mxu1 %v3354_v54  ;;  %v3447_v53 = vld [vmem:[#allocation2 + $0x744] ss:$16 sps:$4 sm:$0xff]   ;;  %v3450_v54 = vld [vmem:[#allocation2 + $0x74c] ss:$16 sps:$4 sm:$0xff]  }
  0xf9   :  { %2046 = vmatpush1.bf16.msra.mxu0 %v3349_v55  ;;  %2311 = vmatpush1.bf16.msra.mxu1 %v3352_v56  ;;  %v3445_v55 = vld [vmem:[#allocation2 + $0x740] ss:$16 sps:$4 sm:$0xff]   ;;  %v3448_v56 = vld [vmem:[#allocation2 + $0x748] ss:$16 sps:$4 sm:$0xff]  }
  0xfa   :  { %2047 = vmatprep.subr.bf16.mxu0 %v3357_v57  ;;  %2312 = vmatprep.subr.bf16.mxu1 %v3360_v58  ;;  %v3453_v57 = vld [vmem:[#allocation2 + $0x764] ss:$16 sps:$4 sm:$0xff]   ;;  %v3456_v58 = vld [vmem:[#allocation2 + $0x76c] ss:$16 sps:$4 sm:$0xff]  }
  0xfd   :  { %2048 = vmatpush1.bf16.msra.mxu0 %v3355_v59  ;;  %2313 = vmatpush1.bf16.msra.mxu1 %v3358_v60  ;;  %v3451_v59 = vld [vmem:[#allocation2 + $0x760] ss:$16 sps:$4 sm:$0xff]   ;;  %v3454_v60 = vld [vmem:[#allocation2 + $0x768] ss:$16 sps:$4 sm:$0xff]  }
  0xfe   :  { %2049 = vmatprep.subr.bf16.mxu0 %v3363_v61  ;;  %2314 = vmatprep.subr.bf16.mxu1 %v3366_v62  ;;  %v3459_v61 = vld [vmem:[#allocation2 + $0x784] ss:$16 sps:$4 sm:$0xff]   ;;  %v3462_v62 = vld [vmem:[#allocation2 + $0x78c] ss:$16 sps:$4 sm:$0xff]  }
 0x101   :  { %2050 = vmatpush1.bf16.msra.mxu0 %v3361_v63  ;;  %2315 = vmatpush1.bf16.msra.mxu1 %v3364_v0  ;;  %v3457_v63 = vld [vmem:[#allocation2 + $0x780] ss:$16 sps:$4 sm:$0xff]   ;;  %v3460_v0 = vld [vmem:[#allocation2 + $0x788] ss:$16 sps:$4 sm:$0xff]  }
 0x102   :  { %2051 = vmatprep.subr.bf16.mxu0 %v3371_v1  ;;  %2316 = vmatprep.subr.bf16.mxu1 %v3374_v2  ;;  %v3465_v1 = vld [vmem:[#allocation2 + $0x7a4] ss:$16 sps:$4 sm:$0xff]   ;;  %v3468_v2 = vld [vmem:[#allocation2 + $0x7ac] ss:$16 sps:$4 sm:$0xff]  }
 0x105   :  { %2052 = vmatpush1.bf16.msra.mxu0 %v3369_v3  ;;  %2317 = vmatpush1.bf16.msra.mxu1 %v3372_v4  ;;  %v3463_v3 = vld [vmem:[#allocation2 + $0x7a0] ss:$16 sps:$4 sm:$0xff]   ;;  %v3466_v4 = vld [vmem:[#allocation2 + $0x7a8] ss:$16 sps:$4 sm:$0xff]  }
 0x106   :  { %2053 = vmatprep.subr.bf16.mxu0 %v3378_v5  ;;  %2318 = vmatprep.subr.bf16.mxu1 %v3381_v6  ;;  %v3473_v5 = vld [vmem:[#allocation2 + $0x7c4] ss:$16 sps:$4 sm:$0xff]   ;;  %v3476_v6 = vld [vmem:[#allocation2 + $0x7cc] ss:$16 sps:$4 sm:$0xff]  }
 0x109   :  { %2054 = vmatpush1.bf16.msra.mxu0 %v3376_v7  ;;  %2319 = vmatpush1.bf16.msra.mxu1 %v3379_v8  ;;  %v3471_v7 = vld [vmem:[#allocation2 + $0x7c0] ss:$16 sps:$4 sm:$0xff]   ;;  %v3474_v8 = vld [vmem:[#allocation2 + $0x7c8] ss:$16 sps:$4 sm:$0xff]  }
 0x10a   :  { %2076 = vmatprep.subr.bf16.mxu0 %v3387_v9  ;;  %2341 = vmatprep.subr.bf16.mxu1 %v3390_v10  ;;  %v3480_v9 = vld [vmem:[#allocation2 + $0x7e4] ss:$16 sps:$4 sm:$0xff]   ;;  %v3483_v10 = vld [vmem:[#allocation2 + $0x7ec] ss:$16 sps:$4 sm:$0xff]  }
 0x10c   :  { %2056 = vmatmul.mubr.bf16.vlgmr.msra.gmra.mrb[0].mxu0 %v3382_v11  ;;  %2321 = vmatmul.mubr.bf16.vlgmr.msra.gmra.mrb[0].mxu1 %v3382_v11  ;;  %v3478_v11 = vld [vmem:[#allocation2 + $0x7e0] ss:$16 sps:$4 sm:$0xff]  }
 0x10d   :  { %2077 = vmatpush1.bf16.msra.mxu0 %v3385_v12  ;;  %2342 = vmatpush1.bf16.msra.mxu1 %v3388_v13  ;;  %v3481_v12 = vld [vmem:[#allocation2 + $0x7e8] ss:$16 sps:$4 sm:$0xff]   ;;  %v3489_v13 = vld [vmem:[#allocation2 + $0x804] ss:$16 sps:$4 sm:$0xff]  }
 0x10e   :  { %2078 = vmatprep.subr.bf16.mxu0 %v3393_v14  ;;  %2343 = vmatprep.subr.bf16.mxu1 %v3396_v15  ;;  %v3492_v14 = vld [vmem:[#allocation2 + $0x80c] ss:$16 sps:$4 sm:$0xff]  }
 0x10f   :  { %2065 = vmatprep.mubr.bf16.mxu0 %v3469_v16  ;;  %2330 = vmatprep.mubr.bf16.mxu1 %v3469_v16  ;;  %v3484_v15 = vld [vmem:[%s3902_s0 + $0x18] ss:$36 sps:$4 sm:$0xff]   ;;  %v3487_v16 = vld [vmem:[#allocation2 + $0x800] ss:$16 sps:$4 sm:$0xff]  }
 0x111   :  { %2079 = vmatpush1.bf16.msra.mxu0 %v3391_v17  ;;  %2344 = vmatpush1.bf16.msra.mxu1 %v3394_v18  ;;  %v3490_v17 = vld [vmem:[#allocation2 + $0x808] ss:$16 sps:$4 sm:$0xff]   ;;  %v3495_v18 = vld [vmem:[#allocation2 + $0x824] ss:$16 sps:$4 sm:$0xff]  }
 0x112   :  { %2080 = vmatprep.subr.bf16.mxu0 %v3399_v19  ;;  %2345 = vmatprep.subr.bf16.mxu1 %v3402_v20  ;;  %v3498_v19 = vld [vmem:[#allocation2 + $0x82c] ss:$16 sps:$4 sm:$0xff]   ;;  %v3523_v20 = vld [vmem:[%s3902_s0 + $0x64] ss:$36 sps:$4 sm:$0xff]  }
 0x114   :  { %2066 = vmatmul.mubr.bf16.gmra.mrb[4].mxu0 %v3477_v23  ;;  %2331 = vmatmul.mubr.bf16.gmra.mrb[4].mxu1 %v3477_v23  ;;  %v3501_v23 = vld [vmem:[#allocation2 + $0x844] ss:$16 sps:$4 sm:$0xff]  }
 0x115   :  { %2081 = vmatpush1.bf16.msra.mxu0 %v3397_v21  ;;  %2346 = vmatpush1.bf16.msra.mxu1 %v3400_v22  ;;  %v3493_v21 = vld [vmem:[#allocation2 + $0x820] ss:$16 sps:$4 sm:$0xff]   ;;  %v3496_v22 = vld [vmem:[#allocation2 + $0x828] ss:$16 sps:$4 sm:$0xff]  }
 0x116   :  { %2082 = vmatprep.subr.bf16.mxu0 %v3405_v24  ;;  %2347 = vmatprep.subr.bf16.mxu1 %v3408_v25  ;;  %v3504_v24 = vld [vmem:[#allocation2 + $0x84c] ss:$16 sps:$4 sm:$0xff]   ;;  %v3525_v25 = vld [vmem:[%s3902_s0 + $0x60] ss:$36 sps:$4 sm:$0xff]  }
 0x117   :  { %2108 = vmatprep.mubr.bf16.mxu0 %v3486_v26  ;;  %2373 = vmatprep.mubr.bf16.mxu1 %v3486_v26  ;;  %v3499_v26 = vld [vmem:[#allocation2 + $0x840] ss:$16 sps:$4 sm:$0xff]  }
 0x119   :  { %2083 = vmatpush1.bf16.msra.mxu0 %v3403_v27  ;;  %2348 = vmatpush1.bf16.msra.mxu1 %v3406_v28  ;;  %v3502_v27 = vld [vmem:[#allocation2 + $0x848] ss:$16 sps:$4 sm:$0xff]   ;;  %v3507_v28 = vld [vmem:[#allocation2 + $0x864] ss:$16 sps:$4 sm:$0xff]  }
 0x11a   :  { %2084 = vmatprep.subr.bf16.mxu0 %v3411_v29  ;;  %2349 = vmatprep.subr.bf16.mxu1 %v3414_v30  ;;  %v3510_v29 = vld [vmem:[#allocation2 + $0x86c] ss:$16 sps:$4 sm:$0xff]   ;;  %v3505_v30 = vld [vmem:[#allocation2 + $0x860] ss:$16 sps:$4 sm:$0xff]  }
 0x11d   :  { %2085 = vmatpush1.bf16.msra.mxu0 %v3409_v31  ;;  %2350 = vmatpush1.bf16.msra.mxu1 %v3412_v32  ;;  %v3508_v31 = vld [vmem:[#allocation2 + $0x868] ss:$16 sps:$4 sm:$0xff]   ;;  %v3513_v32 = vld [vmem:[#allocation2 + $0x884] ss:$16 sps:$4 sm:$0xff]  }
 0x11e   :  { %2086 = vmatprep.subr.bf16.mxu0 %v3417_v33  ;;  %2351 = vmatprep.subr.bf16.mxu1 %v3420_v34  ;;  %v3516_v33 = vld [vmem:[#allocation2 + $0x88c] ss:$16 sps:$4 sm:$0xff]   ;;  %v3642_v34 = vmov 0  }
 0x121   :  { %2087 = vmatpush1.bf16.msra.mxu0 %v3415_v35  ;;  %2352 = vmatpush1.bf16.msra.mxu1 %v3418_v36  ;;  %v3511_v35 = vld [vmem:[#allocation2 + $0x880] ss:$16 sps:$4 sm:$0xff]   ;;  %v3514_v36 = vld [vmem:[#allocation2 + $0x888] ss:$16 sps:$4 sm:$0xff]  }
 0x122   :  { %2088 = vmatprep.subr.bf16.mxu0 %v3423_v37  ;;  %2353 = vmatprep.subr.bf16.mxu1 %v3426_v38  ;;  %v3519_v37 = vld [vmem:[#allocation2 + $0x8a4] ss:$16 sps:$4 sm:$0xff]   ;;  %v3522_v38 = vld [vmem:[#allocation2 + $0x8ac] ss:$16 sps:$4 sm:$0xff]  }
 0x125   :  { %2089 = vmatpush1.bf16.msra.mxu0 %v3421_v39  ;;  %2354 = vmatpush1.bf16.msra.mxu1 %v3424_v40  ;;  %v3517_v39 = vld [vmem:[#allocation2 + $0x8a0] ss:$16 sps:$4 sm:$0xff]   ;;  %v3520_v40 = vld [vmem:[#allocation2 + $0x8a8] ss:$16 sps:$4 sm:$0xff]  }
 0x126   :  { %2090 = vmatprep.subr.bf16.mxu0 %v3429_v41  ;;  %2355 = vmatprep.subr.bf16.mxu1 %v3432_v42  ;;  %v3528_v41 = vld [vmem:[#allocation2 + $0x8c4] ss:$16 sps:$4 sm:$0xff]   ;;  %v3531_v42 = vld [vmem:[#allocation2 + $0x8cc] ss:$16 sps:$4 sm:$0xff]  }
 0x129   :  { %2091 = vmatpush1.bf16.msra.mxu0 %v3427_v43  ;;  %2356 = vmatpush1.bf16.msra.mxu1 %v3430_v44  ;;  %v3526_v43 = vld [vmem:[#allocation2 + $0x8c0] ss:$16 sps:$4 sm:$0xff]   ;;  %v3529_v44 = vld [vmem:[#allocation2 + $0x8c8] ss:$16 sps:$4 sm:$0xff]  }
 0x12a   :  { %2092 = vmatprep.subr.bf16.mxu0 %v3435_v45  ;;  %2357 = vmatprep.subr.bf16.mxu1 %v3438_v46  ;;  %v3534_v45 = vld [vmem:[#allocation2 + $0x8e4] ss:$16 sps:$4 sm:$0xff]   ;;  %v3537_v46 = vld [vmem:[#allocation2 + $0x8ec] ss:$16 sps:$4 sm:$0xff]  }
 0x12d   :  { %2093 = vmatpush1.bf16.msra.mxu0 %v3433_v47  ;;  %2358 = vmatpush1.bf16.msra.mxu1 %v3436_v48  ;;  %v3532_v47 = vld [vmem:[#allocation2 + $0x8e0] ss:$16 sps:$4 sm:$0xff]   ;;  %v3535_v48 = vld [vmem:[#allocation2 + $0x8e8] ss:$16 sps:$4 sm:$0xff]  }
 0x12e   :  { %2094 = vmatprep.subr.bf16.mxu0 %v3441_v49  ;;  %2359 = vmatprep.subr.bf16.mxu1 %v3444_v50  ;;  %v3538_v49 = vld [vmem:[%s3902_s0 + $0x20] ss:$36 sps:$4 sm:$0xff]   ;;  %v3539_v50 = vld [vmem:[%s3902_s0 + $0x68] ss:$36 sps:$4 sm:$0xff]  }
 0x131   :  { %2095 = vmatpush1.bf16.msra.mxu0 %v3439_v51  ;;  %2360 = vmatpush1.bf16.msra.mxu1 %v3442_v52  ;;  %v2672_v51 = vld [vmem:[#allocation4] ss:$0 sm:$0xff] }
 0x132   :  { %2096 = vmatprep.subr.bf16.mxu0 %v3447_v53  ;;  %2361 = vmatprep.subr.bf16.mxu1 %v3450_v54 }
 0x135   :  { %2097 = vmatpush1.bf16.msra.mxu0 %v3445_v55  ;;  %2362 = vmatpush1.bf16.msra.mxu1 %v3448_v56 }
 0x136   :  { %2098 = vmatprep.subr.bf16.mxu0 %v3453_v57  ;;  %2363 = vmatprep.subr.bf16.mxu1 %v3456_v58 }
 0x139   :  { %2099 = vmatpush1.bf16.msra.mxu0 %v3451_v59  ;;  %2364 = vmatpush1.bf16.msra.mxu1 %v3454_v60 }
 0x13a   :  { %2100 = vmatprep.subr.bf16.mxu0 %v3459_v61  ;;  %2365 = vmatprep.subr.bf16.mxu1 %v3462_v62 }
 0x13d   :  { %2101 = vmatpush1.bf16.msra.mxu0 %v3457_v63  ;;  %2366 = vmatpush1.bf16.msra.mxu1 %v3460_v0 }
 0x13e   :  { %2102 = vmatprep.subr.bf16.mxu0 %v3465_v1  ;;  %2367 = vmatprep.subr.bf16.mxu1 %v3468_v2 }
 0x141   :  { %2103 = vmatpush1.bf16.msra.mxu0 %v3463_v3  ;;  %2368 = vmatpush1.bf16.msra.mxu1 %v3466_v4 }
 0x142   :  { %2104 = vmatprep.subr.bf16.mxu0 %v3473_v5  ;;  %2369 = vmatprep.subr.bf16.mxu1 %v3476_v6 }
 0x145   :  { %2105 = vmatpush1.bf16.msra.mxu0 %v3471_v7  ;;  %2370 = vmatpush1.bf16.msra.mxu1 %v3474_v8 }
 0x146   :  { %2106 = vmatprep.subr.bf16.mxu0 %v3480_v9  ;;  %2371 = vmatprep.subr.bf16.mxu1 %v3483_v10 }
 0x149   :  { %2107 = vmatpush1.bf16.msra.mxu0 %v3478_v11  ;;  %2372 = vmatpush1.bf16.msra.mxu1 %v3481_v12 }
 0x14a   :  { %2129 = vmatprep.subr.bf16.mxu0 %v3489_v13  ;;  %2394 = vmatprep.subr.bf16.mxu1 %v3492_v14 }
 0x14c   :  { %2109 = vmatmul.mubr.bf16.vlgmr.msra.gmra.mrb[0].mxu0 %v3484_v15  ;;  %2374 = vmatmul.mubr.bf16.vlgmr.msra.gmra.mrb[0].mxu1 %v3484_v15 }
 0x14d   :  { %2130 = vmatpush1.bf16.msra.mxu0 %v3487_v16  ;;  %2395 = vmatpush1.bf16.msra.mxu1 %v3490_v17 }
 0x14e   :  { %2131 = vmatprep.subr.bf16.mxu0 %v3495_v18  ;;  %2396 = vmatprep.subr.bf16.mxu1 %v3498_v19 }
 0x14f   :  { %2118 = vmatprep.mubr.bf16.mxu0 %v3523_v20  ;;  %2383 = vmatprep.mubr.bf16.mxu1 %v3523_v20 }
 0x151   :  { %2132 = vmatpush1.bf16.msra.mxu0 %v3493_v21  ;;  %2397 = vmatpush1.bf16.msra.mxu1 %v3496_v22 }
 0x152   :  { %2133 = vmatprep.subr.bf16.mxu0 %v3501_v23  ;;  %2398 = vmatprep.subr.bf16.mxu1 %v3504_v24 }
 0x154   :  { %2119 = vmatmul.mubr.bf16.gmra.mrb[4].mxu0 %v3525_v25  ;;  %2384 = vmatmul.mubr.bf16.gmra.mrb[4].mxu1 %v3525_v25 }
 0x155   :  { %2134 = vmatpush1.bf16.msra.mxu0 %v3499_v26  ;;  %2399 = vmatpush1.bf16.msra.mxu1 %v3502_v27 }
 0x156   :  { %2135 = vmatprep.subr.bf16.mxu0 %v3507_v28  ;;  %2400 = vmatprep.subr.bf16.mxu1 %v3510_v29 }
 0x157   :  { %2161 = vmatprep.mubr.bf16.mxu0 %v3642_v34  ;;  %2426 = vmatprep.mubr.bf16.mxu1 %v3642_v34 }
 0x159   :  { %2136 = vmatpush1.bf16.msra.mxu0 %v3505_v30  ;;  %2401 = vmatpush1.bf16.msra.mxu1 %v3508_v31 }
 0x15a   :  { %2137 = vmatprep.subr.bf16.mxu0 %v3513_v32  ;;  %2402 = vmatprep.subr.bf16.mxu1 %v3516_v33 }
 0x15d   :  { %2138 = vmatpush1.bf16.msra.mxu0 %v3511_v35  ;;  %2403 = vmatpush1.bf16.msra.mxu1 %v3514_v36 }
 0x15e   :  { %2139 = vmatprep.subr.bf16.mxu0 %v3519_v37  ;;  %2404 = vmatprep.subr.bf16.mxu1 %v3522_v38 }
 0x161   :  { %2140 = vmatpush1.bf16.msra.mxu0 %v3517_v39  ;;  %2405 = vmatpush1.bf16.msra.mxu1 %v3520_v40 }
 0x162   :  { %2141 = vmatprep.subr.bf16.mxu0 %v3528_v41  ;;  %2406 = vmatprep.subr.bf16.mxu1 %v3531_v42 }
 0x165   :  { %2142 = vmatpush1.bf16.msra.mxu0 %v3526_v43  ;;  %2407 = vmatpush1.bf16.msra.mxu1 %v3529_v44 }
 0x166   :  { %2143 = vmatprep.subr.bf16.mxu0 %v3534_v45  ;;  %2408 = vmatprep.subr.bf16.mxu1 %v3537_v46 }
 0x169   :  { %2144 = vmatpush1.bf16.msra.mxu0 %v3532_v47  ;;  %2409 = vmatpush1.bf16.msra.mxu1 %v3535_v48 }
 0x16c   :  { %2162 = vmatmul.mubr.bf16.vlgmr.msra.gmra.mrb[0].mxu0 %v3538_v49  ;;  %2427 = vmatmul.mubr.bf16.vlgmr.msra.gmra.mrb[0].mxu1 %v3538_v49 }
 0x16d   :  { %2171 = vmatprep.mubr.bf16.mxu0 %v3642_v34  ;;  %2436 = vmatprep.mubr.bf16.mxu1 %v3642_v34 }
 0x174   :  { %2172 = vmatmul.mubr.bf16.gmra.mrb[4].mxu0 %v3539_v50  ;;  %2437 = vmatmul.mubr.bf16.gmra.mrb[4].mxu1 %v3539_v50 }
 0x23f   :  { %v2163_v52 = vpop.f32.mrb[0].mxu0  ;;  %v2428_v53 = vpop.f32.mrb[0].mxu1 }
 0x240   :  { %v3782_v54 = vadd.f32 %v2672_v51, %v2163_v52  ;;  %v3784_v55 = vadd.f32 %v2672_v51, %v2428_v53  ;;  %v2165_v56 = vpop.f32.mrb[1].mxu0  ;;  %v2430_v57 = vpop.f32.mrb[1].mxu1 }
 0x241   :  { %v3786_v58 = vadd.f32 %v2672_v51, %v2165_v56  ;;  %v3788_v59 = vadd.f32 %v2672_v51, %v2430_v57  ;;  %v2167_v60 = vpop.f32.mrb[2].mxu0  ;;  %v2432_v61 = vpop.f32.mrb[2].mxu1 }
 0x242   :  { %v2483_v62 = vmul.f32 %v3782_v54, %v3782_v54  ;;  %v2485_v63 = vmul.f32 %v3784_v55, %v3784_v55  ;;  %v3794_v0 = vadd.f32 %v2672_v51, %v2167_v60  ;;  %v3796_v1 = vadd.f32 %v2672_v51, %v2432_v61  ;;  %v2169_v2 = vpop.f32.mrb[3].mxu0  ;;  %v2434_v3 = vpop.f32.mrb[3].mxu1 }
 0x243   :  { %v2484_v4 = vmul.f32 %v3786_v58, %v3786_v58  ;;  %v2486_v5 = vmul.f32 %v3788_v59, %v3788_v59  ;;  %v3802_v6 = vadd.f32 %v2672_v51, %v2169_v2  ;;  %v3804_v7 = vadd.f32 %v2672_v51, %v2434_v3 }
 0x244   :  { %v2447_v8 = vadd.f32 %v3794_v0, %v3782_v54  ;;  %v2487_v9 = vmul.f32 %v3794_v0, %v3794_v0  ;;  %v2465_v10 = vadd.f32 %v3796_v1, %v3784_v55  ;;  %v2489_v11 = vmul.f32 %v3796_v1, %v3796_v1 }
 0x245   :  { %v2456_v12 = vadd.f32 %v3802_v6, %v3786_v58  ;;  %v2488_v13 = vmul.f32 %v3802_v6, %v3802_v6  ;;  %v2474_v14 = vadd.f32 %v3804_v7, %v3788_v59  ;;  %v2490_v15 = vmul.f32 %v3804_v7, %v3804_v7 }
 0x246   :  { %v2499_v16 = vadd.f32 %v2487_v9, %v2483_v62  ;;  %v2517_v17 = vadd.f32 %v2489_v11, %v2485_v63 }
 0x247   :  { %v2508_v18 = vadd.f32 %v2488_v13, %v2484_v4  ;;  %v2526_v19 = vadd.f32 %v2490_v15, %v2486_v5  ;;  %v2173_v20 = vpop.f32.mrb[4].mxu0  ;;  %v2438_v21 = vpop.f32.mrb[4].mxu1 }
 0x248   :  { %v3822_v22 = vadd.f32 %v2672_v51, %v2173_v20  ;;  %v3824_v23 = vadd.f32 %v2672_v51, %v2438_v21  ;;  %v2175_v24 = vpop.f32.mrb[5].mxu0  ;;  %v2440_v25 = vpop.f32.mrb[5].mxu1 }
 0x249   :  { %v3826_v26 = vadd.f32 %v2672_v51, %v2175_v24  ;;  %v3828_v27 = vadd.f32 %v2672_v51, %v2440_v25  ;;  %v2177_v28 = vpop.f32.mrb[6].mxu0  ;;  %v2442_v29 = vpop.f32.mrb[6].mxu1 }
 0x24a   :  { %v2448_v30 = vadd.f32 %v3822_v22, %v2447_v8  ;;  %v2491_v31 = vmul.f32 %v3822_v22, %v3822_v22  ;;  %v2466_v32 = vadd.f32 %v3824_v23, %v2465_v10  ;;  %v2493_v33 = vmul.f32 %v3824_v23, %v3824_v23  ;;  %v2179_v34 = vpop.f32.mrb[7].mxu0  ;;  %v2444_v35 = vpop.f32.mrb[7].mxu1 }
 0x24b   :  { %v2457_v36 = vadd.f32 %v3826_v26, %v2456_v12  ;;  %v2492_v37 = vmul.f32 %v3826_v26, %v3826_v26  ;;  %v2475_v38 = vadd.f32 %v3828_v27, %v2474_v14  ;;  %v2494_v39 = vmul.f32 %v3828_v27, %v3828_v27 }
 0x24c   :  { %v2500_v40 = vadd.f32 %v2499_v16, %v2491_v31  ;;  %v2518_v41 = vadd.f32 %v2517_v17, %v2493_v33  ;;  %v3842_v42 = vadd.f32 %v2672_v51, %v2177_v28  ;;  %v3844_v43 = vadd.f32 %v2672_v51, %v2442_v29 }
 0x24d   :  { %v2509_v44 = vadd.f32 %v2508_v18, %v2492_v37  ;;  %v2527_v45 = vadd.f32 %v2526_v19, %v2494_v39  ;;  %v3846_v46 = vadd.f32 %v2672_v51, %v2179_v34  ;;  %v3848_v47 = vadd.f32 %v2672_v51, %v2444_v35 }
 0x24e   :  { %v2449_v48 = vadd.f32 %v3842_v42, %v2448_v30  ;;  %v2495_v49 = vmul.f32 %v3842_v42, %v3842_v42  ;;  %v2467_v50 = vadd.f32 %v3844_v43, %v2466_v32  ;;  %v2497_v52 = vmul.f32 %v3844_v43, %v3844_v43 }
 0x24f   :  { %v2458_v53 = vadd.f32 %v3846_v46, %v2457_v36  ;;  %v2496_v56 = vmul.f32 %v3846_v46, %v3846_v46  ;;  %v2476_v57 = vadd.f32 %v3848_v47, %v2475_v38  ;;  %v2498_v51 = vmul.f32 %v3848_v47, %v3848_v47 }
 0x250   :  { %v2450_v60 = vrot.slane %v2449_v48, 4  ;;  %v2501_v61 = vadd.f32 %v2500_v40, %v2495_v49  ;;  %v2468_v62 = vrot.slane %v2467_v50, 4  ;;  %v2519_v63 = vadd.f32 %v2518_v41, %v2497_v52 }
 0x251   :  { %v2459_v2 = vrot.slane %v2458_v53, 4  ;;  %v2510_v3 = vadd.f32 %v2509_v44, %v2496_v56  ;;  %v2477_v4 = vrot.slane %v2476_v57, 4  ;;  %v2528_v5 = vadd.f32 %v2527_v45, %v2498_v51 }
 0x252   :  { %v2451_v8 = vadd.f32 %v2450_v60, %v2449_v48  ;;  %v2502_v9 = vrot.slane %v2501_v61, 4  ;;  %v2469_v10 = vadd.f32 %v2468_v62, %v2467_v50  ;;  %v2520_v11 = vrot.slane %v2519_v63, 4 }
 0x253   :  { %v2460_v12 = vadd.f32 %v2459_v2, %v2458_v53  ;;  %v2511_v13 = vrot.slane %v2510_v3, 4  ;;  %v2478_v14 = vadd.f32 %v2477_v4, %v2476_v57  ;;  %v2529_v15 = vrot.slane %v2528_v5, 4 }
 0x254   :  { %v2452_v16 = vrot.slane %v2451_v8, 2  ;;  %v2503_v17 = vadd.f32 %v2502_v9, %v2501_v61  ;;  %v2470_v18 = vrot.slane %v2469_v10, 2  ;;  %v2521_v19 = vadd.f32 %v2520_v11, %v2519_v63 }
 0x255   :  { %v2461_v20 = vrot.slane %v2460_v12, 2  ;;  %v2512_v21 = vadd.f32 %v2511_v13, %v2510_v3  ;;  %v2479_v24 = vrot.slane %v2478_v14, 2  ;;  %v2530_v25 = vadd.f32 %v2529_v15, %v2528_v5 }
 0x256   :  { %v2453_v28 = vadd.f32 %v2452_v16, %v2451_v8  ;;  %v2504_v29 = vrot.slane %v2503_v17, 2  ;;  %v2471_v30 = vadd.f32 %v2470_v18, %v2469_v10  ;;  %v2522_v31 = vrot.slane %v2521_v19, 2 }
 0x257   :  { %v2462_v32 = vadd.f32 %v2461_v20, %v2460_v12  ;;  %v2513_v33 = vrot.slane %v2512_v21, 2  ;;  %v2480_v34 = vadd.f32 %v2479_v24, %v2478_v14  ;;  %v2531_v35 = vrot.slane %v2530_v25, 2 }
 0x258   :  { %v2454_v36 = vrot.slane %v2453_v28, 1  ;;  %v2505_v37 = vadd.f32 %v2504_v29, %v2503_v17  ;;  %v2523_v38 = vadd.f32 %v2522_v31, %v2521_v19  ;;  %v2472_v39 = vrot.slane %v2471_v30, 1  ;;  %v379_v17 = vld [vmem:[#allocation6] sm:$0x1] }
 0x259   :  { %v2463_v40 = vrot.slane %v2462_v32, 1  ;;  %v2514_v41 = vadd.f32 %v2513_v33, %v2512_v21  ;;  %v2532_v44 = vadd.f32 %v2531_v35, %v2530_v25  ;;  %v2481_v53 = vrot.slane %v2480_v34, 1  ;;  %v380_v21 = vld [vmem:[#allocation7] sm:$0x1] }
 0x25a   :  { %v2455_v45 = vadd.f32 %v2454_v36, %v2453_v28  ;;  %v2506_v48 = vrot.slane %v2505_v37, 1  ;;  %v2524_v49 = vrot.slane %v2523_v38, 1  ;;  %v2473_v57 = vadd.f32 %v2472_v39, %v2471_v30 }
 0x25b   :  { %v2464_v50 = vadd.f32 %v2463_v40, %v2462_v32  ;;  %v2515_v52 = vrot.slane %v2514_v41, 1  ;;  %v2533_v61 = vrot.slane %v2532_v44, 1  ;;  %v2482_v2 = vadd.f32 %v2481_v53, %v2480_v34 }
 0x25c   :  { %v2507_v56 = vadd.f32 %v2506_v48, %v2505_v37  ;;  %v2525_v62 = vadd.f32 %v2524_v49, %v2523_v38  ;;  %v2553_v15 = vlaneseq }
 0x25d   :  { %v2516_v51 = vadd.f32 %v2515_v52, %v2514_v41  ;;  %v2536_v60 = vadd.f32 %v2464_v50, %v2455_v45  ;;  %v2534_v4 = vadd.f32 %v2533_v61, %v2532_v44 }
 0x25e   :  { %v2554_v16 = vshrl.u32 %v2553_v15, 7 }
 0x25f   :  { %v2540_v63 = vadd.f32 %v2516_v51, %v2507_v56  ;;  %v2537_v3 = vadd.f32 %v2536_v60, %v2473_v57 }
 0x260   :  { %v2555_v18 = vsub.s32 0, %v2554_v16 }
 0x261   :  { %v2538_v5 = vadd.f32 %v2537_v3, %v2482_v2  ;;  %v2541_v8 = vadd.f32 %v2540_v63, %v2525_v62 }
 0x263   :  { %v2542_v9 = vadd.f32 %v2541_v8, %v2534_v4  ;;  %v2544_v10 = vmul.f32 0.0078125, %v2538_v5 }
 0x265   :  { %v2545_v11 = vmul.f32 0.0078125, %v2542_v9  ;;  %v2546_v12 = vmul.f32 %v2544_v10, %v2544_v10 }
 0x267   :  { %v2547_v13 = vsub.f32 %v2545_v11, %v2546_v12 }
 0x269   :  { %v2548_v14 = vadd.f32 1e-05, %v2547_v13 }
 0x26b   :  { %3540 = vrsqrt.f32 %v2548_v14 }
 0x275   :  { %v3541_v19 = vpop.eup %3540 }
 0x276   :  { %v2550_v20 = vmul.f32 %v3541_v19, %v379_v17 }
 0x278   :  { %v2551_v24 = vmul.f32 %v2550_v20, %v2544_v10  ;;  %v2556_v25 = vrot.slane %v2550_v20, %v2555_v18 }
 0x27a   :  { %v2552_v28 = vsub.f32 %v380_v21, %v2551_v24  ;;  %v2557_v29 = vmul.f32 %v3782_v54, %v2556_v25  ;;  %v2558_v30 = vmul.f32 %v3786_v58, %v2556_v25  ;;  %v2559_v31 = vmul.f32 %v3784_v55, %v2556_v25 }
 0x27b   :  { %v2560_v32 = vmul.f32 %v3788_v59, %v2556_v25  ;;  %v2561_v33 = vmul.f32 %v3794_v0, %v2556_v25  ;;  %v2562_v34 = vmul.f32 %v3802_v6, %v2556_v25  ;;  %v2563_v35 = vmul.f32 %v3796_v1, %v2556_v25 }
 0x27c   :  { %v2564_v36 = vmul.f32 %v3804_v7, %v2556_v25  ;;  %v2565_v37 = vmul.f32 %v3822_v22, %v2556_v25  ;;  %v2566_v38 = vmul.f32 %v3826_v26, %v2556_v25  ;;  %v2567_v54 = vmul.f32 %v3824_v23, %v2556_v25 }
 0x27d   :  { %v2568_v58 = vmul.f32 %v3828_v27, %v2556_v25  ;;  %v2569_v55 = vmul.f32 %v3842_v42, %v2556_v25  ;;  %v2570_v59 = vmul.f32 %v3846_v46, %v2556_v25  ;;  %v2571_v0 = vmul.f32 %v3844_v43, %v2556_v25 }
 0x27e   :  { %v2572_v6 = vmul.f32 %v3848_v47, %v2556_v25  ;;  %v2576_v39 = vrot.slane %v2552_v28, %v2555_v18 }
 0x280   :  { %v2577_v1 = vadd.f32 %v2576_v39, %v2557_v29  ;;  %v2578_v40 = vadd.f32 %v2576_v39, %v2558_v30  ;;  %v2579_v7 = vadd.f32 %v2576_v39, %v2559_v31  ;;  %v2580_v41 = vadd.f32 %v2576_v39, %v2560_v32 }
 0x281   :  { %v2581_v22 = vadd.f32 %v2576_v39, %v2561_v33  ;;  %v2582_v44 = vadd.f32 %v2576_v39, %v2562_v34  ;;  %v2583_v26 = vadd.f32 %v2576_v39, %v2563_v35  ;;  %v2584_v45 = vadd.f32 %v2576_v39, %v2564_v36 }
 0x282   :  { %v2585_v23 = vadd.f32 %v2576_v39, %v2565_v37  ;;  %v2586_v48 = vadd.f32 %v2576_v39, %v2566_v38  ;;  %v2587_v27 = vadd.f32 %v2576_v39, %v2567_v54  ;;  %v2588_v49 = vadd.f32 %v2576_v39, %v2568_v58 }
 0x283   :  { %v2589_v42 = vadd.f32 %v2576_v39, %v2569_v55  ;;  %v2590_v50 = vadd.f32 %v2576_v39, %v2570_v59  ;;  %v2591_v46 = vadd.f32 %v2576_v39, %v2571_v0  ;;  %v2592_v52 = vadd.f32 %v2576_v39, %v2572_v6 }
 0x284   :  { %v2593_v43 = vmax.f32 %v2577_v1, 0.0  ;;  %v2594_v53 = vmax.f32 %v2578_v40, 0.0  ;;  %v2595_v47 = vmax.f32 %v2579_v7, 0.0  ;;  %v2596_v56 = vmax.f32 %v2580_v41, 0.0 }
 0x285   :  { %v2597_v57 = vmax.f32 %v2581_v22, 0.0  ;;  %v2598_v51 = vmax.f32 %v2582_v44, 0.0  ;;  %v2599_v60 = vmax.f32 %v2583_v26, 0.0  ;;  %v2600_v61 = vmax.f32 %v2584_v45, 0.0 }
 0x286   :  { %v2601_v62 = vmax.f32 %v2585_v23, 0.0  ;;  %v2602_v63 = vmax.f32 %v2586_v48, 0.0  ;;  %v2603_v2 = vmax.f32 %v2587_v27, 0.0  ;;  %v2604_v3 = vmax.f32 %v2588_v49, 0.0 }
 0x287   :  { %v2605_v4 = vmax.f32 %v2589_v42, 0.0  ;;  %v2606_v5 = vmax.f32 %v2590_v50, 0.0  ;;  %v2607_v8 = vmax.f32 %v2591_v46, 0.0  ;;  %v2608_v9 = vmax.f32 %v2592_v52, 0.0 }
 0x288   :  { %v2987_v10 = vpack.c.bf16 %v2594_v53, %v2593_v43  ;;  %v2988_v11 = vpack.c.bf16 %v2596_v56, %v2595_v47  ;;  %v2989_v12 = vpack.c.bf16 %v2598_v51, %v2597_v57  ;;  %v2990_v13 = vpack.c.bf16 %v2600_v61, %v2599_v60 }
 0x289   :  { %v2991_v14 = vpack.c.bf16 %v2602_v63, %v2601_v62  ;;  %v2992_v15 = vpack.c.bf16 %v2604_v3, %v2603_v2  ;;  %v2993_v16 = vpack.c.bf16 %v2606_v5, %v2605_v4  ;;  %v2994_v17 = vpack.c.bf16 %v2608_v9, %v2607_v8 }
 0x28a   :  { %2657 = vst [vmem:[%s3907_s5] sm:$0xff] %v2987_v10  ;;  %2658 = vst [vmem:[%s3907_s5 + $0x8] sm:$0xff] %v2988_v11 }
 0x28b   :  { %2659 = vst [vmem:[%s3907_s5 + $0x10] sm:$0xff] %v2989_v12  ;;  %2660 = vst [vmem:[%s3907_s5 + $0x18] sm:$0xff] %v2990_v13 }
 0x28c   :  { %2661 = vst [vmem:[%s3907_s5 + $0x20] sm:$0xff] %v2991_v14  ;;  %2662 = vst [vmem:[%s3907_s5 + $0x28] sm:$0xff] %v2992_v15 }
 0x28d   :  { %2663 = vst [vmem:[%s3907_s5 + $0x30] sm:$0xff] %v2993_v16  ;;  %2664 = vst [vmem:[%s3907_s5 + $0x38] sm:$0xff] %v2994_v17 }
 0x28e   :  { %2669 = vsyncpa [#allocation3], 1 }
 0x28f   :  { %2670 = vsyncpa [#allocation5], 1 }
 0x290   :  { %2671 = vsyncpa [#allocation8], 1 }

// kernel: generator_forward.4
= control target key start
LH: loop header
LB: loop body
LE: loop exit
PB: predicated region body
PF: predicated region fallthrough
CT: control target
= control target key end

     0   :  { %s7483_s1 = inlined_call_operand.vmem [shape: bf16[1152,512], index: 1, kind: input, shape index: {}]   ;;  %s7484_s0 = inlined_call_operand.vmem [shape: bf16[128,1152], index: 0, kind: input, shape index: {}]   ;;  %s7485_s2 = inlined_call_operand.vmem [shape: f32[1,128], index: 2, kind: input, shape index: {}]   ;;  %s7486_s3 = inlined_call_operand.vmem [shape: f32[1,128], index: 3, kind: input, shape index: {}]   ;;  %s7487_s4 = inlined_call_operand.vmem [shape: f32[1,128], index: 4, kind: input, shape index: {}]   ;;  %s7488_s5 = inlined_call_operand.vmem [shape: bf16[128,512], index: 5, kind: output, shape index: {}]  }
   0x1   :  { %v4758_v0 = vld [vmem:[%s7483_s1 + $0x4] ss:$16 sps:$4 sm:$0xff]   ;;  %v4760_v1 = vld [vmem:[%s7483_s1 + $0xc] ss:$16 sps:$4 sm:$0xff]   ;;  %v4762_v2 = vld [vmem:[%s7483_s1] ss:$16 sps:$4 sm:$0xff]  }
   0x2   :  { %2204 = vmatprep.subr.bf16.mxu0 %v4758_v0  ;;  %v4763_v3 = vld [vmem:[%s7483_s1 + $0x8] ss:$16 sps:$4 sm:$0xff]   ;;  %2769 = vmatprep.subr.bf16.mxu1 %v4760_v1  ;;  %v4764_v4 = vld [vmem:[%s7483_s1 + $0x24] ss:$16 sps:$4 sm:$0xff]   ;;  %v4766_v5 = vld [vmem:[%s7483_s1 + $0x2c] ss:$16 sps:$4 sm:$0xff]  }
   0x3   :  { %2205 = vmatpush1.bf16.msra.mxu0 %v4762_v2  ;;  %2770 = vmatpush1.bf16.msra.mxu1 %v4763_v3  ;;  %v4768_v6 = vld [vmem:[%s7483_s1 + $0x20] ss:$16 sps:$4 sm:$0xff]   ;;  %v4769_v7 = vld [vmem:[%s7483_s1 + $0x28] ss:$16 sps:$4 sm:$0xff]   ;;  %v4770_v8 = vld [vmem:[%s7483_s1 + $0x44] ss:$16 sps:$4 sm:$0xff]  }
   0x4   :  { %2206 = vmatprep.subr.bf16.mxu0 %v4764_v4  ;;  %2771 = vmatprep.subr.bf16.mxu1 %v4766_v5  ;;  %v4772_v9 = vld [vmem:[%s7483_s1 + $0x4c] ss:$16 sps:$4 sm:$0xff]   ;;  %v4774_v10 = vld [vmem:[%s7483_s1 + $0x40] ss:$16 sps:$4 sm:$0xff]   ;;  %v4775_v11 = vld [vmem:[%s7483_s1 + $0x48] ss:$16 sps:$4 sm:$0xff]  }
   0x5   :  { %v4776_v12 = vld [vmem:[%s7483_s1 + $0x64] ss:$16 sps:$4 sm:$0xff]   ;;  %v4778_v13 = vld [vmem:[%s7483_s1 + $0x6c] ss:$16 sps:$4 sm:$0xff]   ;;  %v4780_v14 = vld [vmem:[%s7483_s1 + $0x60] ss:$16 sps:$4 sm:$0xff]  }
   0x6   :  { %v4781_v15 = vld [vmem:[%s7483_s1 + $0x68] ss:$16 sps:$4 sm:$0xff]   ;;  %v4782_v16 = vld [vmem:[%s7483_s1 + $0x84] ss:$16 sps:$4 sm:$0xff]   ;;  %v4784_v17 = vld [vmem:[%s7483_s1 + $0x8c] ss:$16 sps:$4 sm:$0xff]  }
   0x7   :  { %2207 = vmatpush1.bf16.msra.mxu0 %v4768_v6  ;;  %2772 = vmatpush1.bf16.msra.mxu1 %v4769_v7  ;;  %v4786_v18 = vld [vmem:[%s7483_s1 + $0x80] ss:$16 sps:$4 sm:$0xff]   ;;  %v4787_v19 = vld [vmem:[%s7483_s1 + $0x88] ss:$16 sps:$4 sm:$0xff]   ;;  %v4788_v20 = vld [vmem:[%s7483_s1 + $0xa4] ss:$16 sps:$4 sm:$0xff]  }
   0x8   :  { %2208 = vmatprep.subr.bf16.mxu0 %v4770_v8  ;;  %2773 = vmatprep.subr.bf16.mxu1 %v4772_v9  ;;  %v4790_v21 = vld [vmem:[%s7483_s1 + $0xac] ss:$16 sps:$4 sm:$0xff]   ;;  %v4792_v22 = vld [vmem:[%s7483_s1 + $0xa0] ss:$16 sps:$4 sm:$0xff]   ;;  %v4793_v23 = vld [vmem:[%s7483_s1 + $0xa8] ss:$16 sps:$4 sm:$0xff]  }
   0x9   :  { %v4794_v24 = vld [vmem:[%s7483_s1 + $0xc4] ss:$16 sps:$4 sm:$0xff]   ;;  %v4796_v25 = vld [vmem:[%s7483_s1 + $0xcc] ss:$16 sps:$4 sm:$0xff]   ;;  %v4798_v26 = vld [vmem:[%s7483_s1 + $0xc0] ss:$16 sps:$4 sm:$0xff]  }
   0xa   :  { %v4799_v27 = vld [vmem:[%s7483_s1 + $0xc8] ss:$16 sps:$4 sm:$0xff]   ;;  %v4800_v28 = vld [vmem:[%s7483_s1 + $0xe4] ss:$16 sps:$4 sm:$0xff]   ;;  %v4802_v29 = vld [vmem:[%s7483_s1 + $0xec] ss:$16 sps:$4 sm:$0xff]  }
   0xb   :  { %2209 = vmatpush1.bf16.msra.mxu0 %v4774_v10  ;;  %2774 = vmatpush1.bf16.msra.mxu1 %v4775_v11  ;;  %v4804_v30 = vld [vmem:[%s7483_s1 + $0xe0] ss:$16 sps:$4 sm:$0xff]   ;;  %v4805_v31 = vld [vmem:[%s7483_s1 + $0xe8] ss:$16 sps:$4 sm:$0xff]   ;;  %v4806_v32 = vld [vmem:[%s7483_s1 + $0x104] ss:$16 sps:$4 sm:$0xff]  }
   0xc   :  { %2210 = vmatprep.subr.bf16.mxu0 %v4776_v12  ;;  %2775 = vmatprep.subr.bf16.mxu1 %v4778_v13  ;;  %v4808_v33 = vld [vmem:[%s7483_s1 + $0x10c] ss:$16 sps:$4 sm:$0xff]   ;;  %v4810_v34 = vld [vmem:[%s7483_s1 + $0x100] ss:$16 sps:$4 sm:$0xff]   ;;  %v4811_v35 = vld [vmem:[%s7483_s1 + $0x108] ss:$16 sps:$4 sm:$0xff]  }
   0xd   :  { %v4812_v36 = vld [vmem:[%s7483_s1 + $0x124] ss:$16 sps:$4 sm:$0xff]   ;;  %v4814_v37 = vld [vmem:[%s7483_s1 + $0x12c] ss:$16 sps:$4 sm:$0xff]   ;;  %v4816_v38 = vld [vmem:[%s7483_s1 + $0x120] ss:$16 sps:$4 sm:$0xff]  }
   0xe   :  { %v4817_v39 = vld [vmem:[%s7483_s1 + $0x128] ss:$16 sps:$4 sm:$0xff]   ;;  %v4818_v40 = vld [vmem:[%s7483_s1 + $0x144] ss:$16 sps:$4 sm:$0xff]   ;;  %v4820_v41 = vld [vmem:[%s7483_s1 + $0x14c] ss:$16 sps:$4 sm:$0xff]  }
   0xf   :  { %2211 = vmatpush1.bf16.msra.mxu0 %v4780_v14  ;;  %2776 = vmatpush1.bf16.msra.mxu1 %v4781_v15  ;;  %v4822_v42 = vld [vmem:[%s7483_s1 + $0x140] ss:$16 sps:$4 sm:$0xff]   ;;  %v4823_v43 = vld [vmem:[%s7483_s1 + $0x148] ss:$16 sps:$4 sm:$0xff]   ;;  %v4824_v44 = vld [vmem:[%s7483_s1 + $0x164] ss:$16 sps:$4 sm:$0xff]  }
  0x10   :  { %2212 = vmatprep.subr.bf16.mxu0 %v4782_v16  ;;  %2777 = vmatprep.subr.bf16.mxu1 %v4784_v17  ;;  %v4826_v45 = vld [vmem:[%s7483_s1 + $0x16c] ss:$16 sps:$4 sm:$0xff]   ;;  %v4828_v46 = vld [vmem:[%s7483_s1 + $0x160] ss:$16 sps:$4 sm:$0xff]   ;;  %v4829_v47 = vld [vmem:[%s7483_s1 + $0x168] ss:$16 sps:$4 sm:$0xff]  }
  0x11   :  { %v4856_v48 = vld [vmem:[%s7484_s0 + $0x4] ss:$36 sps:$4 sm:$0xff]   ;;  %v4832_v50 = vld [vmem:[%s7483_s1 + $0x18c] ss:$16 sps:$4 sm:$0xff]   ;;  %v4834_v51 = vld [vmem:[%s7483_s1 + $0x180] ss:$16 sps:$4 sm:$0xff]  }
  0x12   :  { %v4830_v49 = vld [vmem:[%s7483_s1 + $0x184] ss:$16 sps:$4 sm:$0xff]   ;;  %2236 = vmatprep.mubr.bf16.mxu0 %v4856_v48  ;;  %2801 = vmatprep.mubr.bf16.mxu1 %v4856_v48  ;;  %v4835_v52 = vld [vmem:[%s7483_s1 + $0x188] ss:$16 sps:$4 sm:$0xff]   ;;  %v4838_v54 = vld [vmem:[%s7483_s1 + $0x1ac] ss:$16 sps:$4 sm:$0xff]  }
  0x13   :  { %2213 = vmatpush1.bf16.msra.mxu0 %v4786_v18  ;;  %2778 = vmatpush1.bf16.msra.mxu1 %v4787_v19  ;;  %v4836_v53 = vld [vmem:[%s7483_s1 + $0x1a4] ss:$16 sps:$4 sm:$0xff]   ;;  %v4840_v55 = vld [vmem:[%s7483_s1 + $0x1a0] ss:$16 sps:$4 sm:$0xff]   ;;  %v4841_v56 = vld [vmem:[%s7483_s1 + $0x1a8] ss:$16 sps:$4 sm:$0xff]  }
  0x14   :  { %2214 = vmatprep.subr.bf16.mxu0 %v4788_v20  ;;  %2779 = vmatprep.subr.bf16.mxu1 %v4790_v21  ;;  %v4842_v57 = vld [vmem:[%s7483_s1 + $0x1c4] ss:$16 sps:$4 sm:$0xff]   ;;  %v4844_v58 = vld [vmem:[%s7483_s1 + $0x1cc] ss:$16 sps:$4 sm:$0xff]   ;;  %v4846_v59 = vld [vmem:[%s7483_s1 + $0x1c0] ss:$16 sps:$4 sm:$0xff]  }
  0x15   :  { %v4847_v60 = vld [vmem:[%s7483_s1 + $0x1c8] ss:$16 sps:$4 sm:$0xff]   ;;  %v4848_v61 = vld [vmem:[%s7483_s1 + $0x1e4] ss:$16 sps:$4 sm:$0xff]   ;;  %v4850_v62 = vld [vmem:[%s7483_s1 + $0x1ec] ss:$16 sps:$4 sm:$0xff]  }
  0x16   :  { %v4852_v63 = vld [vmem:[%s7483_s1 + $0x1e0] ss:$16 sps:$4 sm:$0xff]   ;;  %v4853_v0 = vld [vmem:[%s7483_s1 + $0x1e8] ss:$16 sps:$4 sm:$0xff]   ;;  %v4859_v1 = vld [vmem:[%s7483_s1 + $0x204] ss:$16 sps:$4 sm:$0xff]  }
  0x17   :  { %2215 = vmatpush1.bf16.msra.mxu0 %v4792_v22  ;;  %2780 = vmatpush1.bf16.msra.mxu1 %v4793_v23  ;;  %v4862_v2 = vld [vmem:[%s7483_s1 + $0x20c] ss:$16 sps:$4 sm:$0xff]   ;;  %v4854_v3 = vld [vmem:[%s7484_s0] ss:$36 sps:$4 sm:$0xff]   ;;  %v4860_v5 = vld [vmem:[%s7483_s1 + $0x208] ss:$16 sps:$4 sm:$0xff]  }
  0x18   :  { %2216 = vmatprep.subr.bf16.mxu0 %v4794_v24  ;;  %2781 = vmatprep.subr.bf16.mxu1 %v4796_v25  ;;  %v4857_v4 = vld [vmem:[%s7483_s1 + $0x200] ss:$16 sps:$4 sm:$0xff]   ;;  %v4865_v6 = vld [vmem:[%s7483_s1 + $0x224] ss:$16 sps:$4 sm:$0xff]   ;;  %v4868_v7 = vld [vmem:[%s7483_s1 + $0x22c] ss:$16 sps:$4 sm:$0xff]  }
  0x19   :  { %v4869_v8 = vld [vmem:[%s7484_s0 + $0x4c] ss:$36 sps:$4 sm:$0xff]   ;;  %v4866_v10 = vld [vmem:[%s7483_s1 + $0x228] ss:$16 sps:$4 sm:$0xff]   ;;  %v4874_v11 = vld [vmem:[%s7483_s1 + $0x244] ss:$16 sps:$4 sm:$0xff]  }
  0x1a   :  { %v4863_v9 = vld [vmem:[%s7483_s1 + $0x220] ss:$16 sps:$4 sm:$0xff]   ;;  %v4877_v12 = vld [vmem:[%s7483_s1 + $0x24c] ss:$16 sps:$4 sm:$0xff]   ;;  %v4875_v15 = vld [vmem:[%s7483_s1 + $0x248] ss:$16 sps:$4 sm:$0xff]  }
  0x1b   :  { %2217 = vmatpush1.bf16.msra.mxu0 %v4798_v26  ;;  %2782 = vmatpush1.bf16.msra.mxu1 %v4799_v27  ;;  %v4871_v13 = vld [vmem:[%s7484_s0 + $0x48] ss:$36 sps:$4 sm:$0xff]   ;;  %v4872_v14 = vld [vmem:[%s7483_s1 + $0x240] ss:$16 sps:$4 sm:$0xff]   ;;  %v4880_v16 = vld [vmem:[%s7483_s1 + $0x264] ss:$16 sps:$4 sm:$0xff]  }
  0x1c   :  { %2218 = vmatprep.subr.bf16.mxu0 %v4800_v28  ;;  %2783 = vmatprep.subr.bf16.mxu1 %v4802_v29  ;;  %v4883_v17 = vld [vmem:[%s7483_s1 + $0x26c] ss:$16 sps:$4 sm:$0xff]   ;;  %v4884_v18 = vld [vmem:[%s7484_s0 + $0x94] ss:$36 sps:$4 sm:$0xff]   ;;  %v4878_v19 = vld [vmem:[%s7483_s1 + $0x260] ss:$16 sps:$4 sm:$0xff]  }
  0x1d   :  { %v4881_v20 = vld [vmem:[%s7483_s1 + $0x268] ss:$16 sps:$4 sm:$0xff]   ;;  %v4889_v21 = vld [vmem:[%s7483_s1 + $0x284] ss:$16 sps:$4 sm:$0xff]   ;;  %v4892_v22 = vld [vmem:[%s7483_s1 + $0x28c] ss:$16 sps:$4 sm:$0xff]  }
  0x1e   :  { %v4886_v23 = vld [vmem:[%s7484_s0 + $0x90] ss:$36 sps:$4 sm:$0xff]   ;;  %v4890_v25 = vld [vmem:[%s7483_s1 + $0x288] ss:$16 sps:$4 sm:$0xff]   ;;  %v4898_v27 = vld [vmem:[%s7483_s1 + $0x2ac] ss:$16 sps:$4 sm:$0xff]  }
  0x1f   :  { %2219 = vmatpush1.bf16.msra.mxu0 %v4804_v30  ;;  %2784 = vmatpush1.bf16.msra.mxu1 %v4805_v31  ;;  %v4887_v24 = vld [vmem:[%s7483_s1 + $0x280] ss:$16 sps:$4 sm:$0xff]   ;;  %v4895_v26 = vld [vmem:[%s7483_s1 + $0x2a4] ss:$16 sps:$4 sm:$0xff]   ;;  %v4896_v30 = vld [vmem:[%s7483_s1 + $0x2a8] ss:$16 sps:$4 sm:$0xff]  }
  0x20   :  { %2220 = vmatprep.subr.bf16.mxu0 %v4806_v32  ;;  %2785 = vmatprep.subr.bf16.mxu1 %v4808_v33  ;;  %v4899_v28 = vld [vmem:[%s7484_s0 + $0xdc] ss:$36 sps:$4 sm:$0xff]   ;;  %v4904_v31 = vld [vmem:[%s7483_s1 + $0x2c4] ss:$16 sps:$4 sm:$0xff]   ;;  %v4929_v48 = vld [vmem:[%s7484_s0 + $0x16c] ss:$36 sps:$4 sm:$0xff]  }
  0x21   :  { %v4893_v29 = vld [vmem:[%s7483_s1 + $0x2a0] ss:$16 sps:$4 sm:$0xff]   ;;  %v4907_v32 = vld [vmem:[%s7483_s1 + $0x2cc] ss:$16 sps:$4 sm:$0xff]  }
  0x22   :  { %v4901_v33 = vld [vmem:[%s7484_s0 + $0xd8] ss:$36 sps:$4 sm:$0xff]  }
  0x23   :  { %2221 = vmatpush1.bf16.msra.mxu0 %v4810_v34  ;;  %2786 = vmatpush1.bf16.msra.mxu1 %v4811_v35  ;;  %v4902_v34 = vld [vmem:[%s7483_s1 + $0x2c0] ss:$16 sps:$4 sm:$0xff]   ;;  %v4905_v35 = vld [vmem:[%s7483_s1 + $0x2c8] ss:$16 sps:$4 sm:$0xff]  }
  0x24   :  { %2222 = vmatprep.subr.bf16.mxu0 %v4812_v36  ;;  %2787 = vmatprep.subr.bf16.mxu1 %v4814_v37  ;;  %v4910_v36 = vld [vmem:[%s7483_s1 + $0x2e4] ss:$16 sps:$4 sm:$0xff]   ;;  %v4913_v37 = vld [vmem:[%s7483_s1 + $0x2ec] ss:$16 sps:$4 sm:$0xff]  }
  0x27   :  { %2223 = vmatpush1.bf16.msra.mxu0 %v4816_v38  ;;  %2788 = vmatpush1.bf16.msra.mxu1 %v4817_v39  ;;  %v4914_v38 = vld [vmem:[%s7484_s0 + $0x124] ss:$36 sps:$4 sm:$0xff]   ;;  %v4908_v39 = vld [vmem:[%s7483_s1 + $0x2e0] ss:$16 sps:$4 sm:$0xff]  }
  0x28   :  { %2224 = vmatprep.subr.bf16.mxu0 %v4818_v40  ;;  %2789 = vmatprep.subr.bf16.mxu1 %v4820_v41  ;;  %v4911_v40 = vld [vmem:[%s7483_s1 + $0x2e8] ss:$16 sps:$4 sm:$0xff]   ;;  %v4919_v41 = vld [vmem:[%s7483_s1 + $0x304] ss:$16 sps:$4 sm:$0xff]  }
  0x2b   :  { %2225 = vmatpush1.bf16.msra.mxu0 %v4822_v42  ;;  %2790 = vmatpush1.bf16.msra.mxu1 %v4823_v43  ;;  %v4922_v42 = vld [vmem:[%s7483_s1 + $0x30c] ss:$16 sps:$4 sm:$0xff]   ;;  %v4916_v43 = vld [vmem:[%s7484_s0 + $0x120] ss:$36 sps:$4 sm:$0xff]  }
  0x2c   :  { %2226 = vmatprep.subr.bf16.mxu0 %v4824_v44  ;;  %2791 = vmatprep.subr.bf16.mxu1 %v4826_v45  ;;  %v4917_v44 = vld [vmem:[%s7483_s1 + $0x300] ss:$16 sps:$4 sm:$0xff]   ;;  %v4920_v45 = vld [vmem:[%s7483_s1 + $0x308] ss:$16 sps:$4 sm:$0xff]  }
  0x2f   :  { %2227 = vmatpush1.bf16.msra.mxu0 %v4828_v46  ;;  %2792 = vmatpush1.bf16.msra.mxu1 %v4829_v47  ;;  %v4925_v46 = vld [vmem:[%s7483_s1 + $0x324] ss:$16 sps:$4 sm:$0xff]   ;;  %v4928_v47 = vld [vmem:[%s7483_s1 + $0x32c] ss:$16 sps:$4 sm:$0xff]  }
  0x30   :  { %2228 = vmatprep.subr.bf16.mxu0 %v4830_v49  ;;  %2793 = vmatprep.subr.bf16.mxu1 %v4832_v50  ;;  %v4923_v49 = vld [vmem:[%s7483_s1 + $0x320] ss:$16 sps:$4 sm:$0xff]   ;;  %v4926_v50 = vld [vmem:[%s7483_s1 + $0x328] ss:$16 sps:$4 sm:$0xff]  }
  0x33   :  { %2229 = vmatpush1.bf16.msra.mxu0 %v4834_v51  ;;  %2794 = vmatpush1.bf16.msra.mxu1 %v4835_v52  ;;  %v4934_v51 = vld [vmem:[%s7483_s1 + $0x344] ss:$16 sps:$4 sm:$0xff]   ;;  %v4937_v52 = vld [vmem:[%s7483_s1 + $0x34c] ss:$16 sps:$4 sm:$0xff]  }
  0x34   :  { %2230 = vmatprep.subr.bf16.mxu0 %v4836_v53  ;;  %2795 = vmatprep.subr.bf16.mxu1 %v4838_v54  ;;  %v4931_v53 = vld [vmem:[%s7484_s0 + $0x168] ss:$36 sps:$4 sm:$0xff]   ;;  %v4932_v54 = vld [vmem:[%s7483_s1 + $0x340] ss:$16 sps:$4 sm:$0xff]  }
  0x37   :  { %2231 = vmatpush1.bf16.msra.mxu0 %v4840_v55  ;;  %2796 = vmatpush1.bf16.msra.mxu1 %v4841_v56  ;;  %v4935_v55 = vld [vmem:[%s7483_s1 + $0x348] ss:$16 sps:$4 sm:$0xff]   ;;  %v4940_v56 = vld [vmem:[%s7483_s1 + $0x364] ss:$16 sps:$4 sm:$0xff]  }
  0x38   :  { %2232 = vmatprep.subr.bf16.mxu0 %v4842_v57  ;;  %2797 = vmatprep.subr.bf16.mxu1 %v4844_v58  ;;  %v4943_v57 = vld [vmem:[%s7483_s1 + $0x36c] ss:$16 sps:$4 sm:$0xff]   ;;  %v4944_v58 = vld [vmem:[%s7484_s0 + $0x1b4] ss:$36 sps:$4 sm:$0xff]  }
  0x3b   :  { %2233 = vmatpush1.bf16.msra.mxu0 %v4846_v59  ;;  %2798 = vmatpush1.bf16.msra.mxu1 %v4847_v60  ;;  %v4938_v59 = vld [vmem:[%s7483_s1 + $0x360] ss:$16 sps:$4 sm:$0xff]   ;;  %v4941_v60 = vld [vmem:[%s7483_s1 + $0x368] ss:$16 sps:$4 sm:$0xff]  }
  0x3c   :  { %2234 = vmatprep.subr.bf16.mxu0 %v4848_v61  ;;  %2799 = vmatprep.subr.bf16.mxu1 %v4850_v62  ;;  %v4949_v61 = vld [vmem:[%s7483_s1 + $0x384] ss:$16 sps:$4 sm:$0xff]   ;;  %v4952_v62 = vld [vmem:[%s7483_s1 + $0x38c] ss:$16 sps:$4 sm:$0xff]  }
  0x3f   :  { %2235 = vmatpush1.bf16.msra.mxu0 %v4852_v63  ;;  %2800 = vmatpush1.bf16.msra.mxu1 %v4853_v0  ;;  %v4946_v63 = vld [vmem:[%s7484_s0 + $0x1b0] ss:$36 sps:$4 sm:$0xff]  }
  0x40   :  { %2317 = vmatprep.subr.bf16.mxu0 %v4859_v1  ;;  %2882 = vmatprep.subr.bf16.mxu1 %v4862_v2  ;;  %v4947_v0 = vld [vmem:[%s7483_s1 + $0x380] ss:$16 sps:$4 sm:$0xff]   ;;  %v4950_v1 = vld [vmem:[%s7483_s1 + $0x388] ss:$16 sps:$4 sm:$0xff]   ;;  %v4955_v2 = vld [vmem:[%s7483_s1 + $0x3a4] ss:$16 sps:$4 sm:$0xff]  }
  0x42   :  { %2237 = vmatmul.mubr.bf16.vlgmr.msra.gmra.mrb[0].mxu0 %v4854_v3  ;;  %2802 = vmatmul.mubr.bf16.vlgmr.msra.gmra.mrb[0].mxu1 %v4854_v3  ;;  %v4958_v3 = vld [vmem:[%s7483_s1 + $0x3ac] ss:$16 sps:$4 sm:$0xff]  }
  0x43   :  { %2318 = vmatpush1.bf16.msra.mxu0 %v4857_v4  ;;  %2883 = vmatpush1.bf16.msra.mxu1 %v4860_v5  ;;  %v4959_v4 = vld [vmem:[%s7484_s0 + $0x1fc] ss:$36 sps:$4 sm:$0xff]  }
  0x44   :  { %2319 = vmatprep.subr.bf16.mxu0 %v4865_v6  ;;  %2884 = vmatprep.subr.bf16.mxu1 %v4868_v7  ;;  %v4953_v5 = vld [vmem:[%s7483_s1 + $0x3a0] ss:$16 sps:$4 sm:$0xff]   ;;  %v4956_v6 = vld [vmem:[%s7483_s1 + $0x3a8] ss:$16 sps:$4 sm:$0xff]   ;;  %v4964_v7 = vld [vmem:[%s7483_s1 + $0x3c4] ss:$16 sps:$4 sm:$0xff]  }
  0x45   :  { %2246 = vmatprep.mubr.bf16.mxu0 %v4869_v8  ;;  %2811 = vmatprep.mubr.bf16.mxu1 %v4869_v8  ;;  %v4967_v8 = vld [vmem:[%s7483_s1 + $0x3cc] ss:$16 sps:$4 sm:$0xff]  }
  0x47   :  { %2320 = vmatpush1.bf16.msra.mxu0 %v4863_v9  ;;  %2885 = vmatpush1.bf16.msra.mxu1 %v4866_v10  ;;  %v4961_v9 = vld [vmem:[%s7484_s0 + $0x1f8] ss:$36 sps:$4 sm:$0xff]   ;;  %v4962_v10 = vld [vmem:[%s7483_s1 + $0x3c0] ss:$16 sps:$4 sm:$0xff]  }
  0x48   :  { %2321 = vmatprep.subr.bf16.mxu0 %v4874_v11  ;;  %2886 = vmatprep.subr.bf16.mxu1 %v4877_v12  ;;  %v4965_v11 = vld [vmem:[%s7483_s1 + $0x3c8] ss:$16 sps:$4 sm:$0xff]   ;;  %v4970_v12 = vld [vmem:[%s7483_s1 + $0x3e4] ss:$16 sps:$4 sm:$0xff]  }
  0x4a   :  { %2247 = vmatmul.mubr.bf16.gmra.mrb[4].mxu0 %v4871_v13  ;;  %2812 = vmatmul.mubr.bf16.gmra.mrb[4].mxu1 %v4871_v13  ;;  %v4973_v13 = vld [vmem:[%s7483_s1 + $0x3ec] ss:$16 sps:$4 sm:$0xff]  }
  0x4b   :  { %2322 = vmatpush1.bf16.msra.mxu0 %v4872_v14  ;;  %2887 = vmatpush1.bf16.msra.mxu1 %v4875_v15  ;;  %v4976_v14 = vld [vmem:[%s7484_s0 + $0xc] ss:$36 sps:$4 sm:$0xff]  }
  0x4c   :  { %2323 = vmatprep.subr.bf16.mxu0 %v4880_v16  ;;  %2888 = vmatprep.subr.bf16.mxu1 %v4883_v17  ;;  %v4968_v15 = vld [vmem:[%s7483_s1 + $0x3e0] ss:$16 sps:$4 sm:$0xff]   ;;  %v4971_v16 = vld [vmem:[%s7483_s1 + $0x3e8] ss:$16 sps:$4 sm:$0xff]   ;;  %v4979_v17 = vld [vmem:[%s7483_s1 + $0x404] ss:$16 sps:$4 sm:$0xff]  }
  0x4d   :  { %2256 = vmatprep.mubr.bf16.mxu0 %v4884_v18  ;;  %2821 = vmatprep.mubr.bf16.mxu1 %v4884_v18  ;;  %v4982_v18 = vld [vmem:[%s7483_s1 + $0x40c] ss:$16 sps:$4 sm:$0xff]  }
  0x4f   :  { %2324 = vmatpush1.bf16.msra.mxu0 %v4878_v19  ;;  %2889 = vmatpush1.bf16.msra.mxu1 %v4881_v20  ;;  %v4974_v19 = vld [vmem:[%s7484_s0 + $0x8] ss:$36 sps:$4 sm:$0xff]   ;;  %v4977_v20 = vld [vmem:[%s7483_s1 + $0x400] ss:$16 sps:$4 sm:$0xff]  }
  0x50   :  { %2325 = vmatprep.subr.bf16.mxu0 %v4889_v21  ;;  %2890 = vmatprep.subr.bf16.mxu1 %v4892_v22  ;;  %v4980_v21 = vld [vmem:[%s7483_s1 + $0x408] ss:$16 sps:$4 sm:$0xff]   ;;  %v4985_v22 = vld [vmem:[%s7483_s1 + $0x424] ss:$16 sps:$4 sm:$0xff]  }
  0x52   :  { %2257 = vmatmul.mubr.bf16.gmra.mrb[8].mxu0 %v4886_v23  ;;  %2822 = vmatmul.mubr.bf16.gmra.mrb[8].mxu1 %v4886_v23  ;;  %v4988_v23 = vld [vmem:[%s7483_s1 + $0x42c] ss:$16 sps:$4 sm:$0xff]  }
  0x53   :  { %2326 = vmatpush1.bf16.msra.mxu0 %v4887_v24  ;;  %2891 = vmatpush1.bf16.msra.mxu1 %v4890_v25  ;;  %v4989_v24 = vld [vmem:[%s7484_s0 + $0x54] ss:$36 sps:$4 sm:$0xff]   ;;  %v4983_v25 = vld [vmem:[%s7483_s1 + $0x420] ss:$16 sps:$4 sm:$0xff]  }
  0x54   :  { %2327 = vmatprep.subr.bf16.mxu0 %v4895_v26  ;;  %2892 = vmatprep.subr.bf16.mxu1 %v4898_v27  ;;  %v4986_v26 = vld [vmem:[%s7483_s1 + $0x428] ss:$16 sps:$4 sm:$0xff]   ;;  %v4994_v27 = vld [vmem:[%s7483_s1 + $0x444] ss:$16 sps:$4 sm:$0xff]  }
  0x55   :  { %2266 = vmatprep.mubr.bf16.mxu0 %v4899_v28  ;;  %2831 = vmatprep.mubr.bf16.mxu1 %v4899_v28  ;;  %v4997_v28 = vld [vmem:[%s7483_s1 + $0x44c] ss:$16 sps:$4 sm:$0xff]  }
  0x57   :  { %2328 = vmatpush1.bf16.msra.mxu0 %v4893_v29  ;;  %2893 = vmatpush1.bf16.msra.mxu1 %v4896_v30  ;;  %v4991_v29 = vld [vmem:[%s7484_s0 + $0x50] ss:$36 sps:$4 sm:$0xff]  }
  0x58   :  { %2329 = vmatprep.subr.bf16.mxu0 %v4904_v31  ;;  %2894 = vmatprep.subr.bf16.mxu1 %v4907_v32  ;;  %v4992_v30 = vld [vmem:[%s7483_s1 + $0x440] ss:$16 sps:$4 sm:$0xff]   ;;  %v4995_v31 = vld [vmem:[%s7483_s1 + $0x448] ss:$16 sps:$4 sm:$0xff]   ;;  %v5000_v32 = vld [vmem:[%s7483_s1 + $0x464] ss:$16 sps:$4 sm:$0xff]  }
  0x5a   :  { %2267 = vmatmul.mubr.bf16.gmra.mrb[12].mxu0 %v4901_v33  ;;  %2832 = vmatmul.mubr.bf16.gmra.mrb[12].mxu1 %v4901_v33  ;;  %v5003_v33 = vld [vmem:[%s7483_s1 + $0x46c] ss:$16 sps:$4 sm:$0xff]  }
  0x5b   :  { %2330 = vmatpush1.bf16.msra.mxu0 %v4902_v34  ;;  %2895 = vmatpush1.bf16.msra.mxu1 %v4905_v35  ;;  %v5004_v34 = vld [vmem:[%s7484_s0 + $0x9c] ss:$36 sps:$4 sm:$0xff]  }
  0x5c   :  { %2331 = vmatprep.subr.bf16.mxu0 %v4910_v36  ;;  %2896 = vmatprep.subr.bf16.mxu1 %v4913_v37  ;;  %v4998_v35 = vld [vmem:[%s7483_s1 + $0x460] ss:$16 sps:$4 sm:$0xff]   ;;  %v5001_v36 = vld [vmem:[%s7483_s1 + $0x468] ss:$16 sps:$4 sm:$0xff]   ;;  %v5009_v37 = vld [vmem:[%s7483_s1 + $0x484] ss:$16 sps:$4 sm:$0xff]  }
  0x5d   :  { %2276 = vmatprep.mubr.bf16.mxu0 %v4914_v38  ;;  %2841 = vmatprep.mubr.bf16.mxu1 %v4914_v38  ;;  %v5012_v38 = vld [vmem:[%s7483_s1 + $0x48c] ss:$16 sps:$4 sm:$0xff]  }
  0x5f   :  { %2332 = vmatpush1.bf16.msra.mxu0 %v4908_v39  ;;  %2897 = vmatpush1.bf16.msra.mxu1 %v4911_v40  ;;  %v5006_v39 = vld [vmem:[%s7484_s0 + $0x98] ss:$36 sps:$4 sm:$0xff]   ;;  %v5007_v40 = vld [vmem:[%s7483_s1 + $0x480] ss:$16 sps:$4 sm:$0xff]  }
  0x60   :  { %2333 = vmatprep.subr.bf16.mxu0 %v4919_v41  ;;  %2898 = vmatprep.subr.bf16.mxu1 %v4922_v42  ;;  %v5010_v41 = vld [vmem:[%s7483_s1 + $0x488] ss:$16 sps:$4 sm:$0xff]   ;;  %v5015_v42 = vld [vmem:[%s7483_s1 + $0x4a4] ss:$16 sps:$4 sm:$0xff]  }
  0x62   :  { %2277 = vmatmul.mubr.bf16.gmra.mrb[16].mxu0 %v4916_v43  ;;  %2842 = vmatmul.mubr.bf16.gmra.mrb[16].mxu1 %v4916_v43  ;;  %v5018_v43 = vld [vmem:[%s7483_s1 + $0x4ac] ss:$16 sps:$4 sm:$0xff]  }
  0x63   :  { %2334 = vmatpush1.bf16.msra.mxu0 %v4917_v44  ;;  %2899 = vmatpush1.bf16.msra.mxu1 %v4920_v45  ;;  %v5019_v44 = vld [vmem:[%s7484_s0 + $0xe4] ss:$36 sps:$4 sm:$0xff]   ;;  %v5013_v45 = vld [vmem:[%s7483_s1 + $0x4a0] ss:$16 sps:$4 sm:$0xff]  }
  0x64   :  { %2335 = vmatprep.subr.bf16.mxu0 %v4925_v46  ;;  %2900 = vmatprep.subr.bf16.mxu1 %v4928_v47  ;;  %v5016_v46 = vld [vmem:[%s7483_s1 + $0x4a8] ss:$16 sps:$4 sm:$0xff]   ;;  %v5024_v47 = vld [vmem:[%s7483_s1 + $0x4c4] ss:$16 sps:$4 sm:$0xff]  }
  0x65   :  { %2286 = vmatprep.mubr.bf16.mxu0 %v4929_v48  ;;  %2851 = vmatprep.mubr.bf16.mxu1 %v4929_v48  ;;  %v5027_v48 = vld [vmem:[%s7483_s1 + $0x4cc] ss:$16 sps:$4 sm:$0xff]  }
  0x67   :  { %2336 = vmatpush1.bf16.msra.mxu0 %v4923_v49  ;;  %2901 = vmatpush1.bf16.msra.mxu1 %v4926_v50  ;;  %v5021_v49 = vld [vmem:[%s7484_s0 + $0xe0] ss:$36 sps:$4 sm:$0xff]  }
  0x68   :  { %2337 = vmatprep.subr.bf16.mxu0 %v4934_v51  ;;  %2902 = vmatprep.subr.bf16.mxu1 %v4937_v52  ;;  %v5022_v50 = vld [vmem:[%s7483_s1 + $0x4c0] ss:$16 sps:$4 sm:$0xff]   ;;  %v5025_v51 = vld [vmem:[%s7483_s1 + $0x4c8] ss:$16 sps:$4 sm:$0xff]   ;;  %v5030_v52 = vld [vmem:[%s7483_s1 + $0x4e4] ss:$16 sps:$4 sm:$0xff]  }
  0x6a   :  { %2287 = vmatmul.mubr.bf16.gmra.mrb[20].mxu0 %v4931_v53  ;;  %2852 = vmatmul.mubr.bf16.gmra.mrb[20].mxu1 %v4931_v53  ;;  %v5033_v53 = vld [vmem:[%s7483_s1 + $0x4ec] ss:$16 sps:$4 sm:$0xff]  }
  0x6b   :  { %2338 = vmatpush1.bf16.msra.mxu0 %v4932_v54  ;;  %2903 = vmatpush1.bf16.msra.mxu1 %v4935_v55  ;;  %v5034_v54 = vld [vmem:[%s7484_s0 + $0x12c] ss:$36 sps:$4 sm:$0xff]  }
  0x6c   :  { %2339 = vmatprep.subr.bf16.mxu0 %v4940_v56  ;;  %2904 = vmatprep.subr.bf16.mxu1 %v4943_v57  ;;  %v5028_v55 = vld [vmem:[%s7483_s1 + $0x4e0] ss:$16 sps:$4 sm:$0xff]   ;;  %v5031_v56 = vld [vmem:[%s7483_s1 + $0x4e8] ss:$16 sps:$4 sm:$0xff]   ;;  %v5039_v57 = vld [vmem:[%s7483_s1 + $0x504] ss:$16 sps:$4 sm:$0xff]  }
  0x6d   :  { %2296 = vmatprep.mubr.bf16.mxu0 %v4944_v58  ;;  %2861 = vmatprep.mubr.bf16.mxu1 %v4944_v58  ;;  %v5042_v58 = vld [vmem:[%s7483_s1 + $0x50c] ss:$16 sps:$4 sm:$0xff]  }
  0x6f   :  { %2340 = vmatpush1.bf16.msra.mxu0 %v4938_v59  ;;  %2905 = vmatpush1.bf16.msra.mxu1 %v4941_v60  ;;  %v5036_v59 = vld [vmem:[%s7484_s0 + $0x128] ss:$36 sps:$4 sm:$0xff]   ;;  %v5037_v60 = vld [vmem:[%s7483_s1 + $0x500] ss:$16 sps:$4 sm:$0xff]  }
  0x70   :  { %2341 = vmatprep.subr.bf16.mxu0 %v4949_v61  ;;  %2906 = vmatprep.subr.bf16.mxu1 %v4952_v62  ;;  %v5040_v61 = vld [vmem:[%s7483_s1 + $0x508] ss:$16 sps:$4 sm:$0xff]   ;;  %v5045_v62 = vld [vmem:[%s7483_s1 + $0x524] ss:$16 sps:$4 sm:$0xff]  }
  0x72   :  { %2297 = vmatmul.mubr.bf16.gmra.mrb[24].mxu0 %v4946_v63  ;;  %2862 = vmatmul.mubr.bf16.gmra.mrb[24].mxu1 %v4946_v63  ;;  %v5048_v63 = vld [vmem:[%s7483_s1 + $0x52c] ss:$16 sps:$4 sm:$0xff]  }
  0x73   :  { %2342 = vmatpush1.bf16.msra.mxu0 %v4947_v0  ;;  %2907 = vmatpush1.bf16.msra.mxu1 %v4950_v1  ;;  %v5049_v0 = vld [vmem:[%s7484_s0 + $0x174] ss:$36 sps:$4 sm:$0xff]   ;;  %v5043_v1 = vld [vmem:[%s7483_s1 + $0x520] ss:$16 sps:$4 sm:$0xff]  }
  0x74   :  { %2343 = vmatprep.subr.bf16.mxu0 %v4955_v2  ;;  %2908 = vmatprep.subr.bf16.mxu1 %v4958_v3  ;;  %v5046_v2 = vld [vmem:[%s7483_s1 + $0x528] ss:$16 sps:$4 sm:$0xff]   ;;  %v5054_v3 = vld [vmem:[%s7483_s1 + $0x544] ss:$16 sps:$4 sm:$0xff]  }
  0x75   :  { %2306 = vmatprep.mubr.bf16.mxu0 %v4959_v4  ;;  %2871 = vmatprep.mubr.bf16.mxu1 %v4959_v4  ;;  %v5057_v4 = vld [vmem:[%s7483_s1 + $0x54c] ss:$16 sps:$4 sm:$0xff]  }
  0x77   :  { %2344 = vmatpush1.bf16.msra.mxu0 %v4953_v5  ;;  %2909 = vmatpush1.bf16.msra.mxu1 %v4956_v6  ;;  %v5051_v5 = vld [vmem:[%s7484_s0 + $0x170] ss:$36 sps:$4 sm:$0xff]  }
  0x78   :  { %2345 = vmatprep.subr.bf16.mxu0 %v4964_v7  ;;  %2910 = vmatprep.subr.bf16.mxu1 %v4967_v8  ;;  %v5052_v6 = vld [vmem:[%s7483_s1 + $0x540] ss:$16 sps:$4 sm:$0xff]   ;;  %v5055_v7 = vld [vmem:[%s7483_s1 + $0x548] ss:$16 sps:$4 sm:$0xff]   ;;  %v5060_v8 = vld [vmem:[%s7483_s1 + $0x564] ss:$16 sps:$4 sm:$0xff]  }
  0x7a   :  { %2307 = vmatmul.mubr.bf16.gmra.mrb[28].mxu0 %v4961_v9  ;;  %2872 = vmatmul.mubr.bf16.gmra.mrb[28].mxu1 %v4961_v9  ;;  %v5063_v9 = vld [vmem:[%s7483_s1 + $0x56c] ss:$16 sps:$4 sm:$0xff]  }
  0x7b   :  { %2346 = vmatpush1.bf16.msra.mxu0 %v4962_v10  ;;  %2911 = vmatpush1.bf16.msra.mxu1 %v4965_v11  ;;  %v5064_v10 = vld [vmem:[%s7484_s0 + $0x1bc] ss:$36 sps:$4 sm:$0xff]  }
  0x7c   :  { %2347 = vmatprep.subr.bf16.mxu0 %v4970_v12  ;;  %2912 = vmatprep.subr.bf16.mxu1 %v4973_v13  ;;  %v5058_v11 = vld [vmem:[%s7483_s1 + $0x560] ss:$16 sps:$4 sm:$0xff]   ;;  %v5061_v12 = vld [vmem:[%s7483_s1 + $0x568] ss:$16 sps:$4 sm:$0xff]   ;;  %v5069_v13 = vld [vmem:[%s7483_s1 + $0x584] ss:$16 sps:$4 sm:$0xff]  }
  0x7d   :  { %2349 = vmatprep.mubr.bf16.mxu0 %v4976_v14  ;;  %2914 = vmatprep.mubr.bf16.mxu1 %v4976_v14  ;;  %v5072_v14 = vld [vmem:[%s7483_s1 + $0x58c] ss:$16 sps:$4 sm:$0xff]  }
  0x7f   :  { %2348 = vmatpush1.bf16.msra.mxu0 %v4968_v15  ;;  %2913 = vmatpush1.bf16.msra.mxu1 %v4971_v16  ;;  %v5066_v15 = vld [vmem:[%s7484_s0 + $0x1b8] ss:$36 sps:$4 sm:$0xff]   ;;  %v5067_v16 = vld [vmem:[%s7483_s1 + $0x580] ss:$16 sps:$4 sm:$0xff]  }
  0x80   :  { %2430 = vmatprep.subr.bf16.mxu0 %v4979_v17  ;;  %2995 = vmatprep.subr.bf16.mxu1 %v4982_v18  ;;  %v5070_v17 = vld [vmem:[%s7483_s1 + $0x588] ss:$16 sps:$4 sm:$0xff]   ;;  %v5075_v18 = vld [vmem:[%s7483_s1 + $0x5a4] ss:$16 sps:$4 sm:$0xff]  }
  0x82   :  { %2350 = vmatmul.mubr.bf16.vlgmr.msra.gmra.mrb[0].mxu0 %v4974_v19  ;;  %2915 = vmatmul.mubr.bf16.vlgmr.msra.gmra.mrb[0].mxu1 %v4974_v19  ;;  %v5078_v19 = vld [vmem:[%s7483_s1 + $0x5ac] ss:$16 sps:$4 sm:$0xff]  }
  0x83   :  { %2431 = vmatpush1.bf16.msra.mxu0 %v4977_v20  ;;  %2996 = vmatpush1.bf16.msra.mxu1 %v4980_v21  ;;  %v5079_v20 = vld [vmem:[%s7484_s0 + $0x204] ss:$36 sps:$4 sm:$0xff]   ;;  %v5073_v21 = vld [vmem:[%s7483_s1 + $0x5a0] ss:$16 sps:$4 sm:$0xff]  }
  0x84   :  { %2432 = vmatprep.subr.bf16.mxu0 %v4985_v22  ;;  %2997 = vmatprep.subr.bf16.mxu1 %v4988_v23  ;;  %v5076_v22 = vld [vmem:[%s7483_s1 + $0x5a8] ss:$16 sps:$4 sm:$0xff]   ;;  %v5084_v23 = vld [vmem:[%s7483_s1 + $0x5c4] ss:$16 sps:$4 sm:$0xff]  }
  0x85   :  { %2359 = vmatprep.mubr.bf16.mxu0 %v4989_v24  ;;  %2924 = vmatprep.mubr.bf16.mxu1 %v4989_v24  ;;  %v5087_v24 = vld [vmem:[%s7483_s1 + $0x5cc] ss:$16 sps:$4 sm:$0xff]  }
  0x87   :  { %2433 = vmatpush1.bf16.msra.mxu0 %v4983_v25  ;;  %2998 = vmatpush1.bf16.msra.mxu1 %v4986_v26  ;;  %v5081_v25 = vld [vmem:[%s7484_s0 + $0x200] ss:$36 sps:$4 sm:$0xff]  }
  0x88   :  { %2434 = vmatprep.subr.bf16.mxu0 %v4994_v27  ;;  %2999 = vmatprep.subr.bf16.mxu1 %v4997_v28  ;;  %v5082_v26 = vld [vmem:[%s7483_s1 + $0x5c0] ss:$16 sps:$4 sm:$0xff]   ;;  %v5085_v27 = vld [vmem:[%s7483_s1 + $0x5c8] ss:$16 sps:$4 sm:$0xff]   ;;  %v5090_v28 = vld [vmem:[%s7483_s1 + $0x5e4] ss:$16 sps:$4 sm:$0xff]  }
  0x8a   :  { %2360 = vmatmul.mubr.bf16.gmra.mrb[4].mxu0 %v4991_v29  ;;  %2925 = vmatmul.mubr.bf16.gmra.mrb[4].mxu1 %v4991_v29  ;;  %v5093_v29 = vld [vmem:[%s7483_s1 + $0x5ec] ss:$16 sps:$4 sm:$0xff]  }
  0x8b   :  { %2435 = vmatpush1.bf16.msra.mxu0 %v4992_v30  ;;  %3000 = vmatpush1.bf16.msra.mxu1 %v4995_v31  ;;  %v5096_v30 = vld [vmem:[%s7484_s0 + $0x14] ss:$36 sps:$4 sm:$0xff]   ;;  %v5088_v31 = vld [vmem:[%s7483_s1 + $0x5e0] ss:$16 sps:$4 sm:$0xff]  }
  0x8c   :  { %2436 = vmatprep.subr.bf16.mxu0 %v5000_v32  ;;  %3001 = vmatprep.subr.bf16.mxu1 %v5003_v33  ;;  %v5091_v32 = vld [vmem:[%s7483_s1 + $0x5e8] ss:$16 sps:$4 sm:$0xff]   ;;  %v5099_v33 = vld [vmem:[%s7483_s1 + $0x604] ss:$16 sps:$4 sm:$0xff]  }
  0x8d   :  { %2369 = vmatprep.mubr.bf16.mxu0 %v5004_v34  ;;  %2934 = vmatprep.mubr.bf16.mxu1 %v5004_v34  ;;  %v5102_v34 = vld [vmem:[%s7483_s1 + $0x60c] ss:$16 sps:$4 sm:$0xff]  }
  0x8f   :  { %2437 = vmatpush1.bf16.msra.mxu0 %v4998_v35  ;;  %3002 = vmatpush1.bf16.msra.mxu1 %v5001_v36  ;;  %v5094_v35 = vld [vmem:[%s7484_s0 + $0x10] ss:$36 sps:$4 sm:$0xff]  }
  0x90   :  { %2438 = vmatprep.subr.bf16.mxu0 %v5009_v37  ;;  %3003 = vmatprep.subr.bf16.mxu1 %v5012_v38  ;;  %v5097_v36 = vld [vmem:[%s7483_s1 + $0x600] ss:$16 sps:$4 sm:$0xff]   ;;  %v5100_v37 = vld [vmem:[%s7483_s1 + $0x608] ss:$16 sps:$4 sm:$0xff]   ;;  %v5105_v38 = vld [vmem:[%s7483_s1 + $0x624] ss:$16 sps:$4 sm:$0xff]  }
  0x92   :  { %2370 = vmatmul.mubr.bf16.gmra.mrb[8].mxu0 %v5006_v39  ;;  %2935 = vmatmul.mubr.bf16.gmra.mrb[8].mxu1 %v5006_v39  ;;  %v5108_v39 = vld [vmem:[%s7483_s1 + $0x62c] ss:$16 sps:$4 sm:$0xff]  }
  0x93   :  { %2439 = vmatpush1.bf16.msra.mxu0 %v5007_v40  ;;  %3004 = vmatpush1.bf16.msra.mxu1 %v5010_v41  ;;  %v5109_v40 = vld [vmem:[%s7484_s0 + $0x5c] ss:$36 sps:$4 sm:$0xff]  }
  0x94   :  { %2440 = vmatprep.subr.bf16.mxu0 %v5015_v42  ;;  %3005 = vmatprep.subr.bf16.mxu1 %v5018_v43  ;;  %v5103_v41 = vld [vmem:[%s7483_s1 + $0x620] ss:$16 sps:$4 sm:$0xff]   ;;  %v5106_v42 = vld [vmem:[%s7483_s1 + $0x628] ss:$16 sps:$4 sm:$0xff]   ;;  %v5114_v43 = vld [vmem:[%s7483_s1 + $0x644] ss:$16 sps:$4 sm:$0xff]  }
  0x95   :  { %2379 = vmatprep.mubr.bf16.mxu0 %v5019_v44  ;;  %2944 = vmatprep.mubr.bf16.mxu1 %v5019_v44  ;;  %v5117_v44 = vld [vmem:[%s7483_s1 + $0x64c] ss:$16 sps:$4 sm:$0xff]  }
  0x97   :  { %2441 = vmatpush1.bf16.msra.mxu0 %v5013_v45  ;;  %3006 = vmatpush1.bf16.msra.mxu1 %v5016_v46  ;;  %v5111_v45 = vld [vmem:[%s7484_s0 + $0x58] ss:$36 sps:$4 sm:$0xff]   ;;  %v5112_v46 = vld [vmem:[%s7483_s1 + $0x640] ss:$16 sps:$4 sm:$0xff]  }
  0x98   :  { %2442 = vmatprep.subr.bf16.mxu0 %v5024_v47  ;;  %3007 = vmatprep.subr.bf16.mxu1 %v5027_v48  ;;  %v5115_v47 = vld [vmem:[%s7483_s1 + $0x648] ss:$16 sps:$4 sm:$0xff]   ;;  %v5120_v48 = vld [vmem:[%s7483_s1 + $0x664] ss:$16 sps:$4 sm:$0xff]  }
  0x9a   :  { %2380 = vmatmul.mubr.bf16.gmra.mrb[12].mxu0 %v5021_v49  ;;  %2945 = vmatmul.mubr.bf16.gmra.mrb[12].mxu1 %v5021_v49  ;;  %v5123_v49 = vld [vmem:[%s7483_s1 + $0x66c] ss:$16 sps:$4 sm:$0xff]  }
  0x9b   :  { %2443 = vmatpush1.bf16.msra.mxu0 %v5022_v50  ;;  %3008 = vmatpush1.bf16.msra.mxu1 %v5025_v51  ;;  %v5124_v50 = vld [vmem:[%s7484_s0 + $0xa4] ss:$36 sps:$4 sm:$0xff]   ;;  %v5118_v51 = vld [vmem:[%s7483_s1 + $0x660] ss:$16 sps:$4 sm:$0xff]  }
  0x9c   :  { %2444 = vmatprep.subr.bf16.mxu0 %v5030_v52  ;;  %3009 = vmatprep.subr.bf16.mxu1 %v5033_v53  ;;  %v5121_v52 = vld [vmem:[%s7483_s1 + $0x668] ss:$16 sps:$4 sm:$0xff]   ;;  %v5129_v53 = vld [vmem:[%s7483_s1 + $0x684] ss:$16 sps:$4 sm:$0xff]  }
  0x9d   :  { %2389 = vmatprep.mubr.bf16.mxu0 %v5034_v54  ;;  %2954 = vmatprep.mubr.bf16.mxu1 %v5034_v54  ;;  %v5132_v54 = vld [vmem:[%s7483_s1 + $0x68c] ss:$16 sps:$4 sm:$0xff]  }
  0x9f   :  { %2445 = vmatpush1.bf16.msra.mxu0 %v5028_v55  ;;  %3010 = vmatpush1.bf16.msra.mxu1 %v5031_v56  ;;  %v5126_v55 = vld [vmem:[%s7484_s0 + $0xa0] ss:$36 sps:$4 sm:$0xff]  }
  0xa0   :  { %2446 = vmatprep.subr.bf16.mxu0 %v5039_v57  ;;  %3011 = vmatprep.subr.bf16.mxu1 %v5042_v58  ;;  %v5127_v56 = vld [vmem:[%s7483_s1 + $0x680] ss:$16 sps:$4 sm:$0xff]   ;;  %v5130_v57 = vld [vmem:[%s7483_s1 + $0x688] ss:$16 sps:$4 sm:$0xff]   ;;  %v5135_v58 = vld [vmem:[%s7483_s1 + $0x6a4] ss:$16 sps:$4 sm:$0xff]  }
  0xa2   :  { %2390 = vmatmul.mubr.bf16.gmra.mrb[16].mxu0 %v5036_v59  ;;  %2955 = vmatmul.mubr.bf16.gmra.mrb[16].mxu1 %v5036_v59  ;;  %v5138_v59 = vld [vmem:[%s7483_s1 + $0x6ac] ss:$16 sps:$4 sm:$0xff]  }
  0xa3   :  { %2447 = vmatpush1.bf16.msra.mxu0 %v5037_v60  ;;  %3012 = vmatpush1.bf16.msra.mxu1 %v5040_v61  ;;  %v5139_v60 = vld [vmem:[%s7484_s0 + $0xec] ss:$36 sps:$4 sm:$0xff]  }
  0xa4   :  { %2448 = vmatprep.subr.bf16.mxu0 %v5045_v62  ;;  %3013 = vmatprep.subr.bf16.mxu1 %v5048_v63  ;;  %v5133_v61 = vld [vmem:[%s7483_s1 + $0x6a0] ss:$16 sps:$4 sm:$0xff]   ;;  %v5136_v62 = vld [vmem:[%s7483_s1 + $0x6a8] ss:$16 sps:$4 sm:$0xff]   ;;  %v5144_v63 = vld [vmem:[%s7483_s1 + $0x6c4] ss:$16 sps:$4 sm:$0xff]  }
  0xa5   :  { %2399 = vmatprep.mubr.bf16.mxu0 %v5049_v0  ;;  %2964 = vmatprep.mubr.bf16.mxu1 %v5049_v0  ;;  %v5147_v0 = vld [vmem:[%s7483_s1 + $0x6cc] ss:$16 sps:$4 sm:$0xff]  }
  0xa7   :  { %2449 = vmatpush1.bf16.msra.mxu0 %v5043_v1  ;;  %3014 = vmatpush1.bf16.msra.mxu1 %v5046_v2  ;;  %v5141_v1 = vld [vmem:[%s7484_s0 + $0xe8] ss:$36 sps:$4 sm:$0xff]   ;;  %v5142_v2 = vld [vmem:[%s7483_s1 + $0x6c0] ss:$16 sps:$4 sm:$0xff]  }
  0xa8   :  { %2450 = vmatprep.subr.bf16.mxu0 %v5054_v3  ;;  %3015 = vmatprep.subr.bf16.mxu1 %v5057_v4  ;;  %v5145_v3 = vld [vmem:[%s7483_s1 + $0x6c8] ss:$16 sps:$4 sm:$0xff]   ;;  %v5150_v4 = vld [vmem:[%s7483_s1 + $0x6e4] ss:$16 sps:$4 sm:$0xff]  }
  0xaa   :  { %2400 = vmatmul.mubr.bf16.gmra.mrb[20].mxu0 %v5051_v5  ;;  %2965 = vmatmul.mubr.bf16.gmra.mrb[20].mxu1 %v5051_v5  ;;  %v5153_v5 = vld [vmem:[%s7483_s1 + $0x6ec] ss:$16 sps:$4 sm:$0xff]  }
  0xab   :  { %2451 = vmatpush1.bf16.msra.mxu0 %v5052_v6  ;;  %3016 = vmatpush1.bf16.msra.mxu1 %v5055_v7  ;;  %v5154_v6 = vld [vmem:[%s7484_s0 + $0x134] ss:$36 sps:$4 sm:$0xff]   ;;  %v5148_v7 = vld [vmem:[%s7483_s1 + $0x6e0] ss:$16 sps:$4 sm:$0xff]  }
  0xac   :  { %2452 = vmatprep.subr.bf16.mxu0 %v5060_v8  ;;  %3017 = vmatprep.subr.bf16.mxu1 %v5063_v9  ;;  %v5151_v8 = vld [vmem:[%s7483_s1 + $0x6e8] ss:$16 sps:$4 sm:$0xff]   ;;  %v5159_v9 = vld [vmem:[%s7483_s1 + $0x704] ss:$16 sps:$4 sm:$0xff]  }
  0xad   :  { %2409 = vmatprep.mubr.bf16.mxu0 %v5064_v10  ;;  %2974 = vmatprep.mubr.bf16.mxu1 %v5064_v10  ;;  %v5162_v10 = vld [vmem:[%s7483_s1 + $0x70c] ss:$16 sps:$4 sm:$0xff]  }
  0xaf   :  { %2453 = vmatpush1.bf16.msra.mxu0 %v5058_v11  ;;  %3018 = vmatpush1.bf16.msra.mxu1 %v5061_v12  ;;  %v5156_v11 = vld [vmem:[%s7484_s0 + $0x130] ss:$36 sps:$4 sm:$0xff]  }
  0xb0   :  { %2454 = vmatprep.subr.bf16.mxu0 %v5069_v13  ;;  %3019 = vmatprep.subr.bf16.mxu1 %v5072_v14  ;;  %v5157_v12 = vld [vmem:[%s7483_s1 + $0x700] ss:$16 sps:$4 sm:$0xff]   ;;  %v5160_v13 = vld [vmem:[%s7483_s1 + $0x708] ss:$16 sps:$4 sm:$0xff]   ;;  %v5165_v14 = vld [vmem:[%s7483_s1 + $0x724] ss:$16 sps:$4 sm:$0xff]  }
  0xb2   :  { %2410 = vmatmul.mubr.bf16.gmra.mrb[24].mxu0 %v5066_v15  ;;  %2975 = vmatmul.mubr.bf16.gmra.mrb[24].mxu1 %v5066_v15  ;;  %v5168_v15 = vld [vmem:[%s7483_s1 + $0x72c] ss:$16 sps:$4 sm:$0xff]  }
  0xb3   :  { %2455 = vmatpush1.bf16.msra.mxu0 %v5067_v16  ;;  %3020 = vmatpush1.bf16.msra.mxu1 %v5070_v17  ;;  %v5169_v16 = vld [vmem:[%s7484_s0 + $0x17c] ss:$36 sps:$4 sm:$0xff]  }
  0xb4   :  { %2456 = vmatprep.subr.bf16.mxu0 %v5075_v18  ;;  %3021 = vmatprep.subr.bf16.mxu1 %v5078_v19  ;;  %v5163_v17 = vld [vmem:[%s7483_s1 + $0x720] ss:$16 sps:$4 sm:$0xff]   ;;  %v5166_v18 = vld [vmem:[%s7483_s1 + $0x728] ss:$16 sps:$4 sm:$0xff]   ;;  %v5174_v19 = vld [vmem:[%s7483_s1 + $0x744] ss:$16 sps:$4 sm:$0xff]  }
  0xb5   :  { %2419 = vmatprep.mubr.bf16.mxu0 %v5079_v20  ;;  %2984 = vmatprep.mubr.bf16.mxu1 %v5079_v20  ;;  %v5177_v20 = vld [vmem:[%s7483_s1 + $0x74c] ss:$16 sps:$4 sm:$0xff]  }
  0xb7   :  { %2457 = vmatpush1.bf16.msra.mxu0 %v5073_v21  ;;  %3022 = vmatpush1.bf16.msra.mxu1 %v5076_v22  ;;  %v5171_v21 = vld [vmem:[%s7484_s0 + $0x178] ss:$36 sps:$4 sm:$0xff]   ;;  %v5172_v22 = vld [vmem:[%s7483_s1 + $0x740] ss:$16 sps:$4 sm:$0xff]  }
  0xb8   :  { %2458 = vmatprep.subr.bf16.mxu0 %v5084_v23  ;;  %3023 = vmatprep.subr.bf16.mxu1 %v5087_v24  ;;  %v5175_v23 = vld [vmem:[%s7483_s1 + $0x748] ss:$16 sps:$4 sm:$0xff]   ;;  %v5180_v24 = vld [vmem:[%s7483_s1 + $0x764] ss:$16 sps:$4 sm:$0xff]  }
  0xba   :  { %2420 = vmatmul.mubr.bf16.gmra.mrb[28].mxu0 %v5081_v25  ;;  %2985 = vmatmul.mubr.bf16.gmra.mrb[28].mxu1 %v5081_v25  ;;  %v5183_v25 = vld [vmem:[%s7483_s1 + $0x76c] ss:$16 sps:$4 sm:$0xff]  }
  0xbb   :  { %2459 = vmatpush1.bf16.msra.mxu0 %v5082_v26  ;;  %3024 = vmatpush1.bf16.msra.mxu1 %v5085_v27  ;;  %v5178_v26 = vld [vmem:[%s7483_s1 + $0x760] ss:$16 sps:$4 sm:$0xff]   ;;  %v5184_v27 = vld [vmem:[%s7484_s0 + $0x1c4] ss:$36 sps:$4 sm:$0xff]  }
  0xbc   :  { %2460 = vmatprep.subr.bf16.mxu0 %v5090_v28  ;;  %3025 = vmatprep.subr.bf16.mxu1 %v5093_v29  ;;  %v5181_v28 = vld [vmem:[%s7483_s1 + $0x768] ss:$16 sps:$4 sm:$0xff]   ;;  %v5189_v29 = vld [vmem:[%s7483_s1 + $0x784] ss:$16 sps:$4 sm:$0xff]  }
  0xbd   :  { %2462 = vmatprep.mubr.bf16.mxu0 %v5096_v30  ;;  %3027 = vmatprep.mubr.bf16.mxu1 %v5096_v30  ;;  %v5186_v30 = vld [vmem:[%s7484_s0 + $0x1c0] ss:$36 sps:$4 sm:$0xff]  }
  0xbf   :  { %2461 = vmatpush1.bf16.msra.mxu0 %v5088_v31  ;;  %3026 = vmatpush1.bf16.msra.mxu1 %v5091_v32  ;;  %v5192_v31 = vld [vmem:[%s7483_s1 + $0x78c] ss:$16 sps:$4 sm:$0xff]   ;;  %v5187_v32 = vld [vmem:[%s7483_s1 + $0x780] ss:$16 sps:$4 sm:$0xff]  }
  0xc0   :  { %2543 = vmatprep.subr.bf16.mxu0 %v5099_v33  ;;  %3108 = vmatprep.subr.bf16.mxu1 %v5102_v34  ;;  %v5190_v33 = vld [vmem:[%s7483_s1 + $0x788] ss:$16 sps:$4 sm:$0xff]   ;;  %v5195_v34 = vld [vmem:[%s7483_s1 + $0x7a4] ss:$16 sps:$4 sm:$0xff]  }
  0xc2   :  { %2463 = vmatmul.mubr.bf16.vlgmr.msra.gmra.mrb[0].mxu0 %v5094_v35  ;;  %3028 = vmatmul.mubr.bf16.vlgmr.msra.gmra.mrb[0].mxu1 %v5094_v35  ;;  %v5198_v35 = vld [vmem:[%s7483_s1 + $0x7ac] ss:$16 sps:$4 sm:$0xff]  }
  0xc3   :  { %2544 = vmatpush1.bf16.msra.mxu0 %v5097_v36  ;;  %3109 = vmatpush1.bf16.msra.mxu1 %v5100_v37  ;;  %v5199_v36 = vld [vmem:[%s7484_s0 + $0x20c] ss:$36 sps:$4 sm:$0xff]  }
  0xc4   :  { %2545 = vmatprep.subr.bf16.mxu0 %v5105_v38  ;;  %3110 = vmatprep.subr.bf16.mxu1 %v5108_v39  ;;  %v5193_v37 = vld [vmem:[%s7483_s1 + $0x7a0] ss:$16 sps:$4 sm:$0xff]   ;;  %v5196_v38 = vld [vmem:[%s7483_s1 + $0x7a8] ss:$16 sps:$4 sm:$0xff]   ;;  %v5204_v39 = vld [vmem:[%s7483_s1 + $0x7c4] ss:$16 sps:$4 sm:$0xff]  }
  0xc5   :  { %2472 = vmatprep.mubr.bf16.mxu0 %v5109_v40  ;;  %3037 = vmatprep.mubr.bf16.mxu1 %v5109_v40  ;;  %v5207_v40 = vld [vmem:[%s7483_s1 + $0x7cc] ss:$16 sps:$4 sm:$0xff]  }
  0xc7   :  { %2546 = vmatpush1.bf16.msra.mxu0 %v5103_v41  ;;  %3111 = vmatpush1.bf16.msra.mxu1 %v5106_v42  ;;  %v5201_v41 = vld [vmem:[%s7484_s0 + $0x208] ss:$36 sps:$4 sm:$0xff]   ;;  %v5202_v42 = vld [vmem:[%s7483_s1 + $0x7c0] ss:$16 sps:$4 sm:$0xff]  }
  0xc8   :  { %2547 = vmatprep.subr.bf16.mxu0 %v5114_v43  ;;  %3112 = vmatprep.subr.bf16.mxu1 %v5117_v44  ;;  %v5205_v43 = vld [vmem:[%s7483_s1 + $0x7c8] ss:$16 sps:$4 sm:$0xff]   ;;  %v5210_v44 = vld [vmem:[%s7483_s1 + $0x7e4] ss:$16 sps:$4 sm:$0xff]  }
  0xca   :  { %2473 = vmatmul.mubr.bf16.gmra.mrb[4].mxu0 %v5111_v45  ;;  %3038 = vmatmul.mubr.bf16.gmra.mrb[4].mxu1 %v5111_v45  ;;  %v5213_v45 = vld [vmem:[%s7483_s1 + $0x7ec] ss:$16 sps:$4 sm:$0xff]  }
  0xcb   :  { %2548 = vmatpush1.bf16.msra.mxu0 %v5112_v46  ;;  %3113 = vmatpush1.bf16.msra.mxu1 %v5115_v47  ;;  %v5216_v46 = vld [vmem:[%s7484_s0 + $0x1c] ss:$36 sps:$4 sm:$0xff]  }
  0xcc   :  { %2549 = vmatprep.subr.bf16.mxu0 %v5120_v48  ;;  %3114 = vmatprep.subr.bf16.mxu1 %v5123_v49  ;;  %v5208_v47 = vld [vmem:[%s7483_s1 + $0x7e0] ss:$16 sps:$4 sm:$0xff]   ;;  %v5211_v48 = vld [vmem:[%s7483_s1 + $0x7e8] ss:$16 sps:$4 sm:$0xff]   ;;  %v5219_v49 = vld [vmem:[%s7483_s1 + $0x804] ss:$16 sps:$4 sm:$0xff]  }
  0xcd   :  { %2482 = vmatprep.mubr.bf16.mxu0 %v5124_v50  ;;  %3047 = vmatprep.mubr.bf16.mxu1 %v5124_v50  ;;  %v5222_v50 = vld [vmem:[%s7483_s1 + $0x80c] ss:$16 sps:$4 sm:$0xff]  }
  0xcf   :  { %2550 = vmatpush1.bf16.msra.mxu0 %v5118_v51  ;;  %3115 = vmatpush1.bf16.msra.mxu1 %v5121_v52  ;;  %v5214_v51 = vld [vmem:[%s7484_s0 + $0x18] ss:$36 sps:$4 sm:$0xff]   ;;  %v5217_v52 = vld [vmem:[%s7483_s1 + $0x800] ss:$16 sps:$4 sm:$0xff]  }
  0xd0   :  { %2551 = vmatprep.subr.bf16.mxu0 %v5129_v53  ;;  %3116 = vmatprep.subr.bf16.mxu1 %v5132_v54  ;;  %v5220_v53 = vld [vmem:[%s7483_s1 + $0x808] ss:$16 sps:$4 sm:$0xff]  }
  0xd1   :  { %v5223_v54 = vld [vmem:[%s7484_s0 + $0x64] ss:$36 sps:$4 sm:$0xff]  }
  0xd2   :  { %2483 = vmatmul.mubr.bf16.gmra.mrb[8].mxu0 %v5126_v55  ;;  %3048 = vmatmul.mubr.bf16.gmra.mrb[8].mxu1 %v5126_v55  ;;  %v5228_v55 = vld [vmem:[%s7483_s1 + $0x824] ss:$16 sps:$4 sm:$0xff]  }
  0xd3   :  { %2552 = vmatpush1.bf16.msra.mxu0 %v5127_v56  ;;  %3117 = vmatpush1.bf16.msra.mxu1 %v5130_v57  ;;  %v5231_v56 = vld [vmem:[%s7483_s1 + $0x82c] ss:$16 sps:$4 sm:$0xff]   ;;  %v5226_v57 = vld [vmem:[%s7483_s1 + $0x820] ss:$16 sps:$4 sm:$0xff]  }
  0xd4   :  { %2553 = vmatprep.subr.bf16.mxu0 %v5135_v58  ;;  %3118 = vmatprep.subr.bf16.mxu1 %v5138_v59  ;;  %v5229_v58 = vld [vmem:[%s7483_s1 + $0x828] ss:$16 sps:$4 sm:$0xff]   ;;  %v5237_v59 = vld [vmem:[%s7483_s1 + $0x844] ss:$16 sps:$4 sm:$0xff]  }
  0xd5   :  { %2492 = vmatprep.mubr.bf16.mxu0 %v5139_v60  ;;  %3057 = vmatprep.mubr.bf16.mxu1 %v5139_v60  ;;  %v5240_v60 = vld [vmem:[%s7483_s1 + $0x84c] ss:$16 sps:$4 sm:$0xff]  }
  0xd7   :  { %2554 = vmatpush1.bf16.msra.mxu0 %v5133_v61  ;;  %3119 = vmatpush1.bf16.msra.mxu1 %v5136_v62  ;;  %v5225_v61 = vld [vmem:[%s7484_s0 + $0x60] ss:$36 sps:$4 sm:$0xff]   ;;  %v5232_v62 = vld [vmem:[%s7484_s0 + $0xac] ss:$36 sps:$4 sm:$0xff]  }
  0xd8   :  { %2555 = vmatprep.subr.bf16.mxu0 %v5144_v63  ;;  %3120 = vmatprep.subr.bf16.mxu1 %v5147_v0  ;;  %v5235_v63 = vld [vmem:[%s7483_s1 + $0x840] ss:$16 sps:$4 sm:$0xff]   ;;  %v5238_v0 = vld [vmem:[%s7483_s1 + $0x848] ss:$16 sps:$4 sm:$0xff]  }
  0xda   :  { %2493 = vmatmul.mubr.bf16.gmra.mrb[12].mxu0 %v5141_v1  ;;  %3058 = vmatmul.mubr.bf16.gmra.mrb[12].mxu1 %v5141_v1  ;;  %v5246_v1 = vld [vmem:[%s7483_s1 + $0x864] ss:$16 sps:$4 sm:$0xff]  }
  0xdb   :  { %2556 = vmatpush1.bf16.msra.mxu0 %v5142_v2  ;;  %3121 = vmatpush1.bf16.msra.mxu1 %v5145_v3  ;;  %v5249_v2 = vld [vmem:[%s7483_s1 + $0x86c] ss:$16 sps:$4 sm:$0xff]   ;;  %v5244_v3 = vld [vmem:[%s7483_s1 + $0x860] ss:$16 sps:$4 sm:$0xff]  }
  0xdc   :  { %2557 = vmatprep.subr.bf16.mxu0 %v5150_v4  ;;  %3122 = vmatprep.subr.bf16.mxu1 %v5153_v5  ;;  %v5247_v4 = vld [vmem:[%s7483_s1 + $0x868] ss:$16 sps:$4 sm:$0xff]   ;;  %v5255_v5 = vld [vmem:[%s7483_s1 + $0x884] ss:$16 sps:$4 sm:$0xff]  }
  0xdd   :  { %2502 = vmatprep.mubr.bf16.mxu0 %v5154_v6  ;;  %3067 = vmatprep.mubr.bf16.mxu1 %v5154_v6  ;;  %v5258_v6 = vld [vmem:[%s7483_s1 + $0x88c] ss:$16 sps:$4 sm:$0xff]  }
  0xdf   :  { %2558 = vmatpush1.bf16.msra.mxu0 %v5148_v7  ;;  %3123 = vmatpush1.bf16.msra.mxu1 %v5151_v8  ;;  %v5234_v7 = vld [vmem:[%s7484_s0 + $0xa8] ss:$36 sps:$4 sm:$0xff]   ;;  %v5241_v8 = vld [vmem:[%s7484_s0 + $0xf4] ss:$36 sps:$4 sm:$0xff]  }
  0xe0   :  { %2559 = vmatprep.subr.bf16.mxu0 %v5159_v9  ;;  %3124 = vmatprep.subr.bf16.mxu1 %v5162_v10  ;;  %v5253_v9 = vld [vmem:[%s7483_s1 + $0x880] ss:$16 sps:$4 sm:$0xff]   ;;  %v5256_v10 = vld [vmem:[%s7483_s1 + $0x888] ss:$16 sps:$4 sm:$0xff]  }
  0xe2   :  { %2503 = vmatmul.mubr.bf16.gmra.mrb[16].mxu0 %v5156_v11  ;;  %3068 = vmatmul.mubr.bf16.gmra.mrb[16].mxu1 %v5156_v11  ;;  %v5264_v11 = vld [vmem:[%s7483_s1 + $0x8a4] ss:$16 sps:$4 sm:$0xff]  }
  0xe3   :  { %2560 = vmatpush1.bf16.msra.mxu0 %v5157_v12  ;;  %3125 = vmatpush1.bf16.msra.mxu1 %v5160_v13  ;;  %v5267_v12 = vld [vmem:[%s7483_s1 + $0x8ac] ss:$16 sps:$4 sm:$0xff]   ;;  %v5262_v13 = vld [vmem:[%s7483_s1 + $0x8a0] ss:$16 sps:$4 sm:$0xff]  }
  0xe4   :  { %2561 = vmatprep.subr.bf16.mxu0 %v5165_v14  ;;  %3126 = vmatprep.subr.bf16.mxu1 %v5168_v15  ;;  %v5265_v14 = vld [vmem:[%s7483_s1 + $0x8a8] ss:$16 sps:$4 sm:$0xff]   ;;  %v5273_v15 = vld [vmem:[%s7483_s1 + $0x8c4] ss:$16 sps:$4 sm:$0xff]  }
  0xe5   :  { %2512 = vmatprep.mubr.bf16.mxu0 %v5169_v16  ;;  %3077 = vmatprep.mubr.bf16.mxu1 %v5169_v16  ;;  %v5276_v16 = vld [vmem:[%s7483_s1 + $0x8cc] ss:$16 sps:$4 sm:$0xff]  }
  0xe7   :  { %2562 = vmatpush1.bf16.msra.mxu0 %v5163_v17  ;;  %3127 = vmatpush1.bf16.msra.mxu1 %v5166_v18  ;;  %v5243_v17 = vld [vmem:[%s7484_s0 + $0xf0] ss:$36 sps:$4 sm:$0xff]   ;;  %v5250_v18 = vld [vmem:[%s7484_s0 + $0x13c] ss:$36 sps:$4 sm:$0xff]  }
  0xe8   :  { %2563 = vmatprep.subr.bf16.mxu0 %v5174_v19  ;;  %3128 = vmatprep.subr.bf16.mxu1 %v5177_v20  ;;  %v5271_v19 = vld [vmem:[%s7483_s1 + $0x8c0] ss:$16 sps:$4 sm:$0xff]   ;;  %v5274_v20 = vld [vmem:[%s7483_s1 + $0x8c8] ss:$16 sps:$4 sm:$0xff]  }
  0xea   :  { %2513 = vmatmul.mubr.bf16.gmra.mrb[20].mxu0 %v5171_v21  ;;  %3078 = vmatmul.mubr.bf16.gmra.mrb[20].mxu1 %v5171_v21  ;;  %v5282_v21 = vld [vmem:[%s7483_s1 + $0x8e4] ss:$16 sps:$4 sm:$0xff]  }
  0xeb   :  { %2564 = vmatpush1.bf16.msra.mxu0 %v5172_v22  ;;  %3129 = vmatpush1.bf16.msra.mxu1 %v5175_v23  ;;  %v5285_v22 = vld [vmem:[%s7483_s1 + $0x8ec] ss:$16 sps:$4 sm:$0xff]   ;;  %v5280_v23 = vld [vmem:[%s7483_s1 + $0x8e0] ss:$16 sps:$4 sm:$0xff]  }
  0xec   :  { %2565 = vmatprep.subr.bf16.mxu0 %v5180_v24  ;;  %3130 = vmatprep.subr.bf16.mxu1 %v5183_v25  ;;  %v5283_v24 = vld [vmem:[%s7483_s1 + $0x8e8] ss:$16 sps:$4 sm:$0xff]  }
  0xed   :  { %2522 = vmatprep.mubr.bf16.mxu0 %v5184_v27  ;;  %3087 = vmatprep.mubr.bf16.mxu1 %v5184_v27  ;;  %v5252_v25 = vld [vmem:[%s7484_s0 + $0x138] ss:$36 sps:$4 sm:$0xff]   ;;  %v5261_v27 = vld [vmem:[%s7484_s0 + $0x180] ss:$36 sps:$4 sm:$0xff]  }
  0xef   :  { %2566 = vmatpush1.bf16.msra.mxu0 %v5178_v26  ;;  %3131 = vmatpush1.bf16.msra.mxu1 %v5181_v28  ;;  %v5259_v26 = vld [vmem:[%s7484_s0 + $0x184] ss:$36 sps:$4 sm:$0xff]   ;;  %v5268_v28 = vld [vmem:[%s7484_s0 + $0x1cc] ss:$36 sps:$4 sm:$0xff]  }
  0xf0   :  { %2567 = vmatprep.subr.bf16.mxu0 %v5189_v29  ;;  %3132 = vmatprep.subr.bf16.mxu1 %v5192_v31  ;;  %v5270_v29 = vld [vmem:[%s7484_s0 + $0x1c8] ss:$36 sps:$4 sm:$0xff]   ;;  %v5279_v31 = vld [vmem:[%s7484_s0 + $0x210] ss:$36 sps:$4 sm:$0xff]  }
  0xf2   :  { %2523 = vmatmul.mubr.bf16.gmra.mrb[24].mxu0 %v5186_v30  ;;  %3088 = vmatmul.mubr.bf16.gmra.mrb[24].mxu1 %v5186_v30  ;;  %v5277_v30 = vld [vmem:[%s7484_s0 + $0x214] ss:$36 sps:$4 sm:$0xff]  }
  0xf3   :  { %2568 = vmatpush1.bf16.msra.mxu0 %v5187_v32  ;;  %3133 = vmatpush1.bf16.msra.mxu1 %v5190_v33  ;;  %v5296_v32 = vmov 0   ;;  %v5286_v33 = vld [vmem:[%s7484_s0 + $0x20] ss:$36 sps:$4 sm:$0xff]  }
  0xf4   :  { %2569 = vmatprep.subr.bf16.mxu0 %v5195_v34  ;;  %3134 = vmatprep.subr.bf16.mxu1 %v5198_v35  ;;  %v5287_v34 = vld [vmem:[%s7484_s0 + $0x68] ss:$36 sps:$4 sm:$0xff]   ;;  %v5288_v35 = vld [vmem:[%s7484_s0 + $0xb0] ss:$36 sps:$4 sm:$0xff]  }
  0xf5   :  { %2532 = vmatprep.mubr.bf16.mxu0 %v5199_v36  ;;  %3097 = vmatprep.mubr.bf16.mxu1 %v5199_v36  ;;  %v5289_v36 = vld [vmem:[%s7484_s0 + $0xf8] ss:$36 sps:$4 sm:$0xff]  }
  0xf7   :  { %2570 = vmatpush1.bf16.msra.mxu0 %v5193_v37  ;;  %3135 = vmatpush1.bf16.msra.mxu1 %v5196_v38  ;;  %v5290_v37 = vld [vmem:[%s7484_s0 + $0x140] ss:$36 sps:$4 sm:$0xff]   ;;  %v5291_v38 = vld [vmem:[%s7484_s0 + $0x188] ss:$36 sps:$4 sm:$0xff]  }
  0xf8   :  { %2571 = vmatprep.subr.bf16.mxu0 %v5204_v39  ;;  %3136 = vmatprep.subr.bf16.mxu1 %v5207_v40  ;;  %v5292_v39 = vld [vmem:[%s7484_s0 + $0x1d0] ss:$36 sps:$4 sm:$0xff]   ;;  %v5293_v40 = vld [vmem:[%s7484_s0 + $0x218] ss:$36 sps:$4 sm:$0xff]  }
  0xfa   :  { %2533 = vmatmul.mubr.bf16.gmra.mrb[28].mxu0 %v5201_v41  ;;  %3098 = vmatmul.mubr.bf16.gmra.mrb[28].mxu1 %v5201_v41  ;;  %v6410_v41 = vld [vmem:[%s7485_s2] ss:$0 sm:$0xff] }
  0xfb   :  { %2572 = vmatpush1.bf16.msra.mxu0 %v5202_v42  ;;  %3137 = vmatpush1.bf16.msra.mxu1 %v5205_v43 }
  0xfc   :  { %2573 = vmatprep.subr.bf16.mxu0 %v5210_v44  ;;  %3138 = vmatprep.subr.bf16.mxu1 %v5213_v45 }
  0xfd   :  { %2575 = vmatprep.mubr.bf16.mxu0 %v5216_v46  ;;  %3140 = vmatprep.mubr.bf16.mxu1 %v5216_v46 }
  0xff   :  { %2574 = vmatpush1.bf16.msra.mxu0 %v5208_v47  ;;  %3139 = vmatpush1.bf16.msra.mxu1 %v5211_v48 }
 0x100   :  { %2656 = vmatprep.subr.bf16.mxu0 %v5219_v49  ;;  %3221 = vmatprep.subr.bf16.mxu1 %v5222_v50 }
 0x102   :  { %2576 = vmatmul.mubr.bf16.vlgmr.msra.gmra.mrb[0].mxu0 %v5214_v51  ;;  %3141 = vmatmul.mubr.bf16.vlgmr.msra.gmra.mrb[0].mxu1 %v5214_v51 }
 0x103   :  { %2657 = vmatpush1.bf16.msra.mxu0 %v5217_v52  ;;  %3222 = vmatpush1.bf16.msra.mxu1 %v5220_v53 }
 0x104   :  { %2585 = vmatprep.mubr.bf16.mxu0 %v5223_v54  ;;  %3150 = vmatprep.mubr.bf16.mxu1 %v5223_v54 }
 0x105   :  { %2658 = vmatprep.subr.bf16.mxu0 %v5228_v55  ;;  %3223 = vmatprep.subr.bf16.mxu1 %v5231_v56 }
 0x107   :  { %2659 = vmatpush1.bf16.msra.mxu0 %v5226_v57  ;;  %3224 = vmatpush1.bf16.msra.mxu1 %v5229_v58 }
 0x108   :  { %2660 = vmatprep.subr.bf16.mxu0 %v5237_v59  ;;  %3225 = vmatprep.subr.bf16.mxu1 %v5240_v60 }
 0x10a   :  { %2586 = vmatmul.mubr.bf16.gmra.mrb[4].mxu0 %v5225_v61  ;;  %3151 = vmatmul.mubr.bf16.gmra.mrb[4].mxu1 %v5225_v61 }
 0x10b   :  { %2595 = vmatprep.mubr.bf16.mxu0 %v5232_v62  ;;  %3160 = vmatprep.mubr.bf16.mxu1 %v5232_v62 }
 0x10c   :  { %2661 = vmatpush1.bf16.msra.mxu0 %v5235_v63  ;;  %3226 = vmatpush1.bf16.msra.mxu1 %v5238_v0 }
 0x10d   :  { %2662 = vmatprep.subr.bf16.mxu0 %v5246_v1  ;;  %3227 = vmatprep.subr.bf16.mxu1 %v5249_v2 }
 0x110   :  { %2663 = vmatpush1.bf16.msra.mxu0 %v5244_v3  ;;  %3228 = vmatpush1.bf16.msra.mxu1 %v5247_v4 }
 0x111   :  { %2664 = vmatprep.subr.bf16.mxu0 %v5255_v5  ;;  %3229 = vmatprep.subr.bf16.mxu1 %v5258_v6 }
 0x112   :  { %2596 = vmatmul.mubr.bf16.gmra.mrb[8].mxu0 %v5234_v7  ;;  %3161 = vmatmul.mubr.bf16.gmra.mrb[8].mxu1 %v5234_v7 }
 0x113   :  { %2605 = vmatprep.mubr.bf16.mxu0 %v5241_v8  ;;  %3170 = vmatprep.mubr.bf16.mxu1 %v5241_v8 }
 0x114   :  { %2665 = vmatpush1.bf16.msra.mxu0 %v5253_v9  ;;  %3230 = vmatpush1.bf16.msra.mxu1 %v5256_v10 }
 0x115   :  { %2666 = vmatprep.subr.bf16.mxu0 %v5264_v11  ;;  %3231 = vmatprep.subr.bf16.mxu1 %v5267_v12 }
 0x118   :  { %2667 = vmatpush1.bf16.msra.mxu0 %v5262_v13  ;;  %3232 = vmatpush1.bf16.msra.mxu1 %v5265_v14 }
 0x119   :  { %2668 = vmatprep.subr.bf16.mxu0 %v5273_v15  ;;  %3233 = vmatprep.subr.bf16.mxu1 %v5276_v16 }
 0x11a   :  { %2606 = vmatmul.mubr.bf16.gmra.mrb[12].mxu0 %v5243_v17  ;;  %3171 = vmatmul.mubr.bf16.gmra.mrb[12].mxu1 %v5243_v17 }
 0x11b   :  { %2615 = vmatprep.mubr.bf16.mxu0 %v5250_v18  ;;  %3180 = vmatprep.mubr.bf16.mxu1 %v5250_v18 }
 0x11c   :  { %2669 = vmatpush1.bf16.msra.mxu0 %v5271_v19  ;;  %3234 = vmatpush1.bf16.msra.mxu1 %v5274_v20 }
 0x11d   :  { %2670 = vmatprep.subr.bf16.mxu0 %v5282_v21  ;;  %3235 = vmatprep.subr.bf16.mxu1 %v5285_v22 }
 0x120   :  { %2671 = vmatpush1.bf16.msra.mxu0 %v5280_v23  ;;  %3236 = vmatpush1.bf16.msra.mxu1 %v5283_v24 }
 0x122   :  { %2616 = vmatmul.mubr.bf16.gmra.mrb[16].mxu0 %v5252_v25  ;;  %3181 = vmatmul.mubr.bf16.gmra.mrb[16].mxu1 %v5252_v25 }
 0x123   :  { %2625 = vmatprep.mubr.bf16.mxu0 %v5259_v26  ;;  %3190 = vmatprep.mubr.bf16.mxu1 %v5259_v26 }
 0x12a   :  { %2626 = vmatmul.mubr.bf16.gmra.mrb[20].mxu0 %v5261_v27  ;;  %3191 = vmatmul.mubr.bf16.gmra.mrb[20].mxu1 %v5261_v27 }
 0x12b   :  { %2635 = vmatprep.mubr.bf16.mxu0 %v5268_v28  ;;  %3200 = vmatprep.mubr.bf16.mxu1 %v5268_v28 }
 0x132   :  { %2636 = vmatmul.mubr.bf16.gmra.mrb[24].mxu0 %v5270_v29  ;;  %3201 = vmatmul.mubr.bf16.gmra.mrb[24].mxu1 %v5270_v29 }
 0x133   :  { %2645 = vmatprep.mubr.bf16.mxu0 %v5277_v30  ;;  %3210 = vmatprep.mubr.bf16.mxu1 %v5277_v30 }
 0x13a   :  { %2646 = vmatmul.mubr.bf16.gmra.mrb[28].mxu0 %v5279_v31  ;;  %3211 = vmatmul.mubr.bf16.gmra.mrb[28].mxu1 %v5279_v31 }
 0x13b   :  { %2688 = vmatprep.mubr.bf16.mxu0 %v5296_v32  ;;  %3253 = vmatprep.mubr.bf16.mxu1 %v5296_v32 }
 0x142   :  { %2689 = vmatmul.mubr.bf16.vlgmr.msra.gmra.mrb[0].mxu0 %v5286_v33  ;;  %3254 = vmatmul.mubr.bf16.vlgmr.msra.gmra.mrb[0].mxu1 %v5286_v33 }
 0x143   :  { %2698 = vmatprep.mubr.bf16.mxu0 %v5296_v32  ;;  %3263 = vmatprep.mubr.bf16.mxu1 %v5296_v32 }
 0x14a   :  { %2699 = vmatmul.mubr.bf16.gmra.mrb[4].mxu0 %v5287_v34  ;;  %3264 = vmatmul.mubr.bf16.gmra.mrb[4].mxu1 %v5287_v34 }
 0x14b   :  { %2708 = vmatprep.mubr.bf16.mxu0 %v5296_v32  ;;  %3273 = vmatprep.mubr.bf16.mxu1 %v5296_v32 }
 0x152   :  { %2709 = vmatmul.mubr.bf16.gmra.mrb[8].mxu0 %v5288_v35  ;;  %3274 = vmatmul.mubr.bf16.gmra.mrb[8].mxu1 %v5288_v35 }
 0x153   :  { %2718 = vmatprep.mubr.bf16.mxu0 %v5296_v32  ;;  %3283 = vmatprep.mubr.bf16.mxu1 %v5296_v32 }
 0x15a   :  { %2719 = vmatmul.mubr.bf16.gmra.mrb[12].mxu0 %v5289_v36  ;;  %3284 = vmatmul.mubr.bf16.gmra.mrb[12].mxu1 %v5289_v36 }
 0x15b   :  { %2728 = vmatprep.mubr.bf16.mxu0 %v5296_v32  ;;  %3293 = vmatprep.mubr.bf16.mxu1 %v5296_v32 }
 0x162   :  { %2729 = vmatmul.mubr.bf16.gmra.mrb[16].mxu0 %v5290_v37  ;;  %3294 = vmatmul.mubr.bf16.gmra.mrb[16].mxu1 %v5290_v37 }
 0x163   :  { %2738 = vmatprep.mubr.bf16.mxu0 %v5296_v32  ;;  %3303 = vmatprep.mubr.bf16.mxu1 %v5296_v32 }
 0x16a   :  { %2739 = vmatmul.mubr.bf16.gmra.mrb[20].mxu0 %v5291_v38  ;;  %3304 = vmatmul.mubr.bf16.gmra.mrb[20].mxu1 %v5291_v38 }
 0x16b   :  { %2748 = vmatprep.mubr.bf16.mxu0 %v5296_v32  ;;  %3313 = vmatprep.mubr.bf16.mxu1 %v5296_v32 }
 0x172   :  { %2749 = vmatmul.mubr.bf16.gmra.mrb[24].mxu0 %v5292_v39  ;;  %3314 = vmatmul.mubr.bf16.gmra.mrb[24].mxu1 %v5292_v39 }
 0x173   :  { %2758 = vmatprep.mubr.bf16.mxu0 %v5296_v32  ;;  %3323 = vmatprep.mubr.bf16.mxu1 %v5296_v32 }
 0x17a   :  { %2759 = vmatmul.mubr.bf16.gmra.mrb[28].mxu0 %v5293_v40  ;;  %3324 = vmatmul.mubr.bf16.gmra.mrb[28].mxu1 %v5293_v40 }
 0x215   :  { %v2690_v42 = vpop.f32.mrb[0].mxu0  ;;  %v3255_v43 = vpop.f32.mrb[0].mxu1 }
 0x216   :  { %v2692_v44 = vpop.f32.mrb[1].mxu0  ;;  %v3257_v45 = vpop.f32.mrb[1].mxu1  ;;  %v6413_v46 = vadd.f32 %v6410_v41, %v2690_v42  ;;  %v6416_v47 = vadd.f32 %v6410_v41, %v3255_v43 }
 0x217   :  { %v2694_v48 = vpop.f32.mrb[2].mxu0  ;;  %v3259_v49 = vpop.f32.mrb[2].mxu1  ;;  %v6419_v50 = vadd.f32 %v6410_v41, %v2692_v44  ;;  %v6422_v51 = vadd.f32 %v6410_v41, %v3257_v45 }
 0x218   :  { %v6425_v52 = vadd.f32 %v6410_v41, %v2694_v48  ;;  %v6428_v53 = vadd.f32 %v6410_v41, %v3259_v49  ;;  %v2696_v54 = vpop.f32.mrb[3].mxu0  ;;  %v3261_v55 = vpop.f32.mrb[3].mxu1  ;;  %v3418_v62 = vmul.f32 %v6413_v46, %v6413_v46  ;;  %v3420_v63 = vmul.f32 %v6416_v47, %v6416_v47 }
 0x219   :  { %v6431_v56 = vadd.f32 %v6410_v41, %v2696_v54  ;;  %v6434_v57 = vadd.f32 %v6410_v41, %v3261_v55  ;;  %v3419_v0 = vmul.f32 %v6419_v50, %v6419_v50  ;;  %v3421_v1 = vmul.f32 %v6422_v51, %v6422_v51 }
 0x21a   :  { %v3422_v58 = vmul.f32 %v6425_v52, %v6425_v52  ;;  %v3424_v59 = vmul.f32 %v6428_v53, %v6428_v53  ;;  %v3334_v2 = vadd.f32 %v6425_v52, %v6413_v46  ;;  %v3376_v3 = vadd.f32 %v6428_v53, %v6416_v47 }
 0x21b   :  { %v3423_v60 = vmul.f32 %v6431_v56, %v6431_v56  ;;  %v3425_v61 = vmul.f32 %v6434_v57, %v6434_v57  ;;  %v3355_v4 = vadd.f32 %v6431_v56, %v6419_v50  ;;  %v3397_v5 = vadd.f32 %v6434_v57, %v6422_v51 }
 0x21c   :  { %v3482_v8 = vadd.f32 %v3422_v58, %v3418_v62  ;;  %v3524_v9 = vadd.f32 %v3424_v59, %v3420_v63 }
 0x21d   :  { %v2700_v6 = vpop.f32.mrb[4].mxu0  ;;  %v3265_v7 = vpop.f32.mrb[4].mxu1  ;;  %v3503_v14 = vadd.f32 %v3423_v60, %v3419_v0  ;;  %v3545_v15 = vadd.f32 %v3425_v61, %v3421_v1 }
 0x21e   :  { %v6461_v10 = vadd.f32 %v6410_v41, %v2700_v6  ;;  %v6464_v11 = vadd.f32 %v6410_v41, %v3265_v7  ;;  %v2702_v12 = vpop.f32.mrb[5].mxu0  ;;  %v3267_v13 = vpop.f32.mrb[5].mxu1 }
 0x21f   :  { %v6467_v16 = vadd.f32 %v6410_v41, %v2702_v12  ;;  %v6470_v17 = vadd.f32 %v6410_v41, %v3267_v13  ;;  %v2704_v18 = vpop.f32.mrb[6].mxu0  ;;  %v3269_v19 = vpop.f32.mrb[6].mxu1 }
 0x220   :  { %v3335_v20 = vadd.f32 %v6461_v10, %v3334_v2  ;;  %v3426_v21 = vmul.f32 %v6461_v10, %v6461_v10  ;;  %v3377_v22 = vadd.f32 %v6464_v11, %v3376_v3  ;;  %v3428_v23 = vmul.f32 %v6464_v11, %v6464_v11  ;;  %v2706_v24 = vpop.f32.mrb[7].mxu0  ;;  %v3271_v25 = vpop.f32.mrb[7].mxu1 }
 0x221   :  { %v3356_v26 = vadd.f32 %v6467_v16, %v3355_v4  ;;  %v3427_v27 = vmul.f32 %v6467_v16, %v6467_v16  ;;  %v3398_v28 = vadd.f32 %v6470_v17, %v3397_v5  ;;  %v3429_v29 = vmul.f32 %v6470_v17, %v6470_v17 }
 0x222   :  { %v3483_v30 = vadd.f32 %v3482_v8, %v3426_v21  ;;  %v3525_v31 = vadd.f32 %v3524_v9, %v3428_v23  ;;  %v6485_v32 = vadd.f32 %v6410_v41, %v2704_v18  ;;  %v6488_v33 = vadd.f32 %v6410_v41, %v3269_v19 }
 0x223   :  { %v3504_v34 = vadd.f32 %v3503_v14, %v3427_v27  ;;  %v3546_v35 = vadd.f32 %v3545_v15, %v3429_v29  ;;  %v6491_v36 = vadd.f32 %v6410_v41, %v2706_v24  ;;  %v6494_v37 = vadd.f32 %v6410_v41, %v3271_v25 }
 0x224   :  { %v3336_v38 = vadd.f32 %v6485_v32, %v3335_v20  ;;  %v3430_v39 = vmul.f32 %v6485_v32, %v6485_v32  ;;  %v3378_v40 = vadd.f32 %v6488_v33, %v3377_v22  ;;  %v3432_v42 = vmul.f32 %v6488_v33, %v6488_v33 }
 0x225   :  { %v3357_v43 = vadd.f32 %v6491_v36, %v3356_v26  ;;  %v3431_v44 = vmul.f32 %v6491_v36, %v6491_v36  ;;  %v3399_v45 = vadd.f32 %v6494_v37, %v3398_v28  ;;  %v3433_v48 = vmul.f32 %v6494_v37, %v6494_v37  ;;  %v2710_v49 = vpop.f32.mrb[8].mxu0  ;;  %v3275_v54 = vpop.f32.mrb[8].mxu1 }
 0x226   :  { %v3484_v55 = vadd.f32 %v3483_v30, %v3430_v39  ;;  %v3526_v58 = vadd.f32 %v3525_v31, %v3432_v42  ;;  %v6509_v59 = vadd.f32 %v6410_v41, %v2710_v49  ;;  %v6512_v60 = vadd.f32 %v6410_v41, %v3275_v54  ;;  %v2712_v61 = vpop.f32.mrb[9].mxu0  ;;  %v3277_v62 = vpop.f32.mrb[9].mxu1 }
 0x227   :  { %v3505_v63 = vadd.f32 %v3504_v34, %v3431_v44  ;;  %v3547_v0 = vadd.f32 %v3546_v35, %v3433_v48  ;;  %v6515_v1 = vadd.f32 %v6410_v41, %v2712_v61  ;;  %v6518_v2 = vadd.f32 %v6410_v41, %v3277_v62  ;;  %v2714_v3 = vpop.f32.mrb[10].mxu0  ;;  %v3279_v4 = vpop.f32.mrb[10].mxu1 }
 0x228   :  { %v3337_v5 = vadd.f32 %v6509_v59, %v3336_v38  ;;  %v3434_v6 = vmul.f32 %v6509_v59, %v6509_v59  ;;  %v3379_v7 = vadd.f32 %v6512_v60, %v3378_v40  ;;  %v3436_v8 = vmul.f32 %v6512_v60, %v6512_v60  ;;  %v2716_v9 = vpop.f32.mrb[11].mxu0  ;;  %v3281_v12 = vpop.f32.mrb[11].mxu1 }
 0x229   :  { %7528 = vst [vmem:[#allocation2_spill] sm:$0xff] %v6518_v2  ;;  %v3358_v13 = vadd.f32 %v6515_v1, %v3357_v43  ;;  %v3435_v14 = vmul.f32 %v6515_v1, %v6515_v1  ;;  %v3400_v15 = vadd.f32 %v6518_v2, %v3399_v45  ;;  %v3437_v18 = vmul.f32 %v6518_v2, %v6518_v2 }
 0x22a   :  { %v3485_v19 = vadd.f32 %v3484_v55, %v3434_v6  ;;  %v3527_v20 = vadd.f32 %v3526_v58, %v3436_v8  ;;  %v6533_v21 = vadd.f32 %v6410_v41, %v2714_v3  ;;  %v6536_v22 = vadd.f32 %v6410_v41, %v3279_v4 }
 0x22b   :  { %v3506_v23 = vadd.f32 %v3505_v63, %v3435_v14  ;;  %v3548_v24 = vadd.f32 %v3547_v0, %v3437_v18  ;;  %v6539_v25 = vadd.f32 %v6410_v41, %v2716_v9  ;;  %v6542_v26 = vadd.f32 %v6410_v41, %v3281_v12 }
 0x22c   :  { %7529 = vst [vmem:[#allocation3_spill] sm:$0xff] %v6533_v21  ;;  %7530 = vst [vmem:[#allocation4_spill] sm:$0xff] %v6536_v22  ;;  %v3338_v27 = vadd.f32 %v6533_v21, %v3337_v5  ;;  %v3438_v28 = vmul.f32 %v6533_v21, %v6533_v21  ;;  %v3380_v29 = vadd.f32 %v6536_v22, %v3379_v7 }
 0x22d   :  { %7531 = vst [vmem:[#allocation5_spill] sm:$0xff] %v6539_v25  ;;  %v3440_v30 = vmul.f32 %v6536_v22, %v6536_v22  ;;  %v3359_v31 = vadd.f32 %v6539_v25, %v3358_v13  ;;  %v3439_v34 = vmul.f32 %v6539_v25, %v6539_v25  ;;  %v3401_v35 = vadd.f32 %v6542_v26, %v3400_v15  ;;  %v2720_v39 = vpop.f32.mrb[12].mxu0  ;;  %v3285_v40 = vpop.f32.mrb[12].mxu1 }
 0x22e   :  { %v3441_v38 = vmul.f32 %v6542_v26, %v6542_v26  ;;  %v3486_v42 = vadd.f32 %v3485_v19, %v3438_v28  ;;  %v6557_v44 = vadd.f32 %v6410_v41, %v2720_v39  ;;  %v6560_v45 = vadd.f32 %v6410_v41, %v3285_v40  ;;  %v2722_v48 = vpop.f32.mrb[13].mxu0  ;;  %v3287_v49 = vpop.f32.mrb[13].mxu1 }
 0x22f   :  { %v3528_v43 = vadd.f32 %v3527_v20, %v3440_v30  ;;  %v3507_v54 = vadd.f32 %v3506_v23, %v3439_v34  ;;  %v6563_v58 = vadd.f32 %v6410_v41, %v2722_v48  ;;  %v6566_v61 = vadd.f32 %v6410_v41, %v3287_v49  ;;  %v2724_v62 = vpop.f32.mrb[14].mxu0  ;;  %v3289_v63 = vpop.f32.mrb[14].mxu1 }
 0x230   :  { %7532 = vst [vmem:[#allocation6_spill] sm:$0xff] %v6557_v44  ;;  %v3549_v55 = vadd.f32 %v3548_v24, %v3441_v38  ;;  %v3339_v0 = vadd.f32 %v6557_v44, %v3338_v27  ;;  %v3442_v3 = vmul.f32 %v6557_v44, %v6557_v44  ;;  %v3381_v4 = vadd.f32 %v6560_v45, %v3380_v29  ;;  %v2726_v6 = vpop.f32.mrb[15].mxu0  ;;  %v3291_v7 = vpop.f32.mrb[15].mxu1 }
 0x231   :  { %7533 = vst [vmem:[#allocation7_spill] sm:$0xff] %v6563_v58  ;;  %v3444_v5 = vmul.f32 %v6560_v45, %v6560_v45  ;;  %v3360_v8 = vadd.f32 %v6563_v58, %v3359_v31  ;;  %v3443_v9 = vmul.f32 %v6563_v58, %v6563_v58  ;;  %v3402_v12 = vadd.f32 %v6566_v61, %v3401_v35 }
 0x232   :  { %v3445_v13 = vmul.f32 %v6566_v61, %v6566_v61  ;;  %v3487_v14 = vadd.f32 %v3486_v42, %v3442_v3  ;;  %v6581_v18 = vadd.f32 %v6410_v41, %v2724_v62  ;;  %v6584_v19 = vadd.f32 %v6410_v41, %v3289_v63 }
 0x233   :  { %v3529_v15 = vadd.f32 %v3528_v43, %v3444_v5  ;;  %v3508_v20 = vadd.f32 %v3507_v54, %v3443_v9  ;;  %v6587_v24 = vadd.f32 %v6410_v41, %v2726_v6  ;;  %v6590_v27 = vadd.f32 %v6410_v41, %v3291_v7 }
 0x234   :  { %v3550_v23 = vadd.f32 %v3549_v55, %v3445_v13  ;;  %v3340_v28 = vadd.f32 %v6581_v18, %v3339_v0  ;;  %v3446_v29 = vmul.f32 %v6581_v18, %v6581_v18  ;;  %v3382_v30 = vadd.f32 %v6584_v19, %v3381_v4 }
 0x235   :  { %v3448_v31 = vmul.f32 %v6584_v19, %v6584_v19  ;;  %v3361_v34 = vadd.f32 %v6587_v24, %v3360_v8  ;;  %v3447_v35 = vmul.f32 %v6587_v24, %v6587_v24  ;;  %v3403_v38 = vadd.f32 %v6590_v27, %v3402_v12  ;;  %v2730_v40 = vpop.f32.mrb[16].mxu0  ;;  %v3295_v42 = vpop.f32.mrb[16].mxu1 }
 0x236   :  { %v3449_v39 = vmul.f32 %v6590_v27, %v6590_v27  ;;  %v3488_v43 = vadd.f32 %v3487_v14, %v3446_v29  ;;  %v6605_v49 = vadd.f32 %v6410_v41, %v2730_v40  ;;  %v6608_v54 = vadd.f32 %v6410_v41, %v3295_v42  ;;  %v2732_v55 = vpop.f32.mrb[17].mxu0  ;;  %v3297_v62 = vpop.f32.mrb[17].mxu1 }
 0x237   :  { %v3530_v48 = vadd.f32 %v3529_v15, %v3448_v31  ;;  %v3509_v63 = vadd.f32 %v3508_v20, %v3447_v35  ;;  %v6611_v3 = vadd.f32 %v6410_v41, %v2732_v55  ;;  %v6614_v4 = vadd.f32 %v6410_v41, %v3297_v62  ;;  %v2734_v5 = vpop.f32.mrb[18].mxu0  ;;  %v3299_v6 = vpop.f32.mrb[18].mxu1 }
 0x238   :  { %v3551_v0 = vadd.f32 %v3550_v23, %v3449_v39  ;;  %v3341_v7 = vadd.f32 %v6605_v49, %v3340_v28  ;;  %v3450_v8 = vmul.f32 %v6605_v49, %v6605_v49  ;;  %v3383_v9 = vadd.f32 %v6608_v54, %v3382_v30  ;;  %v2736_v13 = vpop.f32.mrb[19].mxu0  ;;  %v3301_v14 = vpop.f32.mrb[19].mxu1 }
 0x239   :  { %v3452_v12 = vmul.f32 %v6608_v54, %v6608_v54  ;;  %v3362_v15 = vadd.f32 %v6611_v3, %v3361_v34  ;;  %v3451_v20 = vmul.f32 %v6611_v3, %v6611_v3  ;;  %v3404_v23 = vadd.f32 %v6614_v4, %v3403_v38 }
 0x23a   :  { %v3453_v28 = vmul.f32 %v6614_v4, %v6614_v4  ;;  %v3489_v29 = vadd.f32 %v3488_v43, %v3450_v8  ;;  %v6629_v35 = vadd.f32 %v6410_v41, %v2734_v5  ;;  %v6632_v30 = vadd.f32 %v6410_v41, %v3299_v6 }
 0x23b   :  { %v3531_v31 = vadd.f32 %v3530_v48, %v3452_v12  ;;  %v3510_v39 = vadd.f32 %v3509_v63, %v3451_v20  ;;  %v6635_v34 = vadd.f32 %v6410_v41, %v2736_v13  ;;  %v6638_v42 = vadd.f32 %v6410_v41, %v3301_v14 }
 0x23c   :  { %7534 = vst [vmem:[#allocation8_spill] sm:$0xff] %v6632_v30  ;;  %v3552_v40 = vadd.f32 %v3551_v0, %v3453_v28  ;;  %v3342_v38 = vadd.f32 %v6629_v35, %v3341_v7  ;;  %v3454_v43 = vmul.f32 %v6629_v35, %v6629_v35  ;;  %v3384_v48 = vadd.f32 %v6632_v30, %v3383_v9 }
 0x23d   :  { %7535 = vst [vmem:[#allocation9_spill] sm:$0xff] %v6635_v34  ;;  %7536 = vst [vmem:[#allocation10_spill] sm:$0xff] %v6638_v42  ;;  %v3456_v55 = vmul.f32 %v6632_v30, %v6632_v30  ;;  %v3363_v62 = vadd.f32 %v6635_v34, %v3362_v15  ;;  %v3455_v63 = vmul.f32 %v6635_v34, %v6635_v34  ;;  %v2740_v6 = vpop.f32.mrb[20].mxu0  ;;  %v3305_v7 = vpop.f32.mrb[20].mxu1 }
 0x23e   :  { %v3405_v0 = vadd.f32 %v6638_v42, %v3404_v23  ;;  %v3457_v5 = vmul.f32 %v6638_v42, %v6638_v42  ;;  %v3490_v8 = vadd.f32 %v3489_v29, %v3454_v43  ;;  %v6653_v13 = vadd.f32 %v6410_v41, %v2740_v6  ;;  %v2742_v14 = vpop.f32.mrb[21].mxu0  ;;  %v3307_v15 = vpop.f32.mrb[21].mxu1 }
 0x23f   :  { %v3532_v12 = vadd.f32 %v3531_v31, %v3456_v55  ;;  %v6656_v9 = vadd.f32 %v6410_v41, %v3305_v7  ;;  %v3511_v20 = vadd.f32 %v3510_v39, %v3455_v63  ;;  %v6659_v58 = vadd.f32 %v6410_v41, %v2742_v14  ;;  %v2744_v44 = vpop.f32.mrb[22].mxu0  ;;  %v3309_v22 = vpop.f32.mrb[22].mxu1 }
 0x240   :  { %7537 = vst [vmem:[#allocation11_spill] sm:$0xff] %v6653_v13  ;;  %v3553_v28 = vadd.f32 %v3552_v40, %v3457_v5  ;;  %v6662_v23 = vadd.f32 %v6410_v41, %v3307_v15  ;;  %v3343_v29 = vadd.f32 %v6653_v13, %v3342_v38  ;;  %v3458_v31 = vmul.f32 %v6653_v13, %v6653_v13  ;;  %v2746_v39 = vpop.f32.mrb[23].mxu0  ;;  %v3311_v40 = vpop.f32.mrb[23].mxu1 }
 0x241   :  { %7538 = vst [vmem:[#allocation12_spill] sm:$0xff] %v6656_v9  ;;  %7539 = vst [vmem:[#allocation13_spill] sm:$0xff] %v6659_v58  ;;  %v3385_v43 = vadd.f32 %v6656_v9, %v3384_v48  ;;  %v3460_v55 = vmul.f32 %v6656_v9, %v6656_v9  ;;  %v3364_v63 = vadd.f32 %v6659_v58, %v3363_v62 }
 0x242   :  { %7540 = vst [vmem:[#allocation14_spill] sm:$0xff] %v6662_v23  ;;  %v3459_v5 = vmul.f32 %v6659_v58, %v6659_v58  ;;  %v3406_v6 = vadd.f32 %v6662_v23, %v3405_v0  ;;  %v3461_v38 = vmul.f32 %v6662_v23, %v6662_v23  ;;  %v3491_v7 = vadd.f32 %v3490_v8, %v3458_v31 }
 0x243   :  { %v3533_v14 = vadd.f32 %v3532_v12, %v3460_v55  ;;  %v6677_v15 = vadd.f32 %v6410_v41, %v2744_v44  ;;  %v6680_v48 = vadd.f32 %v6410_v41, %v3309_v22  ;;  %v6683_v62 = vadd.f32 %v6410_v41, %v2746_v39 }
 0x244   :  { %v3512_v25 = vadd.f32 %v3511_v20, %v3459_v5  ;;  %v3554_v21 = vadd.f32 %v3553_v28, %v3461_v38  ;;  %v6686_v2 = vadd.f32 %v6410_v41, %v3311_v40 }
 0x245   :  { %7541 = vst [vmem:[#allocation15_spill] sm:$0xff] %v6677_v15  ;;  %7542 = vst [vmem:[#allocation16_spill] sm:$0xff] %v6680_v48  ;;  %v3344_v0 = vadd.f32 %v6677_v15, %v3343_v29  ;;  %v3462_v8 = vmul.f32 %v6677_v15, %v6677_v15  ;;  %v3386_v12 = vadd.f32 %v6680_v48, %v3385_v43  ;;  %v2750_v55 = vpop.f32.mrb[24].mxu0  ;;  %v3315_v29 = vpop.f32.mrb[24].mxu1 }
 0x246   :  { %7543 = vst [vmem:[#allocation17_spill] sm:$0xff] %v6683_v62  ;;  %7544 = vst [vmem:[#allocation18_spill] sm:$0xff] %v6686_v2  ;;  %v3464_v44 = vmul.f32 %v6680_v48, %v6680_v48  ;;  %v3365_v22 = vadd.f32 %v6683_v62, %v3364_v63  ;;  %v3463_v20 = vmul.f32 %v6683_v62, %v6683_v62  ;;  %v2752_v38 = vpop.f32.mrb[25].mxu0  ;;  %v3317_v63 = vpop.f32.mrb[25].mxu1 }
 0x247   :  { %v3407_v28 = vadd.f32 %v6686_v2, %v3406_v6  ;;  %v3465_v31 = vmul.f32 %v6686_v2, %v6686_v2  ;;  %v3492_v39 = vadd.f32 %v3491_v7, %v3462_v8  ;;  %v6701_v5 = vadd.f32 %v6410_v41, %v2750_v55  ;;  %v2754_v2 = vpop.f32.mrb[26].mxu0  ;;  %v3319_v23 = vpop.f32.mrb[26].mxu1 }
 0x248   :  { %v3534_v40 = vadd.f32 %v3533_v14, %v3464_v44  ;;  %v6704_v43 = vadd.f32 %v6410_v41, %v3315_v29  ;;  %v3513_v48 = vadd.f32 %v3512_v25, %v3463_v20  ;;  %v6707_v62 = vadd.f32 %v6410_v41, %v2752_v38  ;;  %v2756_v25 = vpop.f32.mrb[27].mxu0 }
 0x249   :  { %7545 = vst [vmem:[#allocation19_spill] sm:$0xff] %v6701_v5  ;;  %v3555_v15 = vadd.f32 %v3554_v21, %v3465_v31  ;;  %v6710_v6 = vadd.f32 %v6410_v41, %v3317_v63  ;;  %v3345_v7 = vadd.f32 %v6701_v5, %v3344_v0  ;;  %v3466_v14 = vmul.f32 %v6701_v5, %v6701_v5  ;;  %v3321_v21 = vpop.f32.mrb[27].mxu1 }
 0x24a   :  { %7546 = vst [vmem:[#allocation20_spill] sm:$0xff] %v6704_v43  ;;  %7547 = vst [vmem:[#allocation21_spill] sm:$0xff] %v6707_v62  ;;  %v3387_v8 = vadd.f32 %v6704_v43, %v3386_v12  ;;  %v3468_v44 = vmul.f32 %v6704_v43, %v6704_v43  ;;  %v3366_v20 = vadd.f32 %v6707_v62, %v3365_v22 }
 0x24b   :  { %7548 = vst [vmem:[#allocation22_spill] sm:$0xff] %v6710_v6  ;;  %v3467_v31 = vmul.f32 %v6707_v62, %v6707_v62  ;;  %v3408_v55 = vadd.f32 %v6710_v6, %v3407_v28  ;;  %v3469_v0 = vmul.f32 %v6710_v6, %v6710_v6  ;;  %v3493_v29 = vadd.f32 %v3492_v39, %v3466_v14 }
 0x24c   :  { %v3535_v38 = vadd.f32 %v3534_v40, %v3468_v44  ;;  %v6725_v63 = vadd.f32 %v6410_v41, %v2754_v2  ;;  %v6728_v12 = vadd.f32 %v6410_v41, %v3319_v23  ;;  %v6731_v22 = vadd.f32 %v6410_v41, %v2756_v25 }
 0x24d   :  { %v3514_v43 = vadd.f32 %v3513_v48, %v3467_v31  ;;  %v3556_v5 = vadd.f32 %v3555_v15, %v3469_v0  ;;  %v6734_v62 = vadd.f32 %v6410_v41, %v3321_v21  ;;  %v2760_v44 = vpop.f32.mrb[28].mxu0 }
 0x24e   :  { %7549 = vst [vmem:[#allocation23_spill] sm:$0xff] %v6725_v63  ;;  %7550 = vst [vmem:[#allocation24_spill] sm:$0xff] %v6728_v12  ;;  %v3346_v28 = vadd.f32 %v6725_v63, %v3345_v7  ;;  %v3470_v39 = vmul.f32 %v6725_v63, %v6725_v63  ;;  %v3388_v40 = vadd.f32 %v6728_v12, %v3387_v8  ;;  %v3325_v7 = vpop.f32.mrb[28].mxu1  ;;  %v2762_v0 = vpop.f32.mrb[29].mxu0 }
 0x24f   :  { %7551 = vst [vmem:[#allocation25_spill] sm:$0xff] %v6731_v22  ;;  %7552 = vst [vmem:[#allocation26_spill] sm:$0xff] %v6734_v62  ;;  %v3472_v2 = vmul.f32 %v6728_v12, %v6728_v12  ;;  %v3367_v23 = vadd.f32 %v6731_v22, %v3366_v20  ;;  %v3471_v15 = vmul.f32 %v6731_v22, %v6731_v22  ;;  %v3327_v20 = vpop.f32.mrb[29].mxu1 }
 0x250   :  { %v3409_v48 = vadd.f32 %v6734_v62, %v3408_v55  ;;  %v3473_v14 = vmul.f32 %v6734_v62, %v6734_v62  ;;  %v3494_v25 = vadd.f32 %v3493_v29, %v3470_v39  ;;  %v6749_v31 = vadd.f32 %v6410_v41, %v2760_v44  ;;  %v2764_v62 = vpop.f32.mrb[30].mxu0  ;;  %v3329_v6 = vpop.f32.mrb[30].mxu1 }
 0x251   :  { %v3536_v21 = vadd.f32 %v3535_v38, %v3472_v2  ;;  %v6752_v8 = vadd.f32 %v6410_v41, %v3325_v7  ;;  %v3515_v12 = vadd.f32 %v3514_v43, %v3471_v15  ;;  %v6755_v22 = vadd.f32 %v6410_v41, %v2762_v0  ;;  %v2766_v43 = vpop.f32.mrb[31].mxu0 }
 0x252   :  { %7553 = vst [vmem:[#allocation27_spill] sm:$0xff] %v6749_v31  ;;  %v3557_v63 = vadd.f32 %v3556_v5, %v3473_v14  ;;  %v6758_v55 = vadd.f32 %v6410_v41, %v3327_v20  ;;  %v3347_v29 = vadd.f32 %v6749_v31, %v3346_v28  ;;  %v3474_v38 = vmul.f32 %v6749_v31, %v6749_v31  ;;  %v3331_v5 = vpop.f32.mrb[31].mxu1 }
 0x253   :  { %7554 = vst [vmem:[#allocation28_spill] sm:$0xff] %v6752_v8  ;;  %7555 = vst [vmem:[#allocation29_spill] sm:$0xff] %v6755_v22  ;;  %v3389_v39 = vadd.f32 %v6752_v8, %v3388_v40  ;;  %v3476_v2 = vmul.f32 %v6752_v8, %v6752_v8  ;;  %v3368_v15 = vadd.f32 %v6755_v22, %v3367_v23 }
 0x254   :  { %7556 = vst [vmem:[#allocation30_spill] sm:$0xff] %v6758_v55  ;;  %v3475_v14 = vmul.f32 %v6755_v22, %v6755_v22  ;;  %v3410_v44 = vadd.f32 %v6758_v55, %v3409_v48  ;;  %v3477_v28 = vmul.f32 %v6758_v55, %v6758_v55  ;;  %v3495_v7 = vadd.f32 %v3494_v25, %v3474_v38 }
 0x255   :  { %v3537_v0 = vadd.f32 %v3536_v21, %v3476_v2  ;;  %v6773_v20 = vadd.f32 %v6410_v41, %v2764_v62  ;;  %v6776_v40 = vadd.f32 %v6410_v41, %v3329_v6  ;;  %v6779_v23 = vadd.f32 %v6410_v41, %v2766_v43 }
 0x256   :  { %v3516_v8 = vadd.f32 %v3515_v12, %v3475_v14  ;;  %v3558_v31 = vadd.f32 %v3557_v63, %v3477_v28  ;;  %v6782_v22 = vadd.f32 %v6410_v41, %v3331_v5 }
 0x257   :  { %7557 = vst [vmem:[#allocation31_spill] sm:$0xff] %v6773_v20  ;;  %7558 = vst [vmem:[#allocation32_spill] sm:$0xff] %v6776_v40  ;;  %v3348_v48 = vadd.f32 %v6773_v20, %v3347_v29  ;;  %v3478_v25 = vmul.f32 %v6773_v20, %v6773_v20  ;;  %v3390_v21 = vadd.f32 %v6776_v40, %v3389_v39 }
 0x258   :  { %7559 = vst [vmem:[#allocation33_spill] sm:$0xff] %v6779_v23  ;;  %7560 = vst [vmem:[#allocation34_spill] sm:$0xff] %v6782_v22  ;;  %v3480_v62 = vmul.f32 %v6776_v40, %v6776_v40  ;;  %v3369_v6 = vadd.f32 %v6779_v23, %v3368_v15  ;;  %v3479_v63 = vmul.f32 %v6779_v23, %v6779_v23 }
 0x259   :  { %v3411_v12 = vadd.f32 %v6782_v22, %v3410_v44  ;;  %v3481_v41 = vmul.f32 %v6782_v22, %v6782_v22  ;;  %v3349_v38 = vrot.slane %v3348_v48, 4  ;;  %v3496_v29 = vadd.f32 %v3495_v7, %v3478_v25 }
 0x25a   :  { %v3391_v2 = vrot.slane %v3390_v21, 4  ;;  %v3538_v43 = vadd.f32 %v3537_v0, %v3480_v62  ;;  %v3370_v5 = vrot.slane %v3369_v6, 4  ;;  %v3517_v14 = vadd.f32 %v3516_v8, %v3479_v63 }
 0x25b   :  { %v3412_v39 = vrot.slane %v3411_v12, 4  ;;  %v3559_v28 = vadd.f32 %v3558_v31, %v3481_v41  ;;  %v3350_v20 = vadd.f32 %v3349_v38, %v3348_v48  ;;  %v3497_v40 = vrot.slane %v3496_v29, 4 }
 0x25c   :  { %v3392_v55 = vadd.f32 %v3391_v2, %v3390_v21  ;;  %v3539_v15 = vrot.slane %v3538_v43, 4  ;;  %v3371_v9 = vadd.f32 %v3370_v5, %v3369_v6  ;;  %v3518_v58 = vrot.slane %v3517_v14, 4 }
 0x25d   :  { %v3413_v23 = vadd.f32 %v3412_v39, %v3411_v12  ;;  %v3560_v13 = vrot.slane %v3559_v28, 4  ;;  %v3351_v44 = vrot.slane %v3350_v20, 2  ;;  %v3498_v42 = vadd.f32 %v3497_v40, %v3496_v29 }
 0x25e   :  { %v3393_v30 = vrot.slane %v3392_v55, 2  ;;  %v3540_v22 = vadd.f32 %v3539_v15, %v3538_v43  ;;  %v3372_v34 = vrot.slane %v3371_v9, 2  ;;  %v3519_v7 = vadd.f32 %v3518_v58, %v3517_v14 }
 0x25f   :  { %v3414_v25 = vrot.slane %v3413_v23, 2  ;;  %v3561_v0 = vadd.f32 %v3560_v13, %v3559_v28  ;;  %v3352_v62 = vadd.f32 %v3351_v44, %v3350_v20  ;;  %v3499_v8 = vrot.slane %v3498_v42, 2 }
 0x260   :  { %v3394_v63 = vadd.f32 %v3393_v30, %v3392_v55  ;;  %v3541_v31 = vrot.slane %v3540_v22, 2  ;;  %v3373_v48 = vadd.f32 %v3372_v34, %v3371_v9  ;;  %v3520_v41 = vrot.slane %v3519_v7, 2 }
 0x261   :  { %v3415_v21 = vadd.f32 %v3414_v25, %v3413_v23  ;;  %v3562_v38 = vrot.slane %v3561_v0, 2  ;;  %v3353_v6 = vrot.slane %v3352_v62, 1  ;;  %v3500_v2 = vadd.f32 %v3499_v8, %v3498_v42 }
 0x262   :  { %v3542_v12 = vadd.f32 %v3541_v31, %v3540_v22  ;;  %v3395_v5 = vrot.slane %v3394_v63, 1  ;;  %v3374_v39 = vrot.slane %v3373_v48, 1  ;;  %v3521_v40 = vadd.f32 %v3520_v41, %v3519_v7 }
 0x263   :  { %v3563_v29 = vadd.f32 %v3562_v38, %v3561_v0  ;;  %v3354_v43 = vadd.f32 %v3353_v6, %v3352_v62  ;;  %v3501_v15 = vrot.slane %v3500_v2, 1  ;;  %v3416_v20 = vrot.slane %v3415_v21, 1 }
 0x264   :  { %v3543_v58 = vrot.slane %v3542_v12, 1  ;;  %v3375_v14 = vadd.f32 %v3374_v39, %v3373_v48  ;;  %v3522_v13 = vrot.slane %v3521_v40, 1  ;;  %v3396_v30 = vadd.f32 %v3395_v5, %v3394_v63  ;;  %v390_v63 = vld [vmem:[%s7486_s3] sm:$0x1] }
 0x265   :  { %v3502_v28 = vadd.f32 %v3501_v15, %v3500_v2  ;;  %v3564_v9 = vrot.slane %v3563_v29, 1  ;;  %v3417_v25 = vadd.f32 %v3416_v20, %v3415_v21  ;;  %v3584_v6 = vlaneseq  ;;  %v6805_v39 = vld [vmem:[%s7487_s4] sm:$0x1] }
 0x266   :  { %v3523_v55 = vadd.f32 %v3522_v13, %v3521_v40  ;;  %v3567_v34 = vadd.f32 %v3375_v14, %v3354_v43  ;;  %v3544_v23 = vadd.f32 %v3543_v58, %v3542_v12 }
 0x267   :  { %v3565_v22 = vadd.f32 %v3564_v9, %v3563_v29  ;;  %v6796_v2 = vshrl.u32 %v3584_v6, 7  ;;  %v7565_v9 = vld [vmem:[#allocation13_spill] sm:$0xff] }
 0x268   :  { %v3571_v44 = vadd.f32 %v3523_v55, %v3502_v28  ;;  %v3568_v42 = vadd.f32 %v3567_v34, %v3396_v30  ;;  %v7561_v28 = vld [vmem:[#allocation9_spill] sm:$0xff]  ;;  %v7562_v30 = vld [vmem:[#allocation8_spill] sm:$0xff]  ;;  %v7563_v55 = vld [vmem:[#allocation10_spill] sm:$0xff] }
 0x269   :  { %v7522_v21 = vsub.s32 0, %v6796_v2  ;;  %v7564_v34 = vld [vmem:[#allocation11_spill] sm:$0xff] }
 0x26a   :  { %v3569_v8 = vadd.f32 %v3568_v42, %v3417_v25  ;;  %v3572_v31 = vadd.f32 %v3571_v44, %v3544_v23  ;;  %v7566_v23 = vld [vmem:[#allocation12_spill] sm:$0xff]  ;;  %v7567_v25 = vld [vmem:[#allocation14_spill] sm:$0xff] }
 0x26c   :  { %v3573_v7 = vadd.f32 %v3572_v31, %v3565_v22  ;;  %v3575_v0 = vmul.f32 0.001953125, %v3569_v8  ;;  %v7568_v22 = vld [vmem:[#allocation15_spill] sm:$0xff]  ;;  %v7569_v31 = vld [vmem:[#allocation17_spill] sm:$0xff] }
 0x26e   :  { %v3576_v62 = vmul.f32 0.001953125, %v3573_v7  ;;  %v3577_v41 = vmul.f32 %v3575_v0, %v3575_v0 }
 0x270   :  { %v3578_v38 = vsub.f32 %v3576_v62, %v3577_v41  ;;  %v7571_v41 = vld [vmem:[#allocation18_spill] sm:$0xff] }
 0x272   :  { %v3579_v48 = vadd.f32 1e-05, %v3578_v38 }
 0x274   :  { %5294 = vrsqrt.f32 %v3579_v48  ;;  %v7572_v48 = vld [vmem:[#allocation19_spill] sm:$0xff] }
 0x27e   :  { %v5295_v12 = vpop.eup %5294 }
 0x27f   :  { %v3581_v5 = vmul.f32 %v5295_v12, %v390_v63  ;;  %v7573_v63 = vld [vmem:[#allocation21_spill] sm:$0xff] }
 0x281   :  { %v6807_v40 = vmul.f32 %v3581_v5, %v3575_v0  ;;  %v6811_v29 = vrot.slane %v3581_v5, %v7522_v21  ;;  %v7570_v0 = vld [vmem:[#allocation16_spill] sm:$0xff]  ;;  %v7593_v21 = vld [vmem:[#allocation33_spill] sm:$0xff] }
 0x282   :  { %v7574_v5 = vld [vmem:[#allocation20_spill] sm:$0xff] }
 0x283   :  { %v3583_v43 = vsub.f32 %v6805_v39, %v6807_v40  ;;  %v6817_v15 = vmul.f32 %v6413_v46, %v6811_v29  ;;  %v6821_v58 = vmul.f32 %v6419_v50, %v6811_v29  ;;  %v6825_v14 = vmul.f32 %v6416_v47, %v6811_v29  ;;  %v7575_v40 = vld [vmem:[#allocation22_spill] sm:$0xff] }
 0x284   :  { %v6829_v13 = vmul.f32 %v6422_v51, %v6811_v29  ;;  %v6833_v20 = vmul.f32 %v6425_v52, %v6811_v29  ;;  %v6837_v46 = vmul.f32 %v6431_v56, %v6811_v29  ;;  %v6841_v50 = vmul.f32 %v6428_v53, %v6811_v29 }
 0x285   :  { %v6845_v47 = vmul.f32 %v6434_v57, %v6811_v29  ;;  %v6849_v51 = vmul.f32 %v6461_v10, %v6811_v29  ;;  %v6853_v52 = vmul.f32 %v6467_v16, %v6811_v29  ;;  %v6857_v56 = vmul.f32 %v6464_v11, %v6811_v29 }
 0x286   :  { %v6861_v53 = vmul.f32 %v6470_v17, %v6811_v29  ;;  %v6865_v57 = vmul.f32 %v6485_v32, %v6811_v29  ;;  %v6869_v10 = vmul.f32 %v6491_v36, %v6811_v29  ;;  %v6873_v16 = vmul.f32 %v6488_v33, %v6811_v29 }
 0x287   :  { %v6877_v11 = vmul.f32 %v6494_v37, %v6811_v29  ;;  %v6881_v17 = vmul.f32 %v6509_v59, %v6811_v29  ;;  %v6885_v32 = vmul.f32 %v6515_v1, %v6811_v29  ;;  %v6889_v36 = vmul.f32 %v6512_v60, %v6811_v29 }
 0x288   :  { %v6893_v33 = vmul.f32 %v6542_v26, %v6811_v29  ;;  %v6897_v37 = vmul.f32 %v6560_v45, %v6811_v29  ;;  %v6901_v59 = vmul.f32 %v6566_v61, %v6811_v29  ;;  %v6905_v1 = vmul.f32 %v6581_v18, %v6811_v29 }
 0x289   :  { %v6909_v60 = vmul.f32 %v6587_v24, %v6811_v29  ;;  %v6913_v26 = vmul.f32 %v6584_v19, %v6811_v29  ;;  %v6917_v45 = vmul.f32 %v6590_v27, %v6811_v29  ;;  %v6921_v61 = vmul.f32 %v6605_v49, %v6811_v29 }
 0x28a   :  { %v6925_v18 = vmul.f32 %v6611_v3, %v6811_v29  ;;  %v6929_v24 = vmul.f32 %v6608_v54, %v6811_v29  ;;  %v6933_v19 = vmul.f32 %v6614_v4, %v6811_v29  ;;  %v6937_v27 = vmul.f32 %v6629_v35, %v6811_v29 }
 0x28b   :  { %v6941_v49 = vmul.f32 %v7561_v28, %v6811_v29  ;;  %v6945_v3 = vmul.f32 %v7562_v30, %v6811_v29  ;;  %v6949_v54 = vmul.f32 %v7563_v55, %v6811_v29  ;;  %v6953_v4 = vmul.f32 %v7564_v34, %v6811_v29  ;;  %v7576_v30 = vld [vmem:[#allocation23_spill] sm:$0xff]  ;;  %v7577_v34 = vld [vmem:[#allocation25_spill] sm:$0xff] }
 0x28c   :  { %v6957_v35 = vmul.f32 %v7565_v9, %v6811_v29  ;;  %v6961_v44 = vmul.f32 %v7566_v23, %v6811_v29  ;;  %v6965_v42 = vmul.f32 %v7567_v25, %v6811_v29  ;;  %v6969_v8 = vmul.f32 %v7568_v22, %v6811_v29  ;;  %v7579_v23 = vld [vmem:[#allocation24_spill] sm:$0xff]  ;;  %v7581_v22 = vld [vmem:[#allocation26_spill] sm:$0xff] }
 0x28d   :  { %v6973_v7 = vmul.f32 %v7569_v31, %v6811_v29  ;;  %v6977_v62 = vmul.f32 %v7570_v0, %v6811_v29  ;;  %v6981_v38 = vmul.f32 %v7571_v41, %v6811_v29  ;;  %v6985_v6 = vmul.f32 %v7572_v48, %v6811_v29  ;;  %v7583_v0 = vld [vmem:[#allocation27_spill] sm:$0xff]  ;;  %v7585_v48 = vld [vmem:[#allocation29_spill] sm:$0xff] }
 0x28e   :  { %v6989_v12 = vmul.f32 %v7573_v63, %v6811_v29  ;;  %v6993_v39 = vmul.f32 %v7574_v5, %v6811_v29  ;;  %v6997_v28 = vmul.f32 %v7575_v40, %v6811_v29  ;;  %v7001_v55 = vmul.f32 %v7576_v30, %v6811_v29  ;;  %v7587_v5 = vld [vmem:[#allocation28_spill] sm:$0xff]  ;;  %v7589_v30 = vld [vmem:[#allocation30_spill] sm:$0xff] }
 0x28f   :  { %v7005_v9 = vmul.f32 %v7577_v34, %v6811_v29  ;;  %v7009_v25 = vmul.f32 %v7579_v23, %v6811_v29  ;;  %v7013_v31 = vmul.f32 %v7581_v22, %v6811_v29  ;;  %v7017_v41 = vmul.f32 %v7583_v0, %v6811_v29  ;;  %v7591_v23 = vld [vmem:[#allocation31_spill] sm:$0xff] }
 0x290   :  { %v7021_v63 = vmul.f32 %v7585_v48, %v6811_v29  ;;  %v7025_v40 = vmul.f32 %v7587_v5, %v6811_v29  ;;  %v7029_v34 = vmul.f32 %v7589_v30, %v6811_v29  ;;  %v7033_v22 = vmul.f32 %v7591_v23, %v6811_v29  ;;  %v7599_v30 = vld [vmem:[#allocation34_spill] sm:$0xff] }
 0x291   :  { %7578 = vst [vmem:[#allocation9_spill] sm:$0xff] %v7005_v9  ;;  %7580 = vst [vmem:[#allocation8_spill] sm:$0xff] %v7009_v25  ;;  %v7037_v0 = vmul.f32 %v7593_v21, %v6811_v29  ;;  %v7600_v23 = vsub.s32 0, %v6796_v2  ;;  %v7601_v21 = vld [vmem:[#allocation5_spill] sm:$0xff]  ;;  %v7603_v25 = vld [vmem:[#allocation6_spill] sm:$0xff] }
 0x292   :  { %7582 = vst [vmem:[#allocation10_spill] sm:$0xff] %v7013_v31  ;;  %7584 = vst [vmem:[#allocation11_spill] sm:$0xff] %v7017_v41  ;;  %v7595_v41 = vld [vmem:[#allocation32_spill] sm:$0xff]  ;;  %v7604_v9 = vld [vmem:[#allocation7_spill] sm:$0xff] }
 0x293   :  { %7586 = vst [vmem:[#allocation13_spill] sm:$0xff] %v7021_v63  ;;  %7588 = vst [vmem:[#allocation12_spill] sm:$0xff] %v7025_v40  ;;  %v7041_v48 = vmul.f32 %v7595_v41, %v6811_v29  ;;  %v7597_v63 = vld [vmem:[#allocation2_spill] sm:$0xff]  ;;  %v7598_v40 = vld [vmem:[#allocation3_spill] sm:$0xff] }
 0x294   :  { %7590 = vst [vmem:[#allocation14_spill] sm:$0xff] %v7029_v34  ;;  %7592 = vst [vmem:[#allocation15_spill] sm:$0xff] %v7033_v22  ;;  %v3607_v5 = vmul.f32 %v7597_v63, %v6811_v29  ;;  %v3608_v31 = vmul.f32 %v7598_v40, %v6811_v29  ;;  %v7049_v34 = vmul.f32 %v7599_v30, %v6811_v29  ;;  %v7602_v41 = vld [vmem:[#allocation4_spill] sm:$0xff] }
 0x295   :  { %7594 = vst [vmem:[#allocation17_spill] sm:$0xff] %v7037_v0  ;;  %7596 = vst [vmem:[#allocation16_spill] sm:$0xff] %v7041_v48  ;;  %v7053_v22 = vrot.slane %v3583_v43, %v7600_v23  ;;  %v3609_v0 = vmul.f32 %v7601_v21, %v6811_v29  ;;  %v3610_v48 = vmul.f32 %v7602_v41, %v6811_v29 }
 0x296   :  { %v3612_v63 = vmul.f32 %v7603_v25, %v6811_v29  ;;  %v3613_v40 = vmul.f32 %v7604_v9, %v6811_v29 }
 0x297   :  { %v7065_v30 = vadd.f32 %v7053_v22, %v6817_v15  ;;  %v7069_v2 = vadd.f32 %v7053_v22, %v6821_v58  ;;  %v7073_v43 = vadd.f32 %v7053_v22, %v6825_v14  ;;  %v7077_v23 = vadd.f32 %v7053_v22, %v6829_v13 }
 0x298   :  { %v7081_v25 = vadd.f32 %v7053_v22, %v6833_v20  ;;  %v7085_v29 = vadd.f32 %v7053_v22, %v6837_v46  ;;  %v7089_v15 = vadd.f32 %v7053_v22, %v6841_v50  ;;  %v7093_v58 = vadd.f32 %v7053_v22, %v6845_v47  ;;  %v7612_v21 = vld [vmem:[#allocation9_spill] sm:$0xff]  ;;  %v7614_v41 = vld [vmem:[#allocation8_spill] sm:$0xff] }
 0x299   :  { %7605 = vst [vmem:[#allocation18_spill] sm:$0xff] %v7065_v30  ;;  %7606 = vst [vmem:[#allocation19_spill] sm:$0xff] %v7069_v2  ;;  %v7097_v14 = vadd.f32 %v7053_v22, %v6849_v51  ;;  %v7101_v13 = vadd.f32 %v7053_v22, %v6853_v52  ;;  %v7105_v20 = vadd.f32 %v7053_v22, %v6857_v56 }
 0x29a   :  { %7607 = vst [vmem:[#allocation21_spill] sm:$0xff] %v7073_v43  ;;  %7608 = vst [vmem:[#allocation20_spill] sm:$0xff] %v7077_v23  ;;  %v7109_v46 = vadd.f32 %v7053_v22, %v6861_v53  ;;  %v7113_v50 = vadd.f32 %v7053_v22, %v6865_v57  ;;  %v7117_v47 = vadd.f32 %v7053_v22, %v6869_v10 }
 0x29b   :  { %7609 = vst [vmem:[#allocation22_spill] sm:$0xff] %v7081_v25  ;;  %v7121_v51 = vadd.f32 %v7053_v22, %v6873_v16  ;;  %v7125_v52 = vadd.f32 %v7053_v22, %v6877_v11  ;;  %v7129_v56 = vadd.f32 %v7053_v22, %v6881_v17  ;;  %v7133_v53 = vadd.f32 %v7053_v22, %v6885_v32 }
 0x29c   :  { %v7137_v57 = vadd.f32 %v7053_v22, %v6889_v36  ;;  %v7140_v10 = vadd.f32 %v7053_v22, %v3607_v5  ;;  %v7143_v16 = vadd.f32 %v7053_v22, %v3608_v31  ;;  %v7146_v11 = vadd.f32 %v7053_v22, %v3609_v0 }
 0x29d   :  { %v7149_v17 = vadd.f32 %v7053_v22, %v3610_v48  ;;  %v7153_v32 = vadd.f32 %v7053_v22, %v6893_v33  ;;  %v7156_v9 = vadd.f32 %v7053_v22, %v3612_v63  ;;  %v7159_v36 = vadd.f32 %v7053_v22, %v3613_v40  ;;  %v7616_v63 = vld [vmem:[#allocation10_spill] sm:$0xff]  ;;  %v7618_v40 = vld [vmem:[#allocation11_spill] sm:$0xff] }
 0x29e   :  { %v7163_v31 = vadd.f32 %v7053_v22, %v6897_v37  ;;  %v7167_v0 = vadd.f32 %v7053_v22, %v6901_v59  ;;  %v7171_v48 = vadd.f32 %v7053_v22, %v6905_v1  ;;  %v7175_v33 = vadd.f32 %v7053_v22, %v6909_v60 }
 0x29f   :  { %v7179_v5 = vadd.f32 %v7053_v22, %v6913_v26  ;;  %v7183_v37 = vadd.f32 %v7053_v22, %v6917_v45  ;;  %v7187_v59 = vadd.f32 %v7053_v22, %v6921_v61  ;;  %v7191_v1 = vadd.f32 %v7053_v22, %v6925_v18 }
 0x2a0   :  { %v7195_v60 = vadd.f32 %v7053_v22, %v6929_v24  ;;  %v7199_v26 = vadd.f32 %v7053_v22, %v6933_v19  ;;  %v7203_v45 = vadd.f32 %v7053_v22, %v6937_v27  ;;  %v7207_v61 = vadd.f32 %v7053_v22, %v6941_v49 }
 0x2a1   :  { %v7211_v18 = vadd.f32 %v7053_v22, %v6945_v3  ;;  %v7215_v24 = vadd.f32 %v7053_v22, %v6949_v54  ;;  %v7219_v19 = vadd.f32 %v7053_v22, %v6953_v4  ;;  %v7223_v27 = vadd.f32 %v7053_v22, %v6957_v35 }
 0x2a2   :  { %v7227_v49 = vadd.f32 %v7053_v22, %v6961_v44  ;;  %v7231_v3 = vadd.f32 %v7053_v22, %v6965_v42  ;;  %v7235_v54 = vadd.f32 %v7053_v22, %v6969_v8  ;;  %v7239_v4 = vadd.f32 %v7053_v22, %v6973_v7 }
 0x2a3   :  { %v7243_v35 = vadd.f32 %v7053_v22, %v6977_v62  ;;  %v7247_v44 = vadd.f32 %v7053_v22, %v6981_v38  ;;  %v7251_v42 = vadd.f32 %v7053_v22, %v6985_v6  ;;  %v7255_v8 = vadd.f32 %v7053_v22, %v6989_v12 }
 0x2a4   :  { %v7259_v7 = vadd.f32 %v7053_v22, %v6993_v39  ;;  %v7263_v62 = vadd.f32 %v7053_v22, %v6997_v28  ;;  %v7267_v38 = vadd.f32 %v7053_v22, %v7001_v55  ;;  %v7271_v6 = vadd.f32 %v7053_v22, %v7612_v21 }
 0x2a5   :  { %v7275_v12 = vadd.f32 %v7053_v22, %v7614_v41  ;;  %v7279_v39 = vadd.f32 %v7053_v22, %v7616_v63  ;;  %v7283_v28 = vadd.f32 %v7053_v22, %v7618_v40 }
 0x2a6   :  { %7610 = vst [vmem:[#allocation23_spill] sm:$0xff] %v7263_v62  ;;  %7611 = vst [vmem:[#allocation25_spill] sm:$0xff] %v7267_v38  ;;  %v7620_v62 = vld [vmem:[#allocation13_spill] sm:$0xff]  ;;  %v7621_v38 = vld [vmem:[#allocation12_spill] sm:$0xff] }
 0x2a7   :  { %7613 = vst [vmem:[#allocation24_spill] sm:$0xff] %v7271_v6  ;;  %7615 = vst [vmem:[#allocation26_spill] sm:$0xff] %v7275_v12  ;;  %v7287_v55 = vadd.f32 %v7053_v22, %v7620_v62  ;;  %v7291_v21 = vadd.f32 %v7053_v22, %v7621_v38  ;;  %v7623_v6 = vld [vmem:[#allocation14_spill] sm:$0xff]  ;;  %v7625_v12 = vld [vmem:[#allocation15_spill] sm:$0xff]  ;;  %v7311_v38 = vadd.f32 %v7053_v22, %v7049_v34  ;;  %v3729_v34 = vmax.f32 %v7101_v13, 0.0 }
 0x2a8   :  { %7617 = vst [vmem:[#allocation27_spill] sm:$0xff] %v7279_v39  ;;  %7619 = vst [vmem:[#allocation29_spill] sm:$0xff] %v7283_v28  ;;  %v7295_v41 = vadd.f32 %v7053_v22, %v7623_v6  ;;  %v7299_v63 = vadd.f32 %v7053_v22, %v7625_v12  ;;  %v7627_v39 = vld [vmem:[#allocation17_spill] sm:$0xff]  ;;  %v7629_v28 = vld [vmem:[#allocation16_spill] sm:$0xff]  ;;  %v3731_v6 = vmax.f32 %v7109_v46, 0.0  ;;  %v3733_v12 = vmax.f32 %v7117_v47, 0.0 }
 0x2a9   :  { %7622 = vst [vmem:[#allocation28_spill] sm:$0xff] %v7291_v21  ;;  %v7303_v40 = vadd.f32 %v7053_v22, %v7627_v39  ;;  %v7307_v62 = vadd.f32 %v7053_v22, %v7629_v28  ;;  %7631 = vst [vmem:[#allocation2_spill] sm:$0xff] %v7311_v38  ;;  %v3725_v39 = vmax.f32 %v7085_v29, 0.0  ;;  %v3727_v28 = vmax.f32 %v7093_v58, 0.0 }
 0x2aa   :  { %7624 = vst [vmem:[#allocation30_spill] sm:$0xff] %v7295_v41  ;;  %7626 = vst [vmem:[#allocation31_spill] sm:$0xff] %v7299_v63  ;;  %v3730_v22 = vmax.f32 %v7105_v20, 0.0  ;;  %v3732_v41 = vmax.f32 %v7113_v50, 0.0  ;;  %v3734_v63 = vmax.f32 %v7121_v51, 0.0  ;;  %v3735_v29 = vmax.f32 %v7125_v52, 0.0 }
 0x2ab   :  { %7628 = vst [vmem:[#allocation33_spill] sm:$0xff] %v7303_v40  ;;  %7630 = vst [vmem:[#allocation32_spill] sm:$0xff] %v7307_v62  ;;  %v3726_v40 = vmax.f32 %v7089_v15, 0.0  ;;  %v3728_v62 = vmax.f32 %v7097_v14, 0.0  ;;  %v3736_v15 = vmax.f32 %v7129_v56, 0.0  ;;  %v3737_v58 = vmax.f32 %v7133_v53, 0.0 }
 0x2ac   :  { %v3738_v14 = vmax.f32 %v7137_v57, 0.0  ;;  %v3739_v13 = vmax.f32 %v7140_v10, 0.0  ;;  %v3740_v20 = vmax.f32 %v7143_v16, 0.0  ;;  %v3741_v46 = vmax.f32 %v7146_v11, 0.0 }
 0x2ad   :  { %v3742_v50 = vmax.f32 %v7149_v17, 0.0  ;;  %v3743_v47 = vmax.f32 %v7153_v32, 0.0  ;;  %v3744_v51 = vmax.f32 %v7156_v9, 0.0  ;;  %v3745_v52 = vmax.f32 %v7159_v36, 0.0  ;;  %v7632_v21 = vld [vmem:[#allocation23_spill] sm:$0xff]  ;;  %v7633_v25 = vld [vmem:[#allocation25_spill] sm:$0xff] }
 0x2ae   :  { %v3746_v56 = vmax.f32 %v7163_v31, 0.0  ;;  %v3747_v53 = vmax.f32 %v7167_v0, 0.0  ;;  %v3748_v57 = vmax.f32 %v7171_v48, 0.0  ;;  %v3749_v10 = vmax.f32 %v7175_v33, 0.0  ;;  %v7634_v23 = vld [vmem:[#allocation24_spill] sm:$0xff]  ;;  %v7635_v43 = vld [vmem:[#allocation26_spill] sm:$0xff] }
 0x2af   :  { %v3750_v16 = vmax.f32 %v7179_v5, 0.0  ;;  %v3751_v11 = vmax.f32 %v7183_v37, 0.0  ;;  %v3752_v17 = vmax.f32 %v7187_v59, 0.0  ;;  %v3753_v32 = vmax.f32 %v7191_v1, 0.0  ;;  %v7636_v2 = vld [vmem:[#allocation27_spill] sm:$0xff]  ;;  %v7637_v30 = vld [vmem:[#allocation29_spill] sm:$0xff] }
 0x2b0   :  { %v3754_v9 = vmax.f32 %v7195_v60, 0.0  ;;  %v3755_v36 = vmax.f32 %v7199_v26, 0.0  ;;  %v3756_v31 = vmax.f32 %v7203_v45, 0.0  ;;  %v3757_v0 = vmax.f32 %v7207_v61, 0.0  ;;  %v7638_v38 = vld [vmem:[#allocation28_spill] sm:$0xff] }
 0x2b1   :  { %v3758_v48 = vmax.f32 %v7211_v18, 0.0  ;;  %v3759_v33 = vmax.f32 %v7215_v24, 0.0  ;;  %v3760_v5 = vmax.f32 %v7219_v19, 0.0  ;;  %v3761_v37 = vmax.f32 %v7223_v27, 0.0 }
 0x2b2   :  { %v3762_v59 = vmax.f32 %v7227_v49, 0.0  ;;  %v3763_v1 = vmax.f32 %v7231_v3, 0.0  ;;  %v3764_v60 = vmax.f32 %v7235_v54, 0.0  ;;  %v3765_v26 = vmax.f32 %v7239_v4, 0.0 }
 0x2b3   :  { %v3766_v45 = vmax.f32 %v7243_v35, 0.0  ;;  %v3767_v61 = vmax.f32 %v7247_v44, 0.0  ;;  %v3768_v18 = vmax.f32 %v7251_v42, 0.0  ;;  %v3769_v24 = vmax.f32 %v7255_v8, 0.0  ;;  %v7639_v8 = vld [vmem:[#allocation30_spill] sm:$0xff] }
 0x2b4   :  { %v3770_v19 = vmax.f32 %v7259_v7, 0.0  ;;  %v3771_v27 = vmax.f32 %v7632_v21, 0.0  ;;  %v3772_v49 = vmax.f32 %v7633_v25, 0.0  ;;  %v3773_v3 = vmax.f32 %v7634_v23, 0.0  ;;  %v7640_v21 = vld [vmem:[#allocation31_spill] sm:$0xff]  ;;  %v7641_v23 = vld [vmem:[#allocation33_spill] sm:$0xff] }
 0x2b5   :  { %v3774_v54 = vmax.f32 %v7635_v43, 0.0  ;;  %v3775_v4 = vmax.f32 %v7636_v2, 0.0  ;;  %v3776_v35 = vmax.f32 %v7637_v30, 0.0  ;;  %v3777_v44 = vmax.f32 %v7287_v55, 0.0  ;;  %v7642_v2 = vld [vmem:[#allocation32_spill] sm:$0xff]  ;;  %v7643_v55 = vld [vmem:[#allocation2_spill] sm:$0xff] }
 0x2b6   :  { %v3778_v42 = vmax.f32 %v7638_v38, 0.0  ;;  %v3779_v7 = vmax.f32 %v7639_v8, 0.0  ;;  %v3780_v25 = vmax.f32 %v7640_v21, 0.0  ;;  %v3781_v43 = vmax.f32 %v7641_v23, 0.0  ;;  %v7644_v8 = vld [vmem:[#allocation18_spill] sm:$0xff]  ;;  %v7646_v23 = vld [vmem:[#allocation19_spill] sm:$0xff] }
 0x2b7   :  { %v3782_v30 = vmax.f32 %v7642_v2, 0.0  ;;  %v3783_v38 = vmax.f32 %v7643_v55, 0.0  ;;  %v7645_v21 = vmax.f32 %v7644_v8, 0.0  ;;  %v7647_v2 = vmax.f32 %v7646_v23, 0.0  ;;  %v7648_v8 = vld [vmem:[#allocation21_spill] sm:$0xff] }
 0x2b8   :  { %v7649_v23 = vmax.f32 %v7648_v8, 0.0 }
 0x2b9   :  { %v4405_v55 = vpack.c.bf16 %v7647_v2, %v7645_v21  ;;  %v7650_v2 = vld [vmem:[#allocation20_spill] sm:$0xff] }
 0x2ba   :  { %v7651_v21 = vmax.f32 %v7650_v2, 0.0  ;;  %v7652_v2 = vld [vmem:[#allocation22_spill] sm:$0xff] }
 0x2bb   :  { %3976 = vst [vmem:[%s7488_s5] sm:$0xff] %v4405_v55 }
 0x2bc   :  { %v4406_v8 = vpack.c.bf16 %v7651_v21, %v7649_v23  ;;  %v7653_v21 = vmax.f32 %v7652_v2, 0.0  ;;  %v4408_v2 = vpack.c.bf16 %v3727_v28, %v3726_v40  ;;  %v4411_v28 = vpack.c.bf16 %v3733_v12, %v3732_v41 }
 0x2bd   :  { %v4412_v40 = vpack.c.bf16 %v3735_v29, %v3734_v63  ;;  %v4417_v41 = vpack.c.bf16 %v3745_v52, %v3744_v51  ;;  %v4418_v63 = vpack.c.bf16 %v3747_v53, %v3746_v56  ;;  %v4419_v12 = vpack.c.bf16 %v3749_v10, %v3748_v57 }
 0x2be   :  { %v4407_v23 = vpack.c.bf16 %v3725_v39, %v7653_v21  ;;  %v4409_v21 = vpack.c.bf16 %v3729_v34, %v3728_v62  ;;  %v4410_v39 = vpack.c.bf16 %v3731_v6, %v3730_v22  ;;  %v4413_v34 = vpack.c.bf16 %v3737_v58, %v3736_v15  ;;  %3977 = vst [vmem:[%s7488_s5 + $0x8] sm:$0xff] %v4406_v8 }
 0x2bf   :  { %v4414_v62 = vpack.c.bf16 %v3739_v13, %v3738_v14  ;;  %v4415_v6 = vpack.c.bf16 %v3741_v46, %v3740_v20  ;;  %v4416_v22 = vpack.c.bf16 %v3743_v47, %v3742_v50  ;;  %3979 = vst [vmem:[%s7488_s5 + $0x18] sm:$0xff] %v4408_v2  ;;  %v4420_v29 = vpack.c.bf16 %v3751_v11, %v3750_v16 }
 0x2c0   :  { %3978 = vst [vmem:[%s7488_s5 + $0x10] sm:$0xff] %v4407_v23  ;;  %3980 = vst [vmem:[%s7488_s5 + $0x20] sm:$0xff] %v4409_v21  ;;  %v4421_v15 = vpack.c.bf16 %v3753_v32, %v3752_v17  ;;  %v4422_v58 = vpack.c.bf16 %v3755_v36, %v3754_v9  ;;  %v4423_v14 = vpack.c.bf16 %v3757_v0, %v3756_v31 }
 0x2c1   :  { %3981 = vst [vmem:[%s7488_s5 + $0x28] sm:$0xff] %v4410_v39  ;;  %3982 = vst [vmem:[%s7488_s5 + $0x30] sm:$0xff] %v4411_v28  ;;  %v4424_v13 = vpack.c.bf16 %v3759_v33, %v3758_v48  ;;  %v4425_v20 = vpack.c.bf16 %v3761_v37, %v3760_v5  ;;  %v4426_v46 = vpack.c.bf16 %v3763_v1, %v3762_v59 }
 0x2c2   :  { %3983 = vst [vmem:[%s7488_s5 + $0x38] sm:$0xff] %v4412_v40  ;;  %3984 = vst [vmem:[%s7488_s5 + $0x40] sm:$0xff] %v4413_v34  ;;  %v4427_v50 = vpack.c.bf16 %v3765_v26, %v3764_v60  ;;  %v4428_v47 = vpack.c.bf16 %v3767_v61, %v3766_v45  ;;  %v4429_v51 = vpack.c.bf16 %v3769_v24, %v3768_v18 }
 0x2c3   :  { %3985 = vst [vmem:[%s7488_s5 + $0x48] sm:$0xff] %v4414_v62  ;;  %3986 = vst [vmem:[%s7488_s5 + $0x50] sm:$0xff] %v4415_v6  ;;  %v4430_v52 = vpack.c.bf16 %v3771_v27, %v3770_v19  ;;  %v4431_v56 = vpack.c.bf16 %v3773_v3, %v3772_v49  ;;  %v4432_v53 = vpack.c.bf16 %v3775_v4, %v3774_v54 }
 0x2c4   :  { %3987 = vst [vmem:[%s7488_s5 + $0x58] sm:$0xff] %v4416_v22  ;;  %3988 = vst [vmem:[%s7488_s5 + $0x60] sm:$0xff] %v4417_v41  ;;  %v4433_v57 = vpack.c.bf16 %v3777_v44, %v3776_v35  ;;  %v4434_v10 = vpack.c.bf16 %v3779_v7, %v3778_v42  ;;  %v4435_v16 = vpack.c.bf16 %v3781_v43, %v3780_v25 }
 0x2c5   :  { %3989 = vst [vmem:[%s7488_s5 + $0x68] sm:$0xff] %v4418_v63  ;;  %3990 = vst [vmem:[%s7488_s5 + $0x70] sm:$0xff] %v4419_v12  ;;  %v4436_v11 = vpack.c.bf16 %v3783_v38, %v3782_v30 }
 0x2c6   :  { %3991 = vst [vmem:[%s7488_s5 + $0x78] sm:$0xff] %v4420_v29  ;;  %3992 = vst [vmem:[%s7488_s5 + $0x80] sm:$0xff] %v4421_v15 }
 0x2c7   :  { %3993 = vst [vmem:[%s7488_s5 + $0x88] sm:$0xff] %v4422_v58  ;;  %3994 = vst [vmem:[%s7488_s5 + $0x90] sm:$0xff] %v4423_v14 }
 0x2c8   :  { %3995 = vst [vmem:[%s7488_s5 + $0x98] sm:$0xff] %v4424_v13  ;;  %3996 = vst [vmem:[%s7488_s5 + $0xa0] sm:$0xff] %v4425_v20 }
 0x2c9   :  { %3997 = vst [vmem:[%s7488_s5 + $0xa8] sm:$0xff] %v4426_v46  ;;  %3998 = vst [vmem:[%s7488_s5 + $0xb0] sm:$0xff] %v4427_v50 }
 0x2ca   :  { %3999 = vst [vmem:[%s7488_s5 + $0xb8] sm:$0xff] %v4428_v47  ;;  %4000 = vst [vmem:[%s7488_s5 + $0xc0] sm:$0xff] %v4429_v51 }
 0x2cb   :  { %4001 = vst [vmem:[%s7488_s5 + $0xc8] sm:$0xff] %v4430_v52  ;;  %4002 = vst [vmem:[%s7488_s5 + $0xd0] sm:$0xff] %v4431_v56 }
 0x2cc   :  { %4003 = vst [vmem:[%s7488_s5 + $0xd8] sm:$0xff] %v4432_v53  ;;  %4004 = vst [vmem:[%s7488_s5 + $0xe0] sm:$0xff] %v4433_v57 }
 0x2cd   :  { %4005 = vst [vmem:[%s7488_s5 + $0xe8] sm:$0xff] %v4434_v10  ;;  %4006 = vst [vmem:[%s7488_s5 + $0xf0] sm:$0xff] %v4435_v16 }
 0x2ce   :  { %4007 = vst [vmem:[%s7488_s5 + $0xf8] sm:$0xff] %v4436_v11 }

// kernel: generator_forward.5
= control target key start
LH: loop header
LB: loop body
LE: loop exit
PB: predicated region body
PF: predicated region fallthrough
CT: control target
= control target key end

     0   :  { %s13674_s1 = inlined_call_operand.vmem [shape: bf16[1152,512], index: 1, kind: input, shape index: {}]   ;;  %s13675_s3 = inlined_call_operand.vmem [shape: f32[1,128], index: 3, kind: input, shape index: {}]   ;;  %s13676_s4 = inlined_call_operand.vmem [shape: f32[1,128], index: 4, kind: input, shape index: {}]   ;;  %s13677_s0 = inlined_call_operand.vmem [shape: bf16[512,1152], index: 0, kind: input, shape index: {}]   ;;  %s13678_s2 = inlined_call_operand.vmem [shape: f32[1,128], index: 2, kind: input, shape index: {}]   ;;  %s13679_s5 = inlined_call_operand.vmem [shape: f32[512,512], index: 5, kind: output, shape index: {}]  }
   0x1   :  { %v9450_v0 = vld [vmem:[%s13674_s1 + $0x4] ss:$16 sps:$4 sm:$0xff]   ;;  %v9452_v1 = vld [vmem:[%s13674_s1 + $0xc] ss:$16 sps:$4 sm:$0xff]   ;;  %v9454_v2 = vld [vmem:[%s13674_s1] ss:$16 sps:$4 sm:$0xff]  }
   0x2   :  { %3546 = vmatprep.subr.bf16.mxu0 %v9450_v0  ;;  %v9455_v3 = vld [vmem:[%s13674_s1 + $0x8] ss:$16 sps:$4 sm:$0xff]   ;;  %5311 = vmatprep.subr.bf16.mxu1 %v9452_v1  ;;  %v9456_v4 = vld [vmem:[%s13674_s1 + $0x24] ss:$16 sps:$4 sm:$0xff]   ;;  %v9458_v5 = vld [vmem:[%s13674_s1 + $0x2c] ss:$16 sps:$4 sm:$0xff]  }
   0x3   :  { %3547 = vmatpush1.bf16.msra.mxu0 %v9454_v2  ;;  %5312 = vmatpush1.bf16.msra.mxu1 %v9455_v3  ;;  %v9460_v6 = vld [vmem:[%s13674_s1 + $0x20] ss:$16 sps:$4 sm:$0xff]   ;;  %v9461_v7 = vld [vmem:[%s13674_s1 + $0x28] ss:$16 sps:$4 sm:$0xff]   ;;  %v9462_v8 = vld [vmem:[%s13674_s1 + $0x44] ss:$16 sps:$4 sm:$0xff]  }
   0x4   :  { %3548 = vmatprep.subr.bf16.mxu0 %v9456_v4  ;;  %5313 = vmatprep.subr.bf16.mxu1 %v9458_v5  ;;  %v9464_v9 = vld [vmem:[%s13674_s1 + $0x4c] ss:$16 sps:$4 sm:$0xff]   ;;  %v9466_v10 = vld [vmem:[%s13674_s1 + $0x40] ss:$16 sps:$4 sm:$0xff]   ;;  %v9467_v11 = vld [vmem:[%s13674_s1 + $0x48] ss:$16 sps:$4 sm:$0xff]  }
   0x5   :  { %v9468_v12 = vld [vmem:[%s13674_s1 + $0x64] ss:$16 sps:$4 sm:$0xff]   ;;  %v9470_v13 = vld [vmem:[%s13674_s1 + $0x6c] ss:$16 sps:$4 sm:$0xff]   ;;  %v9472_v14 = vld [vmem:[%s13674_s1 + $0x60] ss:$16 sps:$4 sm:$0xff]  }
   0x6   :  { %v9473_v15 = vld [vmem:[%s13674_s1 + $0x68] ss:$16 sps:$4 sm:$0xff]   ;;  %v9474_v16 = vld [vmem:[%s13674_s1 + $0x84] ss:$16 sps:$4 sm:$0xff]   ;;  %v9476_v17 = vld [vmem:[%s13674_s1 + $0x8c] ss:$16 sps:$4 sm:$0xff]  }
   0x7   :  { %3549 = vmatpush1.bf16.msra.mxu0 %v9460_v6  ;;  %5314 = vmatpush1.bf16.msra.mxu1 %v9461_v7  ;;  %v9478_v18 = vld [vmem:[%s13674_s1 + $0x80] ss:$16 sps:$4 sm:$0xff]   ;;  %v9479_v19 = vld [vmem:[%s13674_s1 + $0x88] ss:$16 sps:$4 sm:$0xff]   ;;  %v9480_v20 = vld [vmem:[%s13674_s1 + $0xa4] ss:$16 sps:$4 sm:$0xff]  }
   0x8   :  { %3550 = vmatprep.subr.bf16.mxu0 %v9462_v8  ;;  %5315 = vmatprep.subr.bf16.mxu1 %v9464_v9  ;;  %v9482_v21 = vld [vmem:[%s13674_s1 + $0xac] ss:$16 sps:$4 sm:$0xff]   ;;  %v9484_v22 = vld [vmem:[%s13674_s1 + $0xa0] ss:$16 sps:$4 sm:$0xff]   ;;  %v9485_v23 = vld [vmem:[%s13674_s1 + $0xa8] ss:$16 sps:$4 sm:$0xff]  }
   0x9   :  { %v9486_v24 = vld [vmem:[%s13674_s1 + $0xc4] ss:$16 sps:$4 sm:$0xff]   ;;  %v9488_v25 = vld [vmem:[%s13674_s1 + $0xcc] ss:$16 sps:$4 sm:$0xff]   ;;  %v9490_v26 = vld [vmem:[%s13674_s1 + $0xc0] ss:$16 sps:$4 sm:$0xff]  }
   0xa   :  { %v9491_v27 = vld [vmem:[%s13674_s1 + $0xc8] ss:$16 sps:$4 sm:$0xff]   ;;  %v9492_v28 = vld [vmem:[%s13674_s1 + $0xe4] ss:$16 sps:$4 sm:$0xff]   ;;  %v9494_v29 = vld [vmem:[%s13674_s1 + $0xec] ss:$16 sps:$4 sm:$0xff]  }
   0xb   :  { %3551 = vmatpush1.bf16.msra.mxu0 %v9466_v10  ;;  %5316 = vmatpush1.bf16.msra.mxu1 %v9467_v11  ;;  %v9496_v30 = vld [vmem:[%s13674_s1 + $0xe0] ss:$16 sps:$4 sm:$0xff]   ;;  %v9497_v31 = vld [vmem:[%s13674_s1 + $0xe8] ss:$16 sps:$4 sm:$0xff]   ;;  %v9498_v32 = vld [vmem:[%s13674_s1 + $0x104] ss:$16 sps:$4 sm:$0xff]  }
   0xc   :  { %3552 = vmatprep.subr.bf16.mxu0 %v9468_v12  ;;  %5317 = vmatprep.subr.bf16.mxu1 %v9470_v13  ;;  %v9500_v33 = vld [vmem:[%s13674_s1 + $0x10c] ss:$16 sps:$4 sm:$0xff]   ;;  %v9502_v34 = vld [vmem:[%s13674_s1 + $0x100] ss:$16 sps:$4 sm:$0xff]   ;;  %v9503_v35 = vld [vmem:[%s13674_s1 + $0x108] ss:$16 sps:$4 sm:$0xff]  }
   0xd   :  { %v9504_v36 = vld [vmem:[%s13674_s1 + $0x124] ss:$16 sps:$4 sm:$0xff]   ;;  %v9506_v37 = vld [vmem:[%s13674_s1 + $0x12c] ss:$16 sps:$4 sm:$0xff]   ;;  %v9508_v38 = vld [vmem:[%s13674_s1 + $0x120] ss:$16 sps:$4 sm:$0xff]  }
   0xe   :  { %v9509_v39 = vld [vmem:[%s13674_s1 + $0x128] ss:$16 sps:$4 sm:$0xff]   ;;  %v9510_v40 = vld [vmem:[%s13674_s1 + $0x144] ss:$16 sps:$4 sm:$0xff]   ;;  %v9512_v41 = vld [vmem:[%s13674_s1 + $0x14c] ss:$16 sps:$4 sm:$0xff]  }
   0xf   :  { %3553 = vmatpush1.bf16.msra.mxu0 %v9472_v14  ;;  %5318 = vmatpush1.bf16.msra.mxu1 %v9473_v15  ;;  %v9514_v42 = vld [vmem:[%s13674_s1 + $0x140] ss:$16 sps:$4 sm:$0xff]   ;;  %v9515_v43 = vld [vmem:[%s13674_s1 + $0x148] ss:$16 sps:$4 sm:$0xff]   ;;  %v9516_v44 = vld [vmem:[%s13674_s1 + $0x164] ss:$16 sps:$4 sm:$0xff]  }
  0x10   :  { %3554 = vmatprep.subr.bf16.mxu0 %v9474_v16  ;;  %5319 = vmatprep.subr.bf16.mxu1 %v9476_v17  ;;  %v9518_v45 = vld [vmem:[%s13674_s1 + $0x16c] ss:$16 sps:$4 sm:$0xff]   ;;  %v9520_v46 = vld [vmem:[%s13674_s1 + $0x160] ss:$16 sps:$4 sm:$0xff]   ;;  %v9521_v47 = vld [vmem:[%s13674_s1 + $0x168] ss:$16 sps:$4 sm:$0xff]  }
  0x11   :  { %v9548_v48 = vld [vmem:[%s13677_s0 + $0x4] ss:$36 sps:$4 sm:$0xff]   ;;  %v9524_v50 = vld [vmem:[%s13674_s1 + $0x18c] ss:$16 sps:$4 sm:$0xff]   ;;  %v9526_v51 = vld [vmem:[%s13674_s1 + $0x180] ss:$16 sps:$4 sm:$0xff]  }
  0x12   :  { %v9522_v49 = vld [vmem:[%s13674_s1 + $0x184] ss:$16 sps:$4 sm:$0xff]   ;;  %3578 = vmatprep.mubr.bf16.mxu0 %v9548_v48  ;;  %5343 = vmatprep.mubr.bf16.mxu1 %v9548_v48  ;;  %v9527_v52 = vld [vmem:[%s13674_s1 + $0x188] ss:$16 sps:$4 sm:$0xff]   ;;  %v9530_v54 = vld [vmem:[%s13674_s1 + $0x1ac] ss:$16 sps:$4 sm:$0xff]  }
  0x13   :  { %3555 = vmatpush1.bf16.msra.mxu0 %v9478_v18  ;;  %5320 = vmatpush1.bf16.msra.mxu1 %v9479_v19  ;;  %v9528_v53 = vld [vmem:[%s13674_s1 + $0x1a4] ss:$16 sps:$4 sm:$0xff]   ;;  %v9532_v55 = vld [vmem:[%s13674_s1 + $0x1a0] ss:$16 sps:$4 sm:$0xff]   ;;  %v9533_v56 = vld [vmem:[%s13674_s1 + $0x1a8] ss:$16 sps:$4 sm:$0xff]  }
  0x14   :  { %3556 = vmatprep.subr.bf16.mxu0 %v9480_v20  ;;  %5321 = vmatprep.subr.bf16.mxu1 %v9482_v21  ;;  %v9534_v57 = vld [vmem:[%s13674_s1 + $0x1c4] ss:$16 sps:$4 sm:$0xff]   ;;  %v9536_v58 = vld [vmem:[%s13674_s1 + $0x1cc] ss:$16 sps:$4 sm:$0xff]   ;;  %v9538_v59 = vld [vmem:[%s13674_s1 + $0x1c0] ss:$16 sps:$4 sm:$0xff]  }
  0x15   :  { %v9539_v60 = vld [vmem:[%s13674_s1 + $0x1c8] ss:$16 sps:$4 sm:$0xff]   ;;  %v9540_v61 = vld [vmem:[%s13674_s1 + $0x1e4] ss:$16 sps:$4 sm:$0xff]   ;;  %v9542_v62 = vld [vmem:[%s13674_s1 + $0x1ec] ss:$16 sps:$4 sm:$0xff]  }
  0x16   :  { %v9544_v63 = vld [vmem:[%s13674_s1 + $0x1e0] ss:$16 sps:$4 sm:$0xff]   ;;  %v9545_v0 = vld [vmem:[%s13674_s1 + $0x1e8] ss:$16 sps:$4 sm:$0xff]   ;;  %v9551_v1 = vld [vmem:[%s13674_s1 + $0x204] ss:$16 sps:$4 sm:$0xff]  }
  0x17   :  { %3557 = vmatpush1.bf16.msra.mxu0 %v9484_v22  ;;  %5322 = vmatpush1.bf16.msra.mxu1 %v9485_v23  ;;  %v9554_v2 = vld [vmem:[%s13674_s1 + $0x20c] ss:$16 sps:$4 sm:$0xff]   ;;  %v9546_v3 = vld [vmem:[%s13677_s0] ss:$36 sps:$4 sm:$0xff]   ;;  %v9552_v5 = vld [vmem:[%s13674_s1 + $0x208] ss:$16 sps:$4 sm:$0xff]  }
  0x18   :  { %3558 = vmatprep.subr.bf16.mxu0 %v9486_v24  ;;  %5323 = vmatprep.subr.bf16.mxu1 %v9488_v25  ;;  %v9549_v4 = vld [vmem:[%s13674_s1 + $0x200] ss:$16 sps:$4 sm:$0xff]   ;;  %v9563_v7 = vld [vmem:[%s13674_s1 + $0x224] ss:$16 sps:$4 sm:$0xff]   ;;  %v9566_v8 = vld [vmem:[%s13674_s1 + $0x22c] ss:$16 sps:$4 sm:$0xff]  }
  0x19   :  { %v9555_v6 = vld [vmem:[%s13677_s0 + $0x4c] ss:$36 sps:$4 sm:$0xff]   ;;  %v9564_v10 = vld [vmem:[%s13674_s1 + $0x228] ss:$16 sps:$4 sm:$0xff]   ;;  %v9575_v11 = vld [vmem:[%s13674_s1 + $0x244] ss:$16 sps:$4 sm:$0xff]  }
  0x1a   :  { %v9561_v9 = vld [vmem:[%s13674_s1 + $0x220] ss:$16 sps:$4 sm:$0xff]   ;;  %v9578_v12 = vld [vmem:[%s13674_s1 + $0x24c] ss:$16 sps:$4 sm:$0xff]   ;;  %v9558_v14 = vld [vmem:[%s13677_s0 + $0x94] ss:$36 sps:$4 sm:$0xff]  }
  0x1b   :  { %3559 = vmatpush1.bf16.msra.mxu0 %v9490_v26  ;;  %5324 = vmatpush1.bf16.msra.mxu1 %v9491_v27  ;;  %v9557_v13 = vld [vmem:[%s13677_s0 + $0x48] ss:$36 sps:$4 sm:$0xff]   ;;  %v9573_v15 = vld [vmem:[%s13674_s1 + $0x240] ss:$16 sps:$4 sm:$0xff]   ;;  %v9587_v17 = vld [vmem:[%s13674_s1 + $0x264] ss:$16 sps:$4 sm:$0xff]  }
  0x1c   :  { %3560 = vmatprep.subr.bf16.mxu0 %v9492_v28  ;;  %5325 = vmatprep.subr.bf16.mxu1 %v9494_v29  ;;  %v9576_v16 = vld [vmem:[%s13674_s1 + $0x248] ss:$16 sps:$4 sm:$0xff]   ;;  %v9590_v18 = vld [vmem:[%s13674_s1 + $0x26c] ss:$16 sps:$4 sm:$0xff]   ;;  %v9585_v19 = vld [vmem:[%s13674_s1 + $0x260] ss:$16 sps:$4 sm:$0xff]  }
  0x1d   :  { %v9588_v20 = vld [vmem:[%s13674_s1 + $0x268] ss:$16 sps:$4 sm:$0xff]   ;;  %v9599_v21 = vld [vmem:[%s13674_s1 + $0x284] ss:$16 sps:$4 sm:$0xff]   ;;  %v9602_v22 = vld [vmem:[%s13674_s1 + $0x28c] ss:$16 sps:$4 sm:$0xff]  }
  0x1e   :  { %v9560_v23 = vld [vmem:[%s13677_s0 + $0x90] ss:$36 sps:$4 sm:$0xff]   ;;  %v9567_v24 = vld [vmem:[%s13677_s0 + $0xdc] ss:$36 sps:$4 sm:$0xff]   ;;  %v9600_v26 = vld [vmem:[%s13674_s1 + $0x288] ss:$16 sps:$4 sm:$0xff]  }
  0x1f   :  { %3561 = vmatpush1.bf16.msra.mxu0 %v9496_v30  ;;  %5326 = vmatpush1.bf16.msra.mxu1 %v9497_v31  ;;  %v9597_v25 = vld [vmem:[%s13674_s1 + $0x280] ss:$16 sps:$4 sm:$0xff]   ;;  %v9611_v27 = vld [vmem:[%s13674_s1 + $0x2a4] ss:$16 sps:$4 sm:$0xff]   ;;  %v9614_v28 = vld [vmem:[%s13674_s1 + $0x2ac] ss:$16 sps:$4 sm:$0xff]  }
  0x20   :  { %3562 = vmatprep.subr.bf16.mxu0 %v9498_v32  ;;  %5327 = vmatprep.subr.bf16.mxu1 %v9500_v33  ;;  %v9609_v29 = vld [vmem:[%s13674_s1 + $0x2a0] ss:$16 sps:$4 sm:$0xff]   ;;  %v9612_v30 = vld [vmem:[%s13674_s1 + $0x2a8] ss:$16 sps:$4 sm:$0xff]   ;;  %v9623_v31 = vld [vmem:[%s13674_s1 + $0x2c4] ss:$16 sps:$4 sm:$0xff]  }
  0x21   :  { %v9626_v32 = vld [vmem:[%s13674_s1 + $0x2cc] ss:$16 sps:$4 sm:$0xff]  }
  0x22   :  { %v9569_v33 = vld [vmem:[%s13677_s0 + $0xd8] ss:$36 sps:$4 sm:$0xff]  }
  0x23   :  { %3563 = vmatpush1.bf16.msra.mxu0 %v9502_v34  ;;  %5328 = vmatpush1.bf16.msra.mxu1 %v9503_v35  ;;  %v9570_v34 = vld [vmem:[%s13677_s0 + $0x124] ss:$36 sps:$4 sm:$0xff]   ;;  %v9621_v35 = vld [vmem:[%s13674_s1 + $0x2c0] ss:$16 sps:$4 sm:$0xff]   ;;  %v9662_v48 = vld [vmem:[%s13674_s1 + $0x32c] ss:$16 sps:$4 sm:$0xff]  }
  0x24   :  { %3564 = vmatprep.subr.bf16.mxu0 %v9504_v36  ;;  %5329 = vmatprep.subr.bf16.mxu1 %v9506_v37  ;;  %v9624_v36 = vld [vmem:[%s13674_s1 + $0x2c8] ss:$16 sps:$4 sm:$0xff]   ;;  %v9635_v37 = vld [vmem:[%s13674_s1 + $0x2e4] ss:$16 sps:$4 sm:$0xff]  }
  0x27   :  { %3565 = vmatpush1.bf16.msra.mxu0 %v9508_v38  ;;  %5330 = vmatpush1.bf16.msra.mxu1 %v9509_v39  ;;  %v9638_v38 = vld [vmem:[%s13674_s1 + $0x2ec] ss:$16 sps:$4 sm:$0xff]   ;;  %v9633_v39 = vld [vmem:[%s13674_s1 + $0x2e0] ss:$16 sps:$4 sm:$0xff]  }
  0x28   :  { %3566 = vmatprep.subr.bf16.mxu0 %v9510_v40  ;;  %5331 = vmatprep.subr.bf16.mxu1 %v9512_v41  ;;  %v9572_v40 = vld [vmem:[%s13677_s0 + $0x120] ss:$36 sps:$4 sm:$0xff]   ;;  %v9636_v41 = vld [vmem:[%s13674_s1 + $0x2e8] ss:$16 sps:$4 sm:$0xff]  }
  0x2b   :  { %3567 = vmatpush1.bf16.msra.mxu0 %v9514_v42  ;;  %5332 = vmatpush1.bf16.msra.mxu1 %v9515_v43  ;;  %v9579_v42 = vld [vmem:[%s13677_s0 + $0x16c] ss:$36 sps:$4 sm:$0xff]   ;;  %v9647_v43 = vld [vmem:[%s13674_s1 + $0x304] ss:$16 sps:$4 sm:$0xff]  }
  0x2c   :  { %3568 = vmatprep.subr.bf16.mxu0 %v9516_v44  ;;  %5333 = vmatprep.subr.bf16.mxu1 %v9518_v45  ;;  %v9650_v44 = vld [vmem:[%s13674_s1 + $0x30c] ss:$16 sps:$4 sm:$0xff]   ;;  %v9645_v45 = vld [vmem:[%s13674_s1 + $0x300] ss:$16 sps:$4 sm:$0xff]  }
  0x2f   :  { %3569 = vmatpush1.bf16.msra.mxu0 %v9520_v46  ;;  %5334 = vmatpush1.bf16.msra.mxu1 %v9521_v47  ;;  %v9648_v46 = vld [vmem:[%s13674_s1 + $0x308] ss:$16 sps:$4 sm:$0xff]   ;;  %v9659_v47 = vld [vmem:[%s13674_s1 + $0x324] ss:$16 sps:$4 sm:$0xff]  }
  0x30   :  { %3570 = vmatprep.subr.bf16.mxu0 %v9522_v49  ;;  %5335 = vmatprep.subr.bf16.mxu1 %v9524_v50  ;;  %v9657_v49 = vld [vmem:[%s13674_s1 + $0x320] ss:$16 sps:$4 sm:$0xff]   ;;  %v9660_v50 = vld [vmem:[%s13674_s1 + $0x328] ss:$16 sps:$4 sm:$0xff]  }
  0x33   :  { %3571 = vmatpush1.bf16.msra.mxu0 %v9526_v51  ;;  %5336 = vmatpush1.bf16.msra.mxu1 %v9527_v52  ;;  %v9671_v51 = vld [vmem:[%s13674_s1 + $0x344] ss:$16 sps:$4 sm:$0xff]   ;;  %v9581_v52 = vld [vmem:[%s13677_s0 + $0x168] ss:$36 sps:$4 sm:$0xff]  }
  0x34   :  { %3572 = vmatprep.subr.bf16.mxu0 %v9528_v53  ;;  %5337 = vmatprep.subr.bf16.mxu1 %v9530_v54  ;;  %v9674_v53 = vld [vmem:[%s13674_s1 + $0x34c] ss:$16 sps:$4 sm:$0xff]   ;;  %v9582_v54 = vld [vmem:[%s13677_s0 + $0x1b4] ss:$36 sps:$4 sm:$0xff]  }
  0x37   :  { %3573 = vmatpush1.bf16.msra.mxu0 %v9532_v55  ;;  %5338 = vmatpush1.bf16.msra.mxu1 %v9533_v56  ;;  %v9669_v55 = vld [vmem:[%s13674_s1 + $0x340] ss:$16 sps:$4 sm:$0xff]   ;;  %v9672_v56 = vld [vmem:[%s13674_s1 + $0x348] ss:$16 sps:$4 sm:$0xff]  }
  0x38   :  { %3574 = vmatprep.subr.bf16.mxu0 %v9534_v57  ;;  %5339 = vmatprep.subr.bf16.mxu1 %v9536_v58  ;;  %v9584_v57 = vld [vmem:[%s13677_s0 + $0x1b0] ss:$36 sps:$4 sm:$0xff]   ;;  %v9591_v58 = vld [vmem:[%s13677_s0 + $0x1fc] ss:$36 sps:$4 sm:$0xff]  }
  0x3b   :  { %3575 = vmatpush1.bf16.msra.mxu0 %v9538_v59  ;;  %5340 = vmatpush1.bf16.msra.mxu1 %v9539_v60  ;;  %v9681_v59 = vld [vmem:[%s13674_s1 + $0x360] ss:$16 sps:$4 sm:$0xff]   ;;  %v9683_v60 = vld [vmem:[%s13674_s1 + $0x364] ss:$16 sps:$4 sm:$0xff]  }
  0x3c   :  { %3576 = vmatprep.subr.bf16.mxu0 %v9540_v61  ;;  %5341 = vmatprep.subr.bf16.mxu1 %v9542_v62  ;;  %v9684_v61 = vld [vmem:[%s13674_s1 + $0x368] ss:$16 sps:$4 sm:$0xff]   ;;  %v9686_v62 = vld [vmem:[%s13674_s1 + $0x36c] ss:$16 sps:$4 sm:$0xff]  }
  0x3f   :  { %3577 = vmatpush1.bf16.msra.mxu0 %v9544_v63  ;;  %5342 = vmatpush1.bf16.msra.mxu1 %v9545_v0  ;;  %v9593_v63 = vld [vmem:[%s13677_s0 + $0x1f8] ss:$36 sps:$4 sm:$0xff]   ;;  %v9594_v0 = vld [vmem:[%s13677_s0 + $0x244] ss:$36 sps:$4 sm:$0xff]  }
  0x40   :  { %3899 = vmatprep.subr.bf16.mxu0 %v9551_v1  ;;  %5664 = vmatprep.subr.bf16.mxu1 %v9554_v2  ;;  %v9596_v1 = vld [vmem:[%s13677_s0 + $0x240] ss:$36 sps:$4 sm:$0xff]   ;;  %v9603_v2 = vld [vmem:[%s13677_s0 + $0x28c] ss:$36 sps:$4 sm:$0xff]  }
  0x42   :  { %3579 = vmatmul.mubr.bf16.vlgmr.msra.gmra.mrb[0].mxu0 %v9546_v3  ;;  %5344 = vmatmul.mubr.bf16.vlgmr.msra.gmra.mrb[0].mxu1 %v9546_v3  ;;  %v9693_v3 = vld [vmem:[%s13674_s1 + $0x380] ss:$16 sps:$4 sm:$0xff]  }
  0x43   :  { %3900 = vmatpush1.bf16.msra.mxu0 %v9549_v4  ;;  %5665 = vmatpush1.bf16.msra.mxu1 %v9552_v5  ;;  %v9695_v4 = vld [vmem:[%s13674_s1 + $0x384] ss:$16 sps:$4 sm:$0xff]   ;;  %v9696_v5 = vld [vmem:[%s13674_s1 + $0x388] ss:$16 sps:$4 sm:$0xff]  }
  0x44   :  { %3588 = vmatprep.mubr.bf16.mxu0 %v9555_v6  ;;  %5353 = vmatprep.mubr.bf16.mxu1 %v9555_v6  ;;  %v9698_v6 = vld [vmem:[%s13674_s1 + $0x38c] ss:$16 sps:$4 sm:$0xff]  }
  0x45   :  { %3901 = vmatprep.subr.bf16.mxu0 %v9563_v7  ;;  %5666 = vmatprep.subr.bf16.mxu1 %v9566_v8  ;;  %v9605_v7 = vld [vmem:[%s13677_s0 + $0x288] ss:$36 sps:$4 sm:$0xff]   ;;  %v9606_v8 = vld [vmem:[%s13677_s0 + $0x2d4] ss:$36 sps:$4 sm:$0xff]  }
  0x47   :  { %3902 = vmatpush1.bf16.msra.mxu0 %v9561_v9  ;;  %5667 = vmatpush1.bf16.msra.mxu1 %v9564_v10  ;;  %v9608_v9 = vld [vmem:[%s13677_s0 + $0x2d0] ss:$36 sps:$4 sm:$0xff]   ;;  %v9615_v10 = vld [vmem:[%s13677_s0 + $0x31c] ss:$36 sps:$4 sm:$0xff]  }
  0x48   :  { %3903 = vmatprep.subr.bf16.mxu0 %v9575_v11  ;;  %5668 = vmatprep.subr.bf16.mxu1 %v9578_v12  ;;  %v9705_v11 = vld [vmem:[%s13674_s1 + $0x3a0] ss:$16 sps:$4 sm:$0xff]   ;;  %v9707_v12 = vld [vmem:[%s13674_s1 + $0x3a4] ss:$16 sps:$4 sm:$0xff]  }
  0x4a   :  { %3589 = vmatmul.mubr.bf16.gmra.mrb[4].mxu0 %v9557_v13  ;;  %5354 = vmatmul.mubr.bf16.gmra.mrb[4].mxu1 %v9557_v13  ;;  %v9708_v13 = vld [vmem:[%s13674_s1 + $0x3a8] ss:$16 sps:$4 sm:$0xff]  }
  0x4b   :  { %3598 = vmatprep.mubr.bf16.mxu0 %v9558_v14  ;;  %5363 = vmatprep.mubr.bf16.mxu1 %v9558_v14  ;;  %v9710_v14 = vld [vmem:[%s13674_s1 + $0x3ac] ss:$16 sps:$4 sm:$0xff]  }
  0x4c   :  { %3904 = vmatpush1.bf16.msra.mxu0 %v9573_v15  ;;  %5669 = vmatpush1.bf16.msra.mxu1 %v9576_v16  ;;  %v9617_v15 = vld [vmem:[%s13677_s0 + $0x318] ss:$36 sps:$4 sm:$0xff]   ;;  %v9618_v16 = vld [vmem:[%s13677_s0 + $0x364] ss:$36 sps:$4 sm:$0xff]  }
  0x4d   :  { %3905 = vmatprep.subr.bf16.mxu0 %v9587_v17  ;;  %5670 = vmatprep.subr.bf16.mxu1 %v9590_v18  ;;  %v9620_v17 = vld [vmem:[%s13677_s0 + $0x360] ss:$36 sps:$4 sm:$0xff]   ;;  %v9627_v18 = vld [vmem:[%s13677_s0 + $0x3ac] ss:$36 sps:$4 sm:$0xff]  }
  0x50   :  { %3906 = vmatpush1.bf16.msra.mxu0 %v9585_v19  ;;  %5671 = vmatpush1.bf16.msra.mxu1 %v9588_v20  ;;  %v9717_v19 = vld [vmem:[%s13674_s1 + $0x3c0] ss:$16 sps:$4 sm:$0xff]   ;;  %v9719_v20 = vld [vmem:[%s13674_s1 + $0x3c4] ss:$16 sps:$4 sm:$0xff]  }
  0x51   :  { %3907 = vmatprep.subr.bf16.mxu0 %v9599_v21  ;;  %5672 = vmatprep.subr.bf16.mxu1 %v9602_v22  ;;  %v9720_v21 = vld [vmem:[%s13674_s1 + $0x3c8] ss:$16 sps:$4 sm:$0xff]   ;;  %v9722_v22 = vld [vmem:[%s13674_s1 + $0x3cc] ss:$16 sps:$4 sm:$0xff]  }
  0x52   :  { %3599 = vmatmul.mubr.bf16.gmra.mrb[8].mxu0 %v9560_v23  ;;  %5364 = vmatmul.mubr.bf16.gmra.mrb[8].mxu1 %v9560_v23  ;;  %v9629_v23 = vld [vmem:[%s13677_s0 + $0x3a8] ss:$36 sps:$4 sm:$0xff]  }
  0x53   :  { %3608 = vmatprep.mubr.bf16.mxu0 %v9567_v24  ;;  %5373 = vmatprep.mubr.bf16.mxu1 %v9567_v24  ;;  %v9630_v24 = vld [vmem:[%s13677_s0 + $0x3f4] ss:$36 sps:$4 sm:$0xff]  }
  0x54   :  { %3908 = vmatpush1.bf16.msra.mxu0 %v9597_v25  ;;  %5673 = vmatpush1.bf16.msra.mxu1 %v9600_v26  ;;  %v9632_v25 = vld [vmem:[%s13677_s0 + $0x3f0] ss:$36 sps:$4 sm:$0xff]   ;;  %v9639_v26 = vld [vmem:[%s13677_s0 + $0x43c] ss:$36 sps:$4 sm:$0xff]  }
  0x55   :  { %3909 = vmatprep.subr.bf16.mxu0 %v9611_v27  ;;  %5674 = vmatprep.subr.bf16.mxu1 %v9614_v28  ;;  %v9729_v27 = vld [vmem:[%s13674_s1 + $0x3e0] ss:$16 sps:$4 sm:$0xff]   ;;  %v9731_v28 = vld [vmem:[%s13674_s1 + $0x3e4] ss:$16 sps:$4 sm:$0xff]  }
  0x58   :  { %3910 = vmatpush1.bf16.msra.mxu0 %v9609_v29  ;;  %5675 = vmatpush1.bf16.msra.mxu1 %v9612_v30  ;;  %v9732_v29 = vld [vmem:[%s13674_s1 + $0x3e8] ss:$16 sps:$4 sm:$0xff]   ;;  %v9734_v30 = vld [vmem:[%s13674_s1 + $0x3ec] ss:$16 sps:$4 sm:$0xff]  }
  0x59   :  { %3911 = vmatprep.subr.bf16.mxu0 %v9623_v31  ;;  %5676 = vmatprep.subr.bf16.mxu1 %v9626_v32  ;;  %v9641_v31 = vld [vmem:[%s13677_s0 + $0x438] ss:$36 sps:$4 sm:$0xff]   ;;  %v9642_v32 = vld [vmem:[%s13677_s0 + $0x484] ss:$36 sps:$4 sm:$0xff]  }
  0x5a   :  { %3609 = vmatmul.mubr.bf16.gmra.mrb[12].mxu0 %v9569_v33  ;;  %5374 = vmatmul.mubr.bf16.gmra.mrb[12].mxu1 %v9569_v33  ;;  %v9644_v33 = vld [vmem:[%s13677_s0 + $0x480] ss:$36 sps:$4 sm:$0xff]  }
  0x5b   :  { %3618 = vmatprep.mubr.bf16.mxu0 %v9570_v34  ;;  %5383 = vmatprep.mubr.bf16.mxu1 %v9570_v34  ;;  %v9651_v34 = vld [vmem:[%s13677_s0 + $0x4cc] ss:$36 sps:$4 sm:$0xff]  }
  0x5c   :  { %3912 = vmatpush1.bf16.msra.mxu0 %v9621_v35  ;;  %5677 = vmatpush1.bf16.msra.mxu1 %v9624_v36  ;;  %v9743_v35 = vld [vmem:[%s13674_s1 + $0x404] ss:$16 sps:$4 sm:$0xff]   ;;  %v9746_v36 = vld [vmem:[%s13674_s1 + $0x40c] ss:$16 sps:$4 sm:$0xff]  }
  0x5d   :  { %3913 = vmatprep.subr.bf16.mxu0 %v9635_v37  ;;  %5678 = vmatprep.subr.bf16.mxu1 %v9638_v38  ;;  %v9653_v37 = vld [vmem:[%s13677_s0 + $0x4c8] ss:$36 sps:$4 sm:$0xff]   ;;  %v9654_v38 = vld [vmem:[%s13677_s0 + $0x514] ss:$36 sps:$4 sm:$0xff]  }
  0x60   :  { %3914 = vmatpush1.bf16.msra.mxu0 %v9633_v39  ;;  %5679 = vmatpush1.bf16.msra.mxu1 %v9636_v41  ;;  %v9656_v39 = vld [vmem:[%s13677_s0 + $0x510] ss:$36 sps:$4 sm:$0xff]   ;;  %v9665_v41 = vld [vmem:[%s13677_s0 + $0x558] ss:$36 sps:$4 sm:$0xff]  }
  0x61   :  { %3915 = vmatprep.subr.bf16.mxu0 %v9647_v43  ;;  %5680 = vmatprep.subr.bf16.mxu1 %v9650_v44  ;;  %v9668_v43 = vld [vmem:[%s13677_s0 + $0x5a0] ss:$36 sps:$4 sm:$0xff]   ;;  %v9675_v44 = vld [vmem:[%s13677_s0 + $0x5ec] ss:$36 sps:$4 sm:$0xff]  }
  0x62   :  { %3619 = vmatmul.mubr.bf16.gmra.mrb[16].mxu0 %v9572_v40  ;;  %5384 = vmatmul.mubr.bf16.gmra.mrb[16].mxu1 %v9572_v40  ;;  %v9663_v40 = vld [vmem:[%s13677_s0 + $0x55c] ss:$36 sps:$4 sm:$0xff]  }
  0x63   :  { %3628 = vmatprep.mubr.bf16.mxu0 %v9579_v42  ;;  %5393 = vmatprep.mubr.bf16.mxu1 %v9579_v42  ;;  %v9666_v42 = vld [vmem:[%s13677_s0 + $0x5a4] ss:$36 sps:$4 sm:$0xff]  }
  0x64   :  { %3916 = vmatpush1.bf16.msra.mxu0 %v9645_v45  ;;  %5681 = vmatpush1.bf16.msra.mxu1 %v9648_v46  ;;  %v9677_v45 = vld [vmem:[%s13677_s0 + $0x5e8] ss:$36 sps:$4 sm:$0xff]   ;;  %v9678_v46 = vld [vmem:[%s13677_s0 + $0x634] ss:$36 sps:$4 sm:$0xff]  }
  0x65   :  { %3917 = vmatprep.subr.bf16.mxu0 %v9659_v47  ;;  %5682 = vmatprep.subr.bf16.mxu1 %v9662_v48  ;;  %v9680_v47 = vld [vmem:[%s13677_s0 + $0x630] ss:$36 sps:$4 sm:$0xff]   ;;  %v9687_v48 = vld [vmem:[%s13677_s0 + $0x67c] ss:$36 sps:$4 sm:$0xff]  }
  0x68   :  { %3918 = vmatpush1.bf16.msra.mxu0 %v9657_v49  ;;  %5683 = vmatpush1.bf16.msra.mxu1 %v9660_v50  ;;  %v9689_v49 = vld [vmem:[%s13677_s0 + $0x678] ss:$36 sps:$4 sm:$0xff]   ;;  %v9690_v50 = vld [vmem:[%s13677_s0 + $0x6c4] ss:$36 sps:$4 sm:$0xff]  }
  0x69   :  { %3919 = vmatprep.subr.bf16.mxu0 %v9671_v51  ;;  %5684 = vmatprep.subr.bf16.mxu1 %v9674_v53  ;;  %v9692_v51 = vld [vmem:[%s13677_s0 + $0x6c0] ss:$36 sps:$4 sm:$0xff]   ;;  %v9701_v53 = vld [vmem:[%s13677_s0 + $0x708] ss:$36 sps:$4 sm:$0xff]  }
  0x6a   :  { %3629 = vmatmul.mubr.bf16.gmra.mrb[20].mxu0 %v9581_v52  ;;  %5394 = vmatmul.mubr.bf16.gmra.mrb[20].mxu1 %v9581_v52  ;;  %v9699_v52 = vld [vmem:[%s13677_s0 + $0x70c] ss:$36 sps:$4 sm:$0xff]  }
  0x6b   :  { %3638 = vmatprep.mubr.bf16.mxu0 %v9582_v54  ;;  %5403 = vmatprep.mubr.bf16.mxu1 %v9582_v54  ;;  %v9702_v54 = vld [vmem:[%s13677_s0 + $0x754] ss:$36 sps:$4 sm:$0xff]  }
  0x6c   :  { %3920 = vmatpush1.bf16.msra.mxu0 %v9669_v55  ;;  %5685 = vmatpush1.bf16.msra.mxu1 %v9672_v56  ;;  %v9704_v55 = vld [vmem:[%s13677_s0 + $0x750] ss:$36 sps:$4 sm:$0xff]   ;;  %v9711_v56 = vld [vmem:[%s13677_s0 + $0x79c] ss:$36 sps:$4 sm:$0xff]  }
  0x6d   :  { %3921 = vmatprep.subr.bf16.mxu0 %v9683_v60  ;;  %5686 = vmatprep.subr.bf16.mxu1 %v9686_v62  ;;  %v9723_v60 = vld [vmem:[%s13677_s0 + $0x82c] ss:$36 sps:$4 sm:$0xff]   ;;  %v9726_v62 = vld [vmem:[%s13677_s0 + $0x874] ss:$36 sps:$4 sm:$0xff]  }
  0x70   :  { %3922 = vmatpush1.bf16.msra.mxu0 %v9681_v59  ;;  %5687 = vmatpush1.bf16.msra.mxu1 %v9684_v61  ;;  %v9716_v59 = vld [vmem:[%s13677_s0 + $0x7e0] ss:$36 sps:$4 sm:$0xff]   ;;  %v9725_v61 = vld [vmem:[%s13677_s0 + $0x828] ss:$36 sps:$4 sm:$0xff]  }
  0x71   :  { %3923 = vmatprep.subr.bf16.mxu0 %v9695_v4  ;;  %5688 = vmatprep.subr.bf16.mxu1 %v9698_v6  ;;  %v9741_v4 = vld [vmem:[%s13674_s1 + $0x400] ss:$16 sps:$4 sm:$0xff]   ;;  %v9747_v6 = vld [vmem:[%s13677_s0 + $0x54] ss:$36 sps:$4 sm:$0xff]  }
  0x72   :  { %3639 = vmatmul.mubr.bf16.gmra.mrb[24].mxu0 %v9584_v57  ;;  %5404 = vmatmul.mubr.bf16.gmra.mrb[24].mxu1 %v9584_v57  ;;  %v9713_v57 = vld [vmem:[%s13677_s0 + $0x798] ss:$36 sps:$4 sm:$0xff]  }
  0x73   :  { %3648 = vmatprep.mubr.bf16.mxu0 %v9591_v58  ;;  %5413 = vmatprep.mubr.bf16.mxu1 %v9591_v58  ;;  %v9714_v58 = vld [vmem:[%s13677_s0 + $0x7e4] ss:$36 sps:$4 sm:$0xff]  }
  0x74   :  { %3924 = vmatpush1.bf16.msra.mxu0 %v9693_v3  ;;  %5689 = vmatpush1.bf16.msra.mxu1 %v9696_v5  ;;  %v9738_v3 = vld [vmem:[%s13677_s0 + $0x8] ss:$36 sps:$4 sm:$0xff]  }
  0x75   :  { %3925 = vmatprep.subr.bf16.mxu0 %v9707_v12  ;;  %5690 = vmatprep.subr.bf16.mxu1 %v9710_v14  ;;  %v9744_v5 = vld [vmem:[%s13674_s1 + $0x408] ss:$16 sps:$4 sm:$0xff]   ;;  %v9770_v12 = vld [vmem:[%s13674_s1 + $0x44c] ss:$16 sps:$4 sm:$0xff]  }
  0x76   :  { %v9750_v14 = vld [vmem:[%s13677_s0 + $0x9c] ss:$36 sps:$4 sm:$0xff]  }
  0x78   :  { %3926 = vmatpush1.bf16.msra.mxu0 %v9705_v11  ;;  %5691 = vmatpush1.bf16.msra.mxu1 %v9708_v13  ;;  %v9767_v11 = vld [vmem:[%s13674_s1 + $0x444] ss:$16 sps:$4 sm:$0xff]  }
  0x79   :  { %3927 = vmatprep.subr.bf16.mxu0 %v9719_v20  ;;  %5692 = vmatprep.subr.bf16.mxu1 %v9722_v22  ;;  %v9749_v13 = vld [vmem:[%s13677_s0 + $0x50] ss:$36 sps:$4 sm:$0xff]   ;;  %v9780_v20 = vld [vmem:[%s13674_s1 + $0x468] ss:$16 sps:$4 sm:$0xff]   ;;  %v9794_v22 = vld [vmem:[%s13674_s1 + $0x48c] ss:$16 sps:$4 sm:$0xff]  }
  0x7a   :  { %3649 = vmatmul.mubr.bf16.gmra.mrb[28].mxu0 %v9593_v63  ;;  %5414 = vmatmul.mubr.bf16.gmra.mrb[28].mxu1 %v9593_v63  ;;  %v9728_v63 = vld [vmem:[%s13677_s0 + $0x870] ss:$36 sps:$4 sm:$0xff]  }
  0x7b   :  { %3658 = vmatprep.mubr.bf16.mxu0 %v9594_v0  ;;  %5423 = vmatprep.mubr.bf16.mxu1 %v9594_v0  ;;  %v9735_v0 = vld [vmem:[%s13677_s0 + $0x8bc] ss:$36 sps:$4 sm:$0xff]  }
  0x7c   :  { %3928 = vmatpush1.bf16.msra.mxu0 %v9717_v19  ;;  %5693 = vmatpush1.bf16.msra.mxu1 %v9720_v21  ;;  %v9777_v19 = vld [vmem:[%s13674_s1 + $0x460] ss:$16 sps:$4 sm:$0xff]   ;;  %v9791_v21 = vld [vmem:[%s13674_s1 + $0x484] ss:$16 sps:$4 sm:$0xff]  }
  0x7d   :  { %3929 = vmatprep.subr.bf16.mxu0 %v9731_v28  ;;  %5694 = vmatprep.subr.bf16.mxu1 %v9734_v30  ;;  %v9806_v28 = vld [vmem:[%s13674_s1 + $0x4ac] ss:$16 sps:$4 sm:$0xff]   ;;  %v9804_v30 = vld [vmem:[%s13674_s1 + $0x4a8] ss:$16 sps:$4 sm:$0xff]  }
  0x80   :  { %3930 = vmatpush1.bf16.msra.mxu0 %v9729_v27  ;;  %5695 = vmatpush1.bf16.msra.mxu1 %v9732_v29  ;;  %v9803_v27 = vld [vmem:[%s13674_s1 + $0x4a4] ss:$16 sps:$4 sm:$0xff]   ;;  %v9801_v29 = vld [vmem:[%s13674_s1 + $0x4a0] ss:$16 sps:$4 sm:$0xff]  }
  0x81   :  { %4252 = vmatprep.subr.bf16.mxu0 %v9743_v35  ;;  %6017 = vmatprep.subr.bf16.mxu1 %v9746_v36  ;;  %v9813_v35 = vld [vmem:[%s13674_s1 + $0x4c0] ss:$16 sps:$4 sm:$0xff]   ;;  %v9816_v36 = vld [vmem:[%s13674_s1 + $0x4c8] ss:$16 sps:$4 sm:$0xff]  }
  0x82   :  { %3659 = vmatmul.mubr.bf16.gmra.mrb[32].mxu0 %v9596_v1  ;;  %5424 = vmatmul.mubr.bf16.gmra.mrb[32].mxu1 %v9596_v1  ;;  %v9737_v1 = vld [vmem:[%s13677_s0 + $0x8b8] ss:$36 sps:$4 sm:$0xff]  }
  0x83   :  { %3668 = vmatprep.mubr.bf16.mxu0 %v9603_v2  ;;  %5433 = vmatprep.mubr.bf16.mxu1 %v9603_v2  ;;  %v9740_v2 = vld [vmem:[%s13677_s0 + $0xc] ss:$36 sps:$4 sm:$0xff]  }
  0x8a   :  { %3669 = vmatmul.mubr.bf16.gmra.mrb[36].mxu0 %v9605_v7  ;;  %5434 = vmatmul.mubr.bf16.gmra.mrb[36].mxu1 %v9605_v7  ;;  %v9755_v7 = vld [vmem:[%s13674_s1 + $0x424] ss:$16 sps:$4 sm:$0xff]  }
  0x8b   :  { %3678 = vmatprep.mubr.bf16.mxu0 %v9606_v8  ;;  %5443 = vmatprep.mubr.bf16.mxu1 %v9606_v8  ;;  %v9758_v8 = vld [vmem:[%s13674_s1 + $0x42c] ss:$16 sps:$4 sm:$0xff]  }
  0x92   :  { %3679 = vmatmul.mubr.bf16.gmra.mrb[40].mxu0 %v9608_v9  ;;  %5444 = vmatmul.mubr.bf16.gmra.mrb[40].mxu1 %v9608_v9  ;;  %v9753_v9 = vld [vmem:[%s13674_s1 + $0x420] ss:$16 sps:$4 sm:$0xff]  }
  0x93   :  { %3688 = vmatprep.mubr.bf16.mxu0 %v9615_v10  ;;  %5453 = vmatprep.mubr.bf16.mxu1 %v9615_v10  ;;  %v9756_v10 = vld [vmem:[%s13674_s1 + $0x428] ss:$16 sps:$4 sm:$0xff]  }
  0x9a   :  { %3689 = vmatmul.mubr.bf16.gmra.mrb[44].mxu0 %v9617_v15  ;;  %5454 = vmatmul.mubr.bf16.gmra.mrb[44].mxu1 %v9617_v15  ;;  %v9765_v15 = vld [vmem:[%s13674_s1 + $0x440] ss:$16 sps:$4 sm:$0xff]  }
  0x9b   :  { %3698 = vmatprep.mubr.bf16.mxu0 %v9618_v16  ;;  %5463 = vmatprep.mubr.bf16.mxu1 %v9618_v16  ;;  %v9768_v16 = vld [vmem:[%s13674_s1 + $0x448] ss:$16 sps:$4 sm:$0xff]  }
  0xa2   :  { %3699 = vmatmul.mubr.bf16.gmra.mrb[48].mxu0 %v9620_v17  ;;  %5464 = vmatmul.mubr.bf16.gmra.mrb[48].mxu1 %v9620_v17  ;;  %v9779_v17 = vld [vmem:[%s13674_s1 + $0x464] ss:$16 sps:$4 sm:$0xff]  }
  0xa3   :  { %3708 = vmatprep.mubr.bf16.mxu0 %v9627_v18  ;;  %5473 = vmatprep.mubr.bf16.mxu1 %v9627_v18  ;;  %v9782_v18 = vld [vmem:[%s13674_s1 + $0x46c] ss:$16 sps:$4 sm:$0xff]  }
  0xaa   :  { %3709 = vmatmul.mubr.bf16.gmra.mrb[52].mxu0 %v9629_v23  ;;  %5474 = vmatmul.mubr.bf16.gmra.mrb[52].mxu1 %v9629_v23  ;;  %v9752_v23 = vld [vmem:[%s13677_s0 + $0x98] ss:$36 sps:$4 sm:$0xff]  }
  0xab   :  { %3718 = vmatprep.mubr.bf16.mxu0 %v9630_v24  ;;  %5483 = vmatprep.mubr.bf16.mxu1 %v9630_v24  ;;  %v9759_v24 = vld [vmem:[%s13677_s0 + $0xe4] ss:$36 sps:$4 sm:$0xff]  }
  0xb2   :  { %3719 = vmatmul.mubr.bf16.gmra.mrb[56].mxu0 %v9632_v25  ;;  %5484 = vmatmul.mubr.bf16.gmra.mrb[56].mxu1 %v9632_v25  ;;  %v9789_v25 = vld [vmem:[%s13674_s1 + $0x480] ss:$16 sps:$4 sm:$0xff]  }
  0xb3   :  { %3728 = vmatprep.mubr.bf16.mxu0 %v9639_v26  ;;  %5493 = vmatprep.mubr.bf16.mxu1 %v9639_v26  ;;  %v9792_v26 = vld [vmem:[%s13674_s1 + $0x488] ss:$16 sps:$4 sm:$0xff]  }
  0xba   :  { %3729 = vmatmul.mubr.bf16.gmra.mrb[60].mxu0 %v9641_v31  ;;  %5494 = vmatmul.mubr.bf16.gmra.mrb[60].mxu1 %v9641_v31  ;;  %v9815_v31 = vld [vmem:[%s13674_s1 + $0x4c4] ss:$16 sps:$4 sm:$0xff]  }
  0xbb   :  { %3738 = vmatprep.mubr.bf16.mxu0 %v9642_v32  ;;  %5503 = vmatprep.mubr.bf16.mxu1 %v9642_v32  ;;  %v9818_v32 = vld [vmem:[%s13674_s1 + $0x4cc] ss:$16 sps:$4 sm:$0xff]  }
  0xc2   :  { %3739 = vmatmul.mubr.bf16.gmra.mrb[64].mxu0 %v9644_v33  ;;  %5504 = vmatmul.mubr.bf16.gmra.mrb[64].mxu1 %v9644_v33  ;;  %v9761_v33 = vld [vmem:[%s13677_s0 + $0xe0] ss:$36 sps:$4 sm:$0xff]  }
  0xc3   :  { %3748 = vmatprep.mubr.bf16.mxu0 %v9651_v34  ;;  %5513 = vmatprep.mubr.bf16.mxu1 %v9651_v34  ;;  %v9762_v34 = vld [vmem:[%s13677_s0 + $0x12c] ss:$36 sps:$4 sm:$0xff]  }
  0xca   :  { %3749 = vmatmul.mubr.bf16.gmra.mrb[68].mxu0 %v9653_v37  ;;  %5514 = vmatmul.mubr.bf16.gmra.mrb[68].mxu1 %v9653_v37  ;;  %v9827_v37 = vld [vmem:[%s13674_s1 + $0x4e4] ss:$16 sps:$4 sm:$0xff]  }
  0xcb   :  { %3758 = vmatprep.mubr.bf16.mxu0 %v9654_v38  ;;  %5523 = vmatprep.mubr.bf16.mxu1 %v9654_v38  ;;  %v9830_v38 = vld [vmem:[%s13674_s1 + $0x4ec] ss:$16 sps:$4 sm:$0xff]  }
  0xd2   :  { %3759 = vmatmul.mubr.bf16.gmra.mrb[72].mxu0 %v9656_v39  ;;  %5524 = vmatmul.mubr.bf16.gmra.mrb[72].mxu1 %v9656_v39  ;;  %v9825_v39 = vld [vmem:[%s13674_s1 + $0x4e0] ss:$16 sps:$4 sm:$0xff]  }
  0xd3   :  { %3768 = vmatprep.mubr.bf16.mxu0 %v9663_v40  ;;  %5533 = vmatprep.mubr.bf16.mxu1 %v9663_v40  ;;  %v9828_v40 = vld [vmem:[%s13674_s1 + $0x4e8] ss:$16 sps:$4 sm:$0xff]  }
  0xda   :  { %3769 = vmatmul.mubr.bf16.gmra.mrb[76].mxu0 %v9665_v41  ;;  %5534 = vmatmul.mubr.bf16.gmra.mrb[76].mxu1 %v9665_v41  ;;  %v9839_v41 = vld [vmem:[%s13674_s1 + $0x504] ss:$16 sps:$4 sm:$0xff]  }
  0xdb   :  { %3778 = vmatprep.mubr.bf16.mxu0 %v9666_v42  ;;  %5543 = vmatprep.mubr.bf16.mxu1 %v9666_v42  ;;  %v9842_v42 = vld [vmem:[%s13674_s1 + $0x50c] ss:$16 sps:$4 sm:$0xff]  }
  0xe2   :  { %3779 = vmatmul.mubr.bf16.gmra.mrb[80].mxu0 %v9668_v43  ;;  %5544 = vmatmul.mubr.bf16.gmra.mrb[80].mxu1 %v9668_v43  ;;  %v9764_v43 = vld [vmem:[%s13677_s0 + $0x128] ss:$36 sps:$4 sm:$0xff]  }
  0xe3   :  { %3788 = vmatprep.mubr.bf16.mxu0 %v9675_v44  ;;  %5553 = vmatprep.mubr.bf16.mxu1 %v9675_v44  ;;  %v9771_v44 = vld [vmem:[%s13677_s0 + $0x174] ss:$36 sps:$4 sm:$0xff]  }
  0xea   :  { %3789 = vmatmul.mubr.bf16.gmra.mrb[84].mxu0 %v9677_v45  ;;  %5554 = vmatmul.mubr.bf16.gmra.mrb[84].mxu1 %v9677_v45  ;;  %v9837_v45 = vld [vmem:[%s13674_s1 + $0x500] ss:$16 sps:$4 sm:$0xff]  }
  0xeb   :  { %3798 = vmatprep.mubr.bf16.mxu0 %v9678_v46  ;;  %5563 = vmatprep.mubr.bf16.mxu1 %v9678_v46  ;;  %v9840_v46 = vld [vmem:[%s13674_s1 + $0x508] ss:$16 sps:$4 sm:$0xff]  }
  0xf2   :  { %3799 = vmatmul.mubr.bf16.gmra.mrb[88].mxu0 %v9680_v47  ;;  %5564 = vmatmul.mubr.bf16.gmra.mrb[88].mxu1 %v9680_v47  ;;  %v9851_v47 = vld [vmem:[%s13674_s1 + $0x524] ss:$16 sps:$4 sm:$0xff]  }
  0xf3   :  { %3808 = vmatprep.mubr.bf16.mxu0 %v9687_v48  ;;  %5573 = vmatprep.mubr.bf16.mxu1 %v9687_v48  ;;  %v9854_v48 = vld [vmem:[%s13674_s1 + $0x52c] ss:$16 sps:$4 sm:$0xff]  }
  0xfa   :  { %3809 = vmatmul.mubr.bf16.gmra.mrb[92].mxu0 %v9689_v49  ;;  %5574 = vmatmul.mubr.bf16.gmra.mrb[92].mxu1 %v9689_v49  ;;  %v9849_v49 = vld [vmem:[%s13674_s1 + $0x520] ss:$16 sps:$4 sm:$0xff]  }
  0xfb   :  { %3818 = vmatprep.mubr.bf16.mxu0 %v9690_v50  ;;  %5583 = vmatprep.mubr.bf16.mxu1 %v9690_v50  ;;  %v9852_v50 = vld [vmem:[%s13674_s1 + $0x528] ss:$16 sps:$4 sm:$0xff]  }
 0x102   :  { %3819 = vmatmul.mubr.bf16.gmra.mrb[96].mxu0 %v9692_v51  ;;  %5584 = vmatmul.mubr.bf16.gmra.mrb[96].mxu1 %v9692_v51  ;;  %v9863_v51 = vld [vmem:[%s13674_s1 + $0x544] ss:$16 sps:$4 sm:$0xff]  }
 0x103   :  { %3828 = vmatprep.mubr.bf16.mxu0 %v9699_v52  ;;  %5593 = vmatprep.mubr.bf16.mxu1 %v9699_v52  ;;  %v9866_v52 = vld [vmem:[%s13674_s1 + $0x54c] ss:$16 sps:$4 sm:$0xff]  }
 0x10a   :  { %3829 = vmatmul.mubr.bf16.gmra.mrb[100].mxu0 %v9701_v53  ;;  %5594 = vmatmul.mubr.bf16.gmra.mrb[100].mxu1 %v9701_v53  ;;  %v9773_v53 = vld [vmem:[%s13677_s0 + $0x170] ss:$36 sps:$4 sm:$0xff]  }
 0x10b   :  { %3838 = vmatprep.mubr.bf16.mxu0 %v9702_v54  ;;  %5603 = vmatprep.mubr.bf16.mxu1 %v9702_v54  ;;  %v9774_v54 = vld [vmem:[%s13677_s0 + $0x1bc] ss:$36 sps:$4 sm:$0xff]  }
 0x112   :  { %3839 = vmatmul.mubr.bf16.gmra.mrb[104].mxu0 %v9704_v55  ;;  %5604 = vmatmul.mubr.bf16.gmra.mrb[104].mxu1 %v9704_v55  ;;  %v9861_v55 = vld [vmem:[%s13674_s1 + $0x540] ss:$16 sps:$4 sm:$0xff]  }
 0x113   :  { %3848 = vmatprep.mubr.bf16.mxu0 %v9711_v56  ;;  %5613 = vmatprep.mubr.bf16.mxu1 %v9711_v56  ;;  %v9864_v56 = vld [vmem:[%s13674_s1 + $0x548] ss:$16 sps:$4 sm:$0xff]  }
 0x11a   :  { %3849 = vmatmul.mubr.bf16.gmra.mrb[108].mxu0 %v9713_v57  ;;  %5614 = vmatmul.mubr.bf16.gmra.mrb[108].mxu1 %v9713_v57  ;;  %v9776_v57 = vld [vmem:[%s13677_s0 + $0x1b8] ss:$36 sps:$4 sm:$0xff]  }
 0x11b   :  { %3858 = vmatprep.mubr.bf16.mxu0 %v9714_v58  ;;  %5623 = vmatprep.mubr.bf16.mxu1 %v9714_v58  ;;  %v9783_v58 = vld [vmem:[%s13677_s0 + $0x204] ss:$36 sps:$4 sm:$0xff]  }
 0x122   :  { %3859 = vmatmul.mubr.bf16.gmra.mrb[112].mxu0 %v9716_v59  ;;  %5624 = vmatmul.mubr.bf16.gmra.mrb[112].mxu1 %v9716_v59  ;;  %v9873_v59 = vld [vmem:[%s13674_s1 + $0x560] ss:$16 sps:$4 sm:$0xff]  }
 0x123   :  { %3868 = vmatprep.mubr.bf16.mxu0 %v9723_v60  ;;  %5633 = vmatprep.mubr.bf16.mxu1 %v9723_v60  ;;  %v9875_v60 = vld [vmem:[%s13674_s1 + $0x564] ss:$16 sps:$4 sm:$0xff]  }
 0x12a   :  { %3869 = vmatmul.mubr.bf16.gmra.mrb[116].mxu0 %v9725_v61  ;;  %5634 = vmatmul.mubr.bf16.gmra.mrb[116].mxu1 %v9725_v61  ;;  %v9876_v61 = vld [vmem:[%s13674_s1 + $0x568] ss:$16 sps:$4 sm:$0xff]  }
 0x12b   :  { %3878 = vmatprep.mubr.bf16.mxu0 %v9726_v62  ;;  %5643 = vmatprep.mubr.bf16.mxu1 %v9726_v62  ;;  %v9878_v62 = vld [vmem:[%s13674_s1 + $0x56c] ss:$16 sps:$4 sm:$0xff]  }
 0x132   :  { %3879 = vmatmul.mubr.bf16.gmra.mrb[120].mxu0 %v9728_v63  ;;  %5644 = vmatmul.mubr.bf16.gmra.mrb[120].mxu1 %v9728_v63  ;;  %v9785_v63 = vld [vmem:[%s13677_s0 + $0x200] ss:$36 sps:$4 sm:$0xff]  }
 0x133   :  { %3888 = vmatprep.mubr.bf16.mxu0 %v9735_v0  ;;  %5653 = vmatprep.mubr.bf16.mxu1 %v9735_v0  ;;  %v9786_v0 = vld [vmem:[%s13677_s0 + $0x24c] ss:$36 sps:$4 sm:$0xff]  }
 0x13a   :  { %3889 = vmatmul.mubr.bf16.gmra.mrb[124].mxu0 %v9737_v1  ;;  %5654 = vmatmul.mubr.bf16.gmra.mrb[124].mxu1 %v9737_v1  ;;  %v9788_v1 = vld [vmem:[%s13677_s0 + $0x248] ss:$36 sps:$4 sm:$0xff]  }
 0x13b   :  { %3931 = vmatprep.mubr.bf16.mxu0 %v9740_v2  ;;  %5696 = vmatprep.mubr.bf16.mxu1 %v9740_v2  ;;  %v9795_v2 = vld [vmem:[%s13677_s0 + $0x294] ss:$36 sps:$4 sm:$0xff]  }
 0x142   :  { %3932 = vmatmul.mubr.bf16.vlgmr.msra.gmra.mrb[0].mxu0 %v9738_v3  ;;  %5697 = vmatmul.mubr.bf16.vlgmr.msra.gmra.mrb[0].mxu1 %v9738_v3  ;;  %v9885_v3 = vld [vmem:[%s13674_s1 + $0x580] ss:$16 sps:$4 sm:$0xff]  }
 0x143   :  { %4253 = vmatpush1.bf16.msra.mxu0 %v9741_v4  ;;  %6018 = vmatpush1.bf16.msra.mxu1 %v9744_v5  ;;  %v9887_v4 = vld [vmem:[%s13674_s1 + $0x584] ss:$16 sps:$4 sm:$0xff]   ;;  %v9888_v5 = vld [vmem:[%s13674_s1 + $0x588] ss:$16 sps:$4 sm:$0xff]  }
 0x144   :  { %3941 = vmatprep.mubr.bf16.mxu0 %v9747_v6  ;;  %5706 = vmatprep.mubr.bf16.mxu1 %v9747_v6  ;;  %v9890_v6 = vld [vmem:[%s13674_s1 + $0x58c] ss:$16 sps:$4 sm:$0xff]  }
 0x145   :  { %4254 = vmatprep.subr.bf16.mxu0 %v9755_v7  ;;  %6019 = vmatprep.subr.bf16.mxu1 %v9758_v8  ;;  %v9797_v7 = vld [vmem:[%s13677_s0 + $0x290] ss:$36 sps:$4 sm:$0xff]   ;;  %v9798_v8 = vld [vmem:[%s13677_s0 + $0x2dc] ss:$36 sps:$4 sm:$0xff]  }
 0x147   :  { %4255 = vmatpush1.bf16.msra.mxu0 %v9753_v9  ;;  %6020 = vmatpush1.bf16.msra.mxu1 %v9756_v10  ;;  %v9800_v9 = vld [vmem:[%s13677_s0 + $0x2d8] ss:$36 sps:$4 sm:$0xff]   ;;  %v9807_v10 = vld [vmem:[%s13677_s0 + $0x324] ss:$36 sps:$4 sm:$0xff]  }
 0x148   :  { %4256 = vmatprep.subr.bf16.mxu0 %v9767_v11  ;;  %6021 = vmatprep.subr.bf16.mxu1 %v9770_v12  ;;  %v9897_v11 = vld [vmem:[%s13674_s1 + $0x5a0] ss:$16 sps:$4 sm:$0xff]   ;;  %v9899_v12 = vld [vmem:[%s13674_s1 + $0x5a4] ss:$16 sps:$4 sm:$0xff]  }
 0x14a   :  { %3942 = vmatmul.mubr.bf16.gmra.mrb[4].mxu0 %v9749_v13  ;;  %5707 = vmatmul.mubr.bf16.gmra.mrb[4].mxu1 %v9749_v13  ;;  %v9900_v13 = vld [vmem:[%s13674_s1 + $0x5a8] ss:$16 sps:$4 sm:$0xff]  }
 0x14b   :  { %3951 = vmatprep.mubr.bf16.mxu0 %v9750_v14  ;;  %5716 = vmatprep.mubr.bf16.mxu1 %v9750_v14  ;;  %v9902_v14 = vld [vmem:[%s13674_s1 + $0x5ac] ss:$16 sps:$4 sm:$0xff]  }
 0x14c   :  { %4257 = vmatpush1.bf16.msra.mxu0 %v9765_v15  ;;  %6022 = vmatpush1.bf16.msra.mxu1 %v9768_v16  ;;  %v9809_v15 = vld [vmem:[%s13677_s0 + $0x320] ss:$36 sps:$4 sm:$0xff]   ;;  %v9810_v16 = vld [vmem:[%s13677_s0 + $0x36c] ss:$36 sps:$4 sm:$0xff]  }
 0x14d   :  { %4258 = vmatprep.subr.bf16.mxu0 %v9779_v17  ;;  %6023 = vmatprep.subr.bf16.mxu1 %v9782_v18  ;;  %v9812_v17 = vld [vmem:[%s13677_s0 + $0x368] ss:$36 sps:$4 sm:$0xff]   ;;  %v9819_v18 = vld [vmem:[%s13677_s0 + $0x3b4] ss:$36 sps:$4 sm:$0xff]  }
 0x150   :  { %4259 = vmatpush1.bf16.msra.mxu0 %v9777_v19  ;;  %6024 = vmatpush1.bf16.msra.mxu1 %v9780_v20  ;;  %v9909_v19 = vld [vmem:[%s13674_s1 + $0x5c0] ss:$16 sps:$4 sm:$0xff]   ;;  %v9911_v20 = vld [vmem:[%s13674_s1 + $0x5c4] ss:$16 sps:$4 sm:$0xff]  }
 0x151   :  { %4260 = vmatprep.subr.bf16.mxu0 %v9791_v21  ;;  %6025 = vmatprep.subr.bf16.mxu1 %v9794_v22  ;;  %v9912_v21 = vld [vmem:[%s13674_s1 + $0x5c8] ss:$16 sps:$4 sm:$0xff]   ;;  %v9914_v22 = vld [vmem:[%s13674_s1 + $0x5cc] ss:$16 sps:$4 sm:$0xff]  }
 0x152   :  { %3952 = vmatmul.mubr.bf16.gmra.mrb[8].mxu0 %v9752_v23  ;;  %5717 = vmatmul.mubr.bf16.gmra.mrb[8].mxu1 %v9752_v23  ;;  %v9821_v23 = vld [vmem:[%s13677_s0 + $0x3b0] ss:$36 sps:$4 sm:$0xff]  }
 0x153   :  { %3961 = vmatprep.mubr.bf16.mxu0 %v9759_v24  ;;  %5726 = vmatprep.mubr.bf16.mxu1 %v9759_v24  ;;  %v9822_v24 = vld [vmem:[%s13677_s0 + $0x3fc] ss:$36 sps:$4 sm:$0xff]  }
 0x154   :  { %4261 = vmatpush1.bf16.msra.mxu0 %v9789_v25  ;;  %6026 = vmatpush1.bf16.msra.mxu1 %v9792_v26  ;;  %v9824_v25 = vld [vmem:[%s13677_s0 + $0x3f8] ss:$36 sps:$4 sm:$0xff]   ;;  %v9831_v26 = vld [vmem:[%s13677_s0 + $0x444] ss:$36 sps:$4 sm:$0xff]  }
 0x155   :  { %4262 = vmatprep.subr.bf16.mxu0 %v9803_v27  ;;  %6027 = vmatprep.subr.bf16.mxu1 %v9806_v28  ;;  %v9921_v27 = vld [vmem:[%s13674_s1 + $0x5e0] ss:$16 sps:$4 sm:$0xff]   ;;  %v9923_v28 = vld [vmem:[%s13674_s1 + $0x5e4] ss:$16 sps:$4 sm:$0xff]  }
 0x158   :  { %4263 = vmatpush1.bf16.msra.mxu0 %v9801_v29  ;;  %6028 = vmatpush1.bf16.msra.mxu1 %v9804_v30  ;;  %v9924_v29 = vld [vmem:[%s13674_s1 + $0x5e8] ss:$16 sps:$4 sm:$0xff]   ;;  %v9926_v30 = vld [vmem:[%s13674_s1 + $0x5ec] ss:$16 sps:$4 sm:$0xff]  }
 0x159   :  { %4264 = vmatprep.subr.bf16.mxu0 %v9815_v31  ;;  %6029 = vmatprep.subr.bf16.mxu1 %v9818_v32  ;;  %v9833_v31 = vld [vmem:[%s13677_s0 + $0x440] ss:$36 sps:$4 sm:$0xff]   ;;  %v9834_v32 = vld [vmem:[%s13677_s0 + $0x48c] ss:$36 sps:$4 sm:$0xff]  }
 0x15a   :  { %3962 = vmatmul.mubr.bf16.gmra.mrb[12].mxu0 %v9761_v33  ;;  %5727 = vmatmul.mubr.bf16.gmra.mrb[12].mxu1 %v9761_v33  ;;  %v9836_v33 = vld [vmem:[%s13677_s0 + $0x488] ss:$36 sps:$4 sm:$0xff]  }
 0x15b   :  { %3971 = vmatprep.mubr.bf16.mxu0 %v9762_v34  ;;  %5736 = vmatprep.mubr.bf16.mxu1 %v9762_v34  ;;  %v9843_v34 = vld [vmem:[%s13677_s0 + $0x4d4] ss:$36 sps:$4 sm:$0xff]  }
 0x15c   :  { %4265 = vmatpush1.bf16.msra.mxu0 %v9813_v35  ;;  %6030 = vmatpush1.bf16.msra.mxu1 %v9816_v36  ;;  %v9935_v35 = vld [vmem:[%s13674_s1 + $0x604] ss:$16 sps:$4 sm:$0xff]   ;;  %v9938_v36 = vld [vmem:[%s13674_s1 + $0x60c] ss:$16 sps:$4 sm:$0xff]  }
 0x15d   :  { %4266 = vmatprep.subr.bf16.mxu0 %v9827_v37  ;;  %6031 = vmatprep.subr.bf16.mxu1 %v9830_v38  ;;  %v9845_v37 = vld [vmem:[%s13677_s0 + $0x4d0] ss:$36 sps:$4 sm:$0xff]   ;;  %v9846_v38 = vld [vmem:[%s13677_s0 + $0x51c] ss:$36 sps:$4 sm:$0xff]  }
 0x160   :  { %4267 = vmatpush1.bf16.msra.mxu0 %v9825_v39  ;;  %6032 = vmatpush1.bf16.msra.mxu1 %v9828_v40  ;;  %v9848_v39 = vld [vmem:[%s13677_s0 + $0x518] ss:$36 sps:$4 sm:$0xff]   ;;  %v9855_v40 = vld [vmem:[%s13677_s0 + $0x564] ss:$36 sps:$4 sm:$0xff]  }
 0x161   :  { %4268 = vmatprep.subr.bf16.mxu0 %v9839_v41  ;;  %6033 = vmatprep.subr.bf16.mxu1 %v9842_v42  ;;  %v9857_v41 = vld [vmem:[%s13677_s0 + $0x560] ss:$36 sps:$4 sm:$0xff]   ;;  %v9858_v42 = vld [vmem:[%s13677_s0 + $0x5ac] ss:$36 sps:$4 sm:$0xff]  }
 0x162   :  { %3972 = vmatmul.mubr.bf16.gmra.mrb[16].mxu0 %v9764_v43  ;;  %5737 = vmatmul.mubr.bf16.gmra.mrb[16].mxu1 %v9764_v43  ;;  %v9860_v43 = vld [vmem:[%s13677_s0 + $0x5a8] ss:$36 sps:$4 sm:$0xff]  }
 0x163   :  { %3981 = vmatprep.mubr.bf16.mxu0 %v9771_v44  ;;  %5746 = vmatprep.mubr.bf16.mxu1 %v9771_v44  ;;  %v9867_v44 = vld [vmem:[%s13677_s0 + $0x5f4] ss:$36 sps:$4 sm:$0xff]  }
 0x164   :  { %4269 = vmatpush1.bf16.msra.mxu0 %v9837_v45  ;;  %6034 = vmatpush1.bf16.msra.mxu1 %v9840_v46  ;;  %v9869_v45 = vld [vmem:[%s13677_s0 + $0x5f0] ss:$36 sps:$4 sm:$0xff]   ;;  %v9870_v46 = vld [vmem:[%s13677_s0 + $0x63c] ss:$36 sps:$4 sm:$0xff]  }
 0x165   :  { %4270 = vmatprep.subr.bf16.mxu0 %v9851_v47  ;;  %6035 = vmatprep.subr.bf16.mxu1 %v9854_v48  ;;  %v9872_v47 = vld [vmem:[%s13677_s0 + $0x638] ss:$36 sps:$4 sm:$0xff]   ;;  %v9879_v48 = vld [vmem:[%s13677_s0 + $0x684] ss:$36 sps:$4 sm:$0xff]  }
 0x168   :  { %4271 = vmatpush1.bf16.msra.mxu0 %v9849_v49  ;;  %6036 = vmatpush1.bf16.msra.mxu1 %v9852_v50  ;;  %v9881_v49 = vld [vmem:[%s13677_s0 + $0x680] ss:$36 sps:$4 sm:$0xff]   ;;  %v9882_v50 = vld [vmem:[%s13677_s0 + $0x6cc] ss:$36 sps:$4 sm:$0xff]  }
 0x169   :  { %4272 = vmatprep.subr.bf16.mxu0 %v9863_v51  ;;  %6037 = vmatprep.subr.bf16.mxu1 %v9866_v52  ;;  %v9884_v51 = vld [vmem:[%s13677_s0 + $0x6c8] ss:$36 sps:$4 sm:$0xff]   ;;  %v9891_v52 = vld [vmem:[%s13677_s0 + $0x714] ss:$36 sps:$4 sm:$0xff]  }
 0x16a   :  { %3982 = vmatmul.mubr.bf16.gmra.mrb[20].mxu0 %v9773_v53  ;;  %5747 = vmatmul.mubr.bf16.gmra.mrb[20].mxu1 %v9773_v53  ;;  %v9893_v53 = vld [vmem:[%s13677_s0 + $0x710] ss:$36 sps:$4 sm:$0xff]  }
 0x16b   :  { %3991 = vmatprep.mubr.bf16.mxu0 %v9774_v54  ;;  %5756 = vmatprep.mubr.bf16.mxu1 %v9774_v54  ;;  %v9894_v54 = vld [vmem:[%s13677_s0 + $0x75c] ss:$36 sps:$4 sm:$0xff]  }
 0x16c   :  { %4273 = vmatpush1.bf16.msra.mxu0 %v9861_v55  ;;  %6038 = vmatpush1.bf16.msra.mxu1 %v9864_v56  ;;  %v9896_v55 = vld [vmem:[%s13677_s0 + $0x758] ss:$36 sps:$4 sm:$0xff]   ;;  %v9903_v56 = vld [vmem:[%s13677_s0 + $0x7a4] ss:$36 sps:$4 sm:$0xff]  }
 0x16d   :  { %4274 = vmatprep.subr.bf16.mxu0 %v9875_v60  ;;  %6039 = vmatprep.subr.bf16.mxu1 %v9878_v62  ;;  %v9915_v60 = vld [vmem:[%s13677_s0 + $0x834] ss:$36 sps:$4 sm:$0xff]   ;;  %v9918_v62 = vld [vmem:[%s13677_s0 + $0x87c] ss:$36 sps:$4 sm:$0xff]  }
 0x170   :  { %4275 = vmatpush1.bf16.msra.mxu0 %v9873_v59  ;;  %6040 = vmatpush1.bf16.msra.mxu1 %v9876_v61  ;;  %v9908_v59 = vld [vmem:[%s13677_s0 + $0x7e8] ss:$36 sps:$4 sm:$0xff]   ;;  %v9917_v61 = vld [vmem:[%s13677_s0 + $0x830] ss:$36 sps:$4 sm:$0xff]  }
 0x171   :  { %4276 = vmatprep.subr.bf16.mxu0 %v9887_v4  ;;  %6041 = vmatprep.subr.bf16.mxu1 %v9890_v6  ;;  %v9933_v4 = vld [vmem:[%s13674_s1 + $0x600] ss:$16 sps:$4 sm:$0xff]  }
 0x172   :  { %3992 = vmatmul.mubr.bf16.gmra.mrb[24].mxu0 %v9776_v57  ;;  %5757 = vmatmul.mubr.bf16.gmra.mrb[24].mxu1 %v9776_v57  ;;  %v9905_v57 = vld [vmem:[%s13677_s0 + $0x7a0] ss:$36 sps:$4 sm:$0xff]  }
 0x173   :  { %4001 = vmatprep.mubr.bf16.mxu0 %v9783_v58  ;;  %5766 = vmatprep.mubr.bf16.mxu1 %v9783_v58  ;;  %v9906_v58 = vld [vmem:[%s13677_s0 + $0x7ec] ss:$36 sps:$4 sm:$0xff]   ;;  %v9939_v6 = vld [vmem:[%s13677_s0 + $0x5c] ss:$36 sps:$4 sm:$0xff]  }
 0x174   :  { %4277 = vmatpush1.bf16.msra.mxu0 %v9885_v3  ;;  %6042 = vmatpush1.bf16.msra.mxu1 %v9888_v5  ;;  %v9930_v3 = vld [vmem:[%s13677_s0 + $0x10] ss:$36 sps:$4 sm:$0xff]   ;;  %v9936_v5 = vld [vmem:[%s13674_s1 + $0x608] ss:$16 sps:$4 sm:$0xff]  }
 0x175   :  { %4278 = vmatprep.subr.bf16.mxu0 %v9899_v12  ;;  %6043 = vmatprep.subr.bf16.mxu1 %v9902_v14  ;;  %v9962_v12 = vld [vmem:[%s13674_s1 + $0x64c] ss:$16 sps:$4 sm:$0xff]   ;;  %v9942_v14 = vld [vmem:[%s13677_s0 + $0xa4] ss:$36 sps:$4 sm:$0xff]  }
 0x178   :  { %4279 = vmatpush1.bf16.msra.mxu0 %v9897_v11  ;;  %6044 = vmatpush1.bf16.msra.mxu1 %v9900_v13  ;;  %v9959_v11 = vld [vmem:[%s13674_s1 + $0x644] ss:$16 sps:$4 sm:$0xff]   ;;  %v9941_v13 = vld [vmem:[%s13677_s0 + $0x58] ss:$36 sps:$4 sm:$0xff]  }
 0x179   :  { %4280 = vmatprep.subr.bf16.mxu0 %v9911_v20  ;;  %6045 = vmatprep.subr.bf16.mxu1 %v9914_v22  ;;  %v9972_v20 = vld [vmem:[%s13674_s1 + $0x668] ss:$16 sps:$4 sm:$0xff]   ;;  %v9986_v22 = vld [vmem:[%s13674_s1 + $0x68c] ss:$16 sps:$4 sm:$0xff]  }
 0x17a   :  { %4002 = vmatmul.mubr.bf16.gmra.mrb[28].mxu0 %v9785_v63  ;;  %5767 = vmatmul.mubr.bf16.gmra.mrb[28].mxu1 %v9785_v63  ;;  %v9920_v63 = vld [vmem:[%s13677_s0 + $0x878] ss:$36 sps:$4 sm:$0xff]  }
 0x17b   :  { %4011 = vmatprep.mubr.bf16.mxu0 %v9786_v0  ;;  %5776 = vmatprep.mubr.bf16.mxu1 %v9786_v0  ;;  %v9927_v0 = vld [vmem:[%s13677_s0 + $0x8c4] ss:$36 sps:$4 sm:$0xff]  }
 0x17c   :  { %4281 = vmatpush1.bf16.msra.mxu0 %v9909_v19  ;;  %6046 = vmatpush1.bf16.msra.mxu1 %v9912_v21  ;;  %v9969_v19 = vld [vmem:[%s13674_s1 + $0x660] ss:$16 sps:$4 sm:$0xff]   ;;  %v9983_v21 = vld [vmem:[%s13674_s1 + $0x684] ss:$16 sps:$4 sm:$0xff]  }
 0x17d   :  { %4282 = vmatprep.subr.bf16.mxu0 %v9923_v28  ;;  %6047 = vmatprep.subr.bf16.mxu1 %v9926_v30  ;;  %v9998_v28 = vld [vmem:[%s13674_s1 + $0x6ac] ss:$16 sps:$4 sm:$0xff]   ;;  %v9996_v30 = vld [vmem:[%s13674_s1 + $0x6a8] ss:$16 sps:$4 sm:$0xff]  }
 0x180   :  { %4283 = vmatpush1.bf16.msra.mxu0 %v9921_v27  ;;  %6048 = vmatpush1.bf16.msra.mxu1 %v9924_v29  ;;  %v9995_v27 = vld [vmem:[%s13674_s1 + $0x6a4] ss:$16 sps:$4 sm:$0xff]   ;;  %v9993_v29 = vld [vmem:[%s13674_s1 + $0x6a0] ss:$16 sps:$4 sm:$0xff]  }
 0x181   :  { %4605 = vmatprep.subr.bf16.mxu0 %v9935_v35  ;;  %6370 = vmatprep.subr.bf16.mxu1 %v9938_v36  ;;  %v10005_v35 = vld [vmem:[%s13674_s1 + $0x6c0] ss:$16 sps:$4 sm:$0xff]   ;;  %v10008_v36 = vld [vmem:[%s13674_s1 + $0x6c8] ss:$16 sps:$4 sm:$0xff]  }
 0x182   :  { %4012 = vmatmul.mubr.bf16.gmra.mrb[32].mxu0 %v9788_v1  ;;  %5777 = vmatmul.mubr.bf16.gmra.mrb[32].mxu1 %v9788_v1  ;;  %v9929_v1 = vld [vmem:[%s13677_s0 + $0x8c0] ss:$36 sps:$4 sm:$0xff]  }
 0x183   :  { %4021 = vmatprep.mubr.bf16.mxu0 %v9795_v2  ;;  %5786 = vmatprep.mubr.bf16.mxu1 %v9795_v2  ;;  %v9932_v2 = vld [vmem:[%s13677_s0 + $0x14] ss:$36 sps:$4 sm:$0xff]  }
 0x18a   :  { %4022 = vmatmul.mubr.bf16.gmra.mrb[36].mxu0 %v9797_v7  ;;  %5787 = vmatmul.mubr.bf16.gmra.mrb[36].mxu1 %v9797_v7  ;;  %v9947_v7 = vld [vmem:[%s13674_s1 + $0x624] ss:$16 sps:$4 sm:$0xff]  }
 0x18b   :  { %4031 = vmatprep.mubr.bf16.mxu0 %v9798_v8  ;;  %5796 = vmatprep.mubr.bf16.mxu1 %v9798_v8  ;;  %v9950_v8 = vld [vmem:[%s13674_s1 + $0x62c] ss:$16 sps:$4 sm:$0xff]  }
 0x192   :  { %4032 = vmatmul.mubr.bf16.gmra.mrb[40].mxu0 %v9800_v9  ;;  %5797 = vmatmul.mubr.bf16.gmra.mrb[40].mxu1 %v9800_v9  ;;  %v9945_v9 = vld [vmem:[%s13674_s1 + $0x620] ss:$16 sps:$4 sm:$0xff]  }
 0x193   :  { %4041 = vmatprep.mubr.bf16.mxu0 %v9807_v10  ;;  %5806 = vmatprep.mubr.bf16.mxu1 %v9807_v10  ;;  %v9948_v10 = vld [vmem:[%s13674_s1 + $0x628] ss:$16 sps:$4 sm:$0xff]  }
 0x19a   :  { %4042 = vmatmul.mubr.bf16.gmra.mrb[44].mxu0 %v9809_v15  ;;  %5807 = vmatmul.mubr.bf16.gmra.mrb[44].mxu1 %v9809_v15  ;;  %v9957_v15 = vld [vmem:[%s13674_s1 + $0x640] ss:$16 sps:$4 sm:$0xff]  }
 0x19b   :  { %4051 = vmatprep.mubr.bf16.mxu0 %v9810_v16  ;;  %5816 = vmatprep.mubr.bf16.mxu1 %v9810_v16  ;;  %v9960_v16 = vld [vmem:[%s13674_s1 + $0x648] ss:$16 sps:$4 sm:$0xff]  }
 0x1a2   :  { %4052 = vmatmul.mubr.bf16.gmra.mrb[48].mxu0 %v9812_v17  ;;  %5817 = vmatmul.mubr.bf16.gmra.mrb[48].mxu1 %v9812_v17  ;;  %v9971_v17 = vld [vmem:[%s13674_s1 + $0x664] ss:$16 sps:$4 sm:$0xff]  }
 0x1a3   :  { %4061 = vmatprep.mubr.bf16.mxu0 %v9819_v18  ;;  %5826 = vmatprep.mubr.bf16.mxu1 %v9819_v18  ;;  %v9974_v18 = vld [vmem:[%s13674_s1 + $0x66c] ss:$16 sps:$4 sm:$0xff]  }
 0x1aa   :  { %4062 = vmatmul.mubr.bf16.gmra.mrb[52].mxu0 %v9821_v23  ;;  %5827 = vmatmul.mubr.bf16.gmra.mrb[52].mxu1 %v9821_v23  ;;  %v9944_v23 = vld [vmem:[%s13677_s0 + $0xa0] ss:$36 sps:$4 sm:$0xff]  }
 0x1ab   :  { %4071 = vmatprep.mubr.bf16.mxu0 %v9822_v24  ;;  %5836 = vmatprep.mubr.bf16.mxu1 %v9822_v24  ;;  %v9951_v24 = vld [vmem:[%s13677_s0 + $0xec] ss:$36 sps:$4 sm:$0xff]  }
 0x1b2   :  { %4072 = vmatmul.mubr.bf16.gmra.mrb[56].mxu0 %v9824_v25  ;;  %5837 = vmatmul.mubr.bf16.gmra.mrb[56].mxu1 %v9824_v25  ;;  %v9981_v25 = vld [vmem:[%s13674_s1 + $0x680] ss:$16 sps:$4 sm:$0xff]  }
 0x1b3   :  { %4081 = vmatprep.mubr.bf16.mxu0 %v9831_v26  ;;  %5846 = vmatprep.mubr.bf16.mxu1 %v9831_v26  ;;  %v9984_v26 = vld [vmem:[%s13674_s1 + $0x688] ss:$16 sps:$4 sm:$0xff]  }
 0x1ba   :  { %4082 = vmatmul.mubr.bf16.gmra.mrb[60].mxu0 %v9833_v31  ;;  %5847 = vmatmul.mubr.bf16.gmra.mrb[60].mxu1 %v9833_v31  ;;  %v10007_v31 = vld [vmem:[%s13674_s1 + $0x6c4] ss:$16 sps:$4 sm:$0xff]  }
 0x1bb   :  { %4091 = vmatprep.mubr.bf16.mxu0 %v9834_v32  ;;  %5856 = vmatprep.mubr.bf16.mxu1 %v9834_v32  ;;  %v10010_v32 = vld [vmem:[%s13674_s1 + $0x6cc] ss:$16 sps:$4 sm:$0xff]  }
 0x1c2   :  { %4092 = vmatmul.mubr.bf16.gmra.mrb[64].mxu0 %v9836_v33  ;;  %5857 = vmatmul.mubr.bf16.gmra.mrb[64].mxu1 %v9836_v33  ;;  %v9953_v33 = vld [vmem:[%s13677_s0 + $0xe8] ss:$36 sps:$4 sm:$0xff]  }
 0x1c3   :  { %4101 = vmatprep.mubr.bf16.mxu0 %v9843_v34  ;;  %5866 = vmatprep.mubr.bf16.mxu1 %v9843_v34  ;;  %v9954_v34 = vld [vmem:[%s13677_s0 + $0x134] ss:$36 sps:$4 sm:$0xff]  }
 0x1ca   :  { %4102 = vmatmul.mubr.bf16.gmra.mrb[68].mxu0 %v9845_v37  ;;  %5867 = vmatmul.mubr.bf16.gmra.mrb[68].mxu1 %v9845_v37  ;;  %v10019_v37 = vld [vmem:[%s13674_s1 + $0x6e4] ss:$16 sps:$4 sm:$0xff]  }
 0x1cb   :  { %4111 = vmatprep.mubr.bf16.mxu0 %v9846_v38  ;;  %5876 = vmatprep.mubr.bf16.mxu1 %v9846_v38  ;;  %v10022_v38 = vld [vmem:[%s13674_s1 + $0x6ec] ss:$16 sps:$4 sm:$0xff]  }
 0x1d2   :  { %4112 = vmatmul.mubr.bf16.gmra.mrb[72].mxu0 %v9848_v39  ;;  %5877 = vmatmul.mubr.bf16.gmra.mrb[72].mxu1 %v9848_v39  ;;  %v10017_v39 = vld [vmem:[%s13674_s1 + $0x6e0] ss:$16 sps:$4 sm:$0xff]  }
 0x1d3   :  { %4121 = vmatprep.mubr.bf16.mxu0 %v9855_v40  ;;  %5886 = vmatprep.mubr.bf16.mxu1 %v9855_v40  ;;  %v10020_v40 = vld [vmem:[%s13674_s1 + $0x6e8] ss:$16 sps:$4 sm:$0xff]  }
 0x1da   :  { %4122 = vmatmul.mubr.bf16.gmra.mrb[76].mxu0 %v9857_v41  ;;  %5887 = vmatmul.mubr.bf16.gmra.mrb[76].mxu1 %v9857_v41  ;;  %v10031_v41 = vld [vmem:[%s13674_s1 + $0x704] ss:$16 sps:$4 sm:$0xff]  }
 0x1db   :  { %4131 = vmatprep.mubr.bf16.mxu0 %v9858_v42  ;;  %5896 = vmatprep.mubr.bf16.mxu1 %v9858_v42  ;;  %v10034_v42 = vld [vmem:[%s13674_s1 + $0x70c] ss:$16 sps:$4 sm:$0xff]  }
 0x1e2   :  { %4132 = vmatmul.mubr.bf16.gmra.mrb[80].mxu0 %v9860_v43  ;;  %5897 = vmatmul.mubr.bf16.gmra.mrb[80].mxu1 %v9860_v43  ;;  %v9956_v43 = vld [vmem:[%s13677_s0 + $0x130] ss:$36 sps:$4 sm:$0xff]  }
 0x1e3   :  { %4141 = vmatprep.mubr.bf16.mxu0 %v9867_v44  ;;  %5906 = vmatprep.mubr.bf16.mxu1 %v9867_v44  ;;  %v9963_v44 = vld [vmem:[%s13677_s0 + $0x17c] ss:$36 sps:$4 sm:$0xff]  }
 0x1ea   :  { %4142 = vmatmul.mubr.bf16.gmra.mrb[84].mxu0 %v9869_v45  ;;  %5907 = vmatmul.mubr.bf16.gmra.mrb[84].mxu1 %v9869_v45  ;;  %v10029_v45 = vld [vmem:[%s13674_s1 + $0x700] ss:$16 sps:$4 sm:$0xff]  }
 0x1eb   :  { %4151 = vmatprep.mubr.bf16.mxu0 %v9870_v46  ;;  %5916 = vmatprep.mubr.bf16.mxu1 %v9870_v46  ;;  %v10032_v46 = vld [vmem:[%s13674_s1 + $0x708] ss:$16 sps:$4 sm:$0xff]  }
 0x1f2   :  { %4152 = vmatmul.mubr.bf16.gmra.mrb[88].mxu0 %v9872_v47  ;;  %5917 = vmatmul.mubr.bf16.gmra.mrb[88].mxu1 %v9872_v47  ;;  %v10043_v47 = vld [vmem:[%s13674_s1 + $0x724] ss:$16 sps:$4 sm:$0xff]  }
 0x1f3   :  { %4161 = vmatprep.mubr.bf16.mxu0 %v9879_v48  ;;  %5926 = vmatprep.mubr.bf16.mxu1 %v9879_v48  ;;  %v10046_v48 = vld [vmem:[%s13674_s1 + $0x72c] ss:$16 sps:$4 sm:$0xff]  }
 0x1fa   :  { %4162 = vmatmul.mubr.bf16.gmra.mrb[92].mxu0 %v9881_v49  ;;  %5927 = vmatmul.mubr.bf16.gmra.mrb[92].mxu1 %v9881_v49  ;;  %v10041_v49 = vld [vmem:[%s13674_s1 + $0x720] ss:$16 sps:$4 sm:$0xff]  }
 0x1fb   :  { %4171 = vmatprep.mubr.bf16.mxu0 %v9882_v50  ;;  %5936 = vmatprep.mubr.bf16.mxu1 %v9882_v50  ;;  %v10044_v50 = vld [vmem:[%s13674_s1 + $0x728] ss:$16 sps:$4 sm:$0xff]  }
 0x202   :  { %4172 = vmatmul.mubr.bf16.gmra.mrb[96].mxu0 %v9884_v51  ;;  %5937 = vmatmul.mubr.bf16.gmra.mrb[96].mxu1 %v9884_v51  ;;  %v10055_v51 = vld [vmem:[%s13674_s1 + $0x744] ss:$16 sps:$4 sm:$0xff]  }
 0x203   :  { %4181 = vmatprep.mubr.bf16.mxu0 %v9891_v52  ;;  %5946 = vmatprep.mubr.bf16.mxu1 %v9891_v52  ;;  %v10058_v52 = vld [vmem:[%s13674_s1 + $0x74c] ss:$16 sps:$4 sm:$0xff]  }
 0x20a   :  { %4182 = vmatmul.mubr.bf16.gmra.mrb[100].mxu0 %v9893_v53  ;;  %5947 = vmatmul.mubr.bf16.gmra.mrb[100].mxu1 %v9893_v53  ;;  %v9965_v53 = vld [vmem:[%s13677_s0 + $0x178] ss:$36 sps:$4 sm:$0xff]  }
 0x20b   :  { %4191 = vmatprep.mubr.bf16.mxu0 %v9894_v54  ;;  %5956 = vmatprep.mubr.bf16.mxu1 %v9894_v54  ;;  %v9966_v54 = vld [vmem:[%s13677_s0 + $0x1c4] ss:$36 sps:$4 sm:$0xff]  }
 0x212   :  { %4192 = vmatmul.mubr.bf16.gmra.mrb[104].mxu0 %v9896_v55  ;;  %5957 = vmatmul.mubr.bf16.gmra.mrb[104].mxu1 %v9896_v55  ;;  %v10053_v55 = vld [vmem:[%s13674_s1 + $0x740] ss:$16 sps:$4 sm:$0xff]  }
 0x213   :  { %4201 = vmatprep.mubr.bf16.mxu0 %v9903_v56  ;;  %5966 = vmatprep.mubr.bf16.mxu1 %v9903_v56  ;;  %v10056_v56 = vld [vmem:[%s13674_s1 + $0x748] ss:$16 sps:$4 sm:$0xff]  }
 0x21a   :  { %4202 = vmatmul.mubr.bf16.gmra.mrb[108].mxu0 %v9905_v57  ;;  %5967 = vmatmul.mubr.bf16.gmra.mrb[108].mxu1 %v9905_v57  ;;  %v9968_v57 = vld [vmem:[%s13677_s0 + $0x1c0] ss:$36 sps:$4 sm:$0xff]  }
 0x21b   :  { %4211 = vmatprep.mubr.bf16.mxu0 %v9906_v58  ;;  %5976 = vmatprep.mubr.bf16.mxu1 %v9906_v58  ;;  %v9975_v58 = vld [vmem:[%s13677_s0 + $0x20c] ss:$36 sps:$4 sm:$0xff]  }
 0x222   :  { %4212 = vmatmul.mubr.bf16.gmra.mrb[112].mxu0 %v9908_v59  ;;  %5977 = vmatmul.mubr.bf16.gmra.mrb[112].mxu1 %v9908_v59  ;;  %v10065_v59 = vld [vmem:[%s13674_s1 + $0x760] ss:$16 sps:$4 sm:$0xff]  }
 0x223   :  { %4221 = vmatprep.mubr.bf16.mxu0 %v9915_v60  ;;  %5986 = vmatprep.mubr.bf16.mxu1 %v9915_v60  ;;  %v10067_v60 = vld [vmem:[%s13674_s1 + $0x764] ss:$16 sps:$4 sm:$0xff]  }
 0x22a   :  { %4222 = vmatmul.mubr.bf16.gmra.mrb[116].mxu0 %v9917_v61  ;;  %5987 = vmatmul.mubr.bf16.gmra.mrb[116].mxu1 %v9917_v61  ;;  %v10068_v61 = vld [vmem:[%s13674_s1 + $0x768] ss:$16 sps:$4 sm:$0xff]  }
 0x22b   :  { %4231 = vmatprep.mubr.bf16.mxu0 %v9918_v62  ;;  %5996 = vmatprep.mubr.bf16.mxu1 %v9918_v62  ;;  %v10070_v62 = vld [vmem:[%s13674_s1 + $0x76c] ss:$16 sps:$4 sm:$0xff]  }
 0x232   :  { %4232 = vmatmul.mubr.bf16.gmra.mrb[120].mxu0 %v9920_v63  ;;  %5997 = vmatmul.mubr.bf16.gmra.mrb[120].mxu1 %v9920_v63  ;;  %v9977_v63 = vld [vmem:[%s13677_s0 + $0x208] ss:$36 sps:$4 sm:$0xff]  }
 0x233   :  { %4241 = vmatprep.mubr.bf16.mxu0 %v9927_v0  ;;  %6006 = vmatprep.mubr.bf16.mxu1 %v9927_v0  ;;  %v9978_v0 = vld [vmem:[%s13677_s0 + $0x254] ss:$36 sps:$4 sm:$0xff]  }
 0x23a   :  { %4242 = vmatmul.mubr.bf16.gmra.mrb[124].mxu0 %v9929_v1  ;;  %6007 = vmatmul.mubr.bf16.gmra.mrb[124].mxu1 %v9929_v1  ;;  %v9980_v1 = vld [vmem:[%s13677_s0 + $0x250] ss:$36 sps:$4 sm:$0xff]  }
 0x23b   :  { %4284 = vmatprep.mubr.bf16.mxu0 %v9932_v2  ;;  %6049 = vmatprep.mubr.bf16.mxu1 %v9932_v2  ;;  %v9987_v2 = vld [vmem:[%s13677_s0 + $0x29c] ss:$36 sps:$4 sm:$0xff]  }
 0x242   :  { %4285 = vmatmul.mubr.bf16.vlgmr.msra.gmra.mrb[0].mxu0 %v9930_v3  ;;  %6050 = vmatmul.mubr.bf16.vlgmr.msra.gmra.mrb[0].mxu1 %v9930_v3  ;;  %v10077_v3 = vld [vmem:[%s13674_s1 + $0x780] ss:$16 sps:$4 sm:$0xff]  }
 0x243   :  { %4606 = vmatpush1.bf16.msra.mxu0 %v9933_v4  ;;  %6371 = vmatpush1.bf16.msra.mxu1 %v9936_v5  ;;  %v10079_v4 = vld [vmem:[%s13674_s1 + $0x784] ss:$16 sps:$4 sm:$0xff]   ;;  %v10080_v5 = vld [vmem:[%s13674_s1 + $0x788] ss:$16 sps:$4 sm:$0xff]  }
 0x244   :  { %4294 = vmatprep.mubr.bf16.mxu0 %v9939_v6  ;;  %6059 = vmatprep.mubr.bf16.mxu1 %v9939_v6  ;;  %v10082_v6 = vld [vmem:[%s13674_s1 + $0x78c] ss:$16 sps:$4 sm:$0xff]  }
 0x245   :  { %4607 = vmatprep.subr.bf16.mxu0 %v9947_v7  ;;  %6372 = vmatprep.subr.bf16.mxu1 %v9950_v8  ;;  %v9989_v7 = vld [vmem:[%s13677_s0 + $0x298] ss:$36 sps:$4 sm:$0xff]   ;;  %v9990_v8 = vld [vmem:[%s13677_s0 + $0x2e4] ss:$36 sps:$4 sm:$0xff]  }
 0x247   :  { %4608 = vmatpush1.bf16.msra.mxu0 %v9945_v9  ;;  %6373 = vmatpush1.bf16.msra.mxu1 %v9948_v10  ;;  %v9992_v9 = vld [vmem:[%s13677_s0 + $0x2e0] ss:$36 sps:$4 sm:$0xff]   ;;  %v9999_v10 = vld [vmem:[%s13677_s0 + $0x32c] ss:$36 sps:$4 sm:$0xff]  }
 0x248   :  { %4609 = vmatprep.subr.bf16.mxu0 %v9959_v11  ;;  %6374 = vmatprep.subr.bf16.mxu1 %v9962_v12  ;;  %v10089_v11 = vld [vmem:[%s13674_s1 + $0x7a0] ss:$16 sps:$4 sm:$0xff]   ;;  %v10091_v12 = vld [vmem:[%s13674_s1 + $0x7a4] ss:$16 sps:$4 sm:$0xff]  }
 0x24a   :  { %4295 = vmatmul.mubr.bf16.gmra.mrb[4].mxu0 %v9941_v13  ;;  %6060 = vmatmul.mubr.bf16.gmra.mrb[4].mxu1 %v9941_v13  ;;  %v10092_v13 = vld [vmem:[%s13674_s1 + $0x7a8] ss:$16 sps:$4 sm:$0xff]  }
 0x24b   :  { %4304 = vmatprep.mubr.bf16.mxu0 %v9942_v14  ;;  %6069 = vmatprep.mubr.bf16.mxu1 %v9942_v14  ;;  %v10094_v14 = vld [vmem:[%s13674_s1 + $0x7ac] ss:$16 sps:$4 sm:$0xff]  }
 0x24c   :  { %4610 = vmatpush1.bf16.msra.mxu0 %v9957_v15  ;;  %6375 = vmatpush1.bf16.msra.mxu1 %v9960_v16  ;;  %v10001_v15 = vld [vmem:[%s13677_s0 + $0x328] ss:$36 sps:$4 sm:$0xff]   ;;  %v10002_v16 = vld [vmem:[%s13677_s0 + $0x374] ss:$36 sps:$4 sm:$0xff]  }
 0x24d   :  { %4611 = vmatprep.subr.bf16.mxu0 %v9971_v17  ;;  %6376 = vmatprep.subr.bf16.mxu1 %v9974_v18  ;;  %v10004_v17 = vld [vmem:[%s13677_s0 + $0x370] ss:$36 sps:$4 sm:$0xff]   ;;  %v10011_v18 = vld [vmem:[%s13677_s0 + $0x3bc] ss:$36 sps:$4 sm:$0xff]  }
 0x250   :  { %4612 = vmatpush1.bf16.msra.mxu0 %v9969_v19  ;;  %6377 = vmatpush1.bf16.msra.mxu1 %v9972_v20  ;;  %v10101_v19 = vld [vmem:[%s13674_s1 + $0x7c0] ss:$16 sps:$4 sm:$0xff]   ;;  %v10103_v20 = vld [vmem:[%s13674_s1 + $0x7c4] ss:$16 sps:$4 sm:$0xff]  }
 0x251   :  { %4613 = vmatprep.subr.bf16.mxu0 %v9983_v21  ;;  %6378 = vmatprep.subr.bf16.mxu1 %v9986_v22  ;;  %v10104_v21 = vld [vmem:[%s13674_s1 + $0x7c8] ss:$16 sps:$4 sm:$0xff]   ;;  %v10106_v22 = vld [vmem:[%s13674_s1 + $0x7cc] ss:$16 sps:$4 sm:$0xff]  }
 0x252   :  { %4305 = vmatmul.mubr.bf16.gmra.mrb[8].mxu0 %v9944_v23  ;;  %6070 = vmatmul.mubr.bf16.gmra.mrb[8].mxu1 %v9944_v23  ;;  %v10013_v23 = vld [vmem:[%s13677_s0 + $0x3b8] ss:$36 sps:$4 sm:$0xff]  }
 0x253   :  { %4314 = vmatprep.mubr.bf16.mxu0 %v9951_v24  ;;  %6079 = vmatprep.mubr.bf16.mxu1 %v9951_v24  ;;  %v10014_v24 = vld [vmem:[%s13677_s0 + $0x404] ss:$36 sps:$4 sm:$0xff]  }
 0x254   :  { %4614 = vmatpush1.bf16.msra.mxu0 %v9981_v25  ;;  %6379 = vmatpush1.bf16.msra.mxu1 %v9984_v26  ;;  %v10016_v25 = vld [vmem:[%s13677_s0 + $0x400] ss:$36 sps:$4 sm:$0xff]   ;;  %v10023_v26 = vld [vmem:[%s13677_s0 + $0x44c] ss:$36 sps:$4 sm:$0xff]  }
 0x255   :  { %4615 = vmatprep.subr.bf16.mxu0 %v9995_v27  ;;  %6380 = vmatprep.subr.bf16.mxu1 %v9998_v28  ;;  %v10113_v27 = vld [vmem:[%s13674_s1 + $0x7e0] ss:$16 sps:$4 sm:$0xff]   ;;  %v10115_v28 = vld [vmem:[%s13674_s1 + $0x7e4] ss:$16 sps:$4 sm:$0xff]  }
 0x258   :  { %4616 = vmatpush1.bf16.msra.mxu0 %v9993_v29  ;;  %6381 = vmatpush1.bf16.msra.mxu1 %v9996_v30  ;;  %v10116_v29 = vld [vmem:[%s13674_s1 + $0x7e8] ss:$16 sps:$4 sm:$0xff]   ;;  %v10118_v30 = vld [vmem:[%s13674_s1 + $0x7ec] ss:$16 sps:$4 sm:$0xff]  }
 0x259   :  { %4617 = vmatprep.subr.bf16.mxu0 %v10007_v31  ;;  %6382 = vmatprep.subr.bf16.mxu1 %v10010_v32  ;;  %v10025_v31 = vld [vmem:[%s13677_s0 + $0x448] ss:$36 sps:$4 sm:$0xff]   ;;  %v10026_v32 = vld [vmem:[%s13677_s0 + $0x494] ss:$36 sps:$4 sm:$0xff]  }
 0x25a   :  { %4315 = vmatmul.mubr.bf16.gmra.mrb[12].mxu0 %v9953_v33  ;;  %6080 = vmatmul.mubr.bf16.gmra.mrb[12].mxu1 %v9953_v33  ;;  %v10028_v33 = vld [vmem:[%s13677_s0 + $0x490] ss:$36 sps:$4 sm:$0xff]  }
 0x25b   :  { %4324 = vmatprep.mubr.bf16.mxu0 %v9954_v34  ;;  %6089 = vmatprep.mubr.bf16.mxu1 %v9954_v34  ;;  %v10035_v34 = vld [vmem:[%s13677_s0 + $0x4dc] ss:$36 sps:$4 sm:$0xff]  }
 0x25c   :  { %4618 = vmatpush1.bf16.msra.mxu0 %v10005_v35  ;;  %6383 = vmatpush1.bf16.msra.mxu1 %v10008_v36  ;;  %v10127_v35 = vld [vmem:[%s13674_s1 + $0x804] ss:$16 sps:$4 sm:$0xff]   ;;  %v10130_v36 = vld [vmem:[%s13674_s1 + $0x80c] ss:$16 sps:$4 sm:$0xff]  }
 0x25d   :  { %4619 = vmatprep.subr.bf16.mxu0 %v10019_v37  ;;  %6384 = vmatprep.subr.bf16.mxu1 %v10022_v38  ;;  %v10037_v37 = vld [vmem:[%s13677_s0 + $0x4d8] ss:$36 sps:$4 sm:$0xff]   ;;  %v10038_v38 = vld [vmem:[%s13677_s0 + $0x524] ss:$36 sps:$4 sm:$0xff]  }
 0x260   :  { %4620 = vmatpush1.bf16.msra.mxu0 %v10017_v39  ;;  %6385 = vmatpush1.bf16.msra.mxu1 %v10020_v40  ;;  %v10040_v39 = vld [vmem:[%s13677_s0 + $0x520] ss:$36 sps:$4 sm:$0xff]   ;;  %v10047_v40 = vld [vmem:[%s13677_s0 + $0x56c] ss:$36 sps:$4 sm:$0xff]  }
 0x261   :  { %4621 = vmatprep.subr.bf16.mxu0 %v10031_v41  ;;  %6386 = vmatprep.subr.bf16.mxu1 %v10034_v42  ;;  %v10049_v41 = vld [vmem:[%s13677_s0 + $0x568] ss:$36 sps:$4 sm:$0xff]   ;;  %v10050_v42 = vld [vmem:[%s13677_s0 + $0x5b4] ss:$36 sps:$4 sm:$0xff]  }
 0x262   :  { %4325 = vmatmul.mubr.bf16.gmra.mrb[16].mxu0 %v9956_v43  ;;  %6090 = vmatmul.mubr.bf16.gmra.mrb[16].mxu1 %v9956_v43  ;;  %v10052_v43 = vld [vmem:[%s13677_s0 + $0x5b0] ss:$36 sps:$4 sm:$0xff]  }
 0x263   :  { %4334 = vmatprep.mubr.bf16.mxu0 %v9963_v44  ;;  %6099 = vmatprep.mubr.bf16.mxu1 %v9963_v44  ;;  %v10059_v44 = vld [vmem:[%s13677_s0 + $0x5fc] ss:$36 sps:$4 sm:$0xff]  }
 0x264   :  { %4622 = vmatpush1.bf16.msra.mxu0 %v10029_v45  ;;  %6387 = vmatpush1.bf16.msra.mxu1 %v10032_v46  ;;  %v10061_v45 = vld [vmem:[%s13677_s0 + $0x5f8] ss:$36 sps:$4 sm:$0xff]   ;;  %v10062_v46 = vld [vmem:[%s13677_s0 + $0x644] ss:$36 sps:$4 sm:$0xff]  }
 0x265   :  { %4623 = vmatprep.subr.bf16.mxu0 %v10043_v47  ;;  %6388 = vmatprep.subr.bf16.mxu1 %v10046_v48  ;;  %v10064_v47 = vld [vmem:[%s13677_s0 + $0x640] ss:$36 sps:$4 sm:$0xff]   ;;  %v10071_v48 = vld [vmem:[%s13677_s0 + $0x68c] ss:$36 sps:$4 sm:$0xff]  }
 0x268   :  { %4624 = vmatpush1.bf16.msra.mxu0 %v10041_v49  ;;  %6389 = vmatpush1.bf16.msra.mxu1 %v10044_v50  ;;  %v10073_v49 = vld [vmem:[%s13677_s0 + $0x688] ss:$36 sps:$4 sm:$0xff]   ;;  %v10074_v50 = vld [vmem:[%s13677_s0 + $0x6d4] ss:$36 sps:$4 sm:$0xff]  }
 0x269   :  { %4625 = vmatprep.subr.bf16.mxu0 %v10055_v51  ;;  %6390 = vmatprep.subr.bf16.mxu1 %v10058_v52  ;;  %v10076_v51 = vld [vmem:[%s13677_s0 + $0x6d0] ss:$36 sps:$4 sm:$0xff]   ;;  %v10083_v52 = vld [vmem:[%s13677_s0 + $0x71c] ss:$36 sps:$4 sm:$0xff]  }
 0x26a   :  { %4335 = vmatmul.mubr.bf16.gmra.mrb[20].mxu0 %v9965_v53  ;;  %6100 = vmatmul.mubr.bf16.gmra.mrb[20].mxu1 %v9965_v53  ;;  %v10085_v53 = vld [vmem:[%s13677_s0 + $0x718] ss:$36 sps:$4 sm:$0xff]  }
 0x26b   :  { %4344 = vmatprep.mubr.bf16.mxu0 %v9966_v54  ;;  %6109 = vmatprep.mubr.bf16.mxu1 %v9966_v54  ;;  %v10086_v54 = vld [vmem:[%s13677_s0 + $0x764] ss:$36 sps:$4 sm:$0xff]  }
 0x26c   :  { %4626 = vmatpush1.bf16.msra.mxu0 %v10053_v55  ;;  %6391 = vmatpush1.bf16.msra.mxu1 %v10056_v56  ;;  %v10088_v55 = vld [vmem:[%s13677_s0 + $0x760] ss:$36 sps:$4 sm:$0xff]   ;;  %v10095_v56 = vld [vmem:[%s13677_s0 + $0x7ac] ss:$36 sps:$4 sm:$0xff]  }
 0x26d   :  { %4627 = vmatprep.subr.bf16.mxu0 %v10067_v60  ;;  %6392 = vmatprep.subr.bf16.mxu1 %v10070_v62  ;;  %v10107_v60 = vld [vmem:[%s13677_s0 + $0x83c] ss:$36 sps:$4 sm:$0xff]   ;;  %v10110_v62 = vld [vmem:[%s13677_s0 + $0x884] ss:$36 sps:$4 sm:$0xff]  }
 0x270   :  { %4628 = vmatpush1.bf16.msra.mxu0 %v10065_v59  ;;  %6393 = vmatpush1.bf16.msra.mxu1 %v10068_v61  ;;  %v10100_v59 = vld [vmem:[%s13677_s0 + $0x7f0] ss:$36 sps:$4 sm:$0xff]   ;;  %v10109_v61 = vld [vmem:[%s13677_s0 + $0x838] ss:$36 sps:$4 sm:$0xff]  }
 0x271   :  { %4629 = vmatprep.subr.bf16.mxu0 %v10079_v4  ;;  %6394 = vmatprep.subr.bf16.mxu1 %v10082_v6  ;;  %v10125_v4 = vld [vmem:[%s13674_s1 + $0x800] ss:$16 sps:$4 sm:$0xff]   ;;  %v10131_v6 = vld [vmem:[%s13677_s0 + $0x64] ss:$36 sps:$4 sm:$0xff]  }
 0x272   :  { %4345 = vmatmul.mubr.bf16.gmra.mrb[24].mxu0 %v9968_v57  ;;  %6110 = vmatmul.mubr.bf16.gmra.mrb[24].mxu1 %v9968_v57  ;;  %v10097_v57 = vld [vmem:[%s13677_s0 + $0x7a8] ss:$36 sps:$4 sm:$0xff]  }
 0x273   :  { %4354 = vmatprep.mubr.bf16.mxu0 %v9975_v58  ;;  %6119 = vmatprep.mubr.bf16.mxu1 %v9975_v58  ;;  %v10098_v58 = vld [vmem:[%s13677_s0 + $0x7f4] ss:$36 sps:$4 sm:$0xff]  }
 0x274   :  { %4630 = vmatpush1.bf16.msra.mxu0 %v10077_v3  ;;  %6395 = vmatpush1.bf16.msra.mxu1 %v10080_v5  ;;  %v10122_v3 = vld [vmem:[%s13677_s0 + $0x18] ss:$36 sps:$4 sm:$0xff]  }
 0x275   :  { %4631 = vmatprep.subr.bf16.mxu0 %v10091_v12  ;;  %6396 = vmatprep.subr.bf16.mxu1 %v10094_v14  ;;  %v10128_v5 = vld [vmem:[%s13674_s1 + $0x808] ss:$16 sps:$4 sm:$0xff]   ;;  %v10166_v12 = vld [vmem:[%s13674_s1 + $0x84c] ss:$16 sps:$4 sm:$0xff]  }
 0x276   :  { %v10134_v14 = vld [vmem:[%s13677_s0 + $0xac] ss:$36 sps:$4 sm:$0xff]  }
 0x278   :  { %4632 = vmatpush1.bf16.msra.mxu0 %v10089_v11  ;;  %6397 = vmatpush1.bf16.msra.mxu1 %v10092_v13  ;;  %v10163_v11 = vld [vmem:[%s13674_s1 + $0x844] ss:$16 sps:$4 sm:$0xff]  }
 0x279   :  { %4633 = vmatprep.subr.bf16.mxu0 %v10103_v20  ;;  %6398 = vmatprep.subr.bf16.mxu1 %v10106_v22  ;;  %v10133_v13 = vld [vmem:[%s13677_s0 + $0x60] ss:$36 sps:$4 sm:$0xff]   ;;  %v10182_v20 = vld [vmem:[%s13674_s1 + $0x868] ss:$16 sps:$4 sm:$0xff]   ;;  %v10202_v22 = vld [vmem:[%s13674_s1 + $0x88c] ss:$16 sps:$4 sm:$0xff]  }
 0x27a   :  { %4355 = vmatmul.mubr.bf16.gmra.mrb[28].mxu0 %v9977_v63  ;;  %6120 = vmatmul.mubr.bf16.gmra.mrb[28].mxu1 %v9977_v63  ;;  %v10112_v63 = vld [vmem:[%s13677_s0 + $0x880] ss:$36 sps:$4 sm:$0xff]  }
 0x27b   :  { %4364 = vmatprep.mubr.bf16.mxu0 %v9978_v0  ;;  %6129 = vmatprep.mubr.bf16.mxu1 %v9978_v0  ;;  %v10119_v0 = vld [vmem:[%s13677_s0 + $0x8cc] ss:$36 sps:$4 sm:$0xff]  }
 0x27c   :  { %4634 = vmatpush1.bf16.msra.mxu0 %v10101_v19  ;;  %6399 = vmatpush1.bf16.msra.mxu1 %v10104_v21  ;;  %v10179_v19 = vld [vmem:[%s13674_s1 + $0x860] ss:$16 sps:$4 sm:$0xff]   ;;  %v10199_v21 = vld [vmem:[%s13674_s1 + $0x884] ss:$16 sps:$4 sm:$0xff]  }
 0x27d   :  { %4635 = vmatprep.subr.bf16.mxu0 %v10115_v28  ;;  %6400 = vmatprep.subr.bf16.mxu1 %v10118_v30  ;;  %v10140_v28 = vld [vmem:[%s13677_s0 + $0x13c] ss:$36 sps:$4 sm:$0xff]   ;;  %v10149_v30 = vld [vmem:[%s13677_s0 + $0x184] ss:$36 sps:$4 sm:$0xff]  }
 0x280   :  { %4636 = vmatpush1.bf16.msra.mxu0 %v10113_v27  ;;  %6401 = vmatpush1.bf16.msra.mxu1 %v10116_v29  ;;  %v10139_v27 = vld [vmem:[%s13677_s0 + $0xf0] ss:$36 sps:$4 sm:$0xff]   ;;  %v10142_v29 = vld [vmem:[%s13677_s0 + $0x138] ss:$36 sps:$4 sm:$0xff]  }
 0x281   :  { %4958 = vmatprep.subr.bf16.mxu0 %v10127_v35  ;;  %6723 = vmatprep.subr.bf16.mxu1 %v10130_v36  ;;  %v10151_v35 = vld [vmem:[%s13677_s0 + $0x180] ss:$36 sps:$4 sm:$0xff]   ;;  %v10152_v36 = vld [vmem:[%s13677_s0 + $0x1cc] ss:$36 sps:$4 sm:$0xff]  }
 0x282   :  { %4365 = vmatmul.mubr.bf16.gmra.mrb[32].mxu0 %v9980_v1  ;;  %6130 = vmatmul.mubr.bf16.gmra.mrb[32].mxu1 %v9980_v1  ;;  %v10121_v1 = vld [vmem:[%s13677_s0 + $0x8c8] ss:$36 sps:$4 sm:$0xff]  }
 0x283   :  { %4374 = vmatprep.mubr.bf16.mxu0 %v9987_v2  ;;  %6139 = vmatprep.mubr.bf16.mxu1 %v9987_v2  ;;  %v10124_v2 = vld [vmem:[%s13677_s0 + $0x1c] ss:$36 sps:$4 sm:$0xff]  }
 0x28a   :  { %4375 = vmatmul.mubr.bf16.gmra.mrb[36].mxu0 %v9989_v7  ;;  %6140 = vmatmul.mubr.bf16.gmra.mrb[36].mxu1 %v9989_v7  ;;  %v10145_v7 = vld [vmem:[%s13674_s1 + $0x824] ss:$16 sps:$4 sm:$0xff]  }
 0x28b   :  { %4384 = vmatprep.mubr.bf16.mxu0 %v9990_v8  ;;  %6149 = vmatprep.mubr.bf16.mxu1 %v9990_v8  ;;  %v10148_v8 = vld [vmem:[%s13674_s1 + $0x82c] ss:$16 sps:$4 sm:$0xff]  }
 0x292   :  { %4385 = vmatmul.mubr.bf16.gmra.mrb[40].mxu0 %v9992_v9  ;;  %6150 = vmatmul.mubr.bf16.gmra.mrb[40].mxu1 %v9992_v9  ;;  %v10143_v9 = vld [vmem:[%s13674_s1 + $0x820] ss:$16 sps:$4 sm:$0xff]  }
 0x293   :  { %4394 = vmatprep.mubr.bf16.mxu0 %v9999_v10  ;;  %6159 = vmatprep.mubr.bf16.mxu1 %v9999_v10  ;;  %v10146_v10 = vld [vmem:[%s13674_s1 + $0x828] ss:$16 sps:$4 sm:$0xff]  }
 0x29a   :  { %4395 = vmatmul.mubr.bf16.gmra.mrb[44].mxu0 %v10001_v15  ;;  %6160 = vmatmul.mubr.bf16.gmra.mrb[44].mxu1 %v10001_v15  ;;  %v10161_v15 = vld [vmem:[%s13674_s1 + $0x840] ss:$16 sps:$4 sm:$0xff]  }
 0x29b   :  { %4404 = vmatprep.mubr.bf16.mxu0 %v10002_v16  ;;  %6169 = vmatprep.mubr.bf16.mxu1 %v10002_v16  ;;  %v10164_v16 = vld [vmem:[%s13674_s1 + $0x848] ss:$16 sps:$4 sm:$0xff]  }
 0x2a2   :  { %4405 = vmatmul.mubr.bf16.gmra.mrb[48].mxu0 %v10004_v17  ;;  %6170 = vmatmul.mubr.bf16.gmra.mrb[48].mxu1 %v10004_v17  ;;  %v10181_v17 = vld [vmem:[%s13674_s1 + $0x864] ss:$16 sps:$4 sm:$0xff]  }
 0x2a3   :  { %4414 = vmatprep.mubr.bf16.mxu0 %v10011_v18  ;;  %6179 = vmatprep.mubr.bf16.mxu1 %v10011_v18  ;;  %v10184_v18 = vld [vmem:[%s13674_s1 + $0x86c] ss:$16 sps:$4 sm:$0xff]  }
 0x2aa   :  { %4415 = vmatmul.mubr.bf16.gmra.mrb[52].mxu0 %v10013_v23  ;;  %6180 = vmatmul.mubr.bf16.gmra.mrb[52].mxu1 %v10013_v23  ;;  %v10136_v23 = vld [vmem:[%s13677_s0 + $0xa8] ss:$36 sps:$4 sm:$0xff]  }
 0x2ab   :  { %4424 = vmatprep.mubr.bf16.mxu0 %v10014_v24  ;;  %6189 = vmatprep.mubr.bf16.mxu1 %v10014_v24  ;;  %v10137_v24 = vld [vmem:[%s13677_s0 + $0xf4] ss:$36 sps:$4 sm:$0xff]  }
 0x2b2   :  { %4425 = vmatmul.mubr.bf16.gmra.mrb[56].mxu0 %v10016_v25  ;;  %6190 = vmatmul.mubr.bf16.gmra.mrb[56].mxu1 %v10016_v25  ;;  %v10197_v25 = vld [vmem:[%s13674_s1 + $0x880] ss:$16 sps:$4 sm:$0xff]  }
 0x2b3   :  { %4434 = vmatprep.mubr.bf16.mxu0 %v10023_v26  ;;  %6199 = vmatprep.mubr.bf16.mxu1 %v10023_v26  ;;  %v10200_v26 = vld [vmem:[%s13674_s1 + $0x888] ss:$16 sps:$4 sm:$0xff]  }
 0x2ba   :  { %4435 = vmatmul.mubr.bf16.gmra.mrb[60].mxu0 %v10025_v31  ;;  %6200 = vmatmul.mubr.bf16.gmra.mrb[60].mxu1 %v10025_v31  ;;  %v10215_v31 = vld [vmem:[%s13674_s1 + $0x8a0] ss:$16 sps:$4 sm:$0xff]  }
 0x2bb   :  { %4444 = vmatprep.mubr.bf16.mxu0 %v10026_v32  ;;  %6209 = vmatprep.mubr.bf16.mxu1 %v10026_v32  ;;  %v10217_v32 = vld [vmem:[%s13674_s1 + $0x8a4] ss:$16 sps:$4 sm:$0xff]  }
 0x2c2   :  { %4445 = vmatmul.mubr.bf16.gmra.mrb[64].mxu0 %v10028_v33  ;;  %6210 = vmatmul.mubr.bf16.gmra.mrb[64].mxu1 %v10028_v33  ;;  %v10218_v33 = vld [vmem:[%s13674_s1 + $0x8a8] ss:$16 sps:$4 sm:$0xff]  }
 0x2c3   :  { %4454 = vmatprep.mubr.bf16.mxu0 %v10035_v34  ;;  %6219 = vmatprep.mubr.bf16.mxu1 %v10035_v34  ;;  %v10220_v34 = vld [vmem:[%s13674_s1 + $0x8ac] ss:$16 sps:$4 sm:$0xff]  }
 0x2ca   :  { %4455 = vmatmul.mubr.bf16.gmra.mrb[68].mxu0 %v10037_v37  ;;  %6220 = vmatmul.mubr.bf16.gmra.mrb[68].mxu1 %v10037_v37  ;;  %v10154_v37 = vld [vmem:[%s13677_s0 + $0x1c8] ss:$36 sps:$4 sm:$0xff]  }
 0x2cb   :  { %4464 = vmatprep.mubr.bf16.mxu0 %v10038_v38  ;;  %6229 = vmatprep.mubr.bf16.mxu1 %v10038_v38  ;;  %v10155_v38 = vld [vmem:[%s13677_s0 + $0x214] ss:$36 sps:$4 sm:$0xff]  }
 0x2d2   :  { %4465 = vmatmul.mubr.bf16.gmra.mrb[72].mxu0 %v10040_v39  ;;  %6230 = vmatmul.mubr.bf16.gmra.mrb[72].mxu1 %v10040_v39  ;;  %v10157_v39 = vld [vmem:[%s13677_s0 + $0x210] ss:$36 sps:$4 sm:$0xff]  }
 0x2d3   :  { %4474 = vmatprep.mubr.bf16.mxu0 %v10047_v40  ;;  %6239 = vmatprep.mubr.bf16.mxu1 %v10047_v40  ;;  %v10158_v40 = vld [vmem:[%s13677_s0 + $0x25c] ss:$36 sps:$4 sm:$0xff]  }
 0x2da   :  { %4475 = vmatmul.mubr.bf16.gmra.mrb[76].mxu0 %v10049_v41  ;;  %6240 = vmatmul.mubr.bf16.gmra.mrb[76].mxu1 %v10049_v41  ;;  %v10160_v41 = vld [vmem:[%s13677_s0 + $0x258] ss:$36 sps:$4 sm:$0xff]  }
 0x2db   :  { %4484 = vmatprep.mubr.bf16.mxu0 %v10050_v42  ;;  %6249 = vmatprep.mubr.bf16.mxu1 %v10050_v42  ;;  %v10167_v42 = vld [vmem:[%s13677_s0 + $0x2a4] ss:$36 sps:$4 sm:$0xff]  }
 0x2e2   :  { %4485 = vmatmul.mubr.bf16.gmra.mrb[80].mxu0 %v10052_v43  ;;  %6250 = vmatmul.mubr.bf16.gmra.mrb[80].mxu1 %v10052_v43  ;;  %v10233_v43 = vld [vmem:[%s13674_s1 + $0x8c0] ss:$16 sps:$4 sm:$0xff]  }
 0x2e3   :  { %4494 = vmatprep.mubr.bf16.mxu0 %v10059_v44  ;;  %6259 = vmatprep.mubr.bf16.mxu1 %v10059_v44  ;;  %v10235_v44 = vld [vmem:[%s13674_s1 + $0x8c4] ss:$16 sps:$4 sm:$0xff]  }
 0x2ea   :  { %4495 = vmatmul.mubr.bf16.gmra.mrb[84].mxu0 %v10061_v45  ;;  %6260 = vmatmul.mubr.bf16.gmra.mrb[84].mxu1 %v10061_v45  ;;  %v10236_v45 = vld [vmem:[%s13674_s1 + $0x8c8] ss:$16 sps:$4 sm:$0xff]  }
 0x2eb   :  { %4504 = vmatprep.mubr.bf16.mxu0 %v10062_v46  ;;  %6269 = vmatprep.mubr.bf16.mxu1 %v10062_v46  ;;  %v10238_v46 = vld [vmem:[%s13674_s1 + $0x8cc] ss:$16 sps:$4 sm:$0xff]  }
 0x2f2   :  { %4505 = vmatmul.mubr.bf16.gmra.mrb[88].mxu0 %v10064_v47  ;;  %6270 = vmatmul.mubr.bf16.gmra.mrb[88].mxu1 %v10064_v47  ;;  %v10169_v47 = vld [vmem:[%s13677_s0 + $0x2a0] ss:$36 sps:$4 sm:$0xff]  }
 0x2f3   :  { %4514 = vmatprep.mubr.bf16.mxu0 %v10071_v48  ;;  %6279 = vmatprep.mubr.bf16.mxu1 %v10071_v48  ;;  %v10170_v48 = vld [vmem:[%s13677_s0 + $0x2ec] ss:$36 sps:$4 sm:$0xff]  }
 0x2fa   :  { %4515 = vmatmul.mubr.bf16.gmra.mrb[92].mxu0 %v10073_v49  ;;  %6280 = vmatmul.mubr.bf16.gmra.mrb[92].mxu1 %v10073_v49  ;;  %v10172_v49 = vld [vmem:[%s13677_s0 + $0x2e8] ss:$36 sps:$4 sm:$0xff]  }
 0x2fb   :  { %4524 = vmatprep.mubr.bf16.mxu0 %v10074_v50  ;;  %6289 = vmatprep.mubr.bf16.mxu1 %v10074_v50  ;;  %v10173_v50 = vld [vmem:[%s13677_s0 + $0x334] ss:$36 sps:$4 sm:$0xff]  }
 0x302   :  { %4525 = vmatmul.mubr.bf16.gmra.mrb[96].mxu0 %v10076_v51  ;;  %6290 = vmatmul.mubr.bf16.gmra.mrb[96].mxu1 %v10076_v51  ;;  %v10175_v51 = vld [vmem:[%s13677_s0 + $0x330] ss:$36 sps:$4 sm:$0xff]  }
 0x303   :  { %4534 = vmatprep.mubr.bf16.mxu0 %v10083_v52  ;;  %6299 = vmatprep.mubr.bf16.mxu1 %v10083_v52  ;;  %v10176_v52 = vld [vmem:[%s13677_s0 + $0x37c] ss:$36 sps:$4 sm:$0xff]  }
 0x30a   :  { %4535 = vmatmul.mubr.bf16.gmra.mrb[100].mxu0 %v10085_v53  ;;  %6300 = vmatmul.mubr.bf16.gmra.mrb[100].mxu1 %v10085_v53  ;;  %v10178_v53 = vld [vmem:[%s13677_s0 + $0x378] ss:$36 sps:$4 sm:$0xff]  }
 0x30b   :  { %4544 = vmatprep.mubr.bf16.mxu0 %v10086_v54  ;;  %6309 = vmatprep.mubr.bf16.mxu1 %v10086_v54  ;;  %v10185_v54 = vld [vmem:[%s13677_s0 + $0x3c4] ss:$36 sps:$4 sm:$0xff]  }
 0x312   :  { %4545 = vmatmul.mubr.bf16.gmra.mrb[104].mxu0 %v10088_v55  ;;  %6310 = vmatmul.mubr.bf16.gmra.mrb[104].mxu1 %v10088_v55  ;;  %v10251_v55 = vld [vmem:[%s13674_s1 + $0x8e0] ss:$16 sps:$4 sm:$0xff]  }
 0x313   :  { %4554 = vmatprep.mubr.bf16.mxu0 %v10095_v56  ;;  %6319 = vmatprep.mubr.bf16.mxu1 %v10095_v56  ;;  %v10253_v56 = vld [vmem:[%s13674_s1 + $0x8e4] ss:$16 sps:$4 sm:$0xff]  }
 0x31a   :  { %4555 = vmatmul.mubr.bf16.gmra.mrb[108].mxu0 %v10097_v57  ;;  %6320 = vmatmul.mubr.bf16.gmra.mrb[108].mxu1 %v10097_v57  ;;  %v10254_v57 = vld [vmem:[%s13674_s1 + $0x8e8] ss:$16 sps:$4 sm:$0xff]  }
 0x31b   :  { %4564 = vmatprep.mubr.bf16.mxu0 %v10098_v58  ;;  %6329 = vmatprep.mubr.bf16.mxu1 %v10098_v58  ;;  %v10256_v58 = vld [vmem:[%s13674_s1 + $0x8ec] ss:$16 sps:$4 sm:$0xff]  }
 0x322   :  { %4565 = vmatmul.mubr.bf16.gmra.mrb[112].mxu0 %v10100_v59  ;;  %6330 = vmatmul.mubr.bf16.gmra.mrb[112].mxu1 %v10100_v59  ;;  %v10187_v59 = vld [vmem:[%s13677_s0 + $0x3c0] ss:$36 sps:$4 sm:$0xff]  }
 0x323   :  { %4574 = vmatprep.mubr.bf16.mxu0 %v10107_v60  ;;  %6339 = vmatprep.mubr.bf16.mxu1 %v10107_v60  ;;  %v10188_v60 = vld [vmem:[%s13677_s0 + $0x40c] ss:$36 sps:$4 sm:$0xff]  }
 0x32a   :  { %4575 = vmatmul.mubr.bf16.gmra.mrb[116].mxu0 %v10109_v61  ;;  %6340 = vmatmul.mubr.bf16.gmra.mrb[116].mxu1 %v10109_v61  ;;  %v10190_v61 = vld [vmem:[%s13677_s0 + $0x408] ss:$36 sps:$4 sm:$0xff]  }
 0x32b   :  { %4584 = vmatprep.mubr.bf16.mxu0 %v10110_v62  ;;  %6349 = vmatprep.mubr.bf16.mxu1 %v10110_v62  ;;  %v10191_v62 = vld [vmem:[%s13677_s0 + $0x454] ss:$36 sps:$4 sm:$0xff]  }
 0x332   :  { %4585 = vmatmul.mubr.bf16.gmra.mrb[120].mxu0 %v10112_v63  ;;  %6350 = vmatmul.mubr.bf16.gmra.mrb[120].mxu1 %v10112_v63  ;;  %v10193_v63 = vld [vmem:[%s13677_s0 + $0x450] ss:$36 sps:$4 sm:$0xff]  }
 0x333   :  { %4594 = vmatprep.mubr.bf16.mxu0 %v10119_v0  ;;  %6359 = vmatprep.mubr.bf16.mxu1 %v10119_v0  ;;  %v10194_v0 = vld [vmem:[%s13677_s0 + $0x49c] ss:$36 sps:$4 sm:$0xff]  }
 0x33a   :  { %4595 = vmatmul.mubr.bf16.gmra.mrb[124].mxu0 %v10121_v1  ;;  %6360 = vmatmul.mubr.bf16.gmra.mrb[124].mxu1 %v10121_v1  ;;  %v10196_v1 = vld [vmem:[%s13677_s0 + $0x498] ss:$36 sps:$4 sm:$0xff]  }
 0x33b   :  { %4637 = vmatprep.mubr.bf16.mxu0 %v10124_v2  ;;  %6402 = vmatprep.mubr.bf16.mxu1 %v10124_v2  ;;  %v10203_v2 = vld [vmem:[%s13677_s0 + $0x4e4] ss:$36 sps:$4 sm:$0xff]  }
 0x342   :  { %4638 = vmatmul.mubr.bf16.vlgmr.msra.gmra.mrb[0].mxu0 %v10122_v3  ;;  %6403 = vmatmul.mubr.bf16.vlgmr.msra.gmra.mrb[0].mxu1 %v10122_v3  ;;  %v10205_v3 = vld [vmem:[%s13677_s0 + $0x4e0] ss:$36 sps:$4 sm:$0xff]  }
 0x343   :  { %4959 = vmatpush1.bf16.msra.mxu0 %v10125_v4  ;;  %6724 = vmatpush1.bf16.msra.mxu1 %v10128_v5  ;;  %v10206_v4 = vld [vmem:[%s13677_s0 + $0x52c] ss:$36 sps:$4 sm:$0xff]  }
 0x344   :  { %4647 = vmatprep.mubr.bf16.mxu0 %v10131_v6  ;;  %6412 = vmatprep.mubr.bf16.mxu1 %v10131_v6  ;;  %v10208_v5 = vld [vmem:[%s13677_s0 + $0x528] ss:$36 sps:$4 sm:$0xff]   ;;  %v10209_v6 = vld [vmem:[%s13677_s0 + $0x574] ss:$36 sps:$4 sm:$0xff]  }
 0x345   :  { %4960 = vmatprep.subr.bf16.mxu0 %v10145_v7  ;;  %6725 = vmatprep.subr.bf16.mxu1 %v10148_v8  ;;  %v10211_v7 = vld [vmem:[%s13677_s0 + $0x570] ss:$36 sps:$4 sm:$0xff]   ;;  %v10212_v8 = vld [vmem:[%s13677_s0 + $0x5bc] ss:$36 sps:$4 sm:$0xff]  }
 0x347   :  { %4961 = vmatpush1.bf16.msra.mxu0 %v10143_v9  ;;  %6726 = vmatpush1.bf16.msra.mxu1 %v10146_v10  ;;  %v10214_v9 = vld [vmem:[%s13677_s0 + $0x5b8] ss:$36 sps:$4 sm:$0xff]   ;;  %v10221_v10 = vld [vmem:[%s13677_s0 + $0x604] ss:$36 sps:$4 sm:$0xff]  }
 0x348   :  { %4962 = vmatprep.subr.bf16.mxu0 %v10163_v11  ;;  %6727 = vmatprep.subr.bf16.mxu1 %v10166_v12  ;;  %v10223_v11 = vld [vmem:[%s13677_s0 + $0x600] ss:$36 sps:$4 sm:$0xff]   ;;  %v10224_v12 = vld [vmem:[%s13677_s0 + $0x64c] ss:$36 sps:$4 sm:$0xff]  }
 0x34a   :  { %4648 = vmatmul.mubr.bf16.gmra.mrb[4].mxu0 %v10133_v13  ;;  %6413 = vmatmul.mubr.bf16.gmra.mrb[4].mxu1 %v10133_v13  ;;  %v10226_v13 = vld [vmem:[%s13677_s0 + $0x648] ss:$36 sps:$4 sm:$0xff]  }
 0x34b   :  { %4657 = vmatprep.mubr.bf16.mxu0 %v10134_v14  ;;  %6422 = vmatprep.mubr.bf16.mxu1 %v10134_v14  ;;  %v10227_v14 = vld [vmem:[%s13677_s0 + $0x694] ss:$36 sps:$4 sm:$0xff]  }
 0x34c   :  { %4963 = vmatpush1.bf16.msra.mxu0 %v10161_v15  ;;  %6728 = vmatpush1.bf16.msra.mxu1 %v10164_v16  ;;  %v10229_v15 = vld [vmem:[%s13677_s0 + $0x690] ss:$36 sps:$4 sm:$0xff]   ;;  %v10230_v16 = vld [vmem:[%s13677_s0 + $0x6dc] ss:$36 sps:$4 sm:$0xff]  }
 0x34d   :  { %4964 = vmatprep.subr.bf16.mxu0 %v10181_v17  ;;  %6729 = vmatprep.subr.bf16.mxu1 %v10184_v18  ;;  %v10232_v17 = vld [vmem:[%s13677_s0 + $0x6d8] ss:$36 sps:$4 sm:$0xff]   ;;  %v10239_v18 = vld [vmem:[%s13677_s0 + $0x724] ss:$36 sps:$4 sm:$0xff]  }
 0x350   :  { %4965 = vmatpush1.bf16.msra.mxu0 %v10179_v19  ;;  %6730 = vmatpush1.bf16.msra.mxu1 %v10182_v20  ;;  %v10241_v19 = vld [vmem:[%s13677_s0 + $0x720] ss:$36 sps:$4 sm:$0xff]   ;;  %v10242_v20 = vld [vmem:[%s13677_s0 + $0x76c] ss:$36 sps:$4 sm:$0xff]  }
 0x351   :  { %4966 = vmatprep.subr.bf16.mxu0 %v10199_v21  ;;  %6731 = vmatprep.subr.bf16.mxu1 %v10202_v22  ;;  %v10244_v21 = vld [vmem:[%s13677_s0 + $0x768] ss:$36 sps:$4 sm:$0xff]   ;;  %v10245_v22 = vld [vmem:[%s13677_s0 + $0x7b4] ss:$36 sps:$4 sm:$0xff]  }
 0x352   :  { %4658 = vmatmul.mubr.bf16.gmra.mrb[8].mxu0 %v10136_v23  ;;  %6423 = vmatmul.mubr.bf16.gmra.mrb[8].mxu1 %v10136_v23  ;;  %v10247_v23 = vld [vmem:[%s13677_s0 + $0x7b0] ss:$36 sps:$4 sm:$0xff]  }
 0x353   :  { %4667 = vmatprep.mubr.bf16.mxu0 %v10137_v24  ;;  %6432 = vmatprep.mubr.bf16.mxu1 %v10137_v24  ;;  %v10248_v24 = vld [vmem:[%s13677_s0 + $0x7fc] ss:$36 sps:$4 sm:$0xff]  }
 0x354   :  { %4967 = vmatpush1.bf16.msra.mxu0 %v10197_v25  ;;  %6732 = vmatpush1.bf16.msra.mxu1 %v10200_v26  ;;  %v10250_v25 = vld [vmem:[%s13677_s0 + $0x7f8] ss:$36 sps:$4 sm:$0xff]   ;;  %v10257_v26 = vld [vmem:[%s13677_s0 + $0x844] ss:$36 sps:$4 sm:$0xff]  }
 0x355   :  { %4968 = vmatprep.subr.bf16.mxu0 %v10217_v32  ;;  %6733 = vmatprep.subr.bf16.mxu1 %v10220_v34  ;;  %v10812_v32 = vmov 0   ;;  %v10267_v34 = vld [vmem:[%s13677_s0 + $0x68] ss:$36 sps:$4 sm:$0xff]  }
 0x358   :  { %4969 = vmatpush1.bf16.msra.mxu0 %v10215_v31  ;;  %6734 = vmatpush1.bf16.msra.mxu1 %v10218_v33  ;;  %v10265_v31 = vld [vmem:[%s13677_s0 + $0x8d0] ss:$36 sps:$4 sm:$0xff]   ;;  %v10266_v33 = vld [vmem:[%s13677_s0 + $0x20] ss:$36 sps:$4 sm:$0xff]  }
 0x359   :  { %4970 = vmatprep.subr.bf16.mxu0 %v10235_v44  ;;  %6735 = vmatprep.subr.bf16.mxu1 %v10238_v46  ;;  %v10277_v44 = vld [vmem:[%s13677_s0 + $0x338] ss:$36 sps:$4 sm:$0xff]   ;;  %v10279_v46 = vld [vmem:[%s13677_s0 + $0x3c8] ss:$36 sps:$4 sm:$0xff]  }
 0x35a   :  { %4668 = vmatmul.mubr.bf16.gmra.mrb[12].mxu0 %v10139_v27  ;;  %6433 = vmatmul.mubr.bf16.gmra.mrb[12].mxu1 %v10139_v27  ;;  %v10259_v27 = vld [vmem:[%s13677_s0 + $0x840] ss:$36 sps:$4 sm:$0xff]  }
 0x35b   :  { %4677 = vmatprep.mubr.bf16.mxu0 %v10140_v28  ;;  %6442 = vmatprep.mubr.bf16.mxu1 %v10140_v28  ;;  %v10260_v28 = vld [vmem:[%s13677_s0 + $0x88c] ss:$36 sps:$4 sm:$0xff]  }
 0x35c   :  { %4971 = vmatpush1.bf16.msra.mxu0 %v10233_v43  ;;  %6736 = vmatpush1.bf16.msra.mxu1 %v10236_v45  ;;  %v10276_v43 = vld [vmem:[%s13677_s0 + $0x2f0] ss:$36 sps:$4 sm:$0xff]   ;;  %v10278_v45 = vld [vmem:[%s13677_s0 + $0x380] ss:$36 sps:$4 sm:$0xff]  }
 0x35d   :  { %4972 = vmatprep.subr.bf16.mxu0 %v10253_v56  ;;  %6737 = vmatprep.subr.bf16.mxu1 %v10256_v58  ;;  %v10289_v56 = vld [vmem:[%s13677_s0 + $0x698] ss:$36 sps:$4 sm:$0xff]   ;;  %v10291_v58 = vld [vmem:[%s13677_s0 + $0x728] ss:$36 sps:$4 sm:$0xff]  }
 0x360   :  { %4973 = vmatpush1.bf16.msra.mxu0 %v10251_v55  ;;  %6738 = vmatpush1.bf16.msra.mxu1 %v10254_v57  ;;  %v10288_v55 = vld [vmem:[%s13677_s0 + $0x650] ss:$36 sps:$4 sm:$0xff]   ;;  %v10290_v57 = vld [vmem:[%s13677_s0 + $0x6e0] ss:$36 sps:$4 sm:$0xff]  }
 0x362   :  { %4678 = vmatmul.mubr.bf16.gmra.mrb[16].mxu0 %v10142_v29  ;;  %6443 = vmatmul.mubr.bf16.gmra.mrb[16].mxu1 %v10142_v29  ;;  %v10262_v29 = vld [vmem:[%s13677_s0 + $0x888] ss:$36 sps:$4 sm:$0xff]  }
 0x363   :  { %4687 = vmatprep.mubr.bf16.mxu0 %v10149_v30  ;;  %6452 = vmatprep.mubr.bf16.mxu1 %v10149_v30  ;;  %v10263_v30 = vld [vmem:[%s13677_s0 + $0x8d4] ss:$36 sps:$4 sm:$0xff]  }
 0x36a   :  { %4688 = vmatmul.mubr.bf16.gmra.mrb[20].mxu0 %v10151_v35  ;;  %6453 = vmatmul.mubr.bf16.gmra.mrb[20].mxu1 %v10151_v35  ;;  %v10268_v35 = vld [vmem:[%s13677_s0 + $0xb0] ss:$36 sps:$4 sm:$0xff]  }
 0x36b   :  { %4697 = vmatprep.mubr.bf16.mxu0 %v10152_v36  ;;  %6462 = vmatprep.mubr.bf16.mxu1 %v10152_v36  ;;  %v10269_v36 = vld [vmem:[%s13677_s0 + $0xf8] ss:$36 sps:$4 sm:$0xff]  }
 0x372   :  { %4698 = vmatmul.mubr.bf16.gmra.mrb[24].mxu0 %v10154_v37  ;;  %6463 = vmatmul.mubr.bf16.gmra.mrb[24].mxu1 %v10154_v37  ;;  %v10270_v37 = vld [vmem:[%s13677_s0 + $0x140] ss:$36 sps:$4 sm:$0xff]  }
 0x373   :  { %4707 = vmatprep.mubr.bf16.mxu0 %v10155_v38  ;;  %6472 = vmatprep.mubr.bf16.mxu1 %v10155_v38  ;;  %v10271_v38 = vld [vmem:[%s13677_s0 + $0x188] ss:$36 sps:$4 sm:$0xff]  }
 0x37a   :  { %4708 = vmatmul.mubr.bf16.gmra.mrb[28].mxu0 %v10157_v39  ;;  %6473 = vmatmul.mubr.bf16.gmra.mrb[28].mxu1 %v10157_v39  ;;  %v10272_v39 = vld [vmem:[%s13677_s0 + $0x1d0] ss:$36 sps:$4 sm:$0xff]  }
 0x37b   :  { %4717 = vmatprep.mubr.bf16.mxu0 %v10158_v40  ;;  %6482 = vmatprep.mubr.bf16.mxu1 %v10158_v40  ;;  %v10273_v40 = vld [vmem:[%s13677_s0 + $0x218] ss:$36 sps:$4 sm:$0xff]  }
 0x382   :  { %4718 = vmatmul.mubr.bf16.gmra.mrb[32].mxu0 %v10160_v41  ;;  %6483 = vmatmul.mubr.bf16.gmra.mrb[32].mxu1 %v10160_v41  ;;  %v10274_v41 = vld [vmem:[%s13677_s0 + $0x260] ss:$36 sps:$4 sm:$0xff]  }
 0x383   :  { %4727 = vmatprep.mubr.bf16.mxu0 %v10167_v42  ;;  %6492 = vmatprep.mubr.bf16.mxu1 %v10167_v42  ;;  %v10275_v42 = vld [vmem:[%s13677_s0 + $0x2a8] ss:$36 sps:$4 sm:$0xff]  }
 0x38a   :  { %4728 = vmatmul.mubr.bf16.gmra.mrb[36].mxu0 %v10169_v47  ;;  %6493 = vmatmul.mubr.bf16.gmra.mrb[36].mxu1 %v10169_v47  ;;  %v10280_v47 = vld [vmem:[%s13677_s0 + $0x410] ss:$36 sps:$4 sm:$0xff]  }
 0x38b   :  { %4737 = vmatprep.mubr.bf16.mxu0 %v10170_v48  ;;  %6502 = vmatprep.mubr.bf16.mxu1 %v10170_v48  ;;  %v10281_v48 = vld [vmem:[%s13677_s0 + $0x458] ss:$36 sps:$4 sm:$0xff]  }
 0x392   :  { %4738 = vmatmul.mubr.bf16.gmra.mrb[40].mxu0 %v10172_v49  ;;  %6503 = vmatmul.mubr.bf16.gmra.mrb[40].mxu1 %v10172_v49  ;;  %v10282_v49 = vld [vmem:[%s13677_s0 + $0x4a0] ss:$36 sps:$4 sm:$0xff]  }
 0x393   :  { %4747 = vmatprep.mubr.bf16.mxu0 %v10173_v50  ;;  %6512 = vmatprep.mubr.bf16.mxu1 %v10173_v50  ;;  %v10283_v50 = vld [vmem:[%s13677_s0 + $0x4e8] ss:$36 sps:$4 sm:$0xff]  }
 0x39a   :  { %4748 = vmatmul.mubr.bf16.gmra.mrb[44].mxu0 %v10175_v51  ;;  %6513 = vmatmul.mubr.bf16.gmra.mrb[44].mxu1 %v10175_v51  ;;  %v10284_v51 = vld [vmem:[%s13677_s0 + $0x530] ss:$36 sps:$4 sm:$0xff]  }
 0x39b   :  { %4757 = vmatprep.mubr.bf16.mxu0 %v10176_v52  ;;  %6522 = vmatprep.mubr.bf16.mxu1 %v10176_v52  ;;  %v10285_v52 = vld [vmem:[%s13677_s0 + $0x578] ss:$36 sps:$4 sm:$0xff]  }
 0x3a2   :  { %4758 = vmatmul.mubr.bf16.gmra.mrb[48].mxu0 %v10178_v53  ;;  %6523 = vmatmul.mubr.bf16.gmra.mrb[48].mxu1 %v10178_v53  ;;  %v10286_v53 = vld [vmem:[%s13677_s0 + $0x5c0] ss:$36 sps:$4 sm:$0xff]  }
 0x3a3   :  { %4767 = vmatprep.mubr.bf16.mxu0 %v10185_v54  ;;  %6532 = vmatprep.mubr.bf16.mxu1 %v10185_v54  ;;  %v10287_v54 = vld [vmem:[%s13677_s0 + $0x608] ss:$36 sps:$4 sm:$0xff]  }
 0x3aa   :  { %4768 = vmatmul.mubr.bf16.gmra.mrb[52].mxu0 %v10187_v59  ;;  %6533 = vmatmul.mubr.bf16.gmra.mrb[52].mxu1 %v10187_v59  ;;  %v10292_v59 = vld [vmem:[%s13677_s0 + $0x770] ss:$36 sps:$4 sm:$0xff]  }
 0x3ab   :  { %4777 = vmatprep.mubr.bf16.mxu0 %v10188_v60  ;;  %6542 = vmatprep.mubr.bf16.mxu1 %v10188_v60  ;;  %v12613_v60 = vld [vmem:[%s13678_s2] ss:$0 sm:$0xff] }
 0x3b2   :  { %4778 = vmatmul.mubr.bf16.gmra.mrb[56].mxu0 %v10190_v61  ;;  %6543 = vmatmul.mubr.bf16.gmra.mrb[56].mxu1 %v10190_v61 }
 0x3b3   :  { %4787 = vmatprep.mubr.bf16.mxu0 %v10191_v62  ;;  %6552 = vmatprep.mubr.bf16.mxu1 %v10191_v62 }
 0x3ba   :  { %4788 = vmatmul.mubr.bf16.gmra.mrb[60].mxu0 %v10193_v63  ;;  %6553 = vmatmul.mubr.bf16.gmra.mrb[60].mxu1 %v10193_v63 }
 0x3bb   :  { %4797 = vmatprep.mubr.bf16.mxu0 %v10194_v0  ;;  %6562 = vmatprep.mubr.bf16.mxu1 %v10194_v0 }
 0x3c2   :  { %4798 = vmatmul.mubr.bf16.gmra.mrb[64].mxu0 %v10196_v1  ;;  %6563 = vmatmul.mubr.bf16.gmra.mrb[64].mxu1 %v10196_v1 }
 0x3c3   :  { %4807 = vmatprep.mubr.bf16.mxu0 %v10203_v2  ;;  %6572 = vmatprep.mubr.bf16.mxu1 %v10203_v2 }
 0x3ca   :  { %4808 = vmatmul.mubr.bf16.gmra.mrb[68].mxu0 %v10205_v3  ;;  %6573 = vmatmul.mubr.bf16.gmra.mrb[68].mxu1 %v10205_v3  ;;  %v10293_v3 = vld [vmem:[%s13677_s0 + $0x7b8] ss:$36 sps:$4 sm:$0xff]  }
 0x3cb   :  { %4817 = vmatprep.mubr.bf16.mxu0 %v10206_v4  ;;  %6582 = vmatprep.mubr.bf16.mxu1 %v10206_v4 }
 0x3d2   :  { %4818 = vmatmul.mubr.bf16.gmra.mrb[72].mxu0 %v10208_v5  ;;  %6583 = vmatmul.mubr.bf16.gmra.mrb[72].mxu1 %v10208_v5 }
 0x3d3   :  { %4827 = vmatprep.mubr.bf16.mxu0 %v10209_v6  ;;  %6592 = vmatprep.mubr.bf16.mxu1 %v10209_v6 }
 0x3da   :  { %4828 = vmatmul.mubr.bf16.gmra.mrb[76].mxu0 %v10211_v7  ;;  %6593 = vmatmul.mubr.bf16.gmra.mrb[76].mxu1 %v10211_v7 }
 0x3db   :  { %4837 = vmatprep.mubr.bf16.mxu0 %v10212_v8  ;;  %6602 = vmatprep.mubr.bf16.mxu1 %v10212_v8 }
 0x3e2   :  { %4838 = vmatmul.mubr.bf16.gmra.mrb[80].mxu0 %v10214_v9  ;;  %6603 = vmatmul.mubr.bf16.gmra.mrb[80].mxu1 %v10214_v9 }
 0x3e3   :  { %4847 = vmatprep.mubr.bf16.mxu0 %v10221_v10  ;;  %6612 = vmatprep.mubr.bf16.mxu1 %v10221_v10 }
 0x3ea   :  { %4848 = vmatmul.mubr.bf16.gmra.mrb[84].mxu0 %v10223_v11  ;;  %6613 = vmatmul.mubr.bf16.gmra.mrb[84].mxu1 %v10223_v11 }
 0x3eb   :  { %4857 = vmatprep.mubr.bf16.mxu0 %v10224_v12  ;;  %6622 = vmatprep.mubr.bf16.mxu1 %v10224_v12 }
 0x3f2   :  { %4858 = vmatmul.mubr.bf16.gmra.mrb[88].mxu0 %v10226_v13  ;;  %6623 = vmatmul.mubr.bf16.gmra.mrb[88].mxu1 %v10226_v13 }
 0x3f3   :  { %4867 = vmatprep.mubr.bf16.mxu0 %v10227_v14  ;;  %6632 = vmatprep.mubr.bf16.mxu1 %v10227_v14 }
 0x3fa   :  { %4868 = vmatmul.mubr.bf16.gmra.mrb[92].mxu0 %v10229_v15  ;;  %6633 = vmatmul.mubr.bf16.gmra.mrb[92].mxu1 %v10229_v15 }
 0x3fb   :  { %4877 = vmatprep.mubr.bf16.mxu0 %v10230_v16  ;;  %6642 = vmatprep.mubr.bf16.mxu1 %v10230_v16 }
 0x402   :  { %4878 = vmatmul.mubr.bf16.gmra.mrb[96].mxu0 %v10232_v17  ;;  %6643 = vmatmul.mubr.bf16.gmra.mrb[96].mxu1 %v10232_v17 }
 0x403   :  { %4887 = vmatprep.mubr.bf16.mxu0 %v10239_v18  ;;  %6652 = vmatprep.mubr.bf16.mxu1 %v10239_v18 }
 0x40a   :  { %4888 = vmatmul.mubr.bf16.gmra.mrb[100].mxu0 %v10241_v19  ;;  %6653 = vmatmul.mubr.bf16.gmra.mrb[100].mxu1 %v10241_v19 }
 0x40b   :  { %4897 = vmatprep.mubr.bf16.mxu0 %v10242_v20  ;;  %6662 = vmatprep.mubr.bf16.mxu1 %v10242_v20  ;;  %v10294_v20 = vld [vmem:[%s13677_s0 + $0x800] ss:$36 sps:$4 sm:$0xff]  }
 0x412   :  { %4898 = vmatmul.mubr.bf16.gmra.mrb[104].mxu0 %v10244_v21  ;;  %6663 = vmatmul.mubr.bf16.gmra.mrb[104].mxu1 %v10244_v21 }
 0x413   :  { %4907 = vmatprep.mubr.bf16.mxu0 %v10245_v22  ;;  %6672 = vmatprep.mubr.bf16.mxu1 %v10245_v22 }
 0x41a   :  { %4908 = vmatmul.mubr.bf16.gmra.mrb[108].mxu0 %v10247_v23  ;;  %6673 = vmatmul.mubr.bf16.gmra.mrb[108].mxu1 %v10247_v23 }
 0x41b   :  { %4917 = vmatprep.mubr.bf16.mxu0 %v10248_v24  ;;  %6682 = vmatprep.mubr.bf16.mxu1 %v10248_v24 }
 0x422   :  { %4918 = vmatmul.mubr.bf16.gmra.mrb[112].mxu0 %v10250_v25  ;;  %6683 = vmatmul.mubr.bf16.gmra.mrb[112].mxu1 %v10250_v25 }
 0x423   :  { %4927 = vmatprep.mubr.bf16.mxu0 %v10257_v26  ;;  %6692 = vmatprep.mubr.bf16.mxu1 %v10257_v26 }
 0x42a   :  { %4928 = vmatmul.mubr.bf16.gmra.mrb[116].mxu0 %v10259_v27  ;;  %6693 = vmatmul.mubr.bf16.gmra.mrb[116].mxu1 %v10259_v27 }
 0x42b   :  { %4937 = vmatprep.mubr.bf16.mxu0 %v10260_v28  ;;  %6702 = vmatprep.mubr.bf16.mxu1 %v10260_v28 }
 0x432   :  { %4938 = vmatmul.mubr.bf16.gmra.mrb[120].mxu0 %v10262_v29  ;;  %6703 = vmatmul.mubr.bf16.gmra.mrb[120].mxu1 %v10262_v29 }
 0x433   :  { %4947 = vmatprep.mubr.bf16.mxu0 %v10263_v30  ;;  %6712 = vmatprep.mubr.bf16.mxu1 %v10263_v30 }
 0x43a   :  { %4948 = vmatmul.mubr.bf16.gmra.mrb[124].mxu0 %v10265_v31  ;;  %6713 = vmatmul.mubr.bf16.gmra.mrb[124].mxu1 %v10265_v31 }
 0x43b   :  { %4990 = vmatprep.mubr.bf16.mxu0 %v10812_v32  ;;  %6755 = vmatprep.mubr.bf16.mxu1 %v10812_v32 }
 0x442   :  { %4991 = vmatmul.mubr.bf16.vlgmr.msra.gmra.mrb[0].mxu0 %v10266_v33  ;;  %6756 = vmatmul.mubr.bf16.vlgmr.msra.gmra.mrb[0].mxu1 %v10266_v33 }
 0x443   :  { %5000 = vmatprep.mubr.bf16.mxu0 %v10812_v32  ;;  %6765 = vmatprep.mubr.bf16.mxu1 %v10812_v32 }
 0x44a   :  { %5001 = vmatmul.mubr.bf16.gmra.mrb[4].mxu0 %v10267_v34  ;;  %6766 = vmatmul.mubr.bf16.gmra.mrb[4].mxu1 %v10267_v34 }
 0x44b   :  { %5010 = vmatprep.mubr.bf16.mxu0 %v10812_v32  ;;  %6775 = vmatprep.mubr.bf16.mxu1 %v10812_v32 }
 0x452   :  { %5011 = vmatmul.mubr.bf16.gmra.mrb[8].mxu0 %v10268_v35  ;;  %6776 = vmatmul.mubr.bf16.gmra.mrb[8].mxu1 %v10268_v35 }
 0x453   :  { %5020 = vmatprep.mubr.bf16.mxu0 %v10812_v32  ;;  %6785 = vmatprep.mubr.bf16.mxu1 %v10812_v32 }
 0x45a   :  { %5021 = vmatmul.mubr.bf16.gmra.mrb[12].mxu0 %v10269_v36  ;;  %6786 = vmatmul.mubr.bf16.gmra.mrb[12].mxu1 %v10269_v36 }
 0x45b   :  { %5030 = vmatprep.mubr.bf16.mxu0 %v10812_v32  ;;  %6795 = vmatprep.mubr.bf16.mxu1 %v10812_v32 }
 0x462   :  { %5031 = vmatmul.mubr.bf16.gmra.mrb[16].mxu0 %v10270_v37  ;;  %6796 = vmatmul.mubr.bf16.gmra.mrb[16].mxu1 %v10270_v37 }
 0x463   :  { %5040 = vmatprep.mubr.bf16.mxu0 %v10812_v32  ;;  %6805 = vmatprep.mubr.bf16.mxu1 %v10812_v32 }
 0x46a   :  { %5041 = vmatmul.mubr.bf16.gmra.mrb[20].mxu0 %v10271_v38  ;;  %6806 = vmatmul.mubr.bf16.gmra.mrb[20].mxu1 %v10271_v38 }
 0x46b   :  { %5050 = vmatprep.mubr.bf16.mxu0 %v10812_v32  ;;  %6815 = vmatprep.mubr.bf16.mxu1 %v10812_v32 }
 0x472   :  { %5051 = vmatmul.mubr.bf16.gmra.mrb[24].mxu0 %v10272_v39  ;;  %6816 = vmatmul.mubr.bf16.gmra.mrb[24].mxu1 %v10272_v39 }
 0x473   :  { %5060 = vmatprep.mubr.bf16.mxu0 %v10812_v32  ;;  %6825 = vmatprep.mubr.bf16.mxu1 %v10812_v32 }
 0x47a   :  { %5061 = vmatmul.mubr.bf16.gmra.mrb[28].mxu0 %v10273_v40  ;;  %6826 = vmatmul.mubr.bf16.gmra.mrb[28].mxu1 %v10273_v40 }
 0x47b   :  { %5070 = vmatprep.mubr.bf16.mxu0 %v10812_v32  ;;  %6835 = vmatprep.mubr.bf16.mxu1 %v10812_v32 }
 0x482   :  { %5071 = vmatmul.mubr.bf16.gmra.mrb[32].mxu0 %v10274_v41  ;;  %6836 = vmatmul.mubr.bf16.gmra.mrb[32].mxu1 %v10274_v41 }
 0x483   :  { %5080 = vmatprep.mubr.bf16.mxu0 %v10812_v32  ;;  %6845 = vmatprep.mubr.bf16.mxu1 %v10812_v32 }
 0x48a   :  { %5081 = vmatmul.mubr.bf16.gmra.mrb[36].mxu0 %v10275_v42  ;;  %6846 = vmatmul.mubr.bf16.gmra.mrb[36].mxu1 %v10275_v42 }
 0x48b   :  { %5090 = vmatprep.mubr.bf16.mxu0 %v10812_v32  ;;  %6855 = vmatprep.mubr.bf16.mxu1 %v10812_v32 }
 0x492   :  { %5091 = vmatmul.mubr.bf16.gmra.mrb[40].mxu0 %v10276_v43  ;;  %6856 = vmatmul.mubr.bf16.gmra.mrb[40].mxu1 %v10276_v43  ;;  %v10295_v43 = vld [vmem:[%s13677_s0 + $0x848] ss:$36 sps:$4 sm:$0xff]  }
 0x493   :  { %5100 = vmatprep.mubr.bf16.mxu0 %v10812_v32  ;;  %6865 = vmatprep.mubr.bf16.mxu1 %v10812_v32 }
 0x49a   :  { %5101 = vmatmul.mubr.bf16.gmra.mrb[44].mxu0 %v10277_v44  ;;  %6866 = vmatmul.mubr.bf16.gmra.mrb[44].mxu1 %v10277_v44 }
 0x49b   :  { %5110 = vmatprep.mubr.bf16.mxu0 %v10812_v32  ;;  %6875 = vmatprep.mubr.bf16.mxu1 %v10812_v32 }
 0x4a2   :  { %5111 = vmatmul.mubr.bf16.gmra.mrb[48].mxu0 %v10278_v45  ;;  %6876 = vmatmul.mubr.bf16.gmra.mrb[48].mxu1 %v10278_v45 }
 0x4a3   :  { %5120 = vmatprep.mubr.bf16.mxu0 %v10812_v32  ;;  %6885 = vmatprep.mubr.bf16.mxu1 %v10812_v32 }
 0x4aa   :  { %5121 = vmatmul.mubr.bf16.gmra.mrb[52].mxu0 %v10279_v46  ;;  %6886 = vmatmul.mubr.bf16.gmra.mrb[52].mxu1 %v10279_v46 }
 0x4ab   :  { %5130 = vmatprep.mubr.bf16.mxu0 %v10812_v32  ;;  %6895 = vmatprep.mubr.bf16.mxu1 %v10812_v32 }
 0x4b2   :  { %5131 = vmatmul.mubr.bf16.gmra.mrb[56].mxu0 %v10280_v47  ;;  %6896 = vmatmul.mubr.bf16.gmra.mrb[56].mxu1 %v10280_v47 }
 0x4b3   :  { %5140 = vmatprep.mubr.bf16.mxu0 %v10812_v32  ;;  %6905 = vmatprep.mubr.bf16.mxu1 %v10812_v32 }
 0x4ba   :  { %5141 = vmatmul.mubr.bf16.gmra.mrb[60].mxu0 %v10281_v48  ;;  %6906 = vmatmul.mubr.bf16.gmra.mrb[60].mxu1 %v10281_v48 }
 0x4bb   :  { %5150 = vmatprep.mubr.bf16.mxu0 %v10812_v32  ;;  %6915 = vmatprep.mubr.bf16.mxu1 %v10812_v32 }
 0x4c2   :  { %5151 = vmatmul.mubr.bf16.gmra.mrb[64].mxu0 %v10282_v49  ;;  %6916 = vmatmul.mubr.bf16.gmra.mrb[64].mxu1 %v10282_v49 }
 0x4c3   :  { %5160 = vmatprep.mubr.bf16.mxu0 %v10812_v32  ;;  %6925 = vmatprep.mubr.bf16.mxu1 %v10812_v32 }
 0x4ca   :  { %5161 = vmatmul.mubr.bf16.gmra.mrb[68].mxu0 %v10283_v50  ;;  %6926 = vmatmul.mubr.bf16.gmra.mrb[68].mxu1 %v10283_v50 }
 0x4cb   :  { %5170 = vmatprep.mubr.bf16.mxu0 %v10812_v32  ;;  %6935 = vmatprep.mubr.bf16.mxu1 %v10812_v32 }
 0x4d2   :  { %5171 = vmatmul.mubr.bf16.gmra.mrb[72].mxu0 %v10284_v51  ;;  %6936 = vmatmul.mubr.bf16.gmra.mrb[72].mxu1 %v10284_v51 }
 0x4d3   :  { %5180 = vmatprep.mubr.bf16.mxu0 %v10812_v32  ;;  %6945 = vmatprep.mubr.bf16.mxu1 %v10812_v32 }
 0x4da   :  { %5181 = vmatmul.mubr.bf16.gmra.mrb[76].mxu0 %v10285_v52  ;;  %6946 = vmatmul.mubr.bf16.gmra.mrb[76].mxu1 %v10285_v52 }
 0x4db   :  { %5190 = vmatprep.mubr.bf16.mxu0 %v10812_v32  ;;  %6955 = vmatprep.mubr.bf16.mxu1 %v10812_v32 }
 0x4e2   :  { %5191 = vmatmul.mubr.bf16.gmra.mrb[80].mxu0 %v10286_v53  ;;  %6956 = vmatmul.mubr.bf16.gmra.mrb[80].mxu1 %v10286_v53 }
 0x4e3   :  { %5200 = vmatprep.mubr.bf16.mxu0 %v10812_v32  ;;  %6965 = vmatprep.mubr.bf16.mxu1 %v10812_v32 }
 0x4ea   :  { %5201 = vmatmul.mubr.bf16.gmra.mrb[84].mxu0 %v10287_v54  ;;  %6966 = vmatmul.mubr.bf16.gmra.mrb[84].mxu1 %v10287_v54 }
 0x4eb   :  { %5210 = vmatprep.mubr.bf16.mxu0 %v10812_v32  ;;  %6975 = vmatprep.mubr.bf16.mxu1 %v10812_v32 }
 0x4f2   :  { %5211 = vmatmul.mubr.bf16.gmra.mrb[88].mxu0 %v10288_v55  ;;  %6976 = vmatmul.mubr.bf16.gmra.mrb[88].mxu1 %v10288_v55 }
 0x4f3   :  { %5220 = vmatprep.mubr.bf16.mxu0 %v10812_v32  ;;  %6985 = vmatprep.mubr.bf16.mxu1 %v10812_v32 }
 0x4fa   :  { %5221 = vmatmul.mubr.bf16.gmra.mrb[92].mxu0 %v10289_v56  ;;  %6986 = vmatmul.mubr.bf16.gmra.mrb[92].mxu1 %v10289_v56 }
 0x4fb   :  { %5230 = vmatprep.mubr.bf16.mxu0 %v10812_v32  ;;  %6995 = vmatprep.mubr.bf16.mxu1 %v10812_v32 }
 0x502   :  { %5231 = vmatmul.mubr.bf16.gmra.mrb[96].mxu0 %v10290_v57  ;;  %6996 = vmatmul.mubr.bf16.gmra.mrb[96].mxu1 %v10290_v57 }
 0x503   :  { %5240 = vmatprep.mubr.bf16.mxu0 %v10812_v32  ;;  %7005 = vmatprep.mubr.bf16.mxu1 %v10812_v32 }
 0x50a   :  { %5241 = vmatmul.mubr.bf16.gmra.mrb[100].mxu0 %v10291_v58  ;;  %7006 = vmatmul.mubr.bf16.gmra.mrb[100].mxu1 %v10291_v58 }
 0x50b   :  { %5250 = vmatprep.mubr.bf16.mxu0 %v10812_v32  ;;  %7015 = vmatprep.mubr.bf16.mxu1 %v10812_v32 }
 0x512   :  { %5251 = vmatmul.mubr.bf16.gmra.mrb[104].mxu0 %v10292_v59  ;;  %7016 = vmatmul.mubr.bf16.gmra.mrb[104].mxu1 %v10292_v59 }
 0x513   :  { %5260 = vmatprep.mubr.bf16.mxu0 %v10812_v32  ;;  %7025 = vmatprep.mubr.bf16.mxu1 %v10812_v32 }
 0x515   :  { %v4992_v61 = vpop.f32.mrb[0].mxu0  ;;  %v6757_v62 = vpop.f32.mrb[0].mxu1 }
 0x516   :  { %v8169_v63 = vadd.f32 %v12613_v60, %v4992_v61  ;;  %v8297_v0 = vadd.f32 %v12613_v60, %v6757_v62  ;;  %v4994_v1 = vpop.f32.mrb[1].mxu0  ;;  %v6759_v2 = vpop.f32.mrb[1].mxu1 }
 0x517   :  { %v8170_v4 = vadd.f32 %v12613_v60, %v4994_v1  ;;  %v8298_v5 = vadd.f32 %v12613_v60, %v6759_v2  ;;  %v4996_v6 = vpop.f32.mrb[2].mxu0  ;;  %v6761_v7 = vpop.f32.mrb[2].mxu1 }
 0x518   :  { %10298 = vtanh.f32 %v8169_v63  ;;  %v8171_v8 = vadd.f32 %v12613_v60, %v4996_v6  ;;  %v4998_v9 = vpop.f32.mrb[3].mxu0  ;;  %v6763_v10 = vpop.f32.mrb[3].mxu1  ;;  %v8299_v11 = vadd.f32 %v12613_v60, %v6761_v7 }
 0x519   :  { %10300 = vtanh.f32 %v8297_v0  ;;  %v8172_v12 = vadd.f32 %v12613_v60, %v4998_v9  ;;  %v8300_v13 = vadd.f32 %v12613_v60, %v6763_v10 }
 0x51a   :  { %10302 = vtanh.f32 %v8170_v4  ;;  %5261 = vmatmul.mubr.bf16.gmra.mrb[108].mxu0 %v10293_v3  ;;  %7026 = vmatmul.mubr.bf16.gmra.mrb[108].mxu1 %v10293_v3 }
 0x51b   :  { %10304 = vtanh.f32 %v8298_v5  ;;  %5270 = vmatprep.mubr.bf16.mxu0 %v10812_v32  ;;  %7035 = vmatprep.mubr.bf16.mxu1 %v10812_v32  ;;  %v10296_v5 = vld [vmem:[%s13677_s0 + $0x890] ss:$36 sps:$4 sm:$0xff]  }
 0x51c   :  { %10306 = vtanh.f32 %v8171_v8 }
 0x51d   :  { %10308 = vtanh.f32 %v8299_v11  ;;  %v5002_v14 = vpop.f32.mrb[4].mxu0  ;;  %v6767_v15 = vpop.f32.mrb[4].mxu1 }
 0x51e   :  { %10310 = vtanh.f32 %v8172_v12  ;;  %v8173_v16 = vadd.f32 %v12613_v60, %v5002_v14  ;;  %v8301_v17 = vadd.f32 %v12613_v60, %v6767_v15  ;;  %v5004_v18 = vpop.f32.mrb[5].mxu0  ;;  %v6769_v19 = vpop.f32.mrb[5].mxu1 }
 0x51f   :  { %10312 = vtanh.f32 %v8300_v13  ;;  %v8174_v21 = vadd.f32 %v12613_v60, %v5004_v18  ;;  %v8302_v22 = vadd.f32 %v12613_v60, %v6769_v19  ;;  %v5006_v23 = vpop.f32.mrb[6].mxu0  ;;  %v6771_v24 = vpop.f32.mrb[6].mxu1 }
 0x520   :  { %10314 = vtanh.f32 %v8173_v16  ;;  %v8175_v25 = vadd.f32 %v12613_v60, %v5006_v23  ;;  %v5008_v26 = vpop.f32.mrb[7].mxu0  ;;  %v6773_v27 = vpop.f32.mrb[7].mxu1  ;;  %v8303_v28 = vadd.f32 %v12613_v60, %v6771_v24 }
 0x521   :  { %10316 = vtanh.f32 %v8301_v17  ;;  %v8176_v30 = vadd.f32 %v12613_v60, %v5008_v26  ;;  %v8304_v33 = vadd.f32 %v12613_v60, %v6773_v27 }
 0x522   :  { %v10299_v29 = vpop.eup %10298  ;;  %10318 = vtanh.f32 %v8174_v21  ;;  %5271 = vmatmul.mubr.bf16.gmra.mrb[112].mxu0 %v10294_v20  ;;  %7036 = vmatmul.mubr.bf16.gmra.mrb[112].mxu1 %v10294_v20 }
 0x523   :  { %v10301_v31 = vpop.eup %10300  ;;  %7332 = vst [vmem:[%s13679_s5] sm:$0xff] %v10299_v29  ;;  %10320 = vtanh.f32 %v8302_v22  ;;  %5280 = vmatprep.mubr.bf16.mxu0 %v10812_v32  ;;  %7045 = vmatprep.mubr.bf16.mxu1 %v10812_v32  ;;  %v10297_v29 = vld [vmem:[%s13677_s0 + $0x8d8] ss:$36 sps:$4 sm:$0xff]  }
 0x524   :  { %v10303_v34 = vpop.eup %10302  ;;  %7334 = vst [vmem:[%s13679_s5 + $0x10] sm:$0xff] %v10301_v31  ;;  %10322 = vtanh.f32 %v8175_v25 }
 0x525   :  { %v10305_v35 = vpop.eup %10304  ;;  %7333 = vst [vmem:[%s13679_s5 + $0x8] sm:$0xff] %v10303_v34  ;;  %10324 = vtanh.f32 %v8303_v28  ;;  %v5012_v36 = vpop.f32.mrb[8].mxu0 }
 0x526   :  { %v6777_v37 = vpop.f32.mrb[8].mxu1  ;;  %v10307_v38 = vpop.eup %10306  ;;  %7335 = vst [vmem:[%s13679_s5 + $0x18] sm:$0xff] %v10305_v35  ;;  %10326 = vtanh.f32 %v8176_v30  ;;  %v8177_v39 = vadd.f32 %v12613_v60, %v5012_v36 }
 0x527   :  { %v8305_v40 = vadd.f32 %v12613_v60, %v6777_v37  ;;  %v5014_v41 = vpop.f32.mrb[9].mxu0  ;;  %v6779_v42 = vpop.f32.mrb[9].mxu1  ;;  %7336 = vst [vmem:[%s13679_s5 + $0x20] sm:$0xff] %v10307_v38  ;;  %10328 = vtanh.f32 %v8304_v33 }
 0x528   :  { %v10309_v44 = vpop.eup %10308  ;;  %v8178_v45 = vadd.f32 %v12613_v60, %v5014_v41  ;;  %v8306_v46 = vadd.f32 %v12613_v60, %v6779_v42  ;;  %v5016_v47 = vpop.f32.mrb[10].mxu0  ;;  %10330 = vtanh.f32 %v8177_v39 }
 0x529   :  { %v6781_v48 = vpop.f32.mrb[10].mxu1  ;;  %v10311_v49 = vpop.eup %10310  ;;  %7338 = vst [vmem:[%s13679_s5 + $0x30] sm:$0xff] %v10309_v44  ;;  %v8179_v50 = vadd.f32 %v12613_v60, %v5016_v47  ;;  %10332 = vtanh.f32 %v8305_v40 }
 0x52a   :  { %v5018_v51 = vpop.f32.mrb[11].mxu0  ;;  %v6783_v52 = vpop.f32.mrb[11].mxu1  ;;  %7337 = vst [vmem:[%s13679_s5 + $0x28] sm:$0xff] %v10311_v49  ;;  %v8307_v54 = vadd.f32 %v12613_v60, %v6781_v48  ;;  %10334 = vtanh.f32 %v8178_v45  ;;  %5281 = vmatmul.mubr.bf16.gmra.mrb[116].mxu0 %v10295_v43  ;;  %7046 = vmatmul.mubr.bf16.gmra.mrb[116].mxu1 %v10295_v43 }
 0x52b   :  { %v10313_v53 = vpop.eup %10312  ;;  %v8180_v56 = vadd.f32 %v12613_v60, %v5018_v51  ;;  %10336 = vtanh.f32 %v8306_v46  ;;  %v8308_v58 = vadd.f32 %v12613_v60, %v6783_v52  ;;  %5290 = vmatprep.mubr.bf16.mxu0 %v10812_v32  ;;  %7055 = vmatprep.mubr.bf16.mxu1 %v10812_v32 }
 0x52c   :  { %v10315_v55 = vpop.eup %10314  ;;  %7339 = vst [vmem:[%s13679_s5 + $0x38] sm:$0xff] %v10313_v53  ;;  %10338 = vtanh.f32 %v8179_v50 }
 0x52d   :  { %v10317_v57 = vpop.eup %10316  ;;  %7340 = vst [vmem:[%s13679_s5 + $0x40] sm:$0xff] %v10315_v55  ;;  %10340 = vtanh.f32 %v8307_v54  ;;  %v5022_v62 = vpop.f32.mrb[12].mxu0 }
 0x52e   :  { %v10319_v59 = vpop.eup %10318  ;;  %7342 = vst [vmem:[%s13679_s5 + $0x50] sm:$0xff] %v10317_v57  ;;  %v6787_v63 = vpop.f32.mrb[12].mxu1  ;;  %10342 = vtanh.f32 %v8180_v56  ;;  %v8181_v1 = vadd.f32 %v12613_v60, %v5022_v62 }
 0x52f   :  { %v10321_v61 = vpop.eup %10320  ;;  %7341 = vst [vmem:[%s13679_s5 + $0x48] sm:$0xff] %v10319_v59  ;;  %v8309_v2 = vadd.f32 %v12613_v60, %v6787_v63  ;;  %v5024_v3 = vpop.f32.mrb[13].mxu0  ;;  %10344 = vtanh.f32 %v8308_v58 }
 0x530   :  { %v10323_v0 = vpop.eup %10322  ;;  %7343 = vst [vmem:[%s13679_s5 + $0x58] sm:$0xff] %v10321_v61  ;;  %v6789_v4 = vpop.f32.mrb[13].mxu1  ;;  %v8182_v7 = vadd.f32 %v12613_v60, %v5024_v3  ;;  %10346 = vtanh.f32 %v8181_v1 }
 0x531   :  { %v10325_v6 = vpop.eup %10324  ;;  %7344 = vst [vmem:[%s13679_s5 + $0x60] sm:$0xff] %v10323_v0  ;;  %v8310_v8 = vadd.f32 %v12613_v60, %v6789_v4  ;;  %v5026_v9 = vpop.f32.mrb[14].mxu0  ;;  %10348 = vtanh.f32 %v8309_v2 }
 0x532   :  { %v6791_v10 = vpop.f32.mrb[14].mxu1  ;;  %v10327_v11 = vpop.eup %10326  ;;  %7346 = vst [vmem:[%s13679_s5 + $0x70] sm:$0xff] %v10325_v6  ;;  %v8183_v12 = vadd.f32 %v12613_v60, %v5026_v9  ;;  %10350 = vtanh.f32 %v8182_v7  ;;  %5291 = vmatmul.mubr.bf16.gmra.mrb[120].mxu0 %v10296_v5  ;;  %7056 = vmatmul.mubr.bf16.gmra.mrb[120].mxu1 %v10296_v5 }
 0x533   :  { %v5028_v13 = vpop.f32.mrb[15].mxu0  ;;  %v6793_v14 = vpop.f32.mrb[15].mxu1  ;;  %7345 = vst [vmem:[%s13679_s5 + $0x68] sm:$0xff] %v10327_v11  ;;  %v8311_v16 = vadd.f32 %v12613_v60, %v6791_v10  ;;  %10352 = vtanh.f32 %v8310_v8  ;;  %5300 = vmatprep.mubr.bf16.mxu0 %v10812_v32  ;;  %7065 = vmatprep.mubr.bf16.mxu1 %v10812_v32 }
 0x534   :  { %v10329_v15 = vpop.eup %10328  ;;  %v8184_v18 = vadd.f32 %v12613_v60, %v5028_v13  ;;  %v8312_v20 = vadd.f32 %v12613_v60, %v6793_v14  ;;  %10354 = vtanh.f32 %v8183_v12 }
 0x535   :  { %v10331_v17 = vpop.eup %10330  ;;  %7347 = vst [vmem:[%s13679_s5 + $0x78] sm:$0xff] %v10329_v15  ;;  %10356 = vtanh.f32 %v8311_v16  ;;  %v5032_v23 = vpop.f32.mrb[16].mxu0 }
 0x536   :  { %v10333_v19 = vpop.eup %10332  ;;  %7348 = vst [vmem:[%s13679_s5 + $0x80] sm:$0xff] %v10331_v17  ;;  %v6797_v24 = vpop.f32.mrb[16].mxu1  ;;  %10358 = vtanh.f32 %v8184_v18  ;;  %v8185_v32 = vadd.f32 %v12613_v60, %v5032_v23 }
 0x537   :  { %v10335_v21 = vpop.eup %10334  ;;  %7350 = vst [vmem:[%s13679_s5 + $0x90] sm:$0xff] %v10333_v19  ;;  %v8313_v26 = vadd.f32 %v12613_v60, %v6797_v24  ;;  %v5034_v27 = vpop.f32.mrb[17].mxu0  ;;  %10360 = vtanh.f32 %v8312_v20 }
 0x538   :  { %v10337_v22 = vpop.eup %10336  ;;  %7349 = vst [vmem:[%s13679_s5 + $0x88] sm:$0xff] %v10335_v21  ;;  %v6799_v28 = vpop.f32.mrb[17].mxu1  ;;  %v8186_v31 = vadd.f32 %v12613_v60, %v5034_v27  ;;  %10362 = vtanh.f32 %v8185_v32 }
 0x539   :  { %v10339_v25 = vpop.eup %10338  ;;  %7351 = vst [vmem:[%s13679_s5 + $0x98] sm:$0xff] %v10337_v22  ;;  %v8314_v33 = vadd.f32 %v12613_v60, %v6799_v28  ;;  %v5036_v34 = vpop.f32.mrb[18].mxu0  ;;  %10364 = vtanh.f32 %v8313_v26 }
 0x53a   :  { %v10341_v30 = vpop.eup %10340  ;;  %7352 = vst [vmem:[%s13679_s5 + $0xa0] sm:$0xff] %v10339_v25  ;;  %v6801_v35 = vpop.f32.mrb[18].mxu1  ;;  %v8187_v37 = vadd.f32 %v12613_v60, %v5036_v34  ;;  %10366 = vtanh.f32 %v8186_v31  ;;  %5301 = vmatmul.mubr.bf16.gmra.mrb[124].mxu0 %v10297_v29  ;;  %7066 = vmatmul.mubr.bf16.gmra.mrb[124].mxu1 %v10297_v29 }
 0x53b   :  { %v10343_v36 = vpop.eup %10342  ;;  %7354 = vst [vmem:[%s13679_s5 + $0xb0] sm:$0xff] %v10341_v30  ;;  %v5038_v38 = vpop.f32.mrb[19].mxu0  ;;  %v8315_v41 = vadd.f32 %v12613_v60, %v6801_v35  ;;  %10368 = vtanh.f32 %v8314_v33 }
 0x53c   :  { %v6803_v39 = vpop.f32.mrb[19].mxu1  ;;  %v10345_v40 = vpop.eup %10344  ;;  %7353 = vst [vmem:[%s13679_s5 + $0xa8] sm:$0xff] %v10343_v36  ;;  %v8188_v43 = vadd.f32 %v12613_v60, %v5038_v38  ;;  %10370 = vtanh.f32 %v8187_v37 }
 0x53d   :  { %v10347_v42 = vpop.eup %10346  ;;  %7355 = vst [vmem:[%s13679_s5 + $0xb8] sm:$0xff] %v10345_v40  ;;  %v8316_v45 = vadd.f32 %v12613_v60, %v6803_v39  ;;  %10372 = vtanh.f32 %v8315_v41  ;;  %v5042_v48 = vpop.f32.mrb[20].mxu0 }
 0x53e   :  { %v10349_v44 = vpop.eup %10348  ;;  %7356 = vst [vmem:[%s13679_s5 + $0xc0] sm:$0xff] %v10347_v42  ;;  %v6807_v49 = vpop.f32.mrb[20].mxu1  ;;  %10374 = vtanh.f32 %v8188_v43  ;;  %v8189_v51 = vadd.f32 %v12613_v60, %v5042_v48 }
 0x53f   :  { %v10351_v46 = vpop.eup %10350  ;;  %7358 = vst [vmem:[%s13679_s5 + $0xd0] sm:$0xff] %v10349_v44  ;;  %v8317_v52 = vadd.f32 %v12613_v60, %v6807_v49  ;;  %v5044_v53 = vpop.f32.mrb[21].mxu0  ;;  %10376 = vtanh.f32 %v8316_v45 }
 0x540   :  { %v10353_v47 = vpop.eup %10352  ;;  %7357 = vst [vmem:[%s13679_s5 + $0xc8] sm:$0xff] %v10351_v46  ;;  %v6809_v54 = vpop.f32.mrb[21].mxu1  ;;  %v8190_v56 = vadd.f32 %v12613_v60, %v5044_v53  ;;  %10378 = vtanh.f32 %v8189_v51 }
 0x541   :  { %v10355_v50 = vpop.eup %10354  ;;  %7359 = vst [vmem:[%s13679_s5 + $0xd8] sm:$0xff] %v10353_v47  ;;  %v8318_v57 = vadd.f32 %v12613_v60, %v6809_v54  ;;  %v5046_v58 = vpop.f32.mrb[22].mxu0  ;;  %10380 = vtanh.f32 %v8317_v52 }
 0x542   :  { %v10357_v55 = vpop.eup %10356  ;;  %7360 = vst [vmem:[%s13679_s5 + $0xe0] sm:$0xff] %v10355_v50  ;;  %v6811_v59 = vpop.f32.mrb[22].mxu1  ;;  %v8191_v62 = vadd.f32 %v12613_v60, %v5046_v58  ;;  %10382 = vtanh.f32 %v8190_v56 }
 0x543   :  { %v10359_v61 = vpop.eup %10358  ;;  %7362 = vst [vmem:[%s13679_s5 + $0xf0] sm:$0xff] %v10357_v55  ;;  %v5048_v63 = vpop.f32.mrb[23].mxu0  ;;  %v8319_v2 = vadd.f32 %v12613_v60, %v6811_v59  ;;  %10384 = vtanh.f32 %v8318_v57 }
 0x544   :  { %v6813_v0 = vpop.f32.mrb[23].mxu1  ;;  %v10361_v1 = vpop.eup %10360  ;;  %7361 = vst [vmem:[%s13679_s5 + $0xe8] sm:$0xff] %v10359_v61  ;;  %v8192_v4 = vadd.f32 %v12613_v60, %v5048_v63  ;;  %10386 = vtanh.f32 %v8191_v62 }
 0x545   :  { %v10363_v3 = vpop.eup %10362  ;;  %7363 = vst [vmem:[%s13679_s5 + $0xf8] sm:$0xff] %v10361_v1  ;;  %v8320_v6 = vadd.f32 %v12613_v60, %v6813_v0  ;;  %10388 = vtanh.f32 %v8319_v2  ;;  %v5052_v9 = vpop.f32.mrb[24].mxu0 }
 0x546   :  { %v10365_v5 = vpop.eup %10364  ;;  %7364 = vst [vmem:[%s13679_s5 + $0x100] sm:$0xff] %v10363_v3  ;;  %v6817_v10 = vpop.f32.mrb[24].mxu1  ;;  %10390 = vtanh.f32 %v8192_v4  ;;  %v8193_v12 = vadd.f32 %v12613_v60, %v5052_v9 }
 0x547   :  { %v10367_v7 = vpop.eup %10366  ;;  %7366 = vst [vmem:[%s13679_s5 + $0x110] sm:$0xff] %v10365_v5  ;;  %v8321_v13 = vadd.f32 %v12613_v60, %v6817_v10  ;;  %v5054_v14 = vpop.f32.mrb[25].mxu0  ;;  %10392 = vtanh.f32 %v8320_v6 }
 0x548   :  { %v10369_v8 = vpop.eup %10368  ;;  %7365 = vst [vmem:[%s13679_s5 + $0x108] sm:$0xff] %v10367_v7  ;;  %v6819_v15 = vpop.f32.mrb[25].mxu1  ;;  %v8194_v17 = vadd.f32 %v12613_v60, %v5054_v14  ;;  %10394 = vtanh.f32 %v8193_v12 }
 0x549   :  { %v10371_v11 = vpop.eup %10370  ;;  %7367 = vst [vmem:[%s13679_s5 + $0x118] sm:$0xff] %v10369_v8  ;;  %v8322_v18 = vadd.f32 %v12613_v60, %v6819_v15  ;;  %v5056_v19 = vpop.f32.mrb[26].mxu0  ;;  %10396 = vtanh.f32 %v8321_v13 }
 0x54a   :  { %v10373_v16 = vpop.eup %10372  ;;  %7368 = vst [vmem:[%s13679_s5 + $0x120] sm:$0xff] %v10371_v11  ;;  %v6821_v20 = vpop.f32.mrb[26].mxu1  ;;  %v8195_v22 = vadd.f32 %v12613_v60, %v5056_v19  ;;  %10398 = vtanh.f32 %v8194_v17 }
 0x54b   :  { %v10375_v21 = vpop.eup %10374  ;;  %7370 = vst [vmem:[%s13679_s5 + $0x130] sm:$0xff] %v10373_v16  ;;  %v5058_v23 = vpop.f32.mrb[27].mxu0  ;;  %v8323_v32 = vadd.f32 %v12613_v60, %v6821_v20  ;;  %10400 = vtanh.f32 %v8322_v18 }
 0x54c   :  { %v6823_v24 = vpop.f32.mrb[27].mxu1  ;;  %v10377_v25 = vpop.eup %10376  ;;  %7369 = vst [vmem:[%s13679_s5 + $0x128] sm:$0xff] %v10375_v21  ;;  %v8196_v27 = vadd.f32 %v12613_v60, %v5058_v23  ;;  %10402 = vtanh.f32 %v8195_v22 }
 0x54d   :  { %v10379_v26 = vpop.eup %10378  ;;  %7371 = vst [vmem:[%s13679_s5 + $0x138] sm:$0xff] %v10377_v25  ;;  %v8324_v29 = vadd.f32 %v12613_v60, %v6823_v24  ;;  %10404 = vtanh.f32 %v8323_v32  ;;  %v5062_v33 = vpop.f32.mrb[28].mxu0 }
 0x54e   :  { %v10381_v28 = vpop.eup %10380  ;;  %7372 = vst [vmem:[%s13679_s5 + $0x140] sm:$0xff] %v10379_v26  ;;  %v6827_v34 = vpop.f32.mrb[28].mxu1  ;;  %10406 = vtanh.f32 %v8196_v27  ;;  %v8197_v36 = vadd.f32 %v12613_v60, %v5062_v33 }
 0x54f   :  { %v10383_v30 = vpop.eup %10382  ;;  %7374 = vst [vmem:[%s13679_s5 + $0x150] sm:$0xff] %v10381_v28  ;;  %v8325_v37 = vadd.f32 %v12613_v60, %v6827_v34  ;;  %v5064_v38 = vpop.f32.mrb[29].mxu0  ;;  %10408 = vtanh.f32 %v8324_v29 }
 0x550   :  { %v10385_v31 = vpop.eup %10384  ;;  %7373 = vst [vmem:[%s13679_s5 + $0x148] sm:$0xff] %v10383_v30  ;;  %v6829_v39 = vpop.f32.mrb[29].mxu1  ;;  %v8198_v41 = vadd.f32 %v12613_v60, %v5064_v38  ;;  %10410 = vtanh.f32 %v8197_v36 }
 0x551   :  { %v10387_v35 = vpop.eup %10386  ;;  %7375 = vst [vmem:[%s13679_s5 + $0x158] sm:$0xff] %v10385_v31  ;;  %v8326_v42 = vadd.f32 %v12613_v60, %v6829_v39  ;;  %v5066_v43 = vpop.f32.mrb[30].mxu0  ;;  %10412 = vtanh.f32 %v8325_v37 }
 0x552   :  { %v10389_v40 = vpop.eup %10388  ;;  %7376 = vst [vmem:[%s13679_s5 + $0x160] sm:$0xff] %v10387_v35  ;;  %v6831_v44 = vpop.f32.mrb[30].mxu1  ;;  %v8199_v46 = vadd.f32 %v12613_v60, %v5066_v43  ;;  %10414 = vtanh.f32 %v8198_v41 }
 0x553   :  { %v10391_v45 = vpop.eup %10390  ;;  %7378 = vst [vmem:[%s13679_s5 + $0x170] sm:$0xff] %v10389_v40  ;;  %v5068_v47 = vpop.f32.mrb[31].mxu0  ;;  %v8327_v50 = vadd.f32 %v12613_v60, %v6831_v44  ;;  %10416 = vtanh.f32 %v8326_v42 }
 0x554   :  { %v6833_v48 = vpop.f32.mrb[31].mxu1  ;;  %v10393_v49 = vpop.eup %10392  ;;  %7377 = vst [vmem:[%s13679_s5 + $0x168] sm:$0xff] %v10391_v45  ;;  %v8200_v52 = vadd.f32 %v12613_v60, %v5068_v47  ;;  %10418 = vtanh.f32 %v8199_v46 }
 0x555   :  { %v10395_v51 = vpop.eup %10394  ;;  %7379 = vst [vmem:[%s13679_s5 + $0x178] sm:$0xff] %v10393_v49  ;;  %v8328_v54 = vadd.f32 %v12613_v60, %v6833_v48  ;;  %10420 = vtanh.f32 %v8327_v50  ;;  %v5072_v57 = vpop.f32.mrb[32].mxu0 }
 0x556   :  { %v10397_v53 = vpop.eup %10396  ;;  %7380 = vst [vmem:[%s13679_s5 + $0x180] sm:$0xff] %v10395_v51  ;;  %v6837_v58 = vpop.f32.mrb[32].mxu1  ;;  %10422 = vtanh.f32 %v8200_v52  ;;  %v8201_v61 = vadd.f32 %v12613_v60, %v5072_v57 }
 0x557   :  { %v10399_v55 = vpop.eup %10398  ;;  %7382 = vst [vmem:[%s13679_s5 + $0x190] sm:$0xff] %v10397_v53  ;;  %v8329_v62 = vadd.f32 %v12613_v60, %v6837_v58  ;;  %v5074_v63 = vpop.f32.mrb[33].mxu0  ;;  %10424 = vtanh.f32 %v8328_v54 }
 0x558   :  { %v10401_v56 = vpop.eup %10400  ;;  %7381 = vst [vmem:[%s13679_s5 + $0x188] sm:$0xff] %v10399_v55  ;;  %v6839_v0 = vpop.f32.mrb[33].mxu1  ;;  %v8202_v2 = vadd.f32 %v12613_v60, %v5074_v63  ;;  %10426 = vtanh.f32 %v8201_v61 }
 0x559   :  { %v10403_v59 = vpop.eup %10402  ;;  %7383 = vst [vmem:[%s13679_s5 + $0x198] sm:$0xff] %v10401_v56  ;;  %v8330_v3 = vadd.f32 %v12613_v60, %v6839_v0  ;;  %v5076_v4 = vpop.f32.mrb[34].mxu0  ;;  %10428 = vtanh.f32 %v8329_v62 }
 0x55a   :  { %v10405_v1 = vpop.eup %10404  ;;  %7384 = vst [vmem:[%s13679_s5 + $0x1a0] sm:$0xff] %v10403_v59  ;;  %v6841_v5 = vpop.f32.mrb[34].mxu1  ;;  %v8203_v7 = vadd.f32 %v12613_v60, %v5076_v4  ;;  %10430 = vtanh.f32 %v8202_v2 }
 0x55b   :  { %v10407_v6 = vpop.eup %10406  ;;  %7386 = vst [vmem:[%s13679_s5 + $0x1b0] sm:$0xff] %v10405_v1  ;;  %v5078_v8 = vpop.f32.mrb[35].mxu0  ;;  %v8331_v11 = vadd.f32 %v12613_v60, %v6841_v5  ;;  %10432 = vtanh.f32 %v8330_v3 }
 0x55c   :  { %v6843_v9 = vpop.f32.mrb[35].mxu1  ;;  %v10409_v10 = vpop.eup %10408  ;;  %7385 = vst [vmem:[%s13679_s5 + $0x1a8] sm:$0xff] %v10407_v6  ;;  %v8204_v13 = vadd.f32 %v12613_v60, %v5078_v8  ;;  %10434 = vtanh.f32 %v8203_v7 }
 0x55d   :  { %v10411_v12 = vpop.eup %10410  ;;  %7387 = vst [vmem:[%s13679_s5 + $0x1b8] sm:$0xff] %v10409_v10  ;;  %v8332_v15 = vadd.f32 %v12613_v60, %v6843_v9  ;;  %10436 = vtanh.f32 %v8331_v11  ;;  %v5082_v18 = vpop.f32.mrb[36].mxu0 }
 0x55e   :  { %v10413_v14 = vpop.eup %10412  ;;  %7388 = vst [vmem:[%s13679_s5 + $0x1c0] sm:$0xff] %v10411_v12  ;;  %v6847_v19 = vpop.f32.mrb[36].mxu1  ;;  %10438 = vtanh.f32 %v8204_v13  ;;  %v8205_v21 = vadd.f32 %v12613_v60, %v5082_v18 }
 0x55f   :  { %v10415_v16 = vpop.eup %10414  ;;  %7390 = vst [vmem:[%s13679_s5 + $0x1d0] sm:$0xff] %v10413_v14  ;;  %v8333_v22 = vadd.f32 %v12613_v60, %v6847_v19  ;;  %v5084_v23 = vpop.f32.mrb[37].mxu0  ;;  %10440 = vtanh.f32 %v8332_v15 }
 0x560   :  { %v10417_v17 = vpop.eup %10416  ;;  %7389 = vst [vmem:[%s13679_s5 + $0x1c8] sm:$0xff] %v10415_v16  ;;  %v6849_v24 = vpop.f32.mrb[37].mxu1  ;;  %v8206_v32 = vadd.f32 %v12613_v60, %v5084_v23  ;;  %10442 = vtanh.f32 %v8205_v21 }
 0x561   :  { %v10419_v20 = vpop.eup %10418  ;;  %7391 = vst [vmem:[%s13679_s5 + $0x1d8] sm:$0xff] %v10417_v17  ;;  %v8334_v26 = vadd.f32 %v12613_v60, %v6849_v24  ;;  %v5086_v27 = vpop.f32.mrb[38].mxu0  ;;  %10444 = vtanh.f32 %v8333_v22 }
 0x562   :  { %v10421_v25 = vpop.eup %10420  ;;  %7392 = vst [vmem:[%s13679_s5 + $0x1e0] sm:$0xff] %v10419_v20  ;;  %v6851_v28 = vpop.f32.mrb[38].mxu1  ;;  %v8207_v30 = vadd.f32 %v12613_v60, %v5086_v27  ;;  %10446 = vtanh.f32 %v8206_v32 }
 0x563   :  { %v10423_v29 = vpop.eup %10422  ;;  %7394 = vst [vmem:[%s13679_s5 + $0x1f0] sm:$0xff] %v10421_v25  ;;  %v5088_v31 = vpop.f32.mrb[39].mxu0  ;;  %v8335_v35 = vadd.f32 %v12613_v60, %v6851_v28  ;;  %10448 = vtanh.f32 %v8334_v26 }
 0x564   :  { %v6853_v33 = vpop.f32.mrb[39].mxu1  ;;  %v10425_v34 = vpop.eup %10424  ;;  %7393 = vst [vmem:[%s13679_s5 + $0x1e8] sm:$0xff] %v10423_v29  ;;  %v8208_v37 = vadd.f32 %v12613_v60, %v5088_v31  ;;  %10450 = vtanh.f32 %v8207_v30 }
 0x565   :  { %v10427_v36 = vpop.eup %10426  ;;  %7395 = vst [vmem:[%s13679_s5 + $0x1f8] sm:$0xff] %v10425_v34  ;;  %v8336_v39 = vadd.f32 %v12613_v60, %v6853_v33  ;;  %10452 = vtanh.f32 %v8335_v35  ;;  %v5092_v42 = vpop.f32.mrb[40].mxu0 }
 0x566   :  { %v10429_v38 = vpop.eup %10428  ;;  %7396 = vst [vmem:[%s13679_s5 + $0x200] sm:$0xff] %v10427_v36  ;;  %v6857_v43 = vpop.f32.mrb[40].mxu1  ;;  %10454 = vtanh.f32 %v8208_v37  ;;  %v8209_v45 = vadd.f32 %v12613_v60, %v5092_v42 }
 0x567   :  { %v10431_v40 = vpop.eup %10430  ;;  %7398 = vst [vmem:[%s13679_s5 + $0x210] sm:$0xff] %v10429_v38  ;;  %v8337_v46 = vadd.f32 %v12613_v60, %v6857_v43  ;;  %v5094_v47 = vpop.f32.mrb[41].mxu0  ;;  %10456 = vtanh.f32 %v8336_v39 }
 0x568   :  { %v10433_v41 = vpop.eup %10432  ;;  %7397 = vst [vmem:[%s13679_s5 + $0x208] sm:$0xff] %v10431_v40  ;;  %v6859_v48 = vpop.f32.mrb[41].mxu1  ;;  %v8210_v50 = vadd.f32 %v12613_v60, %v5094_v47  ;;  %10458 = vtanh.f32 %v8209_v45 }
 0x569   :  { %v10435_v44 = vpop.eup %10434  ;;  %7399 = vst [vmem:[%s13679_s5 + $0x218] sm:$0xff] %v10433_v41  ;;  %v8338_v51 = vadd.f32 %v12613_v60, %v6859_v48  ;;  %v5096_v52 = vpop.f32.mrb[42].mxu0  ;;  %10460 = vtanh.f32 %v8337_v46  ;;  %v13013_v48 = vld [vmem:[%s13678_s2] ss:$0 sm:$0xff] }
 0x56a   :  { %v10437_v49 = vpop.eup %10436  ;;  %7400 = vst [vmem:[%s13679_s5 + $0x220] sm:$0xff] %v10435_v44  ;;  %v6861_v53 = vpop.f32.mrb[42].mxu1  ;;  %v8211_v55 = vadd.f32 %v12613_v60, %v5096_v52  ;;  %10462 = vtanh.f32 %v8210_v50 }
 0x56b   :  { %v10439_v54 = vpop.eup %10438  ;;  %7402 = vst [vmem:[%s13679_s5 + $0x230] sm:$0xff] %v10437_v49  ;;  %v5098_v56 = vpop.f32.mrb[43].mxu0  ;;  %v8339_v59 = vadd.f32 %v12613_v60, %v6861_v53  ;;  %10464 = vtanh.f32 %v8338_v51 }
 0x56c   :  { %v6863_v57 = vpop.f32.mrb[43].mxu1  ;;  %v10441_v58 = vpop.eup %10440  ;;  %7401 = vst [vmem:[%s13679_s5 + $0x228] sm:$0xff] %v10439_v54  ;;  %v8212_v62 = vadd.f32 %v12613_v60, %v5098_v56  ;;  %10466 = vtanh.f32 %v8211_v55 }
 0x56d   :  { %v10443_v61 = vpop.eup %10442  ;;  %7403 = vst [vmem:[%s13679_s5 + $0x238] sm:$0xff] %v10441_v58  ;;  %v8340_v0 = vadd.f32 %v12613_v60, %v6863_v57  ;;  %10468 = vtanh.f32 %v8339_v59  ;;  %v5102_v3 = vpop.f32.mrb[44].mxu0 }
 0x56e   :  { %v10445_v63 = vpop.eup %10444  ;;  %7404 = vst [vmem:[%s13679_s5 + $0x240] sm:$0xff] %v10443_v61  ;;  %v6867_v4 = vpop.f32.mrb[44].mxu1  ;;  %10470 = vtanh.f32 %v8212_v62  ;;  %v8213_v6 = vadd.f32 %v12613_v60, %v5102_v3 }
 0x56f   :  { %v10447_v1 = vpop.eup %10446  ;;  %7406 = vst [vmem:[%s13679_s5 + $0x250] sm:$0xff] %v10445_v63  ;;  %v8341_v7 = vadd.f32 %v12613_v60, %v6867_v4  ;;  %v5104_v8 = vpop.f32.mrb[45].mxu0  ;;  %10472 = vtanh.f32 %v8340_v0 }
 0x570   :  { %v10449_v2 = vpop.eup %10448  ;;  %7405 = vst [vmem:[%s13679_s5 + $0x248] sm:$0xff] %v10447_v1  ;;  %v6869_v9 = vpop.f32.mrb[45].mxu1  ;;  %v8214_v11 = vadd.f32 %v12613_v60, %v5104_v8  ;;  %10474 = vtanh.f32 %v8213_v6 }
 0x571   :  { %v10451_v5 = vpop.eup %10450  ;;  %7407 = vst [vmem:[%s13679_s5 + $0x258] sm:$0xff] %v10449_v2  ;;  %v8342_v12 = vadd.f32 %v12613_v60, %v6869_v9  ;;  %v5106_v13 = vpop.f32.mrb[46].mxu0  ;;  %10476 = vtanh.f32 %v8341_v7 }
 0x572   :  { %v10453_v10 = vpop.eup %10452  ;;  %7408 = vst [vmem:[%s13679_s5 + $0x260] sm:$0xff] %v10451_v5  ;;  %v6871_v14 = vpop.f32.mrb[46].mxu1  ;;  %v8215_v16 = vadd.f32 %v12613_v60, %v5106_v13  ;;  %10478 = vtanh.f32 %v8214_v11 }
 0x573   :  { %v10455_v15 = vpop.eup %10454  ;;  %7410 = vst [vmem:[%s13679_s5 + $0x270] sm:$0xff] %v10453_v10  ;;  %v5108_v17 = vpop.f32.mrb[47].mxu0  ;;  %v8343_v20 = vadd.f32 %v12613_v60, %v6871_v14  ;;  %10480 = vtanh.f32 %v8342_v12 }
 0x574   :  { %v6873_v18 = vpop.f32.mrb[47].mxu1  ;;  %v10457_v19 = vpop.eup %10456  ;;  %7409 = vst [vmem:[%s13679_s5 + $0x268] sm:$0xff] %v10455_v15  ;;  %v8216_v22 = vadd.f32 %v12613_v60, %v5108_v17  ;;  %10482 = vtanh.f32 %v8215_v16 }
 0x575   :  { %v10459_v21 = vpop.eup %10458  ;;  %7411 = vst [vmem:[%s13679_s5 + $0x278] sm:$0xff] %v10457_v19  ;;  %v8344_v24 = vadd.f32 %v12613_v60, %v6873_v18  ;;  %10484 = vtanh.f32 %v8343_v20  ;;  %v5112_v26 = vpop.f32.mrb[48].mxu0 }
 0x576   :  { %v10461_v23 = vpop.eup %10460  ;;  %7412 = vst [vmem:[%s13679_s5 + $0x280] sm:$0xff] %v10459_v21  ;;  %v6877_v27 = vpop.f32.mrb[48].mxu1  ;;  %10486 = vtanh.f32 %v8216_v22  ;;  %v8217_v29 = vadd.f32 %v12613_v60, %v5112_v26 }
 0x577   :  { %v10463_v25 = vpop.eup %10462  ;;  %7414 = vst [vmem:[%s13679_s5 + $0x290] sm:$0xff] %v10461_v23  ;;  %v8345_v30 = vadd.f32 %v12613_v60, %v6877_v27  ;;  %v5114_v31 = vpop.f32.mrb[49].mxu0  ;;  %10488 = vtanh.f32 %v8344_v24 }
 0x578   :  { %v10465_v32 = vpop.eup %10464  ;;  %7413 = vst [vmem:[%s13679_s5 + $0x288] sm:$0xff] %v10463_v25  ;;  %v6879_v33 = vpop.f32.mrb[49].mxu1  ;;  %v8218_v35 = vadd.f32 %v12613_v60, %v5114_v31  ;;  %10490 = vtanh.f32 %v8217_v29 }
 0x579   :  { %v10467_v28 = vpop.eup %10466  ;;  %7415 = vst [vmem:[%s13679_s5 + $0x298] sm:$0xff] %v10465_v32  ;;  %v8346_v36 = vadd.f32 %v12613_v60, %v6879_v33  ;;  %v5116_v37 = vpop.f32.mrb[50].mxu0  ;;  %10492 = vtanh.f32 %v8345_v30 }
 0x57a   :  { %v10469_v34 = vpop.eup %10468  ;;  %7416 = vst [vmem:[%s13679_s5 + $0x2a0] sm:$0xff] %v10467_v28  ;;  %v6881_v38 = vpop.f32.mrb[50].mxu1  ;;  %v8219_v40 = vadd.f32 %v12613_v60, %v5116_v37  ;;  %10494 = vtanh.f32 %v8218_v35 }
 0x57b   :  { %v10471_v39 = vpop.eup %10470  ;;  %7418 = vst [vmem:[%s13679_s5 + $0x2b0] sm:$0xff] %v10469_v34  ;;  %v5118_v41 = vpop.f32.mrb[51].mxu0  ;;  %v8347_v44 = vadd.f32 %v12613_v60, %v6881_v38  ;;  %10496 = vtanh.f32 %v8346_v36 }
 0x57c   :  { %v6883_v42 = vpop.f32.mrb[51].mxu1  ;;  %v10473_v43 = vpop.eup %10472  ;;  %7417 = vst [vmem:[%s13679_s5 + $0x2a8] sm:$0xff] %v10471_v39  ;;  %v8220_v46 = vadd.f32 %v12613_v60, %v5118_v41  ;;  %10498 = vtanh.f32 %v8219_v40 }
 0x57d   :  { %v10475_v45 = vpop.eup %10474  ;;  %7419 = vst [vmem:[%s13679_s5 + $0x2b8] sm:$0xff] %v10473_v43  ;;  %v8348_v49 = vadd.f32 %v13013_v48, %v6883_v42  ;;  %10500 = vtanh.f32 %v8347_v44  ;;  %v5122_v51 = vpop.f32.mrb[52].mxu0 }
 0x57e   :  { %v10477_v47 = vpop.eup %10476  ;;  %7420 = vst [vmem:[%s13679_s5 + $0x2c0] sm:$0xff] %v10475_v45  ;;  %v6887_v52 = vpop.f32.mrb[52].mxu1  ;;  %10502 = vtanh.f32 %v8220_v46  ;;  %v8221_v54 = vadd.f32 %v13013_v48, %v5122_v51 }
 0x57f   :  { %v10479_v50 = vpop.eup %10478  ;;  %7422 = vst [vmem:[%s13679_s5 + $0x2d0] sm:$0xff] %v10477_v47  ;;  %v8349_v55 = vadd.f32 %v13013_v48, %v6887_v52  ;;  %v5124_v56 = vpop.f32.mrb[53].mxu0  ;;  %10504 = vtanh.f32 %v8348_v49 }
 0x580   :  { %v10481_v60 = vpop.eup %10480  ;;  %7421 = vst [vmem:[%s13679_s5 + $0x2c8] sm:$0xff] %v10479_v50  ;;  %v6889_v57 = vpop.f32.mrb[53].mxu1  ;;  %v8222_v59 = vadd.f32 %v13013_v48, %v5124_v56  ;;  %10506 = vtanh.f32 %v8221_v54 }
 0x581   :  { %v10483_v53 = vpop.eup %10482  ;;  %7423 = vst [vmem:[%s13679_s5 + $0x2d8] sm:$0xff] %v10481_v60  ;;  %v8350_v61 = vadd.f32 %v13013_v48, %v6889_v57  ;;  %v5126_v62 = vpop.f32.mrb[54].mxu0  ;;  %10508 = vtanh.f32 %v8349_v55 }
 0x582   :  { %v10485_v58 = vpop.eup %10484  ;;  %7424 = vst [vmem:[%s13679_s5 + $0x2e0] sm:$0xff] %v10483_v53  ;;  %v6891_v63 = vpop.f32.mrb[54].mxu1  ;;  %v8223_v1 = vadd.f32 %v13013_v48, %v5126_v62  ;;  %10510 = vtanh.f32 %v8222_v59 }
 0x583   :  { %v10487_v0 = vpop.eup %10486  ;;  %7426 = vst [vmem:[%s13679_s5 + $0x2f0] sm:$0xff] %v10485_v58  ;;  %v5128_v2 = vpop.f32.mrb[55].mxu0  ;;  %v8351_v5 = vadd.f32 %v13013_v48, %v6891_v63  ;;  %10512 = vtanh.f32 %v8350_v61 }
 0x584   :  { %v6893_v3 = vpop.f32.mrb[55].mxu1  ;;  %v10489_v4 = vpop.eup %10488  ;;  %7425 = vst [vmem:[%s13679_s5 + $0x2e8] sm:$0xff] %v10487_v0  ;;  %v8224_v7 = vadd.f32 %v13013_v48, %v5128_v2  ;;  %10514 = vtanh.f32 %v8223_v1 }
 0x585   :  { %v10491_v6 = vpop.eup %10490  ;;  %7427 = vst [vmem:[%s13679_s5 + $0x2f8] sm:$0xff] %v10489_v4  ;;  %v8352_v9 = vadd.f32 %v13013_v48, %v6893_v3  ;;  %10516 = vtanh.f32 %v8351_v5  ;;  %v5132_v12 = vpop.f32.mrb[56].mxu0 }
 0x586   :  { %v10493_v8 = vpop.eup %10492  ;;  %7428 = vst [vmem:[%s13679_s5 + $0x300] sm:$0xff] %v10491_v6  ;;  %v6897_v13 = vpop.f32.mrb[56].mxu1  ;;  %10518 = vtanh.f32 %v8224_v7  ;;  %v8225_v15 = vadd.f32 %v13013_v48, %v5132_v12 }
 0x587   :  { %v10495_v10 = vpop.eup %10494  ;;  %7430 = vst [vmem:[%s13679_s5 + $0x310] sm:$0xff] %v10493_v8  ;;  %v8353_v16 = vadd.f32 %v13013_v48, %v6897_v13  ;;  %v5134_v17 = vpop.f32.mrb[57].mxu0  ;;  %10520 = vtanh.f32 %v8352_v9 }
 0x588   :  { %v10497_v11 = vpop.eup %10496  ;;  %7429 = vst [vmem:[%s13679_s5 + $0x308] sm:$0xff] %v10495_v10  ;;  %v6899_v18 = vpop.f32.mrb[57].mxu1  ;;  %v8226_v20 = vadd.f32 %v13013_v48, %v5134_v17  ;;  %10522 = vtanh.f32 %v8225_v15 }
 0x589   :  { %v10499_v14 = vpop.eup %10498  ;;  %7431 = vst [vmem:[%s13679_s5 + $0x318] sm:$0xff] %v10497_v11  ;;  %v8354_v21 = vadd.f32 %v13013_v48, %v6899_v18  ;;  %v5136_v22 = vpop.f32.mrb[58].mxu0  ;;  %10524 = vtanh.f32 %v8353_v16 }
 0x58a   :  { %v10501_v19 = vpop.eup %10500  ;;  %7432 = vst [vmem:[%s13679_s5 + $0x320] sm:$0xff] %v10499_v14  ;;  %v6901_v23 = vpop.f32.mrb[58].mxu1  ;;  %v8227_v25 = vadd.f32 %v13013_v48, %v5136_v22  ;;  %10526 = vtanh.f32 %v8226_v20 }
 0x58b   :  { %v10503_v24 = vpop.eup %10502  ;;  %7434 = vst [vmem:[%s13679_s5 + $0x330] sm:$0xff] %v10501_v19  ;;  %v5138_v32 = vpop.f32.mrb[59].mxu0  ;;  %v8355_v28 = vadd.f32 %v13013_v48, %v6901_v23  ;;  %10528 = vtanh.f32 %v8354_v21 }
 0x58c   :  { %v6903_v26 = vpop.f32.mrb[59].mxu1  ;;  %v10505_v27 = vpop.eup %10504  ;;  %7433 = vst [vmem:[%s13679_s5 + $0x328] sm:$0xff] %v10503_v24  ;;  %v8228_v30 = vadd.f32 %v13013_v48, %v5138_v32  ;;  %10530 = vtanh.f32 %v8227_v25 }
 0x58d   :  { %v10507_v29 = vpop.eup %10506  ;;  %7435 = vst [vmem:[%s13679_s5 + $0x338] sm:$0xff] %v10505_v27  ;;  %v8356_v33 = vadd.f32 %v13013_v48, %v6903_v26  ;;  %10532 = vtanh.f32 %v8355_v28  ;;  %v5142_v36 = vpop.f32.mrb[60].mxu0 }
 0x58e   :  { %v10509_v31 = vpop.eup %10508  ;;  %7436 = vst [vmem:[%s13679_s5 + $0x340] sm:$0xff] %v10507_v29  ;;  %v6907_v37 = vpop.f32.mrb[60].mxu1  ;;  %10534 = vtanh.f32 %v8228_v30  ;;  %v8229_v39 = vadd.f32 %v13013_v48, %v5142_v36 }
 0x58f   :  { %v10511_v34 = vpop.eup %10510  ;;  %7438 = vst [vmem:[%s13679_s5 + $0x350] sm:$0xff] %v10509_v31  ;;  %v8357_v40 = vadd.f32 %v13013_v48, %v6907_v37  ;;  %v5144_v41 = vpop.f32.mrb[61].mxu0  ;;  %10536 = vtanh.f32 %v8356_v33 }
 0x590   :  { %v10513_v35 = vpop.eup %10512  ;;  %7437 = vst [vmem:[%s13679_s5 + $0x348] sm:$0xff] %v10511_v34  ;;  %v6909_v42 = vpop.f32.mrb[61].mxu1  ;;  %v8230_v44 = vadd.f32 %v13013_v48, %v5144_v41  ;;  %10538 = vtanh.f32 %v8229_v39 }
 0x591   :  { %v10515_v38 = vpop.eup %10514  ;;  %7439 = vst [vmem:[%s13679_s5 + $0x358] sm:$0xff] %v10513_v35  ;;  %v8358_v45 = vadd.f32 %v13013_v48, %v6909_v42  ;;  %v5146_v46 = vpop.f32.mrb[62].mxu0  ;;  %10540 = vtanh.f32 %v8357_v40 }
 0x592   :  { %v10517_v43 = vpop.eup %10516  ;;  %7440 = vst [vmem:[%s13679_s5 + $0x360] sm:$0xff] %v10515_v38  ;;  %v6911_v47 = vpop.f32.mrb[62].mxu1  ;;  %v8231_v50 = vadd.f32 %v13013_v48, %v5146_v46  ;;  %10542 = vtanh.f32 %v8230_v44 }
 0x593   :  { %v10519_v49 = vpop.eup %10518  ;;  %7442 = vst [vmem:[%s13679_s5 + $0x370] sm:$0xff] %v10517_v43  ;;  %v5148_v60 = vpop.f32.mrb[63].mxu0  ;;  %v8359_v53 = vadd.f32 %v13013_v48, %v6911_v47  ;;  %10544 = vtanh.f32 %v8358_v45 }
 0x594   :  { %v6913_v51 = vpop.f32.mrb[63].mxu1  ;;  %v10521_v52 = vpop.eup %10520  ;;  %7441 = vst [vmem:[%s13679_s5 + $0x368] sm:$0xff] %v10519_v49  ;;  %v8232_v55 = vadd.f32 %v13013_v48, %v5148_v60  ;;  %10546 = vtanh.f32 %v8231_v50 }
 0x595   :  { %v10523_v54 = vpop.eup %10522  ;;  %7443 = vst [vmem:[%s13679_s5 + $0x378] sm:$0xff] %v10521_v52  ;;  %v8360_v57 = vadd.f32 %v13013_v48, %v6913_v51  ;;  %10548 = vtanh.f32 %v8359_v53  ;;  %v5152_v61 = vpop.f32.mrb[64].mxu0 }
 0x596   :  { %v10525_v56 = vpop.eup %10524  ;;  %7444 = vst [vmem:[%s13679_s5 + $0x380] sm:$0xff] %v10523_v54  ;;  %v6917_v62 = vpop.f32.mrb[64].mxu1  ;;  %10550 = vtanh.f32 %v8232_v55  ;;  %v8233_v0 = vadd.f32 %v13013_v48, %v5152_v61 }
 0x597   :  { %v10527_v58 = vpop.eup %10526  ;;  %7446 = vst [vmem:[%s13679_s5 + $0x390] sm:$0xff] %v10525_v56  ;;  %v8361_v1 = vadd.f32 %v13013_v48, %v6917_v62  ;;  %v5154_v2 = vpop.f32.mrb[65].mxu0  ;;  %10552 = vtanh.f32 %v8360_v57 }
 0x598   :  { %v10529_v59 = vpop.eup %10528  ;;  %7445 = vst [vmem:[%s13679_s5 + $0x388] sm:$0xff] %v10527_v58  ;;  %v6919_v3 = vpop.f32.mrb[65].mxu1  ;;  %v8234_v5 = vadd.f32 %v13013_v48, %v5154_v2  ;;  %10554 = vtanh.f32 %v8233_v0 }
 0x599   :  { %v10531_v63 = vpop.eup %10530  ;;  %7447 = vst [vmem:[%s13679_s5 + $0x398] sm:$0xff] %v10529_v59  ;;  %v8362_v6 = vadd.f32 %v13013_v48, %v6919_v3  ;;  %v5156_v7 = vpop.f32.mrb[66].mxu0  ;;  %10556 = vtanh.f32 %v8361_v1 }
 0x59a   :  { %v10533_v4 = vpop.eup %10532  ;;  %7448 = vst [vmem:[%s13679_s5 + $0x3a0] sm:$0xff] %v10531_v63  ;;  %v6921_v8 = vpop.f32.mrb[66].mxu1  ;;  %v8235_v10 = vadd.f32 %v13013_v48, %v5156_v7  ;;  %10558 = vtanh.f32 %v8234_v5 }
 0x59b   :  { %v10535_v9 = vpop.eup %10534  ;;  %7450 = vst [vmem:[%s13679_s5 + $0x3b0] sm:$0xff] %v10533_v4  ;;  %v5158_v11 = vpop.f32.mrb[67].mxu0  ;;  %v8363_v14 = vadd.f32 %v13013_v48, %v6921_v8  ;;  %10560 = vtanh.f32 %v8362_v6 }
 0x59c   :  { %v6923_v12 = vpop.f32.mrb[67].mxu1  ;;  %v10537_v13 = vpop.eup %10536  ;;  %7449 = vst [vmem:[%s13679_s5 + $0x3a8] sm:$0xff] %v10535_v9  ;;  %v8236_v16 = vadd.f32 %v13013_v48, %v5158_v11  ;;  %10562 = vtanh.f32 %v8235_v10 }
 0x59d   :  { %v10539_v15 = vpop.eup %10538  ;;  %7451 = vst [vmem:[%s13679_s5 + $0x3b8] sm:$0xff] %v10537_v13  ;;  %v8364_v18 = vadd.f32 %v13013_v48, %v6923_v12  ;;  %10564 = vtanh.f32 %v8363_v14  ;;  %v5162_v21 = vpop.f32.mrb[68].mxu0 }
 0x59e   :  { %v10541_v17 = vpop.eup %10540  ;;  %7452 = vst [vmem:[%s13679_s5 + $0x3c0] sm:$0xff] %v10539_v15  ;;  %v6927_v22 = vpop.f32.mrb[68].mxu1  ;;  %10566 = vtanh.f32 %v8236_v16  ;;  %v8237_v24 = vadd.f32 %v13013_v48, %v5162_v21 }
 0x59f   :  { %v10543_v19 = vpop.eup %10542  ;;  %7454 = vst [vmem:[%s13679_s5 + $0x3d0] sm:$0xff] %v10541_v17  ;;  %v8365_v25 = vadd.f32 %v13013_v48, %v6927_v22  ;;  %v5164_v32 = vpop.f32.mrb[69].mxu0  ;;  %10568 = vtanh.f32 %v8364_v18 }
 0x5a0   :  { %v10545_v20 = vpop.eup %10544  ;;  %7453 = vst [vmem:[%s13679_s5 + $0x3c8] sm:$0xff] %v10543_v19  ;;  %v6929_v26 = vpop.f32.mrb[69].mxu1  ;;  %v8238_v28 = vadd.f32 %v13013_v48, %v5164_v32  ;;  %10570 = vtanh.f32 %v8237_v24 }
 0x5a1   :  { %v10547_v23 = vpop.eup %10546  ;;  %7455 = vst [vmem:[%s13679_s5 + $0x3d8] sm:$0xff] %v10545_v20  ;;  %v8366_v29 = vadd.f32 %v13013_v48, %v6929_v26  ;;  %v5166_v30 = vpop.f32.mrb[70].mxu0  ;;  %10572 = vtanh.f32 %v8365_v25 }
 0x5a2   :  { %v10549_v27 = vpop.eup %10548  ;;  %7456 = vst [vmem:[%s13679_s5 + $0x3e0] sm:$0xff] %v10547_v23  ;;  %v6931_v31 = vpop.f32.mrb[70].mxu1  ;;  %v8239_v34 = vadd.f32 %v13013_v48, %v5166_v30  ;;  %10574 = vtanh.f32 %v8238_v28 }
 0x5a3   :  { %v10551_v33 = vpop.eup %10550  ;;  %7458 = vst [vmem:[%s13679_s5 + $0x3f0] sm:$0xff] %v10549_v27  ;;  %v5168_v35 = vpop.f32.mrb[71].mxu0  ;;  %v8367_v38 = vadd.f32 %v13013_v48, %v6931_v31  ;;  %10576 = vtanh.f32 %v8366_v29 }
 0x5a4   :  { %v6933_v36 = vpop.f32.mrb[71].mxu1  ;;  %v10553_v37 = vpop.eup %10552  ;;  %7457 = vst [vmem:[%s13679_s5 + $0x3e8] sm:$0xff] %v10551_v33  ;;  %v8240_v40 = vadd.f32 %v13013_v48, %v5168_v35  ;;  %10578 = vtanh.f32 %v8239_v34 }
 0x5a5   :  { %v10555_v39 = vpop.eup %10554  ;;  %7459 = vst [vmem:[%s13679_s5 + $0x3f8] sm:$0xff] %v10553_v37  ;;  %v8368_v42 = vadd.f32 %v13013_v48, %v6933_v36  ;;  %10580 = vtanh.f32 %v8367_v38  ;;  %v5172_v45 = vpop.f32.mrb[72].mxu0 }
 0x5a6   :  { %v10557_v41 = vpop.eup %10556  ;;  %7460 = vst [vmem:[%s13679_s5 + $0x400] sm:$0xff] %v10555_v39  ;;  %v6937_v46 = vpop.f32.mrb[72].mxu1  ;;  %10582 = vtanh.f32 %v8240_v40  ;;  %v8241_v49 = vadd.f32 %v13013_v48, %v5172_v45 }
 0x5a7   :  { %v10559_v43 = vpop.eup %10558  ;;  %7462 = vst [vmem:[%s13679_s5 + $0x410] sm:$0xff] %v10557_v41  ;;  %v8369_v50 = vadd.f32 %v13013_v48, %v6937_v46  ;;  %v5174_v60 = vpop.f32.mrb[73].mxu0  ;;  %10584 = vtanh.f32 %v8368_v42 }
 0x5a8   :  { %v10561_v44 = vpop.eup %10560  ;;  %7461 = vst [vmem:[%s13679_s5 + $0x408] sm:$0xff] %v10559_v43  ;;  %v6939_v51 = vpop.f32.mrb[73].mxu1  ;;  %v8242_v53 = vadd.f32 %v13013_v48, %v5174_v60  ;;  %10586 = vtanh.f32 %v8241_v49 }
 0x5a9   :  { %v10563_v47 = vpop.eup %10562  ;;  %7463 = vst [vmem:[%s13679_s5 + $0x418] sm:$0xff] %v10561_v44  ;;  %v8370_v54 = vadd.f32 %v13013_v48, %v6939_v51  ;;  %v5176_v55 = vpop.f32.mrb[74].mxu0  ;;  %10588 = vtanh.f32 %v8369_v50 }
 0x5aa   :  { %v10565_v52 = vpop.eup %10564  ;;  %7464 = vst [vmem:[%s13679_s5 + $0x420] sm:$0xff] %v10563_v47  ;;  %v6941_v56 = vpop.f32.mrb[74].mxu1  ;;  %v8243_v58 = vadd.f32 %v13013_v48, %v5176_v55  ;;  %10590 = vtanh.f32 %v8242_v53 }
 0x5ab   :  { %v10567_v57 = vpop.eup %10566  ;;  %7466 = vst [vmem:[%s13679_s5 + $0x430] sm:$0xff] %v10565_v52  ;;  %v5178_v59 = vpop.f32.mrb[75].mxu0  ;;  %v8371_v63 = vadd.f32 %v13013_v48, %v6941_v56  ;;  %10592 = vtanh.f32 %v8370_v54 }
 0x5ac   :  { %v6943_v61 = vpop.f32.mrb[75].mxu1  ;;  %v10569_v62 = vpop.eup %10568  ;;  %7465 = vst [vmem:[%s13679_s5 + $0x428] sm:$0xff] %v10567_v57  ;;  %v8244_v1 = vadd.f32 %v13013_v48, %v5178_v59  ;;  %10594 = vtanh.f32 %v8243_v58 }
 0x5ad   :  { %v10571_v0 = vpop.eup %10570  ;;  %7467 = vst [vmem:[%s13679_s5 + $0x438] sm:$0xff] %v10569_v62  ;;  %v8372_v3 = vadd.f32 %v13013_v48, %v6943_v61  ;;  %10596 = vtanh.f32 %v8371_v63  ;;  %v5182_v6 = vpop.f32.mrb[76].mxu0 }
 0x5ae   :  { %v10573_v2 = vpop.eup %10572  ;;  %7468 = vst [vmem:[%s13679_s5 + $0x440] sm:$0xff] %v10571_v0  ;;  %v6947_v7 = vpop.f32.mrb[76].mxu1  ;;  %10598 = vtanh.f32 %v8244_v1  ;;  %v8245_v9 = vadd.f32 %v13013_v48, %v5182_v6 }
 0x5af   :  { %v10575_v4 = vpop.eup %10574  ;;  %7470 = vst [vmem:[%s13679_s5 + $0x450] sm:$0xff] %v10573_v2  ;;  %v8373_v10 = vadd.f32 %v13013_v48, %v6947_v7  ;;  %v5184_v11 = vpop.f32.mrb[77].mxu0  ;;  %10600 = vtanh.f32 %v8372_v3 }
 0x5b0   :  { %v10577_v5 = vpop.eup %10576  ;;  %7469 = vst [vmem:[%s13679_s5 + $0x448] sm:$0xff] %v10575_v4  ;;  %v6949_v12 = vpop.f32.mrb[77].mxu1  ;;  %v8246_v14 = vadd.f32 %v13013_v48, %v5184_v11  ;;  %10602 = vtanh.f32 %v8245_v9 }
 0x5b1   :  { %v10579_v8 = vpop.eup %10578  ;;  %7471 = vst [vmem:[%s13679_s5 + $0x458] sm:$0xff] %v10577_v5  ;;  %v8374_v15 = vadd.f32 %v13013_v48, %v6949_v12  ;;  %v5186_v16 = vpop.f32.mrb[78].mxu0  ;;  %10604 = vtanh.f32 %v8373_v10 }
 0x5b2   :  { %v10581_v13 = vpop.eup %10580  ;;  %7472 = vst [vmem:[%s13679_s5 + $0x460] sm:$0xff] %v10579_v8  ;;  %v6951_v17 = vpop.f32.mrb[78].mxu1  ;;  %v8247_v19 = vadd.f32 %v13013_v48, %v5186_v16  ;;  %10606 = vtanh.f32 %v8246_v14 }
 0x5b3   :  { %v10583_v18 = vpop.eup %10582  ;;  %7474 = vst [vmem:[%s13679_s5 + $0x470] sm:$0xff] %v10581_v13  ;;  %v5188_v20 = vpop.f32.mrb[79].mxu0  ;;  %v8375_v23 = vadd.f32 %v13013_v48, %v6951_v17  ;;  %10608 = vtanh.f32 %v8374_v15 }
 0x5b4   :  { %v6953_v21 = vpop.f32.mrb[79].mxu1  ;;  %v10585_v22 = vpop.eup %10584  ;;  %7473 = vst [vmem:[%s13679_s5 + $0x468] sm:$0xff] %v10583_v18  ;;  %v8248_v25 = vadd.f32 %v13013_v48, %v5188_v20  ;;  %10610 = vtanh.f32 %v8247_v19 }
 0x5b5   :  { %v10587_v24 = vpop.eup %10586  ;;  %7475 = vst [vmem:[%s13679_s5 + $0x478] sm:$0xff] %v10585_v22  ;;  %v8376_v26 = vadd.f32 %v13013_v48, %v6953_v21  ;;  %10612 = vtanh.f32 %v8375_v23  ;;  %v5192_v29 = vpop.f32.mrb[80].mxu0 }
 0x5b6   :  { %v10589_v32 = vpop.eup %10588  ;;  %7476 = vst [vmem:[%s13679_s5 + $0x480] sm:$0xff] %v10587_v24  ;;  %v6957_v30 = vpop.f32.mrb[80].mxu1  ;;  %10614 = vtanh.f32 %v8248_v25  ;;  %v8249_v33 = vadd.f32 %v13013_v48, %v5192_v29 }
 0x5b7   :  { %v10591_v27 = vpop.eup %10590  ;;  %7478 = vst [vmem:[%s13679_s5 + $0x490] sm:$0xff] %v10589_v32  ;;  %v8377_v34 = vadd.f32 %v13013_v48, %v6957_v30  ;;  %v5194_v35 = vpop.f32.mrb[81].mxu0  ;;  %10616 = vtanh.f32 %v8376_v26 }
 0x5b8   :  { %v10593_v28 = vpop.eup %10592  ;;  %7477 = vst [vmem:[%s13679_s5 + $0x488] sm:$0xff] %v10591_v27  ;;  %v6959_v36 = vpop.f32.mrb[81].mxu1  ;;  %v8250_v38 = vadd.f32 %v13013_v48, %v5194_v35  ;;  %10618 = vtanh.f32 %v8249_v33 }
 0x5b9   :  { %v10595_v31 = vpop.eup %10594  ;;  %7479 = vst [vmem:[%s13679_s5 + $0x498] sm:$0xff] %v10593_v28  ;;  %v8378_v39 = vadd.f32 %v13013_v48, %v6959_v36  ;;  %v5196_v40 = vpop.f32.mrb[82].mxu0  ;;  %10620 = vtanh.f32 %v8377_v34 }
 0x5ba   :  { %v10597_v37 = vpop.eup %10596  ;;  %7480 = vst [vmem:[%s13679_s5 + $0x4a0] sm:$0xff] %v10595_v31  ;;  %v6961_v41 = vpop.f32.mrb[82].mxu1  ;;  %v8251_v43 = vadd.f32 %v13013_v48, %v5196_v40  ;;  %10622 = vtanh.f32 %v8250_v38 }
 0x5bb   :  { %v10599_v42 = vpop.eup %10598  ;;  %7482 = vst [vmem:[%s13679_s5 + $0x4b0] sm:$0xff] %v10597_v37  ;;  %v5198_v44 = vpop.f32.mrb[83].mxu0  ;;  %v8379_v47 = vadd.f32 %v13013_v48, %v6961_v41  ;;  %10624 = vtanh.f32 %v8378_v39 }
 0x5bc   :  { %v6963_v45 = vpop.f32.mrb[83].mxu1  ;;  %v10601_v46 = vpop.eup %10600  ;;  %7481 = vst [vmem:[%s13679_s5 + $0x4a8] sm:$0xff] %v10599_v42  ;;  %v8252_v50 = vadd.f32 %v13013_v48, %v5198_v44  ;;  %10626 = vtanh.f32 %v8251_v43 }
 0x5bd   :  { %v10603_v49 = vpop.eup %10602  ;;  %7483 = vst [vmem:[%s13679_s5 + $0x4b8] sm:$0xff] %v10601_v46  ;;  %v8380_v51 = vadd.f32 %v13013_v48, %v6963_v45  ;;  %10628 = vtanh.f32 %v8379_v47  ;;  %v5202_v54 = vpop.f32.mrb[84].mxu0 }
 0x5be   :  { %v10605_v60 = vpop.eup %10604  ;;  %7484 = vst [vmem:[%s13679_s5 + $0x4c0] sm:$0xff] %v10603_v49  ;;  %v6967_v55 = vpop.f32.mrb[84].mxu1  ;;  %10630 = vtanh.f32 %v8252_v50  ;;  %v8253_v57 = vadd.f32 %v13013_v48, %v5202_v54 }
 0x5bf   :  { %v10607_v52 = vpop.eup %10606  ;;  %7486 = vst [vmem:[%s13679_s5 + $0x4d0] sm:$0xff] %v10605_v60  ;;  %v8381_v58 = vadd.f32 %v13013_v48, %v6967_v55  ;;  %v5204_v59 = vpop.f32.mrb[85].mxu0  ;;  %10632 = vtanh.f32 %v8380_v51 }
 0x5c0   :  { %v10609_v53 = vpop.eup %10608  ;;  %7485 = vst [vmem:[%s13679_s5 + $0x4c8] sm:$0xff] %v10607_v52  ;;  %v6969_v61 = vpop.f32.mrb[85].mxu1  ;;  %v8254_v63 = vadd.f32 %v13013_v48, %v5204_v59  ;;  %10634 = vtanh.f32 %v8253_v57 }
 0x5c1   :  { %v10611_v56 = vpop.eup %10610  ;;  %7487 = vst [vmem:[%s13679_s5 + $0x4d8] sm:$0xff] %v10609_v53  ;;  %v8382_v0 = vadd.f32 %v13013_v48, %v6969_v61  ;;  %v5206_v1 = vpop.f32.mrb[86].mxu0  ;;  %10636 = vtanh.f32 %v8381_v58 }
 0x5c2   :  { %v10613_v62 = vpop.eup %10612  ;;  %7488 = vst [vmem:[%s13679_s5 + $0x4e0] sm:$0xff] %v10611_v56  ;;  %v6971_v2 = vpop.f32.mrb[86].mxu1  ;;  %v8255_v4 = vadd.f32 %v13013_v48, %v5206_v1  ;;  %10638 = vtanh.f32 %v8254_v63 }
 0x5c3   :  { %v10615_v3 = vpop.eup %10614  ;;  %7490 = vst [vmem:[%s13679_s5 + $0x4f0] sm:$0xff] %v10613_v62  ;;  %v5208_v5 = vpop.f32.mrb[87].mxu0  ;;  %v8383_v8 = vadd.f32 %v13013_v48, %v6971_v2  ;;  %10640 = vtanh.f32 %v8382_v0 }
 0x5c4   :  { %v6973_v6 = vpop.f32.mrb[87].mxu1  ;;  %v10617_v7 = vpop.eup %10616  ;;  %7489 = vst [vmem:[%s13679_s5 + $0x4e8] sm:$0xff] %v10615_v3  ;;  %v8256_v10 = vadd.f32 %v13013_v48, %v5208_v5  ;;  %10642 = vtanh.f32 %v8255_v4 }
 0x5c5   :  { %v10619_v9 = vpop.eup %10618  ;;  %7491 = vst [vmem:[%s13679_s5 + $0x4f8] sm:$0xff] %v10617_v7  ;;  %v8384_v12 = vadd.f32 %v13013_v48, %v6973_v6  ;;  %10644 = vtanh.f32 %v8383_v8  ;;  %v5212_v15 = vpop.f32.mrb[88].mxu0 }
 0x5c6   :  { %v10621_v11 = vpop.eup %10620  ;;  %7492 = vst [vmem:[%s13679_s5 + $0x500] sm:$0xff] %v10619_v9  ;;  %v6977_v16 = vpop.f32.mrb[88].mxu1  ;;  %10646 = vtanh.f32 %v8256_v10  ;;  %v8257_v18 = vadd.f32 %v13013_v48, %v5212_v15 }
 0x5c7   :  { %v10623_v13 = vpop.eup %10622  ;;  %7494 = vst [vmem:[%s13679_s5 + $0x510] sm:$0xff] %v10621_v11  ;;  %v8385_v19 = vadd.f32 %v13013_v48, %v6977_v16  ;;  %v5214_v20 = vpop.f32.mrb[89].mxu0  ;;  %10648 = vtanh.f32 %v8384_v12 }
 0x5c8   :  { %v10625_v14 = vpop.eup %10624  ;;  %7493 = vst [vmem:[%s13679_s5 + $0x508] sm:$0xff] %v10623_v13  ;;  %v6979_v21 = vpop.f32.mrb[89].mxu1  ;;  %v8258_v23 = vadd.f32 %v13013_v48, %v5214_v20  ;;  %10650 = vtanh.f32 %v8257_v18 }
 0x5c9   :  { %v10627_v17 = vpop.eup %10626  ;;  %7495 = vst [vmem:[%s13679_s5 + $0x518] sm:$0xff] %v10625_v14  ;;  %v8386_v24 = vadd.f32 %v13013_v48, %v6979_v21  ;;  %v5216_v25 = vpop.f32.mrb[90].mxu0  ;;  %10652 = vtanh.f32 %v8385_v19 }
 0x5ca   :  { %v10629_v22 = vpop.eup %10628  ;;  %7496 = vst [vmem:[%s13679_s5 + $0x520] sm:$0xff] %v10627_v17  ;;  %v6981_v32 = vpop.f32.mrb[90].mxu1  ;;  %v8259_v27 = vadd.f32 %v13013_v48, %v5216_v25  ;;  %10654 = vtanh.f32 %v8258_v23 }
 0x5cb   :  { %v10631_v26 = vpop.eup %10630  ;;  %7498 = vst [vmem:[%s13679_s5 + $0x530] sm:$0xff] %v10629_v22  ;;  %v5218_v28 = vpop.f32.mrb[91].mxu0  ;;  %v8387_v31 = vadd.f32 %v13013_v48, %v6981_v32  ;;  %10656 = vtanh.f32 %v8386_v24 }
 0x5cc   :  { %v6983_v29 = vpop.f32.mrb[91].mxu1  ;;  %v10633_v30 = vpop.eup %10632  ;;  %7497 = vst [vmem:[%s13679_s5 + $0x528] sm:$0xff] %v10631_v26  ;;  %v8260_v34 = vadd.f32 %v13013_v48, %v5218_v28  ;;  %10658 = vtanh.f32 %v8259_v27 }
 0x5cd   :  { %v10635_v33 = vpop.eup %10634  ;;  %7499 = vst [vmem:[%s13679_s5 + $0x538] sm:$0xff] %v10633_v30  ;;  %v8388_v36 = vadd.f32 %v13013_v48, %v6983_v29  ;;  %10660 = vtanh.f32 %v8387_v31  ;;  %v5222_v39 = vpop.f32.mrb[92].mxu0 }
 0x5ce   :  { %v10637_v35 = vpop.eup %10636  ;;  %7500 = vst [vmem:[%s13679_s5 + $0x540] sm:$0xff] %v10635_v33  ;;  %v6987_v40 = vpop.f32.mrb[92].mxu1  ;;  %10662 = vtanh.f32 %v8260_v34  ;;  %v8261_v42 = vadd.f32 %v13013_v48, %v5222_v39 }
 0x5cf   :  { %v10639_v37 = vpop.eup %10638  ;;  %7502 = vst [vmem:[%s13679_s5 + $0x550] sm:$0xff] %v10637_v35  ;;  %v8389_v43 = vadd.f32 %v13013_v48, %v6987_v40  ;;  %v5224_v44 = vpop.f32.mrb[93].mxu0  ;;  %10664 = vtanh.f32 %v8388_v36 }
 0x5d0   :  { %v10641_v38 = vpop.eup %10640  ;;  %7501 = vst [vmem:[%s13679_s5 + $0x548] sm:$0xff] %v10639_v37  ;;  %v6989_v45 = vpop.f32.mrb[93].mxu1  ;;  %v8262_v47 = vadd.f32 %v13013_v48, %v5224_v44  ;;  %10666 = vtanh.f32 %v8261_v42 }
 0x5d1   :  { %v10643_v41 = vpop.eup %10642  ;;  %7503 = vst [vmem:[%s13679_s5 + $0x558] sm:$0xff] %v10641_v38  ;;  %v8390_v49 = vadd.f32 %v13013_v48, %v6989_v45  ;;  %v5226_v50 = vpop.f32.mrb[94].mxu0  ;;  %10668 = vtanh.f32 %v8389_v43 }
 0x5d2   :  { %v10645_v46 = vpop.eup %10644  ;;  %7504 = vst [vmem:[%s13679_s5 + $0x560] sm:$0xff] %v10643_v41  ;;  %v6991_v60 = vpop.f32.mrb[94].mxu1  ;;  %v8263_v52 = vadd.f32 %v13013_v48, %v5226_v50  ;;  %10670 = vtanh.f32 %v8262_v47  ;;  %v13426_v41 = vld [vmem:[%s13678_s2] ss:$0 sm:$0xff] }
 0x5d3   :  { %v10647_v51 = vpop.eup %10646  ;;  %7506 = vst [vmem:[%s13679_s5 + $0x570] sm:$0xff] %v10645_v46  ;;  %v5228_v53 = vpop.f32.mrb[95].mxu0  ;;  %v8391_v56 = vadd.f32 %v13013_v48, %v6991_v60  ;;  %10672 = vtanh.f32 %v8390_v49 }
 0x5d4   :  { %v6993_v54 = vpop.f32.mrb[95].mxu1  ;;  %v10649_v55 = vpop.eup %10648  ;;  %7505 = vst [vmem:[%s13679_s5 + $0x568] sm:$0xff] %v10647_v51  ;;  %v8264_v58 = vadd.f32 %v13013_v48, %v5228_v53  ;;  %10674 = vtanh.f32 %v8263_v52 }
 0x5d5   :  { %v10651_v57 = vpop.eup %10650  ;;  %7507 = vst [vmem:[%s13679_s5 + $0x578] sm:$0xff] %v10649_v55  ;;  %v8392_v61 = vadd.f32 %v13013_v48, %v6993_v54  ;;  %10676 = vtanh.f32 %v8391_v56  ;;  %v5232_v0 = vpop.f32.mrb[96].mxu0 }
 0x5d6   :  { %v10653_v59 = vpop.eup %10652  ;;  %7508 = vst [vmem:[%s13679_s5 + $0x580] sm:$0xff] %v10651_v57  ;;  %v6997_v1 = vpop.f32.mrb[96].mxu1  ;;  %10678 = vtanh.f32 %v8264_v58  ;;  %v8265_v3 = vadd.f32 %v13013_v48, %v5232_v0 }
 0x5d7   :  { %v10655_v62 = vpop.eup %10654  ;;  %7510 = vst [vmem:[%s13679_s5 + $0x590] sm:$0xff] %v10653_v59  ;;  %v8393_v4 = vadd.f32 %v13013_v48, %v6997_v1  ;;  %v5234_v5 = vpop.f32.mrb[97].mxu0  ;;  %10680 = vtanh.f32 %v8392_v61 }
 0x5d8   :  { %v10657_v63 = vpop.eup %10656  ;;  %7509 = vst [vmem:[%s13679_s5 + $0x588] sm:$0xff] %v10655_v62  ;;  %v6999_v6 = vpop.f32.mrb[97].mxu1  ;;  %v8266_v8 = vadd.f32 %v13013_v48, %v5234_v5  ;;  %10682 = vtanh.f32 %v8265_v3 }
 0x5d9   :  { %v10659_v2 = vpop.eup %10658  ;;  %7511 = vst [vmem:[%s13679_s5 + $0x598] sm:$0xff] %v10657_v63  ;;  %v8394_v9 = vadd.f32 %v13013_v48, %v6999_v6  ;;  %v5236_v10 = vpop.f32.mrb[98].mxu0  ;;  %10684 = vtanh.f32 %v8393_v4 }
 0x5da   :  { %v10661_v7 = vpop.eup %10660  ;;  %7512 = vst [vmem:[%s13679_s5 + $0x5a0] sm:$0xff] %v10659_v2  ;;  %v7001_v11 = vpop.f32.mrb[98].mxu1  ;;  %v8267_v13 = vadd.f32 %v13013_v48, %v5236_v10  ;;  %10686 = vtanh.f32 %v8266_v8 }
 0x5db   :  { %v10663_v12 = vpop.eup %10662  ;;  %7514 = vst [vmem:[%s13679_s5 + $0x5b0] sm:$0xff] %v10661_v7  ;;  %v5238_v14 = vpop.f32.mrb[99].mxu0  ;;  %v8395_v17 = vadd.f32 %v13013_v48, %v7001_v11  ;;  %10688 = vtanh.f32 %v8394_v9 }
 0x5dc   :  { %v7003_v15 = vpop.f32.mrb[99].mxu1  ;;  %v10665_v16 = vpop.eup %10664  ;;  %7513 = vst [vmem:[%s13679_s5 + $0x5a8] sm:$0xff] %v10663_v12  ;;  %v8268_v19 = vadd.f32 %v13013_v48, %v5238_v14  ;;  %10690 = vtanh.f32 %v8267_v13 }
 0x5dd   :  { %v10667_v18 = vpop.eup %10666  ;;  %7515 = vst [vmem:[%s13679_s5 + $0x5b8] sm:$0xff] %v10665_v16  ;;  %v8396_v21 = vadd.f32 %v13013_v48, %v7003_v15  ;;  %10692 = vtanh.f32 %v8395_v17  ;;  %v5242_v24 = vpop.f32.mrb[100].mxu0 }
 0x5de   :  { %v10669_v20 = vpop.eup %10668  ;;  %7516 = vst [vmem:[%s13679_s5 + $0x5c0] sm:$0xff] %v10667_v18  ;;  %v7007_v25 = vpop.f32.mrb[100].mxu1  ;;  %10694 = vtanh.f32 %v8268_v19  ;;  %v8269_v26 = vadd.f32 %v13013_v48, %v5242_v24 }
 0x5df   :  { %v10671_v22 = vpop.eup %10670  ;;  %7518 = vst [vmem:[%s13679_s5 + $0x5d0] sm:$0xff] %v10669_v20  ;;  %v8397_v27 = vadd.f32 %v13013_v48, %v7007_v25  ;;  %v5244_v28 = vpop.f32.mrb[101].mxu0  ;;  %10696 = vtanh.f32 %v8396_v21 }
 0x5e0   :  { %v10673_v23 = vpop.eup %10672  ;;  %7517 = vst [vmem:[%s13679_s5 + $0x5c8] sm:$0xff] %v10671_v22  ;;  %v7009_v29 = vpop.f32.mrb[101].mxu1  ;;  %v8270_v31 = vadd.f32 %v13013_v48, %v5244_v28  ;;  %10698 = vtanh.f32 %v8269_v26 }
 0x5e1   :  { %v10675_v32 = vpop.eup %10674  ;;  %7519 = vst [vmem:[%s13679_s5 + $0x5d8] sm:$0xff] %v10673_v23  ;;  %v8398_v33 = vadd.f32 %v13013_v48, %v7009_v29  ;;  %v5246_v34 = vpop.f32.mrb[102].mxu0  ;;  %10700 = vtanh.f32 %v8397_v27 }
 0x5e2   :  { %v10677_v30 = vpop.eup %10676  ;;  %7520 = vst [vmem:[%s13679_s5 + $0x5e0] sm:$0xff] %v10675_v32  ;;  %v7011_v35 = vpop.f32.mrb[102].mxu1  ;;  %v8271_v37 = vadd.f32 %v13013_v48, %v5246_v34  ;;  %10702 = vtanh.f32 %v8270_v31 }
 0x5e3   :  { %v10679_v36 = vpop.eup %10678  ;;  %7522 = vst [vmem:[%s13679_s5 + $0x5f0] sm:$0xff] %v10677_v30  ;;  %v5248_v38 = vpop.f32.mrb[103].mxu0  ;;  %v8399_v42 = vadd.f32 %v13426_v41, %v7011_v35  ;;  %10704 = vtanh.f32 %v8398_v33 }
 0x5e4   :  { %v7013_v39 = vpop.f32.mrb[103].mxu1  ;;  %v10681_v40 = vpop.eup %10680  ;;  %7521 = vst [vmem:[%s13679_s5 + $0x5e8] sm:$0xff] %v10679_v36  ;;  %v8272_v48 = vadd.f32 %v13426_v41, %v5248_v38  ;;  %10706 = vtanh.f32 %v8271_v37 }
 0x5e5   :  { %v10683_v43 = vpop.eup %10682  ;;  %7523 = vst [vmem:[%s13679_s5 + $0x5f8] sm:$0xff] %v10681_v40  ;;  %v8400_v45 = vadd.f32 %v13426_v41, %v7013_v39  ;;  %10708 = vtanh.f32 %v8399_v42  ;;  %v5252_v49 = vpop.f32.mrb[104].mxu0 }
 0x5e6   :  { %v10685_v44 = vpop.eup %10684  ;;  %7524 = vst [vmem:[%s13679_s5 + $0x600] sm:$0xff] %v10683_v43  ;;  %v7017_v50 = vpop.f32.mrb[104].mxu1  ;;  %10710 = vtanh.f32 %v8272_v48  ;;  %v8273_v51 = vadd.f32 %v13426_v41, %v5252_v49 }
 0x5e7   :  { %v10687_v46 = vpop.eup %10686  ;;  %7526 = vst [vmem:[%s13679_s5 + $0x610] sm:$0xff] %v10685_v44  ;;  %v8401_v52 = vadd.f32 %v13426_v41, %v7017_v50  ;;  %v5254_v53 = vpop.f32.mrb[105].mxu0  ;;  %10712 = vtanh.f32 %v8400_v45 }
 0x5e8   :  { %v10689_v47 = vpop.eup %10688  ;;  %7525 = vst [vmem:[%s13679_s5 + $0x608] sm:$0xff] %v10687_v46  ;;  %v7019_v54 = vpop.f32.mrb[105].mxu1  ;;  %v8274_v56 = vadd.f32 %v13426_v41, %v5254_v53  ;;  %10714 = vtanh.f32 %v8273_v51 }
 0x5e9   :  { %v10691_v60 = vpop.eup %10690  ;;  %7527 = vst [vmem:[%s13679_s5 + $0x618] sm:$0xff] %v10689_v47  ;;  %v8402_v57 = vadd.f32 %v13426_v41, %v7019_v54  ;;  %v5256_v58 = vpop.f32.mrb[106].mxu0  ;;  %10716 = vtanh.f32 %v8401_v52 }
 0x5ea   :  { %v10693_v55 = vpop.eup %10692  ;;  %7528 = vst [vmem:[%s13679_s5 + $0x620] sm:$0xff] %v10691_v60  ;;  %v7021_v59 = vpop.f32.mrb[106].mxu1  ;;  %v8275_v62 = vadd.f32 %v13426_v41, %v5256_v58  ;;  %10718 = vtanh.f32 %v8274_v56 }
 0x5eb   :  { %v10695_v61 = vpop.eup %10694  ;;  %7530 = vst [vmem:[%s13679_s5 + $0x630] sm:$0xff] %v10693_v55  ;;  %v5258_v63 = vpop.f32.mrb[107].mxu0  ;;  %v8403_v2 = vadd.f32 %v13426_v41, %v7021_v59  ;;  %10720 = vtanh.f32 %v8402_v57 }
 0x5ec   :  { %v7023_v0 = vpop.f32.mrb[107].mxu1  ;;  %v10697_v1 = vpop.eup %10696  ;;  %7529 = vst [vmem:[%s13679_s5 + $0x628] sm:$0xff] %v10695_v61  ;;  %v8276_v4 = vadd.f32 %v13426_v41, %v5258_v63  ;;  %10722 = vtanh.f32 %v8275_v62 }
 0x5ed   :  { %v10699_v3 = vpop.eup %10698  ;;  %7531 = vst [vmem:[%s13679_s5 + $0x638] sm:$0xff] %v10697_v1  ;;  %v8404_v6 = vadd.f32 %v13426_v41, %v7023_v0  ;;  %10724 = vtanh.f32 %v8403_v2  ;;  %v5262_v9 = vpop.f32.mrb[108].mxu0 }
 0x5ee   :  { %v10701_v5 = vpop.eup %10700  ;;  %7532 = vst [vmem:[%s13679_s5 + $0x640] sm:$0xff] %v10699_v3  ;;  %v7027_v10 = vpop.f32.mrb[108].mxu1  ;;  %10726 = vtanh.f32 %v8276_v4  ;;  %v8277_v12 = vadd.f32 %v13426_v41, %v5262_v9 }
 0x5ef   :  { %v10703_v7 = vpop.eup %10702  ;;  %7534 = vst [vmem:[%s13679_s5 + $0x650] sm:$0xff] %v10701_v5  ;;  %v8405_v13 = vadd.f32 %v13426_v41, %v7027_v10  ;;  %v5264_v14 = vpop.f32.mrb[109].mxu0  ;;  %10728 = vtanh.f32 %v8404_v6 }
 0x5f0   :  { %v10705_v8 = vpop.eup %10704  ;;  %7533 = vst [vmem:[%s13679_s5 + $0x648] sm:$0xff] %v10703_v7  ;;  %v7029_v15 = vpop.f32.mrb[109].mxu1  ;;  %v8278_v17 = vadd.f32 %v13426_v41, %v5264_v14  ;;  %10730 = vtanh.f32 %v8277_v12 }
 0x5f1   :  { %v10707_v11 = vpop.eup %10706  ;;  %7535 = vst [vmem:[%s13679_s5 + $0x658] sm:$0xff] %v10705_v8  ;;  %v8406_v18 = vadd.f32 %v13426_v41, %v7029_v15  ;;  %v5266_v19 = vpop.f32.mrb[110].mxu0  ;;  %10732 = vtanh.f32 %v8405_v13 }
 0x5f2   :  { %v10709_v16 = vpop.eup %10708  ;;  %7536 = vst [vmem:[%s13679_s5 + $0x660] sm:$0xff] %v10707_v11  ;;  %v7031_v20 = vpop.f32.mrb[110].mxu1  ;;  %v8279_v22 = vadd.f32 %v13426_v41, %v5266_v19  ;;  %10734 = vtanh.f32 %v8278_v17 }
 0x5f3   :  { %v10711_v21 = vpop.eup %10710  ;;  %7538 = vst [vmem:[%s13679_s5 + $0x670] sm:$0xff] %v10709_v16  ;;  %v5268_v23 = vpop.f32.mrb[111].mxu0  ;;  %v8407_v32 = vadd.f32 %v13426_v41, %v7031_v20  ;;  %10736 = vtanh.f32 %v8406_v18 }
 0x5f4   :  { %v7033_v24 = vpop.f32.mrb[111].mxu1  ;;  %v10713_v25 = vpop.eup %10712  ;;  %7537 = vst [vmem:[%s13679_s5 + $0x668] sm:$0xff] %v10711_v21  ;;  %v8280_v27 = vadd.f32 %v13426_v41, %v5268_v23  ;;  %10738 = vtanh.f32 %v8279_v22 }
 0x5f5   :  { %v10715_v26 = vpop.eup %10714  ;;  %7539 = vst [vmem:[%s13679_s5 + $0x678] sm:$0xff] %v10713_v25  ;;  %v8408_v29 = vadd.f32 %v13426_v41, %v7033_v24  ;;  %10740 = vtanh.f32 %v8407_v32  ;;  %v5272_v33 = vpop.f32.mrb[112].mxu0 }
 0x5f6   :  { %v10717_v28 = vpop.eup %10716  ;;  %7540 = vst [vmem:[%s13679_s5 + $0x680] sm:$0xff] %v10715_v26  ;;  %v7037_v34 = vpop.f32.mrb[112].mxu1  ;;  %10742 = vtanh.f32 %v8280_v27  ;;  %v8281_v36 = vadd.f32 %v13426_v41, %v5272_v33 }
 0x5f7   :  { %v10719_v30 = vpop.eup %10718  ;;  %7542 = vst [vmem:[%s13679_s5 + $0x690] sm:$0xff] %v10717_v28  ;;  %v8409_v37 = vadd.f32 %v13426_v41, %v7037_v34  ;;  %v5274_v38 = vpop.f32.mrb[113].mxu0  ;;  %10744 = vtanh.f32 %v8408_v29 }
 0x5f8   :  { %v10721_v31 = vpop.eup %10720  ;;  %7541 = vst [vmem:[%s13679_s5 + $0x688] sm:$0xff] %v10719_v30  ;;  %v7039_v39 = vpop.f32.mrb[113].mxu1  ;;  %v8282_v42 = vadd.f32 %v13426_v41, %v5274_v38  ;;  %10746 = vtanh.f32 %v8281_v36 }
 0x5f9   :  { %v10723_v35 = vpop.eup %10722  ;;  %7543 = vst [vmem:[%s13679_s5 + $0x698] sm:$0xff] %v10721_v31  ;;  %v8410_v43 = vadd.f32 %v13426_v41, %v7039_v39  ;;  %v5276_v48 = vpop.f32.mrb[114].mxu0  ;;  %10748 = vtanh.f32 %v8409_v37 }
 0x5fa   :  { %v10725_v40 = vpop.eup %10724  ;;  %7544 = vst [vmem:[%s13679_s5 + $0x6a0] sm:$0xff] %v10723_v35  ;;  %v7041_v44 = vpop.f32.mrb[114].mxu1  ;;  %v8283_v46 = vadd.f32 %v13426_v41, %v5276_v48  ;;  %10750 = vtanh.f32 %v8282_v42 }
 0x5fb   :  { %v10727_v45 = vpop.eup %10726  ;;  %7546 = vst [vmem:[%s13679_s5 + $0x6b0] sm:$0xff] %v10725_v40  ;;  %v5278_v47 = vpop.f32.mrb[115].mxu0  ;;  %v8411_v60 = vadd.f32 %v13426_v41, %v7041_v44  ;;  %10752 = vtanh.f32 %v8410_v43 }
 0x5fc   :  { %v7043_v49 = vpop.f32.mrb[115].mxu1  ;;  %v10729_v50 = vpop.eup %10728  ;;  %7545 = vst [vmem:[%s13679_s5 + $0x6a8] sm:$0xff] %v10727_v45  ;;  %v8284_v52 = vadd.f32 %v13426_v41, %v5278_v47  ;;  %10754 = vtanh.f32 %v8283_v46 }
 0x5fd   :  { %v10731_v51 = vpop.eup %10730  ;;  %7547 = vst [vmem:[%s13679_s5 + $0x6b8] sm:$0xff] %v10729_v50  ;;  %v8412_v54 = vadd.f32 %v13426_v41, %v7043_v49  ;;  %10756 = vtanh.f32 %v8411_v60  ;;  %v5282_v57 = vpop.f32.mrb[116].mxu0 }
 0x5fe   :  { %v10733_v53 = vpop.eup %10732  ;;  %7548 = vst [vmem:[%s13679_s5 + $0x6c0] sm:$0xff] %v10731_v51  ;;  %v7047_v58 = vpop.f32.mrb[116].mxu1  ;;  %10758 = vtanh.f32 %v8284_v52  ;;  %v8285_v61 = vadd.f32 %v13426_v41, %v5282_v57 }
 0x5ff   :  { %v10735_v55 = vpop.eup %10734  ;;  %7550 = vst [vmem:[%s13679_s5 + $0x6d0] sm:$0xff] %v10733_v53  ;;  %v8413_v62 = vadd.f32 %v13426_v41, %v7047_v58  ;;  %v5284_v63 = vpop.f32.mrb[117].mxu0  ;;  %10760 = vtanh.f32 %v8412_v54 }
 0x600   :  { %v10737_v56 = vpop.eup %10736  ;;  %7549 = vst [vmem:[%s13679_s5 + $0x6c8] sm:$0xff] %v10735_v55  ;;  %v7049_v0 = vpop.f32.mrb[117].mxu1  ;;  %v8286_v2 = vadd.f32 %v13426_v41, %v5284_v63  ;;  %10762 = vtanh.f32 %v8285_v61 }
 0x601   :  { %v10739_v59 = vpop.eup %10738  ;;  %7551 = vst [vmem:[%s13679_s5 + $0x6d8] sm:$0xff] %v10737_v56  ;;  %v8414_v3 = vadd.f32 %v13426_v41, %v7049_v0  ;;  %v5286_v4 = vpop.f32.mrb[118].mxu0  ;;  %10764 = vtanh.f32 %v8413_v62 }
 0x602   :  { %v10741_v1 = vpop.eup %10740  ;;  %7552 = vst [vmem:[%s13679_s5 + $0x6e0] sm:$0xff] %v10739_v59  ;;  %v7051_v5 = vpop.f32.mrb[118].mxu1  ;;  %v8287_v7 = vadd.f32 %v13426_v41, %v5286_v4  ;;  %10766 = vtanh.f32 %v8286_v2 }
 0x603   :  { %v10743_v6 = vpop.eup %10742  ;;  %7554 = vst [vmem:[%s13679_s5 + $0x6f0] sm:$0xff] %v10741_v1  ;;  %v5288_v8 = vpop.f32.mrb[119].mxu0  ;;  %v8415_v11 = vadd.f32 %v13426_v41, %v7051_v5  ;;  %10768 = vtanh.f32 %v8414_v3 }
 0x604   :  { %v7053_v9 = vpop.f32.mrb[119].mxu1  ;;  %v10745_v10 = vpop.eup %10744  ;;  %7553 = vst [vmem:[%s13679_s5 + $0x6e8] sm:$0xff] %v10743_v6  ;;  %v8288_v13 = vadd.f32 %v13426_v41, %v5288_v8  ;;  %10770 = vtanh.f32 %v8287_v7 }
 0x605   :  { %v10747_v12 = vpop.eup %10746  ;;  %7555 = vst [vmem:[%s13679_s5 + $0x6f8] sm:$0xff] %v10745_v10  ;;  %v8416_v15 = vadd.f32 %v13426_v41, %v7053_v9  ;;  %10772 = vtanh.f32 %v8415_v11  ;;  %v5292_v18 = vpop.f32.mrb[120].mxu0 }
 0x606   :  { %v10749_v14 = vpop.eup %10748  ;;  %7556 = vst [vmem:[%s13679_s5 + $0x700] sm:$0xff] %v10747_v12  ;;  %v7057_v19 = vpop.f32.mrb[120].mxu1  ;;  %10774 = vtanh.f32 %v8288_v13  ;;  %v8289_v21 = vadd.f32 %v13426_v41, %v5292_v18 }
 0x607   :  { %v10751_v16 = vpop.eup %10750  ;;  %7558 = vst [vmem:[%s13679_s5 + $0x710] sm:$0xff] %v10749_v14  ;;  %v8417_v22 = vadd.f32 %v13426_v41, %v7057_v19  ;;  %v5294_v23 = vpop.f32.mrb[121].mxu0  ;;  %10776 = vtanh.f32 %v8416_v15 }
 0x608   :  { %v10753_v17 = vpop.eup %10752  ;;  %7557 = vst [vmem:[%s13679_s5 + $0x708] sm:$0xff] %v10751_v16  ;;  %v7059_v24 = vpop.f32.mrb[121].mxu1  ;;  %v8290_v32 = vadd.f32 %v13426_v41, %v5294_v23  ;;  %10778 = vtanh.f32 %v8289_v21 }
 0x609   :  { %v10755_v20 = vpop.eup %10754  ;;  %7559 = vst [vmem:[%s13679_s5 + $0x718] sm:$0xff] %v10753_v17  ;;  %v8418_v26 = vadd.f32 %v13426_v41, %v7059_v24  ;;  %v5296_v27 = vpop.f32.mrb[122].mxu0  ;;  %10780 = vtanh.f32 %v8417_v22 }
 0x60a   :  { %v10757_v25 = vpop.eup %10756  ;;  %7560 = vst [vmem:[%s13679_s5 + $0x720] sm:$0xff] %v10755_v20  ;;  %v7061_v28 = vpop.f32.mrb[122].mxu1  ;;  %v8291_v30 = vadd.f32 %v13426_v41, %v5296_v27  ;;  %10782 = vtanh.f32 %v8290_v32 }
 0x60b   :  { %v10759_v29 = vpop.eup %10758  ;;  %7562 = vst [vmem:[%s13679_s5 + $0x730] sm:$0xff] %v10757_v25  ;;  %v5298_v31 = vpop.f32.mrb[123].mxu0  ;;  %v8419_v35 = vadd.f32 %v13426_v41, %v7061_v28  ;;  %10784 = vtanh.f32 %v8418_v26 }
 0x60c   :  { %v7063_v33 = vpop.f32.mrb[123].mxu1  ;;  %v10761_v34 = vpop.eup %10760  ;;  %7561 = vst [vmem:[%s13679_s5 + $0x728] sm:$0xff] %v10759_v29  ;;  %v8292_v37 = vadd.f32 %v13426_v41, %v5298_v31  ;;  %10786 = vtanh.f32 %v8291_v30 }
 0x60d   :  { %v10763_v36 = vpop.eup %10762  ;;  %7563 = vst [vmem:[%s13679_s5 + $0x738] sm:$0xff] %v10761_v34  ;;  %v8420_v39 = vadd.f32 %v13426_v41, %v7063_v33  ;;  %10788 = vtanh.f32 %v8419_v35  ;;  %v5302_v43 = vpop.f32.mrb[124].mxu0 }
 0x60e   :  { %v10765_v38 = vpop.eup %10764  ;;  %7564 = vst [vmem:[%s13679_s5 + $0x740] sm:$0xff] %v10763_v36  ;;  %v7067_v48 = vpop.f32.mrb[124].mxu1  ;;  %10790 = vtanh.f32 %v8292_v37  ;;  %v8293_v45 = vadd.f32 %v13426_v41, %v5302_v43 }
 0x60f   :  { %v10767_v40 = vpop.eup %10766  ;;  %7566 = vst [vmem:[%s13679_s5 + $0x750] sm:$0xff] %v10765_v38  ;;  %v8421_v46 = vadd.f32 %v13426_v41, %v7067_v48  ;;  %v5304_v47 = vpop.f32.mrb[125].mxu0  ;;  %10792 = vtanh.f32 %v8420_v39 }
 0x610   :  { %v10769_v42 = vpop.eup %10768  ;;  %7565 = vst [vmem:[%s13679_s5 + $0x748] sm:$0xff] %v10767_v40  ;;  %v7069_v49 = vpop.f32.mrb[125].mxu1  ;;  %v8294_v60 = vadd.f32 %v13426_v41, %v5304_v47  ;;  %10794 = vtanh.f32 %v8293_v45 }
 0x611   :  { %v10771_v44 = vpop.eup %10770  ;;  %7567 = vst [vmem:[%s13679_s5 + $0x758] sm:$0xff] %v10769_v42  ;;  %v8422_v51 = vadd.f32 %v13426_v41, %v7069_v49  ;;  %v5306_v52 = vpop.f32.mrb[126].mxu0  ;;  %10796 = vtanh.f32 %v8421_v46 }
 0x612   :  { %v10773_v50 = vpop.eup %10772  ;;  %7568 = vst [vmem:[%s13679_s5 + $0x760] sm:$0xff] %v10771_v44  ;;  %v7071_v53 = vpop.f32.mrb[126].mxu1  ;;  %v8295_v55 = vadd.f32 %v13426_v41, %v5306_v52  ;;  %10798 = vtanh.f32 %v8294_v60 }
 0x613   :  { %v10775_v54 = vpop.eup %10774  ;;  %7570 = vst [vmem:[%s13679_s5 + $0x770] sm:$0xff] %v10773_v50  ;;  %v5308_v56 = vpop.f32.mrb[127].mxu0  ;;  %v8423_v59 = vadd.f32 %v13426_v41, %v7071_v53  ;;  %10800 = vtanh.f32 %v8422_v51 }
 0x614   :  { %v7073_v57 = vpop.f32.mrb[127].mxu1  ;;  %v10777_v58 = vpop.eup %10776  ;;  %7569 = vst [vmem:[%s13679_s5 + $0x768] sm:$0xff] %v10775_v54  ;;  %v8296_v62 = vadd.f32 %v13426_v41, %v5308_v56  ;;  %10802 = vtanh.f32 %v8295_v55 }
 0x615   :  { %v10779_v61 = vpop.eup %10778  ;;  %7571 = vst [vmem:[%s13679_s5 + $0x778] sm:$0xff] %v10777_v58  ;;  %v8424_v0 = vadd.f32 %v13426_v41, %v7073_v57  ;;  %10804 = vtanh.f32 %v8423_v59 }
 0x616   :  { %v10781_v63 = vpop.eup %10780  ;;  %7572 = vst [vmem:[%s13679_s5 + $0x780] sm:$0xff] %v10779_v61  ;;  %10806 = vtanh.f32 %v8296_v62 }
 0x617   :  { %v10783_v1 = vpop.eup %10782  ;;  %7574 = vst [vmem:[%s13679_s5 + $0x790] sm:$0xff] %v10781_v63  ;;  %10808 = vtanh.f32 %v8424_v0 }
 0x618   :  { %v10785_v2 = vpop.eup %10784  ;;  %7573 = vst [vmem:[%s13679_s5 + $0x788] sm:$0xff] %v10783_v1 }
 0x619   :  { %v10787_v3 = vpop.eup %10786  ;;  %7575 = vst [vmem:[%s13679_s5 + $0x798] sm:$0xff] %v10785_v2 }
 0x61a   :  { %v10789_v4 = vpop.eup %10788  ;;  %7576 = vst [vmem:[%s13679_s5 + $0x7a0] sm:$0xff] %v10787_v3 }
 0x61b   :  { %v10791_v41 = vpop.eup %10790  ;;  %7578 = vst [vmem:[%s13679_s5 + $0x7b0] sm:$0xff] %v10789_v4 }
 0x61c   :  { %v10793_v5 = vpop.eup %10792  ;;  %7577 = vst [vmem:[%s13679_s5 + $0x7a8] sm:$0xff] %v10791_v41 }
 0x61d   :  { %v10795_v6 = vpop.eup %10794  ;;  %7579 = vst [vmem:[%s13679_s5 + $0x7b8] sm:$0xff] %v10793_v5 }
 0x61e   :  { %v10797_v7 = vpop.eup %10796  ;;  %7580 = vst [vmem:[%s13679_s5 + $0x7c0] sm:$0xff] %v10795_v6 }
 0x61f   :  { %v10799_v8 = vpop.eup %10798  ;;  %7582 = vst [vmem:[%s13679_s5 + $0x7d0] sm:$0xff] %v10797_v7 }
 0x620   :  { %v10801_v9 = vpop.eup %10800  ;;  %7581 = vst [vmem:[%s13679_s5 + $0x7c8] sm:$0xff] %v10799_v8 }
 0x621   :  { %v10803_v10 = vpop.eup %10802  ;;  %7583 = vst [vmem:[%s13679_s5 + $0x7d8] sm:$0xff] %v10801_v9 }
 0x622   :  { %v10805_v11 = vpop.eup %10804  ;;  %7584 = vst [vmem:[%s13679_s5 + $0x7e0] sm:$0xff] %v10803_v10 }
 0x623   :  { %v10807_v12 = vpop.eup %10806  ;;  %7586 = vst [vmem:[%s13679_s5 + $0x7f0] sm:$0xff] %v10805_v11 }
 0x624   :  { %v10809_v13 = vpop.eup %10808  ;;  %7585 = vst [vmem:[%s13679_s5 + $0x7e8] sm:$0xff] %v10807_v12 }
 0x625   :  { %7587 = vst [vmem:[%s13679_s5 + $0x7f8] sm:$0xff] %v10809_v13 }

</bundles_post_ra>
